<compile_context>
chip_gen: v6e
topology: v6e:2x2x1
jax: 0.10.0
libtpu: 0.0.40
codegen_flags: <defaults>
</compile_context>

<pallas_src>
import functools

import numpy as np
import jax
import jax.numpy as jnp
from jax.experimental import pallas as pl
from jax.experimental.pallas import tpu as pltpu


# Contraction depth targeted when grouping conv taps for the MXU.
# v6e / v7x MXU is 256 deep; v5e's is 128 (256 costs nothing extra there
# beyond a little more lane-concat work in the LHS scratch).
MXU_K_TARGET = 256


def _round_up(x, m):
    return ((x + m - 1) // m) * m


# ----------------------------------------------------------------------------
# In-kernel building blocks (all Python loops below are statically unrolled,
# so every pl.ds start/size is a compile-time constant).
# ----------------------------------------------------------------------------
def _conv_relu_grouped(slab_ref, w_ref, b_ref, out_ref, lhs_ref, k, cin, wp,
                       group):
    """out[r,:] = relu(bias + sum_{kh,kw} slab[r + kh*wp + kw, :] @ W[kh,kw]).

    The k*k taps are processed `group` at a time: the shifted slab slices of a
    group are lane-concatenated into a bf16 VMEM scratch so each MXU matmul
    has contraction depth group*cin (~MXU_K_TARGET).

    slab_ref: (R_slab, cin)   f32 zero-padded activations, rows = (n, ip, jp)
    w_ref:    (k*k*cin, cout) bf16 flattened HWIO conv weights
    b_ref:    (1, cout)       f32 bias
    out_ref:  (R_out, cout)   conv output; valid (n,i,j) at row n*hp*wp+i*wp+j
    lhs_ref:  (>=R_out, >=group*cin) bf16 grouped-LHS assembly scratch
    """
    r_out = out_ref.shape[0]
    acc = None
    for t0 in range(0, k * k, group):
        gsize = min(group, k * k - t0)
        if gsize == 1:
            kh, kw = divmod(t0, k)
            lhs = slab_ref[pl.ds(kh * wp + kw, r_out), :].astype(jnp.bfloat16)
        else:
            for t in range(gsize):
                kh, kw = divmod(t0 + t, k)
                lhs_ref[pl.ds(0, r_out), pl.ds(t * cin, cin)] = (
                    slab_ref[pl.ds(kh * wp + kw, r_out), :].astype(jnp.bfloat16))
            lhs = lhs_ref[pl.ds(0, r_out), pl.ds(0, gsize * cin)]
        wg = w_ref[pl.ds(t0 * cin, gsize * cin), :]
        part = jnp.dot(lhs, wg, preferred_element_type=jnp.float32)
        acc = part if acc is None else acc + part
    out_ref[...] = jnp.maximum(acc + b_ref[...], 0.0).astype(out_ref.dtype)


def _avgpool2x2_into_slab(src_ref, tmp_ref, dst_ref, nb, h, w,
                          wp_src, ss_src, wp_dst, ss_dst, pad_dst):
    """2x2 average pool of the valid rows of src_ref (conv output, layout
    row = n*ss_src + i*wp_src + j), written into the next layer's zero-padded
    flattened slab dst_ref (row = n*ss_dst + (i+pad)*wp_dst + (j+pad)).

    Vectorized: the height-pair and width-pair sums are two whole-slab VPU
    adds (the second one writes back into src_ref, which is dead afterwards);
    the per (sample, output-row) tail is one stride-2 row selection + one
    contiguous store.
    """
    ho, wo = h // 2, w // 2
    r_src = src_ref.shape[0]
    r_hs = r_src - wp_src
    # height pairs: tmp[r] = src[r] + src[r + wp_src]
    tmp_ref[...] = (src_ref[pl.ds(0, r_hs), :]
                    + src_ref[pl.ds(wp_src, r_hs), :])
    # width pairs (src rows are dead now, reuse them): src[r] = tmp[r] + tmp[r+1]
    src_ref[pl.ds(0, r_hs - 1), :] = (tmp_ref[pl.ds(0, r_hs - 1), :]
                                      + tmp_ref[pl.ds(1, r_hs - 1), :])
    # zero the destination slab once (covers the padded border; the valid
    # interior rows are overwritten just below)
    dst_ref[...] = jnp.zeros_like(dst_ref)
    for n in range(nb):
        for io in range(ho):
            r0 = n * ss_src + (2 * io) * wp_src               # static
            dst = n * ss_dst + (io + pad_dst) * wp_dst + pad_dst
            dst_ref[pl.ds(dst, wo), :] = (
                0.25 * src_ref[pl.ds(r0, wo, stride=2), :]
            ).astype(dst_ref.dtype)


def _make_kernel(nb, geoms):
    num_layers = len(geoms)

    def kernel(*refs):
        x0_ref = refs[0]
        conv_w = [refs[1 + 2 * l] for l in range(num_layers)]
        conv_b = [refs[2 + 2 * l] for l in range(num_layers)]
        s_ref = refs[1 + 2 * num_layers]
        wfc_ref = refs[2 + 2 * num_layers]
        bfc_ref = refs[3 + 2 * num_layers]
        out_ref = refs[4 + 2 * num_layers]
        scratch = list(refs[5 + 2 * num_layers:])

        conv_refs, tmp_refs, slab_refs = [], [], []
        si = 0
        for l in range(num_layers):
            conv_refs.append(scratch[si]); si += 1
            if l < num_layers - 1:
                tmp_refs.append(scratch[si]); si += 1
                slab_refs.append(scratch[si]); si += 1
        lhs_ref = scratch[si] if num_layers > 1 else None

        # ---- layer 0: single fused im2col matmul (K = k0*k0*Cin0) -----------
        c0 = jnp.dot(x0_ref[...], conv_w[0][...],
                     preferred_element_type=jnp.float32)
        conv_refs[0][...] = jnp.maximum(
            c0 + conv_b[0][...], 0.0).astype(conv_refs[0].dtype)

        # ---- layers 1..L-1: pool previous output, grouped-tap conv ----------
        for l in range(1, num_layers):
            gp, g = geoms[l - 1], geoms[l]
            _avgpool2x2_into_slab(conv_refs[l - 1], tmp_refs[l - 1],
                                  slab_refs[l - 1], nb, gp["h"], gp["w"],
                                  gp["wp_out"], gp["ss_out"],
                                  g["wp"], g["hp"] * g["wp"], g["pad"])
            _conv_relu_grouped(slab_refs[l - 1], conv_w[l], conv_b[l],
                               conv_refs[l], lhs_ref,
                               g["k"], g["cin"], g["wp"], g["group"])

        # ---- head: AvgPool2d(2) + AdaptiveAvgPool2d(1) == global mean over
        #      the last conv output, done with a constant averaging matrix on
        #      the MXU and fused with the Linear -----------------------------
        feat = jnp.dot(s_ref[...], conv_refs[-1][...],
                       preferred_element_type=jnp.float32)       # (nb, C_last)
        logits = jnp.dot(feat, wfc_ref[...],
                         preferred_element_type=jnp.float32) + bfc_ref[...]
        out_ref[0] = logits.astype(out_ref.dtype)

    return kernel


# ----------------------------------------------------------------------------
# Wrapper: builds geometry, the layer-0 im2col LHS, the head averaging matrix,
# and the single pallas_call (grid = batch chunks, "parallel").
# ----------------------------------------------------------------------------
def block_forward(x_nchw, conv_params, fc_w, fc_b, batch_chunk=1):
    n, cin0, h0, w0 = (int(d) for d in x_nchw.shape)
    num_layers = len(conv_params)
    num_classes = int(fc_w.shape[-1])
    assert n % batch_chunk == 0, "batch must divide evenly into chunks"
    nb = batch_chunk
    num_chunks = n // nb

    # -------------------------------------------------------------- geometry
    geoms = []
    h, w = h0, w0
    for l, (wl, _) in enumerate(conv_params):
        k = int(wl.shape[0]); pad = k // 2
        cin, cout = int(wl.shape[2]), int(wl.shape[3])
        assert h % 2 == 0 and w % 2 == 0, "AvgPool2d(2) needs even spatial dims"
        g = dict(k=k, pad=pad, cin=cin, cout=cout, h=h, w=w)
        if l == 0:
            # layer-0 output is stored compactly: row = n*h*w + i*w + j
            g.update(wp_out=w, ss_out=h * w, r_out=nb * h * w)
        else:
            hp = h + 2 * pad
            wp = _round_up(w + 2 * pad, 8)            # 8-aligned row stride
            r_slab = nb * hp * wp
            g.update(hp=hp, wp=wp, r_slab=r_slab,
                     wp_out=wp, ss_out=hp * wp,
                     r_out=r_slab - (k - 1) * (wp + 1),
                     group=min(k * k, max(1, MXU_K_TARGET // cin)))
        geoms.append(g)
        h, w = h // 2, w // 2                         # AvgPool2d(2) every layer

    # ---------------------------------------------- layer-0 im2col (host side)
    g0 = geoms[0]
    k0, p0 = g0["k"], g0["pad"]
    k0c = k0 * k0 * cin0
    k0c_pad = _round_up(k0c, 8)
    x_nhwc = jnp.transpose(x_nchw, (0, 2, 3, 1)).astype(jnp.float32)
    x_pad = jnp.pad(x_nhwc, ((0, 0), (p0, p0), (p0, p0), (0, 0)))
    cols = [x_pad[:, kh:kh + h0, kw:kw + w0, :]
            for kh in range(k0) for kw in range(k0)]
    x0 = jnp.concatenate(cols, axis=-1).reshape(n * h0 * w0, k0c)
    x0 = jnp.pad(x0, ((0, 0), (0, k0c_pad - k0c))).astype(jnp.bfloat16)

    inputs = [x0]
    in_specs = [pl.BlockSpec((nb * h0 * w0, k0c_pad), lambda i: (i, 0))]

    # ------------------------------------------------------------ conv weights
    for l, (wl, bl) in enumerate(conv_params):
        g = geoms[l]
        wf = jnp.reshape(wl, (g["k"] * g["k"] * g["cin"], g["cout"]))
        if l == 0 and k0c_pad != k0c:
            wf = jnp.pad(wf, ((0, k0c_pad - k0c), (0, 0)))
        wf = wf.astype(jnp.bfloat16)
        b2 = jnp.reshape(bl, (1, g["cout"])).astype(jnp.float32)
        inputs += [wf, b2]
        in_specs += [pl.BlockSpec(wf.shape, lambda i: (0, 0)),
                     pl.BlockSpec(b2.shape, lambda i: (0, 0))]

    # ---- head averaging matrix (AvgPool2d(2)+AdaptiveAvgPool2d(1) == global
    #      mean over the last conv layer's valid rows; chunk-local layout) ----
    gl = geoms[-1]
    s_np = np.zeros((nb, gl["r_out"]), np.float32)
    inv = 1.0 / float(gl["h"] * gl["w"])
    for b in range(nb):
        for i in range(gl["h"]):
            for j in range(gl["w"]):
                s_np[b, b * gl["ss_out"] + i * gl["wp_out"] + j] = inv
    s_mat = jnp.asarray(s_np, jnp.bfloat16)
    wfc = fc_w.astype(jnp.float32)
    bfc = jnp.reshape(fc_b, (1, num_classes)).astype(jnp.float32)
    inputs += [s_mat, wfc, bfc]
    in_specs += [pl.BlockSpec(s_mat.shape, lambda i: (0, 0)),
                 pl.BlockSpec(wfc.shape, lambda i: (0, 0)),
                 pl.BlockSpec(bfc.shape, lambda i: (0, 0))]

    # ------------------------------------------------------------- VMEM scratch
    scratch_shapes = []
    for l in range(num_layers):
        g = geoms[l]
        last = (l == num_layers - 1)
        # conv outputs feeding pooling stay f32 (strided reads + reuse as the
        # width-sum buffer); the last one feeds the head matmul -> bf16.
        scratch_shapes.append(pltpu.VMEM(
            (g["r_out"], g["cout"]), jnp.bfloat16 if last else jnp.float32))
        if not last:
            g2 = geoms[l + 1]
            scratch_shapes.append(pltpu.VMEM(
                (g["r_out"] - g["wp_out"], g["cout"]), jnp.float32))   # pool tmp
            scratch_shapes.append(pltpu.VMEM(
                (g2["r_slab"], g["cout"]), jnp.float32))               # next slab
    if num_layers > 1:
        lhs_rows = max(geoms[l]["r_out"] for l in range(1, num_layers))
        lhs_cols = max(geoms[l]["group"] * geoms[l]["cin"]
                       for l in range(1, num_layers))
        scratch_shapes.append(pltpu.VMEM((lhs_rows, lhs_cols), jnp.bfloat16))

    kernel = _make_kernel(nb, geoms)
    out = pl.pallas_call(
        kernel,
        out_shape=jax.ShapeDtypeStruct((num_chunks, nb, num_classes),
                                       jnp.float32),
        grid=(num_chunks,),
        in_specs=in_specs,
        out_specs=pl.BlockSpec((1, nb, num_classes), lambda i: (i, 0, 0)),
        scratch_shapes=scratch_shapes,
        compiler_params=pltpu.CompilerParams(
            dimension_semantics=("parallel",),   # batch chunks -> both v7x TCs
            vmem_limit_bytes=32 * 1024 * 1024),
    )(*inputs)
    return out.reshape(n, num_classes)


# ----------------------------------------------------------------------------
# Module equivalent
# ----------------------------------------------------------------------------
class BlockPallas:
    def __init__(self, num_classes, in_channels=3,
                 hidden_dims=(64, 128, 256), kernel_sizes=(3, 5, 3),
                 batch_chunk=1):
        key = jax.random.PRNGKey(42)
        conv_params = []
        cin = in_channels
        for hd, ks in zip(hidden_dims, kernel_sizes):
            key, kw_, kb_ = jax.random.split(key, 3)
            fan_in = cin * ks * ks
            w = jax.random.normal(kw_, (ks, ks, cin, hd), jnp.float32) \
                * (1.0 / fan_in) ** 0.5
            b = jax.random.normal(kb_, (hd,), jnp.float32) * 0.01
            conv_params.append((w, b))
            cin = hd
        key, kw_, kb_ = jax.random.split(key, 3)
        self.conv_params = tuple(conv_params)
        self.fc_w = jax.random.normal(kw_, (cin, num_classes), jnp.float32) \
            * (1.0 / cin) ** 0.5
        self.fc_b = jax.random.normal(kb_, (num_classes,), jnp.float32) * 0.01
        self._forward = jax.jit(
            functools.partial(block_forward, batch_chunk=batch_chunk))

    def __call__(self, x_nchw):
        return self._forward(x_nchw, self.conv_params, self.fc_w, self.fc_b)


# ----------------------------------------------------------------------------
# Pure-JAX reference (f32) for correctness check
# ----------------------------------------------------------------------------
def reference_forward(x_nchw, model):
    x = x_nchw
    for w, b in model.conv_params:
        x = jax.lax.conv_general_dilated(
            x, w, window_strides=(1, 1), padding="SAME",
            dimension_numbers=("NCHW", "HWIO", "NCHW"))
        x = jnp.maximum(x + b[None, :, None, None], 0.0)
        n, c, h, ww = x.shape
        x = x.reshape(n, c, h // 2, 2, ww // 2, 2).mean(axis=(3, 5))
    feat = x.mean(axis=(2, 3))                       # AdaptiveAvgPool2d(1)
    return feat @ model.fc_w + model.fc_b


# ----------------------------------------------------------------------------
if __name__ == "__main__":
    num_classes = 10
    key = jax.random.PRNGKey(0)
    x = jax.random.normal(key, (2, 3, 16, 16), jnp.float32)   # NCHW, like torch

    model = BlockPallas(num_classes=num_classes, batch_chunk=1)
    out = jax.block_until_ready(model(x))

    assert out.shape == (2, num_classes)

    ref = reference_forward(x, model)
    assert jnp.allclose(out, ref, rtol=5e-2, atol=5e-2), (
        "mismatch", np.asarray(out), np.asarray(ref))

    print("KERNEL_OK")
</pallas_src>

<mosaic_0001>
module attributes {stable_mosaic.version = 11 : i64} {
  func.func @kernel(%arg0: i32, %arg1: memref<256x32xbf16, #tpu.memory_space<vmem>>, %arg2: memref<32x64xbf16, #tpu.memory_space<vmem>>, %arg3: memref<1x64xf32, #tpu.memory_space<vmem>>, %arg4: memref<1600x128xbf16, #tpu.memory_space<vmem>>, %arg5: memref<1x128xf32, #tpu.memory_space<vmem>>, %arg6: memref<1152x256xbf16, #tpu.memory_space<vmem>>, %arg7: memref<1x256xf32, #tpu.memory_space<vmem>>, %arg8: memref<1x30xbf16, #tpu.memory_space<vmem>>, %arg9: memref<256x10xf32, #tpu.memory_space<vmem>>, %arg10: memref<1x10xf32, #tpu.memory_space<vmem>>, %arg11: memref<1x1x10xf32, #tpu.memory_space<vmem>>, %arg12: memref<256x64xf32, #tpu.memory_space<vmem>>, %arg13: memref<240x64xf32, #tpu.memory_space<vmem>>, %arg14: memref<192x64xf32, #tpu.memory_space<vmem>>, %arg15: memref<124x128xf32, #tpu.memory_space<vmem>>, %arg16: memref<108x128xf32, #tpu.memory_space<vmem>>, %arg17: memref<48x128xf32, #tpu.memory_space<vmem>>, %arg18: memref<30x256xbf16, #tpu.memory_space<vmem>>, %arg19: memref<124x256xbf16, #tpu.memory_space<vmem>>) attributes {dimension_semantics = [#tpu.dimension_semantics<parallel>], iteration_bounds = array<i64: 2>, scalar_prefetch = 0 : i64, scratch_operands = 8 : i64, tpu.core_type = #tpu.core_type<tc>, window_params = [{transform_indices = @transform_0, window_bounds = array<i64: 256, 32>}, {pipeline_mode = #tpu.pipeline_mode<synchronous>, transform_indices = @transform_1, window_bounds = array<i64: 32, 64>}, {pipeline_mode = #tpu.pipeline_mode<synchronous>, transform_indices = @transform_2, window_bounds = array<i64: 1, 64>}, {pipeline_mode = #tpu.pipeline_mode<synchronous>, transform_indices = @transform_3, window_bounds = array<i64: 1600, 128>}, {pipeline_mode = #tpu.pipeline_mode<synchronous>, transform_indices = @transform_4, window_bounds = array<i64: 1, 128>}, {pipeline_mode = #tpu.pipeline_mode<synchronous>, transform_indices = @transform_5, window_bounds = array<i64: 1152, 256>}, {pipeline_mode = #tpu.pipeline_mode<synchronous>, transform_indices = @transform_6, window_bounds = array<i64: 1, 256>}, {pipeline_mode = #tpu.pipeline_mode<synchronous>, transform_indices = @transform_7, window_bounds = array<i64: 1, 30>}, {pipeline_mode = #tpu.pipeline_mode<synchronous>, transform_indices = @transform_8, window_bounds = array<i64: 256, 10>}, {pipeline_mode = #tpu.pipeline_mode<synchronous>, transform_indices = @transform_9, window_bounds = array<i64: 1, 10>}, {transform_indices = @transform_10, window_bounds = array<i64: 1, 1, 10>}]} {
    %c0 = arith.constant 0 : index
    %c0_0 = arith.constant 0 : index
    %0 = vector.load %arg1[%c0, %c0_0] : memref<256x32xbf16, #tpu.memory_space<vmem>>, vector<256x32xbf16>
    %c0_1 = arith.constant 0 : index
    %c0_2 = arith.constant 0 : index
    %1 = vector.load %arg2[%c0_1, %c0_2] : memref<32x64xbf16, #tpu.memory_space<vmem>>, vector<32x64xbf16>
    %cst = arith.constant dense<0.000000e+00> : vector<256x64xf32>
    %2 = tpu.matmul %0, %1, %cst {dimension_numbers = #tpu.dot_dimension_numbers<[1], [0], [0], [1], [0, 0, 1, 1], [], []>} : vector<256x32xbf16>, vector<32x64xbf16>, vector<256x64xf32> -> vector<256x64xf32>
    %c0_3 = arith.constant 0 : index
    %c0_4 = arith.constant 0 : index
    %3 = vector.load %arg3[%c0_3, %c0_4] : memref<1x64xf32, #tpu.memory_space<vmem>>, vector<1x64xf32>
    %4 = vector.broadcast %3 : vector<1x64xf32> to vector<256x64xf32>
    %5 = arith.addf %2, %4 : vector<256x64xf32>
    %cst_5 = arith.constant 0.000000e+00 : f32
    %6 = vector.broadcast %cst_5 : f32 to vector<256x64xf32>
    %7 = arith.maximumf %5, %6 : vector<256x64xf32>
    %c0_6 = arith.constant 0 : index
    %c0_7 = arith.constant 0 : index
    %8 = vector.load %arg12[%c0_6, %c0_7] : memref<256x64xf32, #tpu.memory_space<vmem>>, vector<256x64xf32>
    tpu.vector_store %arg12[%c0_6, %c0_7], %7 {strides = array<i32>} : memref<256x64xf32, #tpu.memory_space<vmem>>, vector<256x64xf32>,
    %c0_8 = arith.constant 0 : index
    %c0_9 = arith.constant 0 : index
    %9 = vector.load %arg12[%c0_8, %c0_9] : memref<256x64xf32, #tpu.memory_space<vmem>>, vector<240x64xf32>
    %c16 = arith.constant 16 : index
    %c0_10 = arith.constant 0 : index
    %10 = vector.load %arg12[%c16, %c0_10] : memref<256x64xf32, #tpu.memory_space<vmem>>, vector<240x64xf32>
    %11 = arith.addf %9, %10 : vector<240x64xf32>
    %c0_11 = arith.constant 0 : index
    %c0_12 = arith.constant 0 : index
    %12 = vector.load %arg13[%c0_11, %c0_12] : memref<240x64xf32, #tpu.memory_space<vmem>>, vector<240x64xf32>
    tpu.vector_store %arg13[%c0_11, %c0_12], %11 {strides = array<i32>} : memref<240x64xf32, #tpu.memory_space<vmem>>, vector<240x64xf32>,
    %c0_13 = arith.constant 0 : index
    %c0_14 = arith.constant 0 : index
    %13 = vector.load %arg13[%c0_13, %c0_14] : memref<240x64xf32, #tpu.memory_space<vmem>>, vector<239x64xf32>
    %c1 = arith.constant 1 : index
    %c0_15 = arith.constant 0 : index
    %14 = vector.load %arg13[%c1, %c0_15] : memref<240x64xf32, #tpu.memory_space<vmem>>, vector<239x64xf32>
    %15 = arith.addf %13, %14 : vector<239x64xf32>
    %c0_16 = arith.constant 0 : index
    %c0_17 = arith.constant 0 : index
    %16 = vector.load %arg12[%c0_16, %c0_17] : memref<256x64xf32, #tpu.memory_space<vmem>>, vector<239x64xf32>
    tpu.vector_store %arg12[%c0_16, %c0_17], %15 {strides = array<i32>} : memref<256x64xf32, #tpu.memory_space<vmem>>, vector<239x64xf32>,
    %cst_18 = arith.constant 0.000000e+00 : f32
    %17 = vector.broadcast %cst_18 : f32 to vector<192x64xf32>
    %c0_19 = arith.constant 0 : index
    %c0_20 = arith.constant 0 : index
    %18 = vector.load %arg14[%c0_19, %c0_20] : memref<192x64xf32, #tpu.memory_space<vmem>>, vector<192x64xf32>
    tpu.vector_store %arg14[%c0_19, %c0_20], %17 {strides = array<i32>} : memref<192x64xf32, #tpu.memory_space<vmem>>, vector<192x64xf32>,
    %c0_21 = arith.constant 0 : index
    %c0_22 = arith.constant 0 : index
    %19 = tpu.strided_load %arg12[%c0_21, %c0_22] {strides = array<i32: 2, 1>} : memref<256x64xf32, #tpu.memory_space<vmem>>, vector<8x64xf32>
    %cst_23 = arith.constant 2.500000e-01 : f32
    %20 = vector.broadcast %cst_23 : f32 to vector<8x64xf32>
    %21 = arith.mulf %20, %19 : vector<8x64xf32>
    %c34 = arith.constant 34 : index
    %c0_24 = arith.constant 0 : index
    %22 = vector.load %arg14[%c34, %c0_24] : memref<192x64xf32, #tpu.memory_space<vmem>>, vector<8x64xf32>
    tpu.vector_store %arg14[%c34, %c0_24], %21 {strides = array<i32>} : memref<192x64xf32, #tpu.memory_space<vmem>>, vector<8x64xf32>,
    %c32 = arith.constant 32 : index
    %c0_25 = arith.constant 0 : index
    %23 = tpu.strided_load %arg12[%c32, %c0_25] {strides = array<i32: 2, 1>} : memref<256x64xf32, #tpu.memory_space<vmem>>, vector<8x64xf32>
    %cst_26 = arith.constant 2.500000e-01 : f32
    %24 = vector.broadcast %cst_26 : f32 to vector<8x64xf32>
    %25 = arith.mulf %24, %23 : vector<8x64xf32>
    %c50 = arith.constant 50 : index
    %c0_27 = arith.constant 0 : index
    %26 = vector.load %arg14[%c50, %c0_27] : memref<192x64xf32, #tpu.memory_space<vmem>>, vector<8x64xf32>
    tpu.vector_store %arg14[%c50, %c0_27], %25 {strides = array<i32>} : memref<192x64xf32, #tpu.memory_space<vmem>>, vector<8x64xf32>,
    %c64 = arith.constant 64 : index
    %c0_28 = arith.constant 0 : index
    %27 = tpu.strided_load %arg12[%c64, %c0_28] {strides = array<i32: 2, 1>} : memref<256x64xf32, #tpu.memory_space<vmem>>, vector<8x64xf32>
    %cst_29 = arith.constant 2.500000e-01 : f32
    %28 = vector.broadcast %cst_29 : f32 to vector<8x64xf32>
    %29 = arith.mulf %28, %27 : vector<8x64xf32>
    %c66 = arith.constant 66 : index
    %c0_30 = arith.constant 0 : index
    %30 = vector.load %arg14[%c66, %c0_30] : memref<192x64xf32, #tpu.memory_space<vmem>>, vector<8x64xf32>
    tpu.vector_store %arg14[%c66, %c0_30], %29 {strides = array<i32>} : memref<192x64xf32, #tpu.memory_space<vmem>>, vector<8x64xf32>,
    %c96 = arith.constant 96 : index
    %c0_31 = arith.constant 0 : index
    %31 = tpu.strided_load %arg12[%c96, %c0_31] {strides = array<i32: 2, 1>} : memref<256x64xf32, #tpu.memory_space<vmem>>, vector<8x64xf32>
    %cst_32 = arith.constant 2.500000e-01 : f32
    %32 = vector.broadcast %cst_32 : f32 to vector<8x64xf32>
    %33 = arith.mulf %32, %31 : vector<8x64xf32>
    %c82 = arith.constant 82 : index
    %c0_33 = arith.constant 0 : index
    %34 = vector.load %arg14[%c82, %c0_33] : memref<192x64xf32, #tpu.memory_space<vmem>>, vector<8x64xf32>
    tpu.vector_store %arg14[%c82, %c0_33], %33 {strides = array<i32>} : memref<192x64xf32, #tpu.memory_space<vmem>>, vector<8x64xf32>,
    %c128 = arith.constant 128 : index
    %c0_34 = arith.constant 0 : index
    %35 = tpu.strided_load %arg12[%c128, %c0_34] {strides = array<i32: 2, 1>} : memref<256x64xf32, #tpu.memory_space<vmem>>, vector<8x64xf32>
    %cst_35 = arith.constant 2.500000e-01 : f32
    %36 = vector.broadcast %cst_35 : f32 to vector<8x64xf32>
    %37 = arith.mulf %36, %35 : vector<8x64xf32>
    %c98 = arith.constant 98 : index
    %c0_36 = arith.constant 0 : index
    %38 = vector.load %arg14[%c98, %c0_36] : memref<192x64xf32, #tpu.memory_space<vmem>>, vector<8x64xf32>
    tpu.vector_store %arg14[%c98, %c0_36], %37 {strides = array<i32>} : memref<192x64xf32, #tpu.memory_space<vmem>>, vector<8x64xf32>,
    %c160 = arith.constant 160 : index
    %c0_37 = arith.constant 0 : index
    %39 = tpu.strided_load %arg12[%c160, %c0_37] {strides = array<i32: 2, 1>} : memref<256x64xf32, #tpu.memory_space<vmem>>, vector<8x64xf32>
    %cst_38 = arith.constant 2.500000e-01 : f32
    %40 = vector.broadcast %cst_38 : f32 to vector<8x64xf32>
    %41 = arith.mulf %40, %39 : vector<8x64xf32>
    %c114 = arith.constant 114 : index
    %c0_39 = arith.constant 0 : index
    %42 = vector.load %arg14[%c114, %c0_39] : memref<192x64xf32, #tpu.memory_space<vmem>>, vector<8x64xf32>
    tpu.vector_store %arg14[%c114, %c0_39], %41 {strides = array<i32>} : memref<192x64xf32, #tpu.memory_space<vmem>>, vector<8x64xf32>,
    %c192 = arith.constant 192 : index
    %c0_40 = arith.constant 0 : index
    %43 = tpu.strided_load %arg12[%c192, %c0_40] {strides = array<i32: 2, 1>} : memref<256x64xf32, #tpu.memory_space<vmem>>, vector<8x64xf32>
    %cst_41 = arith.constant 2.500000e-01 : f32
    %44 = vector.broadcast %cst_41 : f32 to vector<8x64xf32>
    %45 = arith.mulf %44, %43 : vector<8x64xf32>
    %c130 = arith.constant 130 : index
    %c0_42 = arith.constant 0 : index
    %46 = vector.load %arg14[%c130, %c0_42] : memref<192x64xf32, #tpu.memory_space<vmem>>, vector<8x64xf32>
    tpu.vector_store %arg14[%c130, %c0_42], %45 {strides = array<i32>} : memref<192x64xf32, #tpu.memory_space<vmem>>, vector<8x64xf32>,
    %c224 = arith.constant 224 : index
    %c0_43 = arith.constant 0 : index
    %47 = tpu.strided_load %arg12[%c224, %c0_43] {strides = array<i32: 2, 1>} : memref<256x64xf32, #tpu.memory_space<vmem>>, vector<8x64xf32>
    %cst_44 = arith.constant 2.500000e-01 : f32
    %48 = vector.broadcast %cst_44 : f32 to vector<8x64xf32>
    %49 = arith.mulf %48, %47 : vector<8x64xf32>
    %c146 = arith.constant 146 : index
    %c0_45 = arith.constant 0 : index
    %50 = vector.load %arg14[%c146, %c0_45] : memref<192x64xf32, #tpu.memory_space<vmem>>, vector<8x64xf32>
    tpu.vector_store %arg14[%c146, %c0_45], %49 {strides = array<i32>} : memref<192x64xf32, #tpu.memory_space<vmem>>, vector<8x64xf32>,
    %c0_46 = arith.constant 0 : index
    %c0_47 = arith.constant 0 : index
    %51 = vector.load %arg14[%c0_46, %c0_47] : memref<192x64xf32, #tpu.memory_space<vmem>>, vector<124x64xf32>
    %52 = arith.truncf %51 : vector<124x64xf32> to vector<124x64xbf16>
    %c0_48 = arith.constant 0 : index
    %c0_49 = arith.constant 0 : index
    %53 = vector.load %arg19[%c0_48, %c0_49] : memref<124x256xbf16, #tpu.memory_space<vmem>>, vector<124x64xbf16>
    tpu.vector_store %arg19[%c0_48, %c0_49], %52 {strides = array<i32>} : memref<124x256xbf16, #tpu.memory_space<vmem>>, vector<124x64xbf16>,
    %c1_50 = arith.constant 1 : index
    %c0_51 = arith.constant 0 : index
    %54 = vector.load %arg14[%c1_50, %c0_51] : memref<192x64xf32, #tpu.memory_space<vmem>>, vector<124x64xf32>
    %55 = arith.truncf %54 : vector<124x64xf32> to vector<124x64xbf16>
    %c0_52 = arith.constant 0 : index
    %c64_53 = arith.constant 64 : index
    %56 = vector.load %arg19[%c0_52, %c64_53] : memref<124x256xbf16, #tpu.memory_space<vmem>>, vector<124x64xbf16>
    tpu.vector_store %arg19[%c0_52, %c64_53], %55 {strides = array<i32>} : memref<124x256xbf16, #tpu.memory_space<vmem>>, vector<124x64xbf16>,
    %c2 = arith.constant 2 : index
    %c0_54 = arith.constant 0 : index
    %57 = vector.load %arg14[%c2, %c0_54] : memref<192x64xf32, #tpu.memory_space<vmem>>, vector<124x64xf32>
    %58 = arith.truncf %57 : vector<124x64xf32> to vector<124x64xbf16>
    %c0_55 = arith.constant 0 : index
    %c128_56 = arith.constant 128 : index
    %59 = vector.load %arg19[%c0_55, %c128_56] : memref<124x256xbf16, #tpu.memory_space<vmem>>, vector<124x64xbf16>
    tpu.vector_store %arg19[%c0_55, %c128_56], %58 {strides = array<i32>} : memref<124x256xbf16, #tpu.memory_space<vmem>>, vector<124x64xbf16>,
    %c3 = arith.constant 3 : index
    %c0_57 = arith.constant 0 : index
    %60 = vector.load %arg14[%c3, %c0_57] : memref<192x64xf32, #tpu.memory_space<vmem>>, vector<124x64xf32>
    %61 = arith.truncf %60 : vector<124x64xf32> to vector<124x64xbf16>
    %c0_58 = arith.constant 0 : index
    %c192_59 = arith.constant 192 : index
    %62 = vector.load %arg19[%c0_58, %c192_59] : memref<124x256xbf16, #tpu.memory_space<vmem>>, vector<124x64xbf16>
    tpu.vector_store %arg19[%c0_58, %c192_59], %61 {strides = array<i32>} : memref<124x256xbf16, #tpu.memory_space<vmem>>, vector<124x64xbf16>,
    %c0_60 = arith.constant 0 : index
    %c0_61 = arith.constant 0 : index
    %63 = vector.load %arg19[%c0_60, %c0_61] : memref<124x256xbf16, #tpu.memory_space<vmem>>, vector<124x256xbf16>
    %c0_62 = arith.constant 0 : index
    %c0_63 = arith.constant 0 : index
    %64 = vector.load %arg4[%c0_62, %c0_63] : memref<1600x128xbf16, #tpu.memory_space<vmem>>, vector<256x128xbf16>
    %cst_64 = arith.constant dense<0.000000e+00> : vector<124x128xf32>
    %65 = tpu.matmul %63, %64, %cst_64 {dimension_numbers = #tpu.dot_dimension_numbers<[1], [0], [0], [1], [0, 0, 1, 1], [], []>} : vector<124x256xbf16>, vector<256x128xbf16>, vector<124x128xf32> -> vector<124x128xf32>
    %c4 = arith.constant 4 : index
    %c0_65 = arith.constant 0 : index
    %66 = vector.load %arg14[%c4, %c0_65] : memref<192x64xf32, #tpu.memory_space<vmem>>, vector<124x64xf32>
    %67 = arith.truncf %66 : vector<124x64xf32> to vector<124x64xbf16>
    %c0_66 = arith.constant 0 : index
    %c0_67 = arith.constant 0 : index
    %68 = vector.load %arg19[%c0_66, %c0_67] : memref<124x256xbf16, #tpu.memory_space<vmem>>, vector<124x64xbf16>
    tpu.vector_store %arg19[%c0_66, %c0_67], %67 {strides = array<i32>} : memref<124x256xbf16, #tpu.memory_space<vmem>>, vector<124x64xbf16>,
    %c16_68 = arith.constant 16 : index
    %c0_69 = arith.constant 0 : index
    %69 = vector.load %arg14[%c16_68, %c0_69] : memref<192x64xf32, #tpu.memory_space<vmem>>, vector<124x64xf32>
    %70 = arith.truncf %69 : vector<124x64xf32> to vector<124x64xbf16>
    %c0_70 = arith.constant 0 : index
    %c64_71 = arith.constant 64 : index
    %71 = vector.load %arg19[%c0_70, %c64_71] : memref<124x256xbf16, #tpu.memory_space<vmem>>, vector<124x64xbf16>
    tpu.vector_store %arg19[%c0_70, %c64_71], %70 {strides = array<i32>} : memref<124x256xbf16, #tpu.memory_space<vmem>>, vector<124x64xbf16>,
    %c17 = arith.constant 17 : index
    %c0_72 = arith.constant 0 : index
    %72 = vector.load %arg14[%c17, %c0_72] : memref<192x64xf32, #tpu.memory_space<vmem>>, vector<124x64xf32>
    %73 = arith.truncf %72 : vector<124x64xf32> to vector<124x64xbf16>
    %c0_73 = arith.constant 0 : index
    %c128_74 = arith.constant 128 : index
    %74 = vector.load %arg19[%c0_73, %c128_74] : memref<124x256xbf16, #tpu.memory_space<vmem>>, vector<124x64xbf16>
    tpu.vector_store %arg19[%c0_73, %c128_74], %73 {strides = array<i32>} : memref<124x256xbf16, #tpu.memory_space<vmem>>, vector<124x64xbf16>,
    %c18 = arith.constant 18 : index
    %c0_75 = arith.constant 0 : index
    %75 = vector.load %arg14[%c18, %c0_75] : memref<192x64xf32, #tpu.memory_space<vmem>>, vector<124x64xf32>
    %76 = arith.truncf %75 : vector<124x64xf32> to vector<124x64xbf16>
    %c0_76 = arith.constant 0 : index
    %c192_77 = arith.constant 192 : index
    %77 = vector.load %arg19[%c0_76, %c192_77] : memref<124x256xbf16, #tpu.memory_space<vmem>>, vector<124x64xbf16>
    tpu.vector_store %arg19[%c0_76, %c192_77], %76 {strides = array<i32>} : memref<124x256xbf16, #tpu.memory_space<vmem>>, vector<124x64xbf16>,
    %c0_78 = arith.constant 0 : index
    %c0_79 = arith.constant 0 : index
    %78 = vector.load %arg19[%c0_78, %c0_79] : memref<124x256xbf16, #tpu.memory_space<vmem>>, vector<124x256xbf16>
    %c256 = arith.constant 256 : index
    %c0_80 = arith.constant 0 : index
    %79 = vector.load %arg4[%c256, %c0_80] : memref<1600x128xbf16, #tpu.memory_space<vmem>>, vector<256x128xbf16>
    %cst_81 = arith.constant dense<0.000000e+00> : vector<124x128xf32>
    %80 = tpu.matmul %78, %79, %cst_81 {dimension_numbers = #tpu.dot_dimension_numbers<[1], [0], [0], [1], [0, 0, 1, 1], [], []>} : vector<124x256xbf16>, vector<256x128xbf16>, vector<124x128xf32> -> vector<124x128xf32>
    %81 = arith.addf %65, %80 : vector<124x128xf32>
    %c19 = arith.constant 19 : index
    %c0_82 = arith.constant 0 : index
    %82 = vector.load %arg14[%c19, %c0_82] : memref<192x64xf32, #tpu.memory_space<vmem>>, vector<124x64xf32>
    %83 = arith.truncf %82 : vector<124x64xf32> to vector<124x64xbf16>
    %c0_83 = arith.constant 0 : index
    %c0_84 = arith.constant 0 : index
    %84 = vector.load %arg19[%c0_83, %c0_84] : memref<124x256xbf16, #tpu.memory_space<vmem>>, vector<124x64xbf16>
    tpu.vector_store %arg19[%c0_83, %c0_84], %83 {strides = array<i32>} : memref<124x256xbf16, #tpu.memory_space<vmem>>, vector<124x64xbf16>,
    %c20 = arith.constant 20 : index
    %c0_85 = arith.constant 0 : index
    %85 = vector.load %arg14[%c20, %c0_85] : memref<192x64xf32, #tpu.memory_space<vmem>>, vector<124x64xf32>
    %86 = arith.truncf %85 : vector<124x64xf32> to vector<124x64xbf16>
    %c0_86 = arith.constant 0 : index
    %c64_87 = arith.constant 64 : index
    %87 = vector.load %arg19[%c0_86, %c64_87] : memref<124x256xbf16, #tpu.memory_space<vmem>>, vector<124x64xbf16>
    tpu.vector_store %arg19[%c0_86, %c64_87], %86 {strides = array<i32>} : memref<124x256xbf16, #tpu.memory_space<vmem>>, vector<124x64xbf16>,
    %c32_88 = arith.constant 32 : index
    %c0_89 = arith.constant 0 : index
    %88 = vector.load %arg14[%c32_88, %c0_89] : memref<192x64xf32, #tpu.memory_space<vmem>>, vector<124x64xf32>
    %89 = arith.truncf %88 : vector<124x64xf32> to vector<124x64xbf16>
    %c0_90 = arith.constant 0 : index
    %c128_91 = arith.constant 128 : index
    %90 = vector.load %arg19[%c0_90, %c128_91] : memref<124x256xbf16, #tpu.memory_space<vmem>>, vector<124x64xbf16>
    tpu.vector_store %arg19[%c0_90, %c128_91], %89 {strides = array<i32>} : memref<124x256xbf16, #tpu.memory_space<vmem>>, vector<124x64xbf16>,
    %c33 = arith.constant 33 : index
    %c0_92 = arith.constant 0 : index
    %91 = vector.load %arg14[%c33, %c0_92] : memref<192x64xf32, #tpu.memory_space<vmem>>, vector<124x64xf32>
    %92 = arith.truncf %91 : vector<124x64xf32> to vector<124x64xbf16>
    %c0_93 = arith.constant 0 : index
    %c192_94 = arith.constant 192 : index
    %93 = vector.load %arg19[%c0_93, %c192_94] : memref<124x256xbf16, #tpu.memory_space<vmem>>, vector<124x64xbf16>
    tpu.vector_store %arg19[%c0_93, %c192_94], %92 {strides = array<i32>} : memref<124x256xbf16, #tpu.memory_space<vmem>>, vector<124x64xbf16>,
    %c0_95 = arith.constant 0 : index
    %c0_96 = arith.constant 0 : index
    %94 = vector.load %arg19[%c0_95, %c0_96] : memref<124x256xbf16, #tpu.memory_space<vmem>>, vector<124x256xbf16>
    %c512 = arith.constant 512 : index
    %c0_97 = arith.constant 0 : index
    %95 = vector.load %arg4[%c512, %c0_97] : memref<1600x128xbf16, #tpu.memory_space<vmem>>, vector<256x128xbf16>
    %cst_98 = arith.constant dense<0.000000e+00> : vector<124x128xf32>
    %96 = tpu.matmul %94, %95, %cst_98 {dimension_numbers = #tpu.dot_dimension_numbers<[1], [0], [0], [1], [0, 0, 1, 1], [], []>} : vector<124x256xbf16>, vector<256x128xbf16>, vector<124x128xf32> -> vector<124x128xf32>
    %97 = arith.addf %81, %96 : vector<124x128xf32>
    %c34_99 = arith.constant 34 : index
    %c0_100 = arith.constant 0 : index
    %98 = vector.load %arg14[%c34_99, %c0_100] : memref<192x64xf32, #tpu.memory_space<vmem>>, vector<124x64xf32>
    %99 = arith.truncf %98 : vector<124x64xf32> to vector<124x64xbf16>
    %c0_101 = arith.constant 0 : index
    %c0_102 = arith.constant 0 : index
    %100 = vector.load %arg19[%c0_101, %c0_102] : memref<124x256xbf16, #tpu.memory_space<vmem>>, vector<124x64xbf16>
    tpu.vector_store %arg19[%c0_101, %c0_102], %99 {strides = array<i32>} : memref<124x256xbf16, #tpu.memory_space<vmem>>, vector<124x64xbf16>,
    %c35 = arith.constant 35 : index
    %c0_103 = arith.constant 0 : index
    %101 = vector.load %arg14[%c35, %c0_103] : memref<192x64xf32, #tpu.memory_space<vmem>>, vector<124x64xf32>
    %102 = arith.truncf %101 : vector<124x64xf32> to vector<124x64xbf16>
    %c0_104 = arith.constant 0 : index
    %c64_105 = arith.constant 64 : index
    %103 = vector.load %arg19[%c0_104, %c64_105] : memref<124x256xbf16, #tpu.memory_space<vmem>>, vector<124x64xbf16>
    tpu.vector_store %arg19[%c0_104, %c64_105], %102 {strides = array<i32>} : memref<124x256xbf16, #tpu.memory_space<vmem>>, vector<124x64xbf16>,
    %c36 = arith.constant 36 : index
    %c0_106 = arith.constant 0 : index
    %104 = vector.load %arg14[%c36, %c0_106] : memref<192x64xf32, #tpu.memory_space<vmem>>, vector<124x64xf32>
    %105 = arith.truncf %104 : vector<124x64xf32> to vector<124x64xbf16>
    %c0_107 = arith.constant 0 : index
    %c128_108 = arith.constant 128 : index
    %106 = vector.load %arg19[%c0_107, %c128_108] : memref<124x256xbf16, #tpu.memory_space<vmem>>, vector<124x64xbf16>
    tpu.vector_store %arg19[%c0_107, %c128_108], %105 {strides = array<i32>} : memref<124x256xbf16, #tpu.memory_space<vmem>>, vector<124x64xbf16>,
    %c48 = arith.constant 48 : index
    %c0_109 = arith.constant 0 : index
    %107 = vector.load %arg14[%c48, %c0_109] : memref<192x64xf32, #tpu.memory_space<vmem>>, vector<124x64xf32>
    %108 = arith.truncf %107 : vector<124x64xf32> to vector<124x64xbf16>
    %c0_110 = arith.constant 0 : index
    %c192_111 = arith.constant 192 : index
    %109 = vector.load %arg19[%c0_110, %c192_111] : memref<124x256xbf16, #tpu.memory_space<vmem>>, vector<124x64xbf16>
    tpu.vector_store %arg19[%c0_110, %c192_111], %108 {strides = array<i32>} : memref<124x256xbf16, #tpu.memory_space<vmem>>, vector<124x64xbf16>,
    %c0_112 = arith.constant 0 : index
    %c0_113 = arith.constant 0 : index
    %110 = vector.load %arg19[%c0_112, %c0_113] : memref<124x256xbf16, #tpu.memory_space<vmem>>, vector<124x256xbf16>
    %c768 = arith.constant 768 : index
    %c0_114 = arith.constant 0 : index
    %111 = vector.load %arg4[%c768, %c0_114] : memref<1600x128xbf16, #tpu.memory_space<vmem>>, vector<256x128xbf16>
    %cst_115 = arith.constant dense<0.000000e+00> : vector<124x128xf32>
    %112 = tpu.matmul %110, %111, %cst_115 {dimension_numbers = #tpu.dot_dimension_numbers<[1], [0], [0], [1], [0, 0, 1, 1], [], []>} : vector<124x256xbf16>, vector<256x128xbf16>, vector<124x128xf32> -> vector<124x128xf32>
    %113 = arith.addf %97, %112 : vector<124x128xf32>
    %c49 = arith.constant 49 : index
    %c0_116 = arith.constant 0 : index
    %114 = vector.load %arg14[%c49, %c0_116] : memref<192x64xf32, #tpu.memory_space<vmem>>, vector<124x64xf32>
    %115 = arith.truncf %114 : vector<124x64xf32> to vector<124x64xbf16>
    %c0_117 = arith.constant 0 : index
    %c0_118 = arith.constant 0 : index
    %116 = vector.load %arg19[%c0_117, %c0_118] : memref<124x256xbf16, #tpu.memory_space<vmem>>, vector<124x64xbf16>
    tpu.vector_store %arg19[%c0_117, %c0_118], %115 {strides = array<i32>} : memref<124x256xbf16, #tpu.memory_space<vmem>>, vector<124x64xbf16>,
    %c50_119 = arith.constant 50 : index
    %c0_120 = arith.constant 0 : index
    %117 = vector.load %arg14[%c50_119, %c0_120] : memref<192x64xf32, #tpu.memory_space<vmem>>, vector<124x64xf32>
    %118 = arith.truncf %117 : vector<124x64xf32> to vector<124x64xbf16>
    %c0_121 = arith.constant 0 : index
    %c64_122 = arith.constant 64 : index
    %119 = vector.load %arg19[%c0_121, %c64_122] : memref<124x256xbf16, #tpu.memory_space<vmem>>, vector<124x64xbf16>
    tpu.vector_store %arg19[%c0_121, %c64_122], %118 {strides = array<i32>} : memref<124x256xbf16, #tpu.memory_space<vmem>>, vector<124x64xbf16>,
    %c51 = arith.constant 51 : index
    %c0_123 = arith.constant 0 : index
    %120 = vector.load %arg14[%c51, %c0_123] : memref<192x64xf32, #tpu.memory_space<vmem>>, vector<124x64xf32>
    %121 = arith.truncf %120 : vector<124x64xf32> to vector<124x64xbf16>
    %c0_124 = arith.constant 0 : index
    %c128_125 = arith.constant 128 : index
    %122 = vector.load %arg19[%c0_124, %c128_125] : memref<124x256xbf16, #tpu.memory_space<vmem>>, vector<124x64xbf16>
    tpu.vector_store %arg19[%c0_124, %c128_125], %121 {strides = array<i32>} : memref<124x256xbf16, #tpu.memory_space<vmem>>, vector<124x64xbf16>,
    %c52 = arith.constant 52 : index
    %c0_126 = arith.constant 0 : index
    %123 = vector.load %arg14[%c52, %c0_126] : memref<192x64xf32, #tpu.memory_space<vmem>>, vector<124x64xf32>
    %124 = arith.truncf %123 : vector<124x64xf32> to vector<124x64xbf16>
    %c0_127 = arith.constant 0 : index
    %c192_128 = arith.constant 192 : index
    %125 = vector.load %arg19[%c0_127, %c192_128] : memref<124x256xbf16, #tpu.memory_space<vmem>>, vector<124x64xbf16>
    tpu.vector_store %arg19[%c0_127, %c192_128], %124 {strides = array<i32>} : memref<124x256xbf16, #tpu.memory_space<vmem>>, vector<124x64xbf16>,
    %c0_129 = arith.constant 0 : index
    %c0_130 = arith.constant 0 : index
    %126 = vector.load %arg19[%c0_129, %c0_130] : memref<124x256xbf16, #tpu.memory_space<vmem>>, vector<124x256xbf16>
    %c1024 = arith.constant 1024 : index
    %c0_131 = arith.constant 0 : index
    %127 = vector.load %arg4[%c1024, %c0_131] : memref<1600x128xbf16, #tpu.memory_space<vmem>>, vector<256x128xbf16>
    %cst_132 = arith.constant dense<0.000000e+00> : vector<124x128xf32>
    %128 = tpu.matmul %126, %127, %cst_132 {dimension_numbers = #tpu.dot_dimension_numbers<[1], [0], [0], [1], [0, 0, 1, 1], [], []>} : vector<124x256xbf16>, vector<256x128xbf16>, vector<124x128xf32> -> vector<124x128xf32>
    %129 = arith.addf %113, %128 : vector<124x128xf32>
    %c64_133 = arith.constant 64 : index
    %c0_134 = arith.constant 0 : index
    %130 = vector.load %arg14[%c64_133, %c0_134] : memref<192x64xf32, #tpu.memory_space<vmem>>, vector<124x64xf32>
    %131 = arith.truncf %130 : vector<124x64xf32> to vector<124x64xbf16>
    %c0_135 = arith.constant 0 : index
    %c0_136 = arith.constant 0 : index
    %132 = vector.load %arg19[%c0_135, %c0_136] : memref<124x256xbf16, #tpu.memory_space<vmem>>, vector<124x64xbf16>
    tpu.vector_store %arg19[%c0_135, %c0_136], %131 {strides = array<i32>} : memref<124x256xbf16, #tpu.memory_space<vmem>>, vector<124x64xbf16>,
    %c65 = arith.constant 65 : index
    %c0_137 = arith.constant 0 : index
    %133 = vector.load %arg14[%c65, %c0_137] : memref<192x64xf32, #tpu.memory_space<vmem>>, vector<124x64xf32>
    %134 = arith.truncf %133 : vector<124x64xf32> to vector<124x64xbf16>
    %c0_138 = arith.constant 0 : index
    %c64_139 = arith.constant 64 : index
    %135 = vector.load %arg19[%c0_138, %c64_139] : memref<124x256xbf16, #tpu.memory_space<vmem>>, vector<124x64xbf16>
    tpu.vector_store %arg19[%c0_138, %c64_139], %134 {strides = array<i32>} : memref<124x256xbf16, #tpu.memory_space<vmem>>, vector<124x64xbf16>,
    %c66_140 = arith.constant 66 : index
    %c0_141 = arith.constant 0 : index
    %136 = vector.load %arg14[%c66_140, %c0_141] : memref<192x64xf32, #tpu.memory_space<vmem>>, vector<124x64xf32>
    %137 = arith.truncf %136 : vector<124x64xf32> to vector<124x64xbf16>
    %c0_142 = arith.constant 0 : index
    %c128_143 = arith.constant 128 : index
    %138 = vector.load %arg19[%c0_142, %c128_143] : memref<124x256xbf16, #tpu.memory_space<vmem>>, vector<124x64xbf16>
    tpu.vector_store %arg19[%c0_142, %c128_143], %137 {strides = array<i32>} : memref<124x256xbf16, #tpu.memory_space<vmem>>, vector<124x64xbf16>,
    %c67 = arith.constant 67 : index
    %c0_144 = arith.constant 0 : index
    %139 = vector.load %arg14[%c67, %c0_144] : memref<192x64xf32, #tpu.memory_space<vmem>>, vector<124x64xf32>
    %140 = arith.truncf %139 : vector<124x64xf32> to vector<124x64xbf16>
    %c0_145 = arith.constant 0 : index
    %c192_146 = arith.constant 192 : index
    %141 = vector.load %arg19[%c0_145, %c192_146] : memref<124x256xbf16, #tpu.memory_space<vmem>>, vector<124x64xbf16>
    tpu.vector_store %arg19[%c0_145, %c192_146], %140 {strides = array<i32>} : memref<124x256xbf16, #tpu.memory_space<vmem>>, vector<124x64xbf16>,
    %c0_147 = arith.constant 0 : index
    %c0_148 = arith.constant 0 : index
    %142 = vector.load %arg19[%c0_147, %c0_148] : memref<124x256xbf16, #tpu.memory_space<vmem>>, vector<124x256xbf16>
    %c1280 = arith.constant 1280 : index
    %c0_149 = arith.constant 0 : index
    %143 = vector.load %arg4[%c1280, %c0_149] : memref<1600x128xbf16, #tpu.memory_space<vmem>>, vector<256x128xbf16>
    %cst_150 = arith.constant dense<0.000000e+00> : vector<124x128xf32>
    %144 = tpu.matmul %142, %143, %cst_150 {dimension_numbers = #tpu.dot_dimension_numbers<[1], [0], [0], [1], [0, 0, 1, 1], [], []>} : vector<124x256xbf16>, vector<256x128xbf16>, vector<124x128xf32> -> vector<124x128xf32>
    %145 = arith.addf %129, %144 : vector<124x128xf32>
    %c68 = arith.constant 68 : index
    %c0_151 = arith.constant 0 : index
    %146 = vector.load %arg14[%c68, %c0_151] : memref<192x64xf32, #tpu.memory_space<vmem>>, vector<124x64xf32>
    %147 = arith.truncf %146 : vector<124x64xf32> to vector<124x64xbf16>
    %c1536 = arith.constant 1536 : index
    %c0_152 = arith.constant 0 : index
    %148 = vector.load %arg4[%c1536, %c0_152] : memref<1600x128xbf16, #tpu.memory_space<vmem>>, vector<64x128xbf16>
    %cst_153 = arith.constant dense<0.000000e+00> : vector<124x128xf32>
    %149 = tpu.matmul %147, %148, %cst_153 {dimension_numbers = #tpu.dot_dimension_numbers<[1], [0], [0], [1], [0, 0, 1, 1], [], []>} : vector<124x64xbf16>, vector<64x128xbf16>, vector<124x128xf32> -> vector<124x128xf32>
    %150 = arith.addf %145, %149 : vector<124x128xf32>
    %c0_154 = arith.constant 0 : index
    %c0_155 = arith.constant 0 : index
    %151 = vector.load %arg5[%c0_154, %c0_155] : memref<1x128xf32, #tpu.memory_space<vmem>>, vector<1x128xf32>
    %152 = vector.broadcast %151 : vector<1x128xf32> to vector<124x128xf32>
    %153 = arith.addf %150, %152 : vector<124x128xf32>
    %cst_156 = arith.constant 0.000000e+00 : f32
    %154 = vector.broadcast %cst_156 : f32 to vector<124x128xf32>
    %155 = arith.maximumf %153, %154 : vector<124x128xf32>
    %c0_157 = arith.constant 0 : index
    %c0_158 = arith.constant 0 : index
    %156 = vector.load %arg15[%c0_157, %c0_158] : memref<124x128xf32, #tpu.memory_space<vmem>>, vector<124x128xf32>
    tpu.vector_store %arg15[%c0_157, %c0_158], %155 {strides = array<i32>} : memref<124x128xf32, #tpu.memory_space<vmem>>, vector<124x128xf32>,
    %c0_159 = arith.constant 0 : index
    %c0_160 = arith.constant 0 : index
    %157 = vector.load %arg15[%c0_159, %c0_160] : memref<124x128xf32, #tpu.memory_space<vmem>>, vector<108x128xf32>
    %c16_161 = arith.constant 16 : index
    %c0_162 = arith.constant 0 : index
    %158 = vector.load %arg15[%c16_161, %c0_162] : memref<124x128xf32, #tpu.memory_space<vmem>>, vector<108x128xf32>
    %159 = arith.addf %157, %158 : vector<108x128xf32>
    %c0_163 = arith.constant 0 : index
    %c0_164 = arith.constant 0 : index
    %160 = vector.load %arg16[%c0_163, %c0_164] : memref<108x128xf32, #tpu.memory_space<vmem>>, vector<108x128xf32>
    tpu.vector_store %arg16[%c0_163, %c0_164], %159 {strides = array<i32>} : memref<108x128xf32, #tpu.memory_space<vmem>>, vector<108x128xf32>,
    %c0_165 = arith.constant 0 : index
    %c0_166 = arith.constant 0 : index
    %161 = vector.load %arg16[%c0_165, %c0_166] : memref<108x128xf32, #tpu.memory_space<vmem>>, vector<107x128xf32>
    %c1_167 = arith.constant 1 : index
    %c0_168 = arith.constant 0 : index
    %162 = vector.load %arg16[%c1_167, %c0_168] : memref<108x128xf32, #tpu.memory_space<vmem>>, vector<107x128xf32>
    %163 = arith.addf %161, %162 : vector<107x128xf32>
    %c0_169 = arith.constant 0 : index
    %c0_170 = arith.constant 0 : index
    %164 = vector.load %arg15[%c0_169, %c0_170] : memref<124x128xf32, #tpu.memory_space<vmem>>, vector<107x128xf32>
    tpu.vector_store %arg15[%c0_169, %c0_170], %163 {strides = array<i32>} : memref<124x128xf32, #tpu.memory_space<vmem>>, vector<107x128xf32>,
    %cst_171 = arith.constant 0.000000e+00 : f32
    %165 = vector.broadcast %cst_171 : f32 to vector<48x128xf32>
    %c0_172 = arith.constant 0 : index
    %c0_173 = arith.constant 0 : index
    %166 = vector.load %arg17[%c0_172, %c0_173] : memref<48x128xf32, #tpu.memory_space<vmem>>, vector<48x128xf32>
    tpu.vector_store %arg17[%c0_172, %c0_173], %165 {strides = array<i32>} : memref<48x128xf32, #tpu.memory_space<vmem>>, vector<48x128xf32>,
    %c0_174 = arith.constant 0 : index
    %c0_175 = arith.constant 0 : index
    %167 = tpu.strided_load %arg15[%c0_174, %c0_175] {strides = array<i32: 2, 1>} : memref<124x128xf32, #tpu.memory_space<vmem>>, vector<4x128xf32>
    %cst_176 = arith.constant 2.500000e-01 : f32
    %168 = vector.broadcast %cst_176 : f32 to vector<4x128xf32>
    %169 = arith.mulf %168, %167 : vector<4x128xf32>
    %c9 = arith.constant 9 : index
    %c0_177 = arith.constant 0 : index
    %170 = vector.load %arg17[%c9, %c0_177] : memref<48x128xf32, #tpu.memory_space<vmem>>, vector<4x128xf32>
    tpu.vector_store %arg17[%c9, %c0_177], %169 {strides = array<i32>} : memref<48x128xf32, #tpu.memory_space<vmem>>, vector<4x128xf32>,
    %c32_178 = arith.constant 32 : index
    %c0_179 = arith.constant 0 : index
    %171 = tpu.strided_load %arg15[%c32_178, %c0_179] {strides = array<i32: 2, 1>} : memref<124x128xf32, #tpu.memory_space<vmem>>, vector<4x128xf32>
    %cst_180 = arith.constant 2.500000e-01 : f32
    %172 = vector.broadcast %cst_180 : f32 to vector<4x128xf32>
    %173 = arith.mulf %172, %171 : vector<4x128xf32>
    %c17_181 = arith.constant 17 : index
    %c0_182 = arith.constant 0 : index
    %174 = vector.load %arg17[%c17_181, %c0_182] : memref<48x128xf32, #tpu.memory_space<vmem>>, vector<4x128xf32>
    tpu.vector_store %arg17[%c17_181, %c0_182], %173 {strides = array<i32>} : memref<48x128xf32, #tpu.memory_space<vmem>>, vector<4x128xf32>,
    %c64_183 = arith.constant 64 : index
    %c0_184 = arith.constant 0 : index
    %175 = tpu.strided_load %arg15[%c64_183, %c0_184] {strides = array<i32: 2, 1>} : memref<124x128xf32, #tpu.memory_space<vmem>>, vector<4x128xf32>
    %cst_185 = arith.constant 2.500000e-01 : f32
    %176 = vector.broadcast %cst_185 : f32 to vector<4x128xf32>
    %177 = arith.mulf %176, %175 : vector<4x128xf32>
    %c25 = arith.constant 25 : index
    %c0_186 = arith.constant 0 : index
    %178 = vector.load %arg17[%c25, %c0_186] : memref<48x128xf32, #tpu.memory_space<vmem>>, vector<4x128xf32>
    tpu.vector_store %arg17[%c25, %c0_186], %177 {strides = array<i32>} : memref<48x128xf32, #tpu.memory_space<vmem>>, vector<4x128xf32>,
    %c96_187 = arith.constant 96 : index
    %c0_188 = arith.constant 0 : index
    %179 = tpu.strided_load %arg15[%c96_187, %c0_188] {strides = array<i32: 2, 1>} : memref<124x128xf32, #tpu.memory_space<vmem>>, vector<4x128xf32>
    %cst_189 = arith.constant 2.500000e-01 : f32
    %180 = vector.broadcast %cst_189 : f32 to vector<4x128xf32>
    %181 = arith.mulf %180, %179 : vector<4x128xf32>
    %c33_190 = arith.constant 33 : index
    %c0_191 = arith.constant 0 : index
    %182 = vector.load %arg17[%c33_190, %c0_191] : memref<48x128xf32, #tpu.memory_space<vmem>>, vector<4x128xf32>
    tpu.vector_store %arg17[%c33_190, %c0_191], %181 {strides = array<i32>} : memref<48x128xf32, #tpu.memory_space<vmem>>, vector<4x128xf32>,
    %c0_192 = arith.constant 0 : index
    %c0_193 = arith.constant 0 : index
    %183 = vector.load %arg17[%c0_192, %c0_193] : memref<48x128xf32, #tpu.memory_space<vmem>>, vector<30x128xf32>
    %184 = arith.truncf %183 : vector<30x128xf32> to vector<30x128xbf16>
    %c0_194 = arith.constant 0 : index
    %c0_195 = arith.constant 0 : index
    %185 = vector.load %arg19[%c0_194, %c0_195] : memref<124x256xbf16, #tpu.memory_space<vmem>>, vector<30x128xbf16>
    tpu.vector_store %arg19[%c0_194, %c0_195], %184 {strides = array<i32>} : memref<124x256xbf16, #tpu.memory_space<vmem>>, vector<30x128xbf16>,
    %c1_196 = arith.constant 1 : index
    %c0_197 = arith.constant 0 : index
    %186 = vector.load %arg17[%c1_196, %c0_197] : memref<48x128xf32, #tpu.memory_space<vmem>>, vector<30x128xf32>
    %187 = arith.truncf %186 : vector<30x128xf32> to vector<30x128xbf16>
    %c0_198 = arith.constant 0 : index
    %c128_199 = arith.constant 128 : index
    %188 = vector.load %arg19[%c0_198, %c128_199] : memref<124x256xbf16, #tpu.memory_space<vmem>>, vector<30x128xbf16>
    tpu.vector_store %arg19[%c0_198, %c128_199], %187 {strides = array<i32>} : memref<124x256xbf16, #tpu.memory_space<vmem>>, vector<30x128xbf16>,
    %c0_200 = arith.constant 0 : index
    %c0_201 = arith.constant 0 : index
    %189 = vector.load %arg19[%c0_200, %c0_201] : memref<124x256xbf16, #tpu.memory_space<vmem>>, vector<30x256xbf16>
    %c0_202 = arith.constant 0 : index
    %c0_203 = arith.constant 0 : index
    %190 = vector.load %arg6[%c0_202, %c0_203] : memref<1152x256xbf16, #tpu.memory_space<vmem>>, vector<256x256xbf16>
    %cst_204 = arith.constant dense<0.000000e+00> : vector<30x256xf32>
    %191 = tpu.matmul %189, %190, %cst_204 {dimension_numbers = #tpu.dot_dimension_numbers<[1], [0], [0], [1], [0, 0, 1, 1], [], []>} : vector<30x256xbf16>, vector<256x256xbf16>, vector<30x256xf32> -> vector<30x256xf32>
    %c2_205 = arith.constant 2 : index
    %c0_206 = arith.constant 0 : index
    %192 = vector.load %arg17[%c2_205, %c0_206] : memref<48x128xf32, #tpu.memory_space<vmem>>, vector<30x128xf32>
    %193 = arith.truncf %192 : vector<30x128xf32> to vector<30x128xbf16>
    %c0_207 = arith.constant 0 : index
    %c0_208 = arith.constant 0 : index
    %194 = vector.load %arg19[%c0_207, %c0_208] : memref<124x256xbf16, #tpu.memory_space<vmem>>, vector<30x128xbf16>
    tpu.vector_store %arg19[%c0_207, %c0_208], %193 {strides = array<i32>} : memref<124x256xbf16, #tpu.memory_space<vmem>>, vector<30x128xbf16>,
    %c8 = arith.constant 8 : index
    %c0_209 = arith.constant 0 : index
    %195 = vector.load %arg17[%c8, %c0_209] : memref<48x128xf32, #tpu.memory_space<vmem>>, vector<30x128xf32>
    %196 = arith.truncf %195 : vector<30x128xf32> to vector<30x128xbf16>
    %c0_210 = arith.constant 0 : index
    %c128_211 = arith.constant 128 : index
    %197 = vector.load %arg19[%c0_210, %c128_211] : memref<124x256xbf16, #tpu.memory_space<vmem>>, vector<30x128xbf16>
    tpu.vector_store %arg19[%c0_210, %c128_211], %196 {strides = array<i32>} : memref<124x256xbf16, #tpu.memory_space<vmem>>, vector<30x128xbf16>,
    %c0_212 = arith.constant 0 : index
    %c0_213 = arith.constant 0 : index
    %198 = vector.load %arg19[%c0_212, %c0_213] : memref<124x256xbf16, #tpu.memory_space<vmem>>, vector<30x256xbf16>
    %c256_214 = arith.constant 256 : index
    %c0_215 = arith.constant 0 : index
    %199 = vector.load %arg6[%c256_214, %c0_215] : memref<1152x256xbf16, #tpu.memory_space<vmem>>, vector<256x256xbf16>
    %cst_216 = arith.constant dense<0.000000e+00> : vector<30x256xf32>
    %200 = tpu.matmul %198, %199, %cst_216 {dimension_numbers = #tpu.dot_dimension_numbers<[1], [0], [0], [1], [0, 0, 1, 1], [], []>} : vector<30x256xbf16>, vector<256x256xbf16>, vector<30x256xf32> -> vector<30x256xf32>
    %201 = arith.addf %191, %200 : vector<30x256xf32>
    %c9_217 = arith.constant 9 : index
    %c0_218 = arith.constant 0 : index
    %202 = vector.load %arg17[%c9_217, %c0_218] : memref<48x128xf32, #tpu.memory_space<vmem>>, vector<30x128xf32>
    %203 = arith.truncf %202 : vector<30x128xf32> to vector<30x128xbf16>
    %c0_219 = arith.constant 0 : index
    %c0_220 = arith.constant 0 : index
    %204 = vector.load %arg19[%c0_219, %c0_220] : memref<124x256xbf16, #tpu.memory_space<vmem>>, vector<30x128xbf16>
    tpu.vector_store %arg19[%c0_219, %c0_220], %203 {strides = array<i32>} : memref<124x256xbf16, #tpu.memory_space<vmem>>, vector<30x128xbf16>,
    %c10 = arith.constant 10 : index
    %c0_221 = arith.constant 0 : index
    %205 = vector.load %arg17[%c10, %c0_221] : memref<48x128xf32, #tpu.memory_space<vmem>>, vector<30x128xf32>
    %206 = arith.truncf %205 : vector<30x128xf32> to vector<30x128xbf16>
    %c0_222 = arith.constant 0 : index
    %c128_223 = arith.constant 128 : index
    %207 = vector.load %arg19[%c0_222, %c128_223] : memref<124x256xbf16, #tpu.memory_space<vmem>>, vector<30x128xbf16>
    tpu.vector_store %arg19[%c0_222, %c128_223], %206 {strides = array<i32>} : memref<124x256xbf16, #tpu.memory_space<vmem>>, vector<30x128xbf16>,
    %c0_224 = arith.constant 0 : index
    %c0_225 = arith.constant 0 : index
    %208 = vector.load %arg19[%c0_224, %c0_225] : memref<124x256xbf16, #tpu.memory_space<vmem>>, vector<30x256xbf16>
    %c512_226 = arith.constant 512 : index
    %c0_227 = arith.constant 0 : index
    %209 = vector.load %arg6[%c512_226, %c0_227] : memref<1152x256xbf16, #tpu.memory_space<vmem>>, vector<256x256xbf16>
    %cst_228 = arith.constant dense<0.000000e+00> : vector<30x256xf32>
    %210 = tpu.matmul %208, %209, %cst_228 {dimension_numbers = #tpu.dot_dimension_numbers<[1], [0], [0], [1], [0, 0, 1, 1], [], []>} : vector<30x256xbf16>, vector<256x256xbf16>, vector<30x256xf32> -> vector<30x256xf32>
    %211 = arith.addf %201, %210 : vector<30x256xf32>
    %c16_229 = arith.constant 16 : index
    %c0_230 = arith.constant 0 : index
    %212 = vector.load %arg17[%c16_229, %c0_230] : memref<48x128xf32, #tpu.memory_space<vmem>>, vector<30x128xf32>
    %213 = arith.truncf %212 : vector<30x128xf32> to vector<30x128xbf16>
    %c0_231 = arith.constant 0 : index
    %c0_232 = arith.constant 0 : index
    %214 = vector.load %arg19[%c0_231, %c0_232] : memref<124x256xbf16, #tpu.memory_space<vmem>>, vector<30x128xbf16>
    tpu.vector_store %arg19[%c0_231, %c0_232], %213 {strides = array<i32>} : memref<124x256xbf16, #tpu.memory_space<vmem>>, vector<30x128xbf16>,
    %c17_233 = arith.constant 17 : index
    %c0_234 = arith.constant 0 : index
    %215 = vector.load %arg17[%c17_233, %c0_234] : memref<48x128xf32, #tpu.memory_space<vmem>>, vector<30x128xf32>
    %216 = arith.truncf %215 : vector<30x128xf32> to vector<30x128xbf16>
    %c0_235 = arith.constant 0 : index
    %c128_236 = arith.constant 128 : index
    %217 = vector.load %arg19[%c0_235, %c128_236] : memref<124x256xbf16, #tpu.memory_space<vmem>>, vector<30x128xbf16>
    tpu.vector_store %arg19[%c0_235, %c128_236], %216 {strides = array<i32>} : memref<124x256xbf16, #tpu.memory_space<vmem>>, vector<30x128xbf16>,
    %c0_237 = arith.constant 0 : index
    %c0_238 = arith.constant 0 : index
    %218 = vector.load %arg19[%c0_237, %c0_238] : memref<124x256xbf16, #tpu.memory_space<vmem>>, vector<30x256xbf16>
    %c768_239 = arith.constant 768 : index
    %c0_240 = arith.constant 0 : index
    %219 = vector.load %arg6[%c768_239, %c0_240] : memref<1152x256xbf16, #tpu.memory_space<vmem>>, vector<256x256xbf16>
    %cst_241 = arith.constant dense<0.000000e+00> : vector<30x256xf32>
    %220 = tpu.matmul %218, %219, %cst_241 {dimension_numbers = #tpu.dot_dimension_numbers<[1], [0], [0], [1], [0, 0, 1, 1], [], []>} : vector<30x256xbf16>, vector<256x256xbf16>, vector<30x256xf32> -> vector<30x256xf32>
    %221 = arith.addf %211, %220 : vector<30x256xf32>
    %c18_242 = arith.constant 18 : index
    %c0_243 = arith.constant 0 : index
    %222 = vector.load %arg17[%c18_242, %c0_243] : memref<48x128xf32, #tpu.memory_space<vmem>>, vector<30x128xf32>
    %223 = arith.truncf %222 : vector<30x128xf32> to vector<30x128xbf16>
    %c1024_244 = arith.constant 1024 : index
    %c0_245 = arith.constant 0 : index
    %224 = vector.load %arg6[%c1024_244, %c0_245] : memref<1152x256xbf16, #tpu.memory_space<vmem>>, vector<128x256xbf16>
    %cst_246 = arith.constant dense<0.000000e+00> : vector<30x256xf32>
    %225 = tpu.matmul %223, %224, %cst_246 {dimension_numbers = #tpu.dot_dimension_numbers<[1], [0], [0], [1], [0, 0, 1, 1], [], []>} : vector<30x128xbf16>, vector<128x256xbf16>, vector<30x256xf32> -> vector<30x256xf32>
    %226 = arith.addf %221, %225 : vector<30x256xf32>
    %c0_247 = arith.constant 0 : index
    %c0_248 = arith.constant 0 : index
    %227 = vector.load %arg7[%c0_247, %c0_248] : memref<1x256xf32, #tpu.memory_space<vmem>>, vector<1x256xf32>
    %228 = vector.broadcast %227 : vector<1x256xf32> to vector<30x256xf32>
    %229 = arith.addf %226, %228 : vector<30x256xf32>
    %cst_249 = arith.constant 0.000000e+00 : f32
    %230 = vector.broadcast %cst_249 : f32 to vector<30x256xf32>
    %231 = arith.maximumf %229, %230 : vector<30x256xf32>
    %232 = arith.truncf %231 : vector<30x256xf32> to vector<30x256xbf16>
    %c0_250 = arith.constant 0 : index
    %c0_251 = arith.constant 0 : index
    %233 = vector.load %arg18[%c0_250, %c0_251] : memref<30x256xbf16, #tpu.memory_space<vmem>>, vector<30x256xbf16>
    tpu.vector_store %arg18[%c0_250, %c0_251], %232 {strides = array<i32>} : memref<30x256xbf16, #tpu.memory_space<vmem>>, vector<30x256xbf16>,
    %c0_252 = arith.constant 0 : index
    %c0_253 = arith.constant 0 : index
    %234 = vector.load %arg8[%c0_252, %c0_253] : memref<1x30xbf16, #tpu.memory_space<vmem>>, vector<1x30xbf16>
    %c0_254 = arith.constant 0 : index
    %c0_255 = arith.constant 0 : index
    %235 = vector.load %arg18[%c0_254, %c0_255] : memref<30x256xbf16, #tpu.memory_space<vmem>>, vector<30x256xbf16>
    %cst_256 = arith.constant dense<0.000000e+00> : vector<1x256xf32>
    %236 = tpu.matmul %234, %235, %cst_256 {dimension_numbers = #tpu.dot_dimension_numbers<[1], [0], [0], [1], [0, 0, 1, 1], [], []>} : vector<1x30xbf16>, vector<30x256xbf16>, vector<1x256xf32> -> vector<1x256xf32>
    %c0_257 = arith.constant 0 : index
    %c0_258 = arith.constant 0 : index
    %237 = vector.load %arg9[%c0_257, %c0_258] : memref<256x10xf32, #tpu.memory_space<vmem>>, vector<256x10xf32>
    %cst_259 = arith.constant dense<0.000000e+00> : vector<1x10xf32>
    %238 = tpu.matmul %236, %237, %cst_259 {dimension_numbers = #tpu.dot_dimension_numbers<[1], [0], [0], [1], [0, 0, 1, 1], [], []>} : vector<1x256xf32>, vector<256x10xf32>, vector<1x10xf32> -> vector<1x10xf32>
    %c0_260 = arith.constant 0 : index
    %c0_261 = arith.constant 0 : index
    %239 = vector.load %arg10[%c0_260, %c0_261] : memref<1x10xf32, #tpu.memory_space<vmem>>, vector<1x10xf32>
    %240 = arith.addf %238, %239 : vector<1x10xf32>
    %c0_262 = arith.constant 0 : index
    %c0_263 = arith.constant 0 : index
    %c0_264 = arith.constant 0 : index
    %241 = vector.load %arg11[%c0_262, %c0_263, %c0_264] : memref<1x1x10xf32, #tpu.memory_space<vmem>>, vector<1x1x10xf32>
    %242 = vector.shape_cast %241 : vector<1x1x10xf32> to vector<1x10xf32>
    %243 = vector.shape_cast %240 : vector<1x10xf32> to vector<1x1x10xf32>
    tpu.vector_store %arg11[%c0_262, %c0_263, %c0_264], %243 {strides = array<i32>} : memref<1x1x10xf32, #tpu.memory_space<vmem>>, vector<1x1x10xf32>,
    return
  }
  func.func @transform_0(%arg0: i32) -> (i32, i32) {
    %c0_i32 = arith.constant 0 : i32
    %c0_i32_0 = arith.constant 0 : i32
    return %arg0, %c0_i32 : i32, i32
  }
  func.func @transform_1(%arg0: i32) -> (i32, i32) {
    %c0_i32 = arith.constant 0 : i32
    %c0_i32_0 = arith.constant 0 : i32
    %c0_i32_1 = arith.constant 0 : i32
    return %c0_i32, %c0_i32_0 : i32, i32
  }
  func.func @transform_2(%arg0: i32) -> (i32, i32) {
    %c0_i32 = arith.constant 0 : i32
    %c0_i32_0 = arith.constant 0 : i32
    %c0_i32_1 = arith.constant 0 : i32
    return %c0_i32, %c0_i32_0 : i32, i32
  }
  func.func @transform_3(%arg0: i32) -> (i32, i32) {
    %c0_i32 = arith.constant 0 : i32
    %c0_i32_0 = arith.constant 0 : i32
    %c0_i32_1 = arith.constant 0 : i32
    return %c0_i32, %c0_i32_0 : i32, i32
  }
  func.func @transform_4(%arg0: i32) -> (i32, i32) {
    %c0_i32 = arith.constant 0 : i32
    %c0_i32_0 = arith.constant 0 : i32
    %c0_i32_1 = arith.constant 0 : i32
    return %c0_i32, %c0_i32_0 : i32, i32
  }
  func.func @transform_5(%arg0: i32) -> (i32, i32) {
    %c0_i32 = arith.constant 0 : i32
    %c0_i32_0 = arith.constant 0 : i32
    %c0_i32_1 = arith.constant 0 : i32
    return %c0_i32, %c0_i32_0 : i32, i32
  }
  func.func @transform_6(%arg0: i32) -> (i32, i32) {
    %c0_i32 = arith.constant 0 : i32
    %c0_i32_0 = arith.constant 0 : i32
    %c0_i32_1 = arith.constant 0 : i32
    return %c0_i32, %c0_i32_0 : i32, i32
  }
  func.func @transform_7(%arg0: i32) -> (i32, i32) {
    %c0_i32 = arith.constant 0 : i32
    %c0_i32_0 = arith.constant 0 : i32
    %c0_i32_1 = arith.constant 0 : i32
    return %c0_i32, %c0_i32_0 : i32, i32
  }
  func.func @transform_8(%arg0: i32) -> (i32, i32) {
    %c0_i32 = arith.constant 0 : i32
    %c0_i32_0 = arith.constant 0 : i32
    %c0_i32_1 = arith.constant 0 : i32
    return %c0_i32, %c0_i32_0 : i32, i32
  }
  func.func @transform_9(%arg0: i32) -> (i32, i32) {
    %c0_i32 = arith.constant 0 : i32
    %c0_i32_0 = arith.constant 0 : i32
    %c0_i32_1 = arith.constant 0 : i32
    return %c0_i32, %c0_i32_0 : i32, i32
  }
  func.func @transform_10(%arg0: i32) -> (i32, i32, i32) {
    %c0_i32 = arith.constant 0 : i32
    %c0_i32_0 = arith.constant 0 : i32
    %c0_i32_1 = arith.constant 0 : i32
    return %arg0, %c0_i32, %c0_i32_0 : i32, i32, i32
  }
}

</mosaic_0001>

<bundles_post_ra>
// kernel: block_forward.1
= control target key start
LH: loop header
LB: loop body
LE: loop exit
PB: predicated region body
PF: predicated region fallthrough
CT: control target
= control target key end

     0   :  { %s12976_s0 = inlined_call_operand.vmem [shape: bf16[512,32], index: 0, kind: input, shape index: {}]   ;;  %s12977_s1 = inlined_call_operand.vmem [shape: bf16[32,64], index: 1, kind: input, shape index: {}]   ;;  %s12978_s2 = inlined_call_operand.vmem [shape: f32[1,64], index: 2, kind: input, shape index: {}]   ;;  %s12979_s3 = inlined_call_operand.vmem [shape: bf16[1600,128], index: 3, kind: input, shape index: {}]   ;;  %s12980_s4 = inlined_call_operand.vmem [shape: f32[1,128], index: 4, kind: input, shape index: {}]   ;;  %s12981_s5 = inlined_call_operand.vmem [shape: bf16[1152,256], index: 5, kind: input, shape index: {}]   ;;  %s12982_s6 = inlined_call_operand.vmem [shape: f32[1,256], index: 6, kind: input, shape index: {}]   ;;  %s12983_s7 = inlined_call_operand.vmem [shape: bf16[1,30], index: 7, kind: input, shape index: {}]   ;;  %s12984_s8 = inlined_call_operand.vmem [shape: f32[256,10], index: 8, kind: input, shape index: {}]   ;;  %s12985_s9 = inlined_call_operand.vmem [shape: f32[1,10], index: 9, kind: input, shape index: {}]   ;;  %s12986_s10 = inlined_call_operand.hbm [shape: f32[2,1,10], index: 10, kind: output, shape index: {}]  }
   0x1   :  { %12987 = sst [smem:[#allocation34_spill]] %s12976_s0 }
   0x2   :  { %15 = vsyncpa [#allocation11], 0 }
   0x3   :  { %17 = vsyncpa [#allocation11 + $0x1], 0  ;;  %s10160_s13 = smov 0   ;;  %s10162_s14 = smov 0  }
   0x4   :  { %s10164_s15 = smov 0   ;;  %s10166_s16 = smov 0  }
   0x5 LB: > { %s10181_s17 = sadd.s32 4294967295, %s10099_s16   ;;  %s7852_s18 = sadd.s32 4294967294, %s10099_s16   ;;  %s10099_s16 = sphi %s10166_s16, %s13036_s16   ;;  %s10095_s15 = sphi %s10164_s15, %s13035_s15   ;;  %s10091_s14 = sphi %s10162_s14, %s13034_s14   ;;  %s10087_s13 = sphi %s10160_s13, %s13033_s13  }
   0x6   : > { %s10185_s19 = sadd.s32 1, %s10099_s16   ;;  %s245_s20 = sadd.s32 1, %s10095_s15 }
   0x7   : > { %s242_s21 = ssub.s32 %s10099_s16, %s10185_s19  ;;  %p255_p0 = scmp.ne.s32.totalorder %s10095_s15, %s10091_s14 }
   0x8   : > { %p243_p1 = scmp.eq.s32.totalorder %s242_s21, 0  ;;  %p256_p2 = scmp.eq.s32.totalorder %s10181_s17, 1 }
   0x9   : > { %p261_p3 = scmp.ne.s32.totalorder %s10091_s14, %s10087_s13  ;;  %p262_p4 = scmp.eq.s32.totalorder %s7852_s18, 1 }
   0xa   : > { %s10196_s22 = scalar_select %p243_p1, %s10095_s15, %s245_s20  }
   0xb   : > { %p10198_p5 = por %p256_p2, %p255_p0  ;;  %p10202_p6 = por %p262_p4, %p261_p3 }
   0xc   : > { %p7855_p7 = scmp.ge.s32.totalorder %s10099_s16, 1  ;;  %p316_p8 = scmp.lt.s32.totalorder %s10099_s16, 3 }
   0xe   : > { %p317_p9 = pnand %p7855_p7, %p316_p8 }
  0x10   : > { %320 = sbr.rel (%p317_p9) target bundleno = 1729 (0x6c1), region = 60 }
  0x15   : > { %v9662_v0 = vld [vmem:[%s12977_s1 + $0x8] sm:$0xff]   ;;  %s7856_s27 = sshll.u32 %s10181_s17, 5  ;;  %v9663_v1 = vld [vmem:[%s12977_s1] sm:$0xff]   ;;  %vm495_vm0 = vcmask 261120   ;;  %vm737_vm1 = vcmask 523264   ;;  %v10101_v2 = vmov 0.0  }
  0x16   : > { %p354_p10 = scmp.lt.s32.totalorder %s7856_s27, 63  ;;  %9556 = vmatprep.subr.bf16.mxu0 %v9662_v0  ;;  %9616 = vmatprep.subr.bf16.mxu1 %v9662_v0  ;;  %983 = vst.msk [vmem:[#allocation4] sm:$0xff] %vm737_vm1, %v10101_v2  ;;  %984 = vst.msk [vmem:[#allocation4 + $0x8] sm:$0xff] %vm737_vm1, %v10101_v2  ;;  %s12990_s0 = sld [smem:[#allocation34_spill]]  ;;  %vm1118_vm2 = vcmask 519168   ;;  %vm1248_vm3 = vcmask 1043968  }
  0x17   : > { %9557 = vmatpush3.bf16.msra.mxu0 %v9662_v0  ;;  %9618 = vmatpush3.bf16.msra.mxu1 %v9662_v0  ;;  %985 = vst.msk [vmem:[#allocation4 + $0x10] sm:$0xff] %vm737_vm1, %v10101_v2  ;;  %986 = vst.msk [vmem:[#allocation4 + $0x18] sm:$0xff] %vm737_vm1, %v10101_v2  ;;  %s10102_s20 = smov 64   ;;  %vm1264_vm4 = vcmask 1041920   ;;  %vm1134_vm5 = vcmask 517120   ;;  %vm981_vm6 = vcmask 522240  }
  0x18   : > { %s13038_s27 = smov (!%p354_p10, %s7856_s27), 63  ;;  %987 = vst.msk [vmem:[#allocation4 + $0x20] sm:$0xff] %vm737_vm1, %v10101_v2  ;;  %988 = vst.msk [vmem:[#allocation4 + $0x28] sm:$0xff] %vm737_vm1, %v10101_v2  ;;  %9558 = vmatprep.subr.bf16.mxu0 %v9663_v1  ;;  %9617 = vmatprep.subr.bf16.mxu1 %v9663_v1  ;;  %vm7631_vm7 = vcmask 1046528   ;;  %vm7627_vm8 = vcmask 244736   ;;  %vm7782_vm9 = vcmask 73728  }
  0x19   : > { %989 = vst.msk [vmem:[#allocation4 + $0x30] sm:$0xff] %vm737_vm1, %v10101_v2  ;;  %990 = vst.msk [vmem:[#allocation4 + $0x38] sm:$0xff] %vm737_vm1, %v10101_v2  ;;  %s7857_s30 = sshll.u32 %s13038_s27, 2  ;;  %s10104_s11 = smov [#allocation10]  }
  0x1a   : > { %991 = vst.msk [vmem:[#allocation4 + $0x40] sm:$0xff] %vm737_vm1, %v10101_v2  ;;  %992 = vst.msk [vmem:[#allocation4 + $0x48] sm:$0xff] %vm737_vm1, %v10101_v2  ;;  %s10043_s12 = sshll.u32 %s10104_s11, 4  ;;  %s10044_s12 = int_to_ptr.vmem [resolvable:$false] %s10043_s12 }
  0x1b   : > { %993 = vst.msk [vmem:[#allocation4 + $0x50] sm:$0xff] %vm737_vm1, %v10101_v2  ;;  %994 = vst.msk [vmem:[#allocation4 + $0x58] sm:$0xff] %vm737_vm1, %v10101_v2  ;;  %9559 = vmatpush3.bf16.msra.mxu0 %v9663_v1  ;;  %9619 = vmatpush3.bf16.msra.mxu1 %v9663_v1 }
  0x1c   : > { %995 = vst.msk [vmem:[#allocation4 + $0x60] sm:$0xff] %vm737_vm1, %v10101_v2  ;;  %996 = vst.msk [vmem:[#allocation4 + $0x68] sm:$0xff] %vm737_vm1, %v10101_v2  ;;  %s10245_s18 = scalar_lea.vmem %s12990_s0, %s7857_s30  ;;  %s351_s30 = sand.u32 1, %s10091_s14  }
  0x1d   : > { %997 = vst.msk [vmem:[#allocation4 + $0x70] sm:$0xff] %vm737_vm1, %v10101_v2  ;;  %998 = vst.msk [vmem:[#allocation4 + $0x78] sm:$0xff] %vm737_vm1, %v10101_v2  ;;  %v9664_v3 = vld [vmem:[%s10245_s18] sm:$0xff]   ;;  %v9666_v5 = vld [vmem:[%s10245_s18 + $0x8] sm:$0xff]   ;;  %s352_s21 = scalar_lea.vmem [#allocation10], %s351_s30  ;;  %s7785_s29 = scalar_lea.sflag [#allocation11], %s351_s30 }
  0x1e   : > { %999 = vst.msk [vmem:[#allocation4 + $0x80] sm:$0xff] %vm737_vm1, %v10101_v2  ;;  %1000 = vst.msk [vmem:[#allocation4 + $0x88] sm:$0xff] %vm737_vm1, %v10101_v2  ;;  %v9665_v4 = vld [vmem:[%s10245_s18 + $0x40] sm:$0xff]   ;;  %9560 = vmatprep.mubr.msk.bf16.mxu0 %vm495_vm0, %v9664_v3  ;;  %v9667_v6 = vld [vmem:[%s10245_s18 + $0x48] sm:$0xff]   ;;  %s7797_s25 = sshll.u32 %s352_s21, 4  ;;  %s7798_s25 = int_to_ptr.vmem [resolvable:$true] %s7797_s25 }
  0x1f   : > { %1001 = vst.msk [vmem:[#allocation4 + $0x90] sm:$0xff] %vm737_vm1, %v10101_v2  ;;  %1002 = vst.msk [vmem:[#allocation4 + $0x98] sm:$0xff] %vm737_vm1, %v10101_v2  ;;  %9576 = vmatprep.mubr.msk.bf16.mxu1 %vm495_vm0, %v9665_v4  ;;  %9561 = vmatmul.mubr.msk.bf16.vlgmr.msra.gmra.mxu0 %vm495_vm0, %v9666_v5  ;;  %v9668_v7 = vld [vmem:[%s10245_s18 + $0x10] sm:$0xff]   ;;  %v9670_v9 = vld [vmem:[%s10245_s18 + $0x18] sm:$0xff]   ;;  %p10046_p0 = scmp.lt.s32.totalorder %s7798_s25, %s10044_s12 }
  0x20   : > { %1003 = vst.msk [vmem:[#allocation4 + $0xa0] sm:$0xff] %vm737_vm1, %v10101_v2  ;;  %1004 = vst.msk [vmem:[#allocation4 + $0xa8] sm:$0xff] %vm737_vm1, %v10101_v2  ;;  %9577 = vmatmul.mubr.msk.bf16.vlgmr.msra.gmra.mxu1 %vm495_vm0, %v9667_v6  ;;  %v9669_v8 = vld [vmem:[%s10245_s18 + $0x50] sm:$0xff]   ;;  %9564 = vmatprep.mubr.msk.bf16.mxu0 %vm495_vm0, %v9668_v7  ;;  %v9671_v10 = vld [vmem:[%s10245_s18 + $0x58] sm:$0xff]  }
  0x21   : > { %1005 = vst.msk [vmem:[#allocation4 + $0xb0] sm:$0xff] %vm737_vm1, %v10101_v2  ;;  %1006 = vst.msk [vmem:[#allocation4 + $0xb8] sm:$0xff] %vm737_vm1, %v10101_v2  ;;  %9580 = vmatprep.mubr.msk.bf16.mxu1 %vm495_vm0, %v9669_v8  ;;  %v9672_v11 = vld [vmem:[%s10245_s18 + $0x20] sm:$0xff]   ;;  %v9674_v13 = vld [vmem:[%s10245_s18 + $0x28] sm:$0xff]  }
  0x22   : > { %6080 = vst [vmem:[#allocation7] sm:$0xff] %v10101_v2  ;;  %6081 = vst [vmem:[#allocation7 + $0x8] sm:$0xff] %v10101_v2  ;;  %v9673_v12 = vld [vmem:[%s10245_s18 + $0x60] sm:$0xff]   ;;  %v1136_v14 = vld [vmem:[#allocation4 + $0x1] sm:$0xff] }
  0x23   : > { %6082 = vst [vmem:[#allocation7 + $0x10] sm:$0xff] %v10101_v2  ;;  %6083 = vst [vmem:[#allocation7 + $0x18] sm:$0xff] %v10101_v2  ;;  %v1362_v15 = vld [vmem:[#allocation4 + $0x3] sm:$0xff]  ;;  %v9675_v17 = vld [vmem:[%s10245_s18 + $0x68] sm:$0xff]   ;;  %v8703_v19 = vpack.c.bf16 %v1136_v14, %v1136_v14 }
  0x24   : > { %6084 = vst [vmem:[#allocation7 + $0x20] sm:$0xff] %v10101_v2  ;;  %6085 = vst [vmem:[#allocation7 + $0x28] sm:$0xff] %v10101_v2  ;;  %v1137_v16 = vld [vmem:[#allocation4 + $0x9] sm:$0xff]  ;;  %v9676_v18 = vld [vmem:[%s10245_s18 + $0x30] sm:$0xff]   ;;  %v8735_v20 = vpack.c.bf16 %v1362_v15, %v1362_v15 }
  0x25   : > { %v1363_v21 = vld [vmem:[#allocation4 + $0xb] sm:$0xff]  ;;  %v9677_v22 = vld [vmem:[%s10245_s18 + $0x70] sm:$0xff]   ;;  %1200 = vrot.lane.b32.xlu0 %v8703_v19, %s10102_s20  ;;  %v8704_v23 = vpack.c.bf16 %v1137_v16, %v1137_v16  ;;  %v1364_v28 = vld [vmem:[#allocation4 + $0x13] sm:$0xff] }
  0x26   : > { %1426 = vrot.lane.b32.xlu1 %v8735_v20, %s10102_s20  ;;  %v8736_v24 = vpack.c.bf16 %v1363_v21, %v1363_v21  ;;  %v1138_v25 = vld [vmem:[#allocation4 + $0x11] sm:$0xff]  ;;  %v1139_v26 = vld [vmem:[#allocation4 + $0x19] sm:$0xff]  ;;  %v9678_v27 = vld [vmem:[%s10245_s18 + $0x38] sm:$0xff]   ;;  %v8737_v34 = vpack.c.bf16 %v1364_v28, %v1364_v28 }
  0x27   : > { %9565 = vmatmul.mubr.msk.bf16.gmra.mxu0 %vm495_vm0, %v9670_v9  ;;  %v9679_v29 = vld [vmem:[%s10245_s18 + $0x78] sm:$0xff]   ;;  %v10281_v30 = vpack.c.bf16 %v1138_v25, %v1138_v25  ;;  %v10283_v31 = vpack.c.bf16 %v1139_v26, %v1139_v26  ;;  %v1635_v32 = vld [vmem:[#allocation4 + $0x18] sm:$0xff]  ;;  %v1634_v33 = vld [vmem:[#allocation4 + $0x10] sm:$0xff]  ;;  %s8684_s18 = sshll.u32 %s10181_s17, 4  ;;  %s10045_s17 = scalar_lea.vmem %s10044_s12, 32 }
  0x28   : > { %9581 = vmatmul.mubr.msk.bf16.gmra.mxu1 %vm495_vm0, %v9671_v10  ;;  %9568 = vmatprep.mubr.msk.bf16.mxu0 %vm495_vm0, %v9672_v11  ;;  %v8768_v35 = vpack.c.bf16 %v1635_v32, %v1635_v32  ;;  %v1859_v36 = vld [vmem:[#allocation4 + $0x1a] sm:$0xff]  ;;  %v8767_v37 = vpack.c.bf16 %v1634_v33, %v1634_v33  ;;  %v1858_v39 = vld [vmem:[#allocation4 + $0x12] sm:$0xff]  ;;  %v1861_v41 = vld [vmem:[#allocation4 + $0x2a] sm:$0xff]  ;;  %s7795_s28 = scalar_lea.hbm %s12986_s10, %s8684_s18 }
  0x29   : > { %9584 = vmatprep.mubr.msk.bf16.mxu1 %vm495_vm0, %v9673_v12  ;;  %1202 = vrot.lane.b32.xlu0 %v8704_v23, %s10102_s20  ;;  %v8800_v38 = vpack.c.bf16 %v1859_v36, %v1859_v36  ;;  %v8799_v40 = vpack.c.bf16 %v1858_v39, %v1858_v39  ;;  %v8802_v42 = vpack.c.bf16 %v1861_v41, %v1861_v41  ;;  %v1863_v43 = vld [vmem:[#allocation4 + $0x3a] sm:$0xff]  ;;  %v1865_v45 = vld [vmem:[#allocation4 + $0x4a] sm:$0xff]  ;;  %v1266_v48 = vld [vmem:[#allocation4 + $0x2] sm:$0xff] }
  0x2a   : > { %1428 = vrot.lane.b32.xlu1 %v8736_v24, %s10102_s20  ;;  %v8804_v44 = vpack.c.bf16 %v1863_v43, %v1863_v43  ;;  %v8806_v46 = vpack.c.bf16 %v1865_v45, %v1865_v45  ;;  %v1038_v47 = vld [vmem:[#allocation4] sm:$0xff]  ;;  %v1039_v49 = vld [vmem:[#allocation4 + $0x8] sm:$0xff]  ;;  %v8719_v51 = vpack.c.bf16 %v1266_v48, %v1266_v48  ;;  %1121 = vst.msk [vmem:[#allocation9 + $0x10] sm:$0xf] %vm1118_vm2, %v8767_v37  ;;  %1122 = vst.msk [vmem:[#allocation9 + $0x18] sm:$0xf] %vm1118_vm2, %v8768_v35 }
  0x2b   : > { %v8687_v50 = vpack.c.bf16 %v1038_v47, %v1038_v47  ;;  %v8688_v52 = vpack.c.bf16 %v1039_v49, %v1039_v49  ;;  %v1867_v53 = vld [vmem:[#allocation4 + $0x5a] sm:$0xff]  ;;  %v1267_v54 = vld [vmem:[#allocation4 + $0xa] sm:$0xff]  ;;  %1348 = vst.msk [vmem:[#allocation9 + $0x14] sm:$0xf] %vm1118_vm2, %v8799_v40 }
  0x2c   : > { %v8808_v55 = vpack.c.bf16 %v1867_v53, %v1867_v53  ;;  %1346 = vst.msk [vmem:[#allocation9 + $0x4] sm:$0xf] %vm1118_vm2, %v8719_v51  ;;  %v8720_v56 = vpack.c.bf16 %v1267_v54, %v1267_v54  ;;  %v1869_v57 = vld [vmem:[#allocation4 + $0x6a] sm:$0xff]  ;;  %v1377_v59 = vld [vmem:[#allocation4 + $0x7b] sm:$0xf]  ;;  %v9684_v25 = vld [vmem:[%s12979_s3 + $0xf0] sm:$0xff]  }
  0x2d   : > { %1204 = vrot.lane.b32.xlu0 %v10281_v30, %s10102_s20  ;;  %1119 = vst.msk [vmem:[#allocation9] sm:$0xf] %vm1118_vm2, %v8687_v50  ;;  %1120 = vst.msk [vmem:[#allocation9 + $0x8] sm:$0xf] %vm1118_vm2, %v8688_v52  ;;  %v8810_v58 = vpack.c.bf16 %v1869_v57, %v1869_v57  ;;  %v8750_v60 = vpack.c.bf16 %v1377_v59, %v1377_v59  ;;  %v1871_v61 = vld [vmem:[#allocation4 + $0x7a] sm:$0xff]  ;;  %v1538_v5 = vld [vmem:[#allocation4 + $0x4] sm:$0xff] }
  0x2e   : > { %1206 = vrot.lane.b32.xlu1 %v10283_v31, %s10102_s20  ;;  %1347 = vst.msk [vmem:[#allocation9 + $0xc] sm:$0xf] %vm1118_vm2, %v8720_v56  ;;  %v8812_v62 = vpack.c.bf16 %v1871_v61, %v1871_v61  ;;  %v1873_v63 = vld [vmem:[#allocation4 + $0x8a] sm:$0xf]  ;;  %v2676_v0 = vld [vmem:[#allocation4 + $0x14] sm:$0xff]  ;;  %v8751_v8 = vpack.c.bf16 %v1538_v5, %v1538_v5  ;;  %v9685_v26 = vld [vmem:[%s12979_s3 + $0x70] sm:$0xff]  }
  0x2f   : > { %9569 = vmatmul.mubr.msk.bf16.gmra.mxu0 %vm495_vm0, %v9674_v13  ;;  %v8814_v1 = vpack.c.bf16 %v1873_v63, %v1873_v63  ;;  %v8831_v2 = vpack.c.bf16 %v2676_v0, %v2676_v0  ;;  %v1539_v9 = vld [vmem:[#allocation4 + $0xc] sm:$0xff]  ;;  %v9687_v28 = vld [vmem:[%s12979_s3 + $0x30] sm:$0xff]   ;;  %v9691_v32 = vld [vmem:[%s12979_s3 + $0x28] sm:$0xff]  }
  0x30   : > { %9585 = vmatmul.mubr.msk.bf16.gmra.mxu1 %vm495_vm0, %v9675_v17  ;;  %9572 = vmatprep.mubr.msk.bf16.mxu0 %vm495_vm0, %v9676_v18  ;;  %v8752_v13 = vpack.c.bf16 %v1539_v9, %v1539_v9  ;;  %v9680_v21 = vld [vmem:[%s12979_s3 + $0xf8] sm:$0xff]   ;;  %v10375_v33 = vld [vmem:[%s12978_s2] ss:$0 sm:$0xff]  ;;  %v9700_v59 = vld [vmem:[%s12979_s3 + $0xd0] sm:$0xff]  }
  0x31   : > { %9588 = vmatprep.mubr.msk.bf16.mxu1 %vm495_vm0, %v9677_v22  ;;  %1430 = vrot.lane.b32.xlu0 %v8737_v34, %s10102_s20  ;;  %v9681_v22 = vld [vmem:[%s12979_s3 + $0x78] sm:$0xff]   ;;  %v9692_v34 = vld [vmem:[%s12979_s3 + $0xe0] sm:$0xff]   ;;  %v9702_v61 = vld [vmem:[%s12979_s3 + $0x90] sm:$0xff]  }
  0x32   : > { %1700 = vrot.lane.b32.xlu1 %v8768_v35, %s10102_s20  ;;  %v9682_v23 = vld [vmem:[%s12979_s3 + $0xb8] sm:$0xff]   ;;  %9125 = vmatprep.subr.bf16.mxu1 %v9680_v21  ;;  %v9693_v35 = vld [vmem:[%s12979_s3 + $0x60] sm:$0xff]   ;;  %v9707_v21 = vld [vmem:[%s12979_s3 + $0x8] sm:$0xff]  }
  0x33   : > { %v9683_v24 = vld [vmem:[%s12979_s3 + $0x38] sm:$0xff]   ;;  %9189 = vmatprep.subr.bf16.mxu0 %v9681_v22  ;;  %9126 = vmatpush3.bf16.msra.mxu1 %v9682_v23  ;;  %v9694_v36 = vld [vmem:[%s12979_s3 + $0xa0] sm:$0xff]  }
  0x34   : > { %9190 = vmatpush3.bf16.msra.mxu0 %v9683_v24  ;;  %9127 = vmatprep.subr.bf16.mxu1 %v9684_v25  ;;  %v9696_v43 = vld [vmem:[%s12979_s3 + $0xd8] sm:$0xff]  }
  0x35   : > { %1698 = vrot.lane.b32.xlu0 %v8767_v37, %s10102_s20  ;;  %9191 = vmatprep.subr.bf16.mxu0 %v9685_v26  ;;  %v9695_v37 = vld [vmem:[%s12979_s3 + $0x20] sm:$0xff]   ;;  %v9698_v45 = vld [vmem:[%s12979_s3 + $0x98] sm:$0xff]  }
  0x36   : > { %1924 = vrot.lane.b32.xlu1 %v8800_v38, %s10102_s20  ;;  %v9699_v49 = vld [vmem:[%s12979_s3 + $0x18] sm:$0xff]  }
  0x37   : > { %9573 = vmatmul.mubr.msk.bf16.gmra.mxu0 %vm495_vm0, %v9678_v27  ;;  %v9686_v27 = vld [vmem:[%s12979_s3 + $0xb0] sm:$0xff]  }
  0x38   : > { %9589 = vmatmul.mubr.msk.bf16.gmra.mxu1 %vm495_vm0, %v9679_v29  ;;  %9192 = vmatpush3.bf16.msra.mxu0 %v9687_v28  ;;  %v9688_v29 = vld [vmem:[%s12979_s3 + $0xe8] sm:$0xff]  }
  0x39   : > { %1922 = vrot.lane.b32.xlu0 %v8799_v40, %s10102_s20  ;;  %9128 = vmatpush3.bf16.msra.mxu1 %v9686_v27 }
  0x3a   : > { %1928 = vrot.lane.b32.xlu1 %v8802_v42, %s10102_s20  ;;  %9129 = vmatprep.subr.bf16.mxu1 %v9688_v29 }
  0x3d   : > { %2740 = vrot.lane.b32.xlu0 %v8831_v2, %s10102_s20 }
  0x3e   : > { %1932 = vrot.lane.b32.xlu1 %v8804_v44, %s10102_s20  ;;  %v9697_v44 = vld [vmem:[%s12979_s3 + $0x58] sm:$0xff]  }
  0x42   : > { %1936 = vrot.lane.b32.xlu1 %v8806_v46, %s10102_s20 }
  0x46   : > { %1940 = vrot.lane.b32.xlu1 %v8808_v55, %s10102_s20 }
  0x4a   : > { %1944 = vrot.lane.b32.xlu1 %v8810_v58, %s10102_s20 }
  0x4e   : > { %1456 = vrot.lane.b32.xlu1 %v8750_v60, %s10102_s20  ;;  %v9701_v60 = vld [vmem:[%s12979_s3 + $0x50] sm:$0xff]  }
  0x52   : > { %1948 = vrot.lane.b32.xlu1 %v8812_v62, %s10102_s20 }
  0x56   : > { %1952 = vrot.lane.b32.xlu1 %v8814_v1, %s10102_s20  ;;  %v9703_v1 = vld [vmem:[%s12979_s3 + $0x10] sm:$0xff]  }
  0x97   : > { %v1201_v3 = vpop.permute.xlu0 %1200 }
  0x98   : > { %v1427_v4 = vpop.permute.xlu1 %1426  ;;  %1249 = vst.msk [vmem:[#allocation9] sm:$0xf] %vm1248_vm3, %v1201_v3 }
  0x99   : > { %1474 = vst.msk [vmem:[#allocation9 + $0x4] sm:$0xf] %vm1248_vm3, %v1427_v4 }
  0x9b   : > { %v1203_v6 = vpop.permute.xlu0 %1202 }
  0x9c   : > { %v1429_v7 = vpop.permute.xlu1 %1428  ;;  %1250 = vst.msk [vmem:[#allocation9 + $0x8] sm:$0xf] %vm1248_vm3, %v1203_v6 }
  0x9d   : > { %1475 = vst.msk [vmem:[#allocation9 + $0xc] sm:$0xf] %vm1248_vm3, %v1429_v7 }
  0x9f   : > { %v1205_v11 = vpop.permute.xlu0 %1204 }
  0xa0   : > { %v10316_v10 = vld [vmem:[#allocation9] sm:$0xff]  ;;  %v1207_v12 = vpop.permute.xlu1 %1206  ;;  %1251 = vst.msk [vmem:[#allocation9 + $0x10] sm:$0xf] %vm1248_vm3, %v1205_v11 }
  0xa1   : > { %1842 = vst.msk [vmem:[#allocation9 + $0x4] sm:$0xf] %vm1118_vm2, %v10281_v30  ;;  %1618 = vst.msk [vmem:[#allocation9] sm:$0xf] %vm1118_vm2, %v8751_v8  ;;  %v9689_v30 = vld [vmem:[%s12979_s3 + $0x68] sm:$0xff]  }
  0xa2   : > { %1252 = vst.msk [vmem:[#allocation9 + $0x18] sm:$0xf] %vm1248_vm3, %v1207_v12  ;;  %9193 = vmatprep.subr.bf16.mxu0 %v9689_v30 }
  0xa3   : > { %v1431_v15 = vpop.permute.xlu0 %1430  ;;  %9194 = vmatpush3.bf16.msra.mxu0 %v9691_v32 }
  0xa4   : > { %v10323_v14 = vld [vmem:[#allocation9 + $0x8] sm:$0xff]  ;;  %v1701_v16 = vpop.permute.xlu1 %1700  ;;  %1476 = vst.msk [vmem:[#allocation9 + $0x14] sm:$0xf] %vm1248_vm3, %v1431_v15  ;;  %9195 = vmatprep.subr.bf16.mxu0 %v9693_v35  ;;  %v9705_v15 = vld [vmem:[%s12979_s3 + $0x48] sm:$0xff]  }
  0xa5   : > { %1843 = vst.msk [vmem:[#allocation9 + $0xc] sm:$0xf] %vm1118_vm2, %v10283_v31  ;;  %1619 = vst.msk [vmem:[#allocation9 + $0x8] sm:$0xf] %vm1118_vm2, %v8752_v13  ;;  %v9690_v31 = vld [vmem:[%s12979_s3 + $0xa8] sm:$0xff]  }
  0xa6   : > { %1747 = vst.msk [vmem:[#allocation9 + $0x8] sm:$0xf] %vm1248_vm3, %v1701_v16  ;;  %9130 = vmatpush3.bf16.msra.mxu1 %v9690_v31  ;;  %v9704_v13 = vld [vmem:[%s12979_s3 + $0xc8] sm:$0xff]  }
  0xa7   : > { %v1699_v17 = vpop.permute.xlu0 %1698  ;;  %9131 = vmatprep.subr.bf16.mxu1 %v9692_v34  ;;  %9196 = vmatpush3.bf16.msra.mxu0 %v9695_v37  ;;  %v9706_v16 = vld [vmem:[%s12979_s3 + $0x88] sm:$0xff]   ;;  %v9709_v37 = vld [vmem:[%s12979_s3 + $0x40] sm:$0xff]  }
  0xa8   : > { %v1925_v18 = vpop.permute.xlu1 %1924  ;;  %1746 = vst.msk [vmem:[#allocation9] sm:$0xf] %vm1248_vm3, %v1699_v17  ;;  %9197 = vmatprep.subr.bf16.mxu0 %v9697_v44  ;;  %v9711_v44 = vld [vmem:[%s12979_s3] sm:$0xff]  }
  0xa9   : > { %1971 = vst.msk [vmem:[#allocation9 + $0xc] sm:$0xf] %vm1248_vm3, %v1925_v18 }
  0xaa   : > { %9132 = vmatpush3.bf16.msra.mxu1 %v9694_v36  ;;  %v9708_v36 = vld [vmem:[%s12979_s3 + $0xc0] sm:$0xff]  }
  0xab   : > { %v10332_v19 = vld [vmem:[#allocation9 + $0x10] sm:$0xff]  ;;  %v1923_v20 = vpop.permute.xlu0 %1922  ;;  %9133 = vmatprep.subr.bf16.mxu1 %v9696_v43  ;;  %9198 = vmatpush3.bf16.msra.mxu0 %v9699_v49 }
  0xac   : > { %1970 = vst.msk [vmem:[#allocation9 + $0x4] sm:$0xf] %vm1248_vm3, %v1923_v20  ;;  %9199 = vmatprep.subr.bf16.mxu0 %v9701_v60  ;;  %v10429_v12 = vpop.permute.xlu1 %1928  ;;  %v9710_v43 = vld [vmem:[%s12979_s3 + $0x80] sm:$0xff]  }
  0xad   : > { %1620 = vst.msk [vmem:[#allocation9 + $0x10] sm:$0xf] %vm1118_vm2, %v8831_v2 }
  0xae   : > { %9134 = vmatpush3.bf16.msra.mxu1 %v9698_v45 }
  0xaf   : > { %9135 = vmatprep.subr.bf16.mxu1 %v9700_v59  ;;  %9200 = vmatpush3.bf16.msra.mxu0 %v9703_v1 }
  0xb0   : > { %9201 = vmatprep.subr.bf16.mxu0 %v9705_v15  ;;  %v10455_v35 = vpop.permute.xlu1 %1932 }
  0xb2   : > { %9136 = vmatpush3.bf16.msra.mxu1 %v9702_v61  ;;  %v8054_v61 = vcombine.high %v10316_v10, %v10323_v14 }
  0xb3   : > { %9137 = vmatprep.subr.bf16.mxu1 %v9704_v13  ;;  %9202 = vmatpush3.bf16.msra.mxu0 %v9707_v21 }
  0xb4   : > { %9203 = vmatprep.subr.bf16.mxu0 %v9709_v37  ;;  %2515 = vmatprep.mubr.bf16.mxu0 %v8054_v61 }
  0xb6   : > { %9138 = vmatpush3.bf16.msra.mxu1 %v9706_v16 }
  0xb7   : > { %9139 = vmatprep.subr.bf16.mxu1 %v9708_v36  ;;  %9204 = vmatpush3.bf16.msra.mxu0 %v9711_v44 }
  0xba   : > { %9140 = vmatpush3.bf16.msra.mxu1 %v9710_v43 }
  0xdf   : > { %v9562_v38 = vpop.f32.mrf.mxu0 }
  0xe0   : > { %v587_v39 = vadd.f32 %v9562_v38, %v10375_v33  ;;  %v9578_v40 = vpop.f32.mrf.mxu1 }
  0xe1   : > { %v651_v41 = vadd.f32 %v9578_v40, %v10375_v33  ;;  %v578_v42 = vpop.f32.mrf.mxu0 }
  0xe2   : > { %v707_v46 = vmax.f32 %v587_v39, 0.0  ;;  %v579_v47 = vadd.f32 %v10375_v33, %v578_v42  ;;  %v642_v48 = vpop.f32.mrf.mxu1 }
  0xe3   : > { %v723_v50 = vmax.f32 %v651_v41, 0.0  ;;  %v643_v51 = vadd.f32 %v10375_v33, %v642_v48  ;;  %v9563_v52 = vpop.f32.mrf.mxu0 }
  0xe4   : > { %740 = vst.msk [vmem:[#allocation2 + $0x10] sm:$0xff] %vm737_vm1, %v707_v46  ;;  %v705_v53 = vmax.f32 %v579_v47, 0.0  ;;  %v590_v54 = vadd.f32 %v9563_v52, %v10375_v33  ;;  %v9579_v55 = vpop.f32.mrf.mxu1 }
  0xe5   : > { %756 = vst.msk [vmem:[#allocation2 + $0x90] sm:$0xff] %vm737_vm1, %v723_v50  ;;  %v721_v56 = vmax.f32 %v643_v51, 0.0  ;;  %v654_v57 = vadd.f32 %v9579_v55, %v10375_v33  ;;  %v581_v58 = vpop.f32.mrf.mxu0 }
  0xe6   : > { %738 = vst.msk [vmem:[#allocation2] sm:$0xff] %vm737_vm1, %v705_v53  ;;  %v708_v62 = vmax.f32 %v590_v54, 0.0  ;;  %v582_v63 = vadd.f32 %v10375_v33, %v581_v58  ;;  %v645_v0 = vpop.f32.mrf.mxu1  ;;  %v1987_v53 = vld [vmem:[#allocation9 + $0x8] sm:$0xff]  ;;  %v1986_v54 = vld [vmem:[#allocation9] sm:$0xff] }
  0xe7   : > { %754 = vst.msk [vmem:[#allocation2 + $0x80] sm:$0xff] %vm737_vm1, %v721_v56  ;;  %v724_v2 = vmax.f32 %v654_v57, 0.0  ;;  %v646_v3 = vadd.f32 %v10375_v33, %v645_v0  ;;  %v9566_v4 = vpop.f32.mrf.mxu0  ;;  %v8022_v60 = vcombine.high %v1986_v54, %v1987_v53 }
  0xe8   : > { %741 = vst.msk [vmem:[#allocation2 + $0x18] sm:$0xff] %vm737_vm1, %v708_v62  ;;  %v706_v5 = vmax.f32 %v582_v63, 0.0  ;;  %v603_v6 = vadd.f32 %v9566_v4, %v10375_v33  ;;  %v9582_v7 = vpop.f32.mrf.mxu1 }
  0xe9   : > { %757 = vst.msk [vmem:[#allocation2 + $0x98] sm:$0xff] %vm737_vm1, %v724_v2  ;;  %v722_v8 = vmax.f32 %v646_v3, 0.0  ;;  %v667_v9 = vadd.f32 %v9582_v7, %v10375_v33  ;;  %v594_v11 = vpop.f32.mrf.mxu0  ;;  %v8021_v3 = vcombine.low %v1986_v54, %v1987_v53  ;;  %2242 = vmatprep.mubr.bf16.mxu1 %v8022_v60 }
  0xea   : > { %739 = vst.msk [vmem:[#allocation2 + $0x8] sm:$0xff] %vm737_vm1, %v706_v5  ;;  %v711_v17 = vmax.f32 %v603_v6, 0.0  ;;  %v595_v18 = vadd.f32 %v10375_v33, %v594_v11  ;;  %v658_v20 = vpop.f32.mrf.mxu1 }
  0xeb   : > { %755 = vst.msk [vmem:[#allocation2 + $0x88] sm:$0xff] %vm737_vm1, %v722_v8  ;;  %v727_v22 = vmax.f32 %v667_v9, 0.0  ;;  %v659_v23 = vadd.f32 %v10375_v33, %v658_v20  ;;  %v9567_v24 = vpop.f32.mrf.mxu0  ;;  %v10447_v25 = vld [vmem:[#allocation2 + $0x10] sm:$0xff]  ;;  %v10499_v8 = vpop.permute.xlu1 %1936  ;;  %v8053_v9 = vcombine.low %v10316_v10, %v10323_v14  ;;  %2243 = vmatmul.mubr.bf16.vlgmr.msra.gmra.mxu1 %v8021_v3 }
  0xec   : > { %v10449_v26 = vld [vmem:[#allocation2 + $0x90] sm:$0xff]  ;;  %744 = vst.msk [vmem:[#allocation2 + $0x30] sm:$0xff] %vm737_vm1, %v711_v17  ;;  %v709_v27 = vmax.f32 %v595_v18, 0.0  ;;  %v606_v28 = vadd.f32 %v9567_v24, %v10375_v33  ;;  %v9583_v29 = vpop.f32.mrf.mxu1 }
  0xed   : > { %v770_v30 = vld [vmem:[#allocation2] sm:$0xff]  ;;  %760 = vst.msk [vmem:[#allocation2 + $0xb0] sm:$0xff] %vm737_vm1, %v727_v22  ;;  %v725_v31 = vmax.f32 %v659_v23, 0.0  ;;  %v670_v32 = vadd.f32 %v9583_v29, %v10375_v33  ;;  %v597_v34 = vpop.f32.mrf.mxu0  ;;  %2516 = vmatmul.mubr.bf16.vlgmr.msra.gmra.mxu0 %v8053_v9 }
  0xee   : > { %v802_v38 = vadd.f32 %v10447_v25, %v770_v30  ;;  %v10464_v39 = vld [vmem:[#allocation2 + $0x80] sm:$0xff]  ;;  %742 = vst.msk [vmem:[#allocation2 + $0x20] sm:$0xff] %vm737_vm1, %v709_v27  ;;  %v712_v40 = vmax.f32 %v606_v28, 0.0  ;;  %v598_v41 = vadd.f32 %v10375_v33, %v597_v34  ;;  %v661_v42 = vpop.f32.mrf.mxu1 }
  0xef   : > { %v818_v45 = vadd.f32 %v10449_v26, %v10464_v39  ;;  %758 = vst.msk [vmem:[#allocation2 + $0xa0] sm:$0xff] %vm737_vm1, %v725_v31  ;;  %v728_v46 = vmax.f32 %v670_v32, 0.0  ;;  %v662_v47 = vadd.f32 %v10375_v33, %v661_v42  ;;  %v9570_v48 = vpop.f32.mrf.mxu0  ;;  %v10486_v59 = vld [vmem:[#allocation2 + $0x18] sm:$0xff] }
  0xf0   : > { %832 = vst.msk [vmem:[#allocation3] sm:$0xff] %vm737_vm1, %v802_v38  ;;  %745 = vst.msk [vmem:[#allocation2 + $0x38] sm:$0xff] %vm737_vm1, %v712_v40  ;;  %v710_v49 = vmax.f32 %v598_v41, 0.0  ;;  %v619_v50 = vadd.f32 %v9570_v48, %v10375_v33  ;;  %v9586_v51 = vpop.f32.mrf.mxu1  ;;  %v10481_v52 = vld [vmem:[#allocation2 + $0x98] sm:$0xff] }
  0xf1   : > { %848 = vst.msk [vmem:[#allocation3 + $0x80] sm:$0xff] %vm737_vm1, %v818_v45  ;;  %v771_v55 = vld [vmem:[#allocation2 + $0x8] sm:$0xff]  ;;  %761 = vst.msk [vmem:[#allocation2 + $0xb8] sm:$0xff] %vm737_vm1, %v728_v46  ;;  %v726_v56 = vmax.f32 %v662_v47, 0.0  ;;  %v683_v57 = vadd.f32 %v9586_v51, %v10375_v33  ;;  %v610_v58 = vpop.f32.mrf.mxu0 }
  0xf2   : > { %743 = vst.msk [vmem:[#allocation2 + $0x28] sm:$0xff] %vm737_vm1, %v710_v49  ;;  %v715_v62 = vmax.f32 %v619_v50, 0.0  ;;  %v611_v63 = vadd.f32 %v10375_v33, %v610_v58  ;;  %v674_v0 = vpop.f32.mrf.mxu1  ;;  %v10492_v1 = vld [vmem:[#allocation2 + $0x88] sm:$0xff]  ;;  %v803_v2 = vadd.f32 %v10486_v59, %v771_v55 }
  0xf3   : > { %759 = vst.msk [vmem:[#allocation2 + $0xa8] sm:$0xff] %vm737_vm1, %v726_v56  ;;  %v731_v4 = vmax.f32 %v683_v57, 0.0  ;;  %v675_v5 = vadd.f32 %v10375_v33, %v674_v0  ;;  %v9571_v6 = vpop.f32.mrf.mxu0  ;;  %v819_v7 = vadd.f32 %v10481_v52, %v10492_v1  ;;  %v10508_v17 = vld [vmem:[#allocation2 + $0x30] sm:$0xff] }
  0xf4   : > { %v10503_v11 = vld [vmem:[#allocation2 + $0xb0] sm:$0xff]  ;;  %748 = vst.msk [vmem:[#allocation2 + $0x50] sm:$0xff] %vm737_vm1, %v715_v62  ;;  %v713_v13 = vmax.f32 %v611_v63, 0.0  ;;  %v622_v15 = vadd.f32 %v9571_v6, %v10375_v33  ;;  %v9587_v16 = vpop.f32.mrf.mxu1  ;;  %833 = vst.msk [vmem:[#allocation3 + $0x8] sm:$0xff] %vm737_vm1, %v803_v2 }
  0xf5   : > { %v774_v18 = vld [vmem:[#allocation2 + $0x20] sm:$0xff]  ;;  %764 = vst.msk [vmem:[#allocation2 + $0xd0] sm:$0xff] %vm737_vm1, %v731_v4  ;;  %v729_v20 = vmax.f32 %v675_v5, 0.0  ;;  %v686_v21 = vadd.f32 %v9587_v16, %v10375_v33  ;;  %v613_v10 = vpop.f32.mrf.mxu0  ;;  %849 = vst.msk [vmem:[#allocation3 + $0x88] sm:$0xff] %vm737_vm1, %v819_v7 }
  0xf6   : > { %v804_v14 = vadd.f32 %v774_v18, %v10447_v25  ;;  %v806_v22 = vadd.f32 %v10508_v17, %v774_v18  ;;  %v790_v23 = vld [vmem:[#allocation2 + $0xa0] sm:$0xff]  ;;  %746 = vst.msk [vmem:[#allocation2 + $0x40] sm:$0xff] %vm737_vm1, %v713_v13  ;;  %v716_v24 = vmax.f32 %v622_v15, 0.0  ;;  %v614_v27 = vadd.f32 %v10375_v33, %v613_v10  ;;  %v677_v28 = vpop.f32.mrf.mxu1  ;;  %v1281_v13 = vld [vmem:[#allocation4 + $0x7a] sm:$0xf] }
  0xf7   : > { %v820_v29 = vadd.f32 %v790_v23, %v10449_v26  ;;  %v822_v30 = vadd.f32 %v10503_v11, %v790_v23  ;;  %762 = vst.msk [vmem:[#allocation2 + $0xc0] sm:$0xff] %vm737_vm1, %v729_v20  ;;  %v732_v31 = vmax.f32 %v686_v21, 0.0  ;;  %v678_v32 = vadd.f32 %v10375_v33, %v677_v28  ;;  %v9574_v34 = vpop.f32.mrf.mxu0  ;;  %v10527_v26 = vpop.permute.xlu1 %1940  ;;  %v10533_v44 = vld [vmem:[#allocation2 + $0x38] sm:$0xff]  ;;  %v862_v53 = vld [vmem:[#allocation3] sm:$0xff] }
  0xf8   : > { %834 = vst.msk [vmem:[#allocation3 + $0x10] sm:$0xff] %vm737_vm1, %v804_v14  ;;  %836 = vst.msk [vmem:[#allocation3 + $0x20] sm:$0xff] %vm737_vm1, %v806_v22  ;;  %v714_v25 = vmax.f32 %v614_v27, 0.0  ;;  %v635_v36 = vadd.f32 %v9574_v34, %v10375_v33  ;;  %v9590_v37 = vpop.f32.mrf.mxu1  ;;  %v10525_v38 = vld [vmem:[#allocation2 + $0xb8] sm:$0xff]  ;;  %v878_v49 = vld [vmem:[#allocation3 + $0x80] sm:$0xff] }
  0xf9   : > { %749 = vst.msk [vmem:[#allocation2 + $0x58] sm:$0xff] %vm737_vm1, %v716_v24  ;;  %850 = vst.msk [vmem:[#allocation3 + $0x90] sm:$0xff] %vm737_vm1, %v820_v29  ;;  %v730_v40 = vmax.f32 %v678_v32, 0.0  ;;  %v699_v41 = vadd.f32 %v9590_v37, %v10375_v33  ;;  %v626_v42 = vpop.f32.mrf.mxu0  ;;  %v775_v43 = vld [vmem:[#allocation2 + $0x28] sm:$0xff] }
  0xfa   : > { %852 = vst.msk [vmem:[#allocation3 + $0xa0] sm:$0xff] %vm737_vm1, %v822_v30  ;;  %765 = vst.msk [vmem:[#allocation2 + $0xd8] sm:$0xff] %vm737_vm1, %v732_v31  ;;  %v719_v45 = vmax.f32 %v635_v36, 0.0  ;;  %v627_v46 = vadd.f32 %v10375_v33, %v626_v42  ;;  %v690_v47 = vpop.f32.mrf.mxu1  ;;  %v791_v48 = vld [vmem:[#allocation2 + $0xa8] sm:$0xff]  ;;  %v805_v50 = vadd.f32 %v775_v43, %v10486_v59  ;;  %v807_v51 = vadd.f32 %v10533_v44, %v775_v43 }
  0xfb   : > { %747 = vst.msk [vmem:[#allocation2 + $0x48] sm:$0xff] %vm737_vm1, %v714_v25  ;;  %v10539_v54 = vld [vmem:[#allocation2 + $0x50] sm:$0xff]  ;;  %763 = vst.msk [vmem:[#allocation2 + $0xc8] sm:$0xff] %vm737_vm1, %v730_v40  ;;  %v735_v55 = vmax.f32 %v699_v41, 0.0  ;;  %v691_v56 = vadd.f32 %v10375_v33, %v690_v47  ;;  %v9575_v57 = vpop.f32.mrf.mxu0  ;;  %v821_v58 = vadd.f32 %v791_v48, %v10481_v52  ;;  %v892_v60 = vld [vmem:[#allocation3 + $0x1] sm:$0xff]  ;;  %v823_v61 = vadd.f32 %v10525_v38, %v791_v48  ;;  %v10551_v4 = vpop.permute.xlu1 %1944 }
  0xfc   : > { %v10545_v62 = vld [vmem:[#allocation2 + $0xd0] sm:$0xff]  ;;  %752 = vst.msk [vmem:[#allocation2 + $0x70] sm:$0xff] %vm737_vm1, %v719_v45  ;;  %v717_v59 = vmax.f32 %v627_v46, 0.0  ;;  %v638_v63 = vadd.f32 %v9575_v57, %v10375_v33  ;;  %v908_v0 = vld [vmem:[#allocation3 + $0x81] sm:$0xff]  ;;  %835 = vst.msk [vmem:[#allocation3 + $0x18] sm:$0xff] %vm737_vm1, %v805_v50  ;;  %v922_v2 = vadd.f32 %v892_v60, %v862_v53  ;;  %v9591_v3 = vpop.f32.mrf.mxu1  ;;  %v8734_v31 = vpack.c.bf16 %v1281_v13, %v1281_v13 }
  0xfd   : > { %837 = vst.msk [vmem:[#allocation3 + $0x28] sm:$0xff] %vm737_vm1, %v807_v51  ;;  %v778_v52 = vld [vmem:[#allocation2 + $0x40] sm:$0xff]  ;;  %768 = vst.msk [vmem:[#allocation2 + $0xf0] sm:$0xff] %vm737_vm1, %v735_v55  ;;  %v733_v5 = vmax.f32 %v691_v56, 0.0  ;;  %v938_v6 = vadd.f32 %v908_v0, %v878_v49  ;;  %v629_v7 = vpop.f32.mrf.mxu0  ;;  %v702_v9 = vadd.f32 %v9591_v3, %v10375_v33  ;;  %v879_v21 = vld [vmem:[#allocation3 + $0x88] sm:$0xff] }
  0xfe   : > { %851 = vst.msk [vmem:[#allocation3 + $0x98] sm:$0xff] %vm737_vm1, %v821_v58  ;;  %853 = vst.msk [vmem:[#allocation3 + $0xa8] sm:$0xff] %vm737_vm1, %v823_v61  ;;  %v808_v15 = vadd.f32 %v778_v52, %v10508_v17  ;;  %v810_v16 = vadd.f32 %v10539_v54, %v778_v52  ;;  %v794_v18 = vld [vmem:[#allocation2 + $0xc0] sm:$0xff]  ;;  %v720_v20 = vmax.f32 %v638_v63, 0.0  ;;  %v630_v10 = vadd.f32 %v10375_v33, %v629_v7  ;;  %v693_v14 = vpop.f32.mrf.mxu1 }
  0xff   : > { %750 = vst.msk [vmem:[#allocation2 + $0x60] sm:$0xff] %vm737_vm1, %v717_v59  ;;  %952 = vst.msk [vmem:[#allocation2] sm:$0xff] %vm737_vm1, %v922_v2  ;;  %v824_v22 = vadd.f32 %v794_v18, %v10503_v11  ;;  %v826_v23 = vadd.f32 %v10545_v62, %v794_v18  ;;  %v736_v24 = vmax.f32 %v702_v9, 0.0  ;;  %v694_v27 = vadd.f32 %v10375_v33, %v693_v14  ;;  %v863_v11 = vld [vmem:[#allocation3 + $0x8] sm:$0xff]  ;;  %v1457_v43 = vpop.permute.xlu1 %1456  ;;  %v864_v46 = vld [vmem:[#allocation3 + $0x10] sm:$0xff] }
 0x100   : > { %766 = vst.msk [vmem:[#allocation2 + $0xe0] sm:$0xff] %vm737_vm1, %v733_v5  ;;  %968 = vst.msk [vmem:[#allocation2 + $0x80] sm:$0xff] %vm737_vm1, %v938_v6  ;;  %v10566_v17 = vld [vmem:[#allocation2 + $0x58] sm:$0xff]  ;;  %v909_v28 = vld [vmem:[#allocation3 + $0x89] sm:$0xff]  ;;  %v718_v29 = vmax.f32 %v630_v10, 0.0 }
 0x101   : > { %838 = vst.msk [vmem:[#allocation3 + $0x30] sm:$0xff] %vm737_vm1, %v808_v15  ;;  %840 = vst.msk [vmem:[#allocation3 + $0x40] sm:$0xff] %vm737_vm1, %v810_v16  ;;  %v893_v30 = vld [vmem:[#allocation3 + $0x9] sm:$0xff]  ;;  %v939_v32 = vadd.f32 %v909_v28, %v879_v21  ;;  %v734_v33 = vmax.f32 %v694_v27, 0.0  ;;  %v10575_v36 = vld [vmem:[#allocation2 + $0xd8] sm:$0xff] }
 0x102   : > { %753 = vst.msk [vmem:[#allocation2 + $0x78] sm:$0xff] %vm737_vm1, %v720_v20  ;;  %854 = vst.msk [vmem:[#allocation3 + $0xb0] sm:$0xff] %vm737_vm1, %v824_v22  ;;  %v779_v34 = vld [vmem:[#allocation2 + $0x48] sm:$0xff]  ;;  %v923_v25 = vadd.f32 %v893_v30, %v863_v11  ;;  %v880_v37 = vld [vmem:[#allocation3 + $0x90] sm:$0xff] }
 0x103   : > { %856 = vst.msk [vmem:[#allocation3 + $0xc0] sm:$0xff] %vm737_vm1, %v826_v23  ;;  %769 = vst.msk [vmem:[#allocation2 + $0xf8] sm:$0xff] %vm737_vm1, %v736_v24  ;;  %v809_v40 = vadd.f32 %v779_v34, %v10533_v44  ;;  %v811_v41 = vadd.f32 %v10566_v17, %v779_v34  ;;  %v795_v42 = vld [vmem:[#allocation2 + $0xc8] sm:$0xff]  ;;  %v784_v45 = vld [vmem:[#allocation2 + $0x70] sm:$0xff] }
 0x104   : > { %751 = vst.msk [vmem:[#allocation2 + $0x68] sm:$0xff] %vm737_vm1, %v718_v29  ;;  %969 = vst.msk [vmem:[#allocation2 + $0x88] sm:$0xff] %vm737_vm1, %v939_v32  ;;  %v865_v47 = vld [vmem:[#allocation3 + $0x18] sm:$0xff]  ;;  %v825_v48 = vadd.f32 %v795_v42, %v10525_v38  ;;  %v827_v49 = vadd.f32 %v10575_v36, %v795_v42  ;;  %v816_v44 = vadd.f32 %v10464_v39, %v784_v45  ;;  %v800_v50 = vld [vmem:[#allocation2 + $0xf0] sm:$0xff] }
 0x105   : > { %1361 = vst.msk [vmem:[#allocation9 + $0x7c] sm:$0x3] %vm1134_vm5, %v8734_v31  ;;  %v881_v51 = vld [vmem:[#allocation3 + $0x98] sm:$0xff]  ;;  %v866_v55 = vld [vmem:[#allocation3 + $0x20] sm:$0xff]  ;;  %v867_v9 = vld [vmem:[#allocation3 + $0x28] sm:$0xff] }
 0x106   : > { %953 = vst.msk [vmem:[#allocation2 + $0x8] sm:$0xff] %vm737_vm1, %v923_v25  ;;  %767 = vst.msk [vmem:[#allocation2 + $0xe8] sm:$0xff] %vm737_vm1, %v734_v33  ;;  %v910_v53 = vld [vmem:[#allocation3 + $0x91] sm:$0xff]  ;;  %v782_v56 = vld [vmem:[#allocation2 + $0x60] sm:$0xff] }
 0x107   : > { %1489 = vst.msk [vmem:[#allocation9 + $0x7c] sm:$0x3] %vm1264_vm4, %v1457_v43  ;;  %v911_v57 = vld [vmem:[#allocation3 + $0x99] sm:$0xff]  ;;  %v940_v58 = vadd.f32 %v910_v53, %v880_v37  ;;  %v894_v60 = vld [vmem:[#allocation3 + $0x11] sm:$0xff]  ;;  %v812_v39 = vadd.f32 %v782_v56, %v10539_v54  ;;  %v814_v38 = vadd.f32 %v784_v45, %v782_v56  ;;  %v896_v0 = vld [vmem:[#allocation3 + $0x21] sm:$0xff] }
 0x108   : > { %839 = vst.msk [vmem:[#allocation3 + $0x38] sm:$0xff] %vm737_vm1, %v809_v40  ;;  %841 = vst.msk [vmem:[#allocation3 + $0x48] sm:$0xff] %vm737_vm1, %v811_v41  ;;  %v798_v61 = vld [vmem:[#allocation2 + $0xe0] sm:$0xff]  ;;  %v941_v59 = vadd.f32 %v911_v57, %v881_v51  ;;  %v924_v2 = vadd.f32 %v894_v60, %v864_v46  ;;  %v926_v7 = vadd.f32 %v896_v0, %v866_v55  ;;  %v897_v13 = vld [vmem:[#allocation3 + $0x29] sm:$0xff] }
 0x109   : > { %855 = vst.msk [vmem:[#allocation3 + $0xb8] sm:$0xff] %vm737_vm1, %v825_v48  ;;  %857 = vst.msk [vmem:[#allocation3 + $0xc8] sm:$0xff] %vm737_vm1, %v827_v49  ;;  %v895_v63 = vld [vmem:[#allocation3 + $0x19] sm:$0xff]  ;;  %v828_v3 = vadd.f32 %v798_v61, %v10545_v62  ;;  %v830_v52 = vadd.f32 %v800_v50, %v798_v61  ;;  %v868_v16 = vld [vmem:[#allocation3 + $0x30] sm:$0xff]  ;;  %v927_v20 = vadd.f32 %v897_v13, %v867_v9  ;;  %v2741_v13 = vpop.permute.xlu0 %2740 }
 0x10a   : > { %846 = vst.msk [vmem:[#allocation3 + $0x70] sm:$0xff] %vm737_vm1, %v816_v44  ;;  %v785_v5 = vld [vmem:[#allocation2 + $0x78] sm:$0xff]  ;;  %970 = vst.msk [vmem:[#allocation2 + $0x90] sm:$0xff] %vm737_vm1, %v940_v58  ;;  %v925_v6 = vadd.f32 %v895_v63, %v865_v47  ;;  %v870_v18 = vld [vmem:[#allocation3 + $0x40] sm:$0xff] }
 0x10b   : > { %842 = vst.msk [vmem:[#allocation3 + $0x50] sm:$0xff] %vm737_vm1, %v812_v39  ;;  %844 = vst.msk [vmem:[#allocation3 + $0x60] sm:$0xff] %vm737_vm1, %v814_v38  ;;  %v817_v54 = vadd.f32 %v10492_v1, %v785_v5  ;;  %v801_v15 = vld [vmem:[#allocation2 + $0xf8] sm:$0xff]  ;;  %v783_v62 = vld [vmem:[#allocation2 + $0x68] sm:$0xff] }
 0x10c   : > { %971 = vst.msk [vmem:[#allocation2 + $0x98] sm:$0xff] %vm737_vm1, %v941_v59  ;;  %954 = vst.msk [vmem:[#allocation2 + $0x10] sm:$0xff] %vm737_vm1, %v924_v2  ;;  %v882_v1 = vld [vmem:[#allocation3 + $0xa0] sm:$0xff]  ;;  %v813_v21 = vadd.f32 %v783_v62, %v10566_v17  ;;  %v815_v10 = vadd.f32 %v785_v5, %v783_v62  ;;  %v883_v24 = vld [vmem:[#allocation3 + $0xa8] sm:$0xff] }
 0x10d   : > { %858 = vst.msk [vmem:[#allocation3 + $0xd0] sm:$0xff] %vm737_vm1, %v828_v3  ;;  %860 = vst.msk [vmem:[#allocation3 + $0xe0] sm:$0xff] %vm737_vm1, %v830_v52  ;;  %v1007_v14 = vld [vmem:[#allocation2] ss:$2 sm:$0xff]  ;;  %v884_v32 = vld [vmem:[#allocation3 + $0xb0] sm:$0xff] }
 0x10e   : > { %955 = vst.msk [vmem:[#allocation2 + $0x18] sm:$0xff] %vm737_vm1, %v925_v6  ;;  %956 = vst.msk [vmem:[#allocation2 + $0x20] sm:$0xff] %vm737_vm1, %v926_v7  ;;  %v1023_v22 = vld [vmem:[#allocation2 + $0x80] ss:$2 sm:$0xff]  ;;  %v1008_v29 = vmul.f32 0.25, %v1007_v14 }
 0x10f   : > { %847 = vst.msk [vmem:[#allocation3 + $0x78] sm:$0xff] %vm737_vm1, %v817_v54  ;;  %v799_v23 = vld [vmem:[#allocation2 + $0xe8] sm:$0xff]  ;;  %v869_v27 = vld [vmem:[#allocation3 + $0x38] sm:$0xff]  ;;  %957 = vst.msk [vmem:[#allocation2 + $0x28] sm:$0xff] %vm737_vm1, %v927_v20  ;;  %v1024_v11 = vmul.f32 0.25, %v1023_v22 }
 0x110   : > { %v898_v28 = vld [vmem:[#allocation3 + $0x31] sm:$0xff]  ;;  %v829_v30 = vadd.f32 %v799_v23, %v10575_v36  ;;  %v831_v31 = vadd.f32 %v801_v15, %v799_v23  ;;  %843 = vst.msk [vmem:[#allocation3 + $0x58] sm:$0xff] %vm737_vm1, %v813_v21  ;;  %845 = vst.msk [vmem:[#allocation3 + $0x68] sm:$0xff] %vm737_vm1, %v815_v10  ;;  %v899_v17 = vld [vmem:[#allocation3 + $0x39] sm:$0xff] }
 0x111   : > { %v900_v34 = vld [vmem:[#allocation3 + $0x41] sm:$0xff]  ;;  %v928_v25 = vadd.f32 %v898_v28, %v868_v16  ;;  %v885_v33 = vld [vmem:[#allocation3 + $0xb8] sm:$0xff]  ;;  %v929_v40 = vadd.f32 %v899_v17, %v869_v27  ;;  %1009 = vst.msk [vmem:[#allocation4 + $0x22] sm:$0xff] %vm737_vm1, %v1008_v29  ;;  %1025 = vst.msk [vmem:[#allocation4 + $0x62] sm:$0xff] %vm737_vm1, %v1024_v11 }
 0x112   : > { %v871_v37 = vld [vmem:[#allocation3 + $0x48] sm:$0xff]  ;;  %v930_v41 = vadd.f32 %v900_v34, %v870_v18  ;;  %859 = vst.msk [vmem:[#allocation3 + $0xd8] sm:$0xff] %vm737_vm1, %v829_v30  ;;  %861 = vst.msk [vmem:[#allocation3 + $0xe8] sm:$0xff] %vm737_vm1, %v831_v31  ;;  %v886_v36 = vld [vmem:[#allocation3 + $0xc0] sm:$0xff] }
 0x113   : > { %v912_v42 = vld [vmem:[#allocation3 + $0xa1] sm:$0xff]  ;;  %958 = vst.msk [vmem:[#allocation2 + $0x30] sm:$0xff] %vm737_vm1, %v928_v25  ;;  %v913_v43 = vld [vmem:[#allocation3 + $0xa9] sm:$0xff]  ;;  %v914_v45 = vld [vmem:[#allocation3 + $0xb1] sm:$0xff] }
 0x114   : > { %v915_v46 = vld [vmem:[#allocation3 + $0xb9] sm:$0xff]  ;;  %v942_v47 = vadd.f32 %v912_v42, %v882_v1  ;;  %v876_v48 = vld [vmem:[#allocation3 + $0x70] sm:$0xff]  ;;  %959 = vst.msk [vmem:[#allocation2 + $0x38] sm:$0xff] %vm737_vm1, %v929_v40  ;;  %960 = vst.msk [vmem:[#allocation2 + $0x40] sm:$0xff] %vm737_vm1, %v930_v41  ;;  %v943_v50 = vadd.f32 %v913_v43, %v883_v24  ;;  %v944_v51 = vadd.f32 %v914_v45, %v884_v32 }
 0x115   : > { %v901_v49 = vld [vmem:[#allocation3 + $0x49] sm:$0xff]  ;;  %v945_v53 = vadd.f32 %v915_v46, %v885_v33  ;;  %v874_v56 = vld [vmem:[#allocation3 + $0x60] sm:$0xff] }
 0x116   : > { %v887_v44 = vld [vmem:[#allocation3 + $0xc8] sm:$0xff]  ;;  %v872_v55 = vld [vmem:[#allocation3 + $0x50] sm:$0xff]  ;;  %v931_v57 = vadd.f32 %v901_v49, %v871_v37  ;;  %972 = vst.msk [vmem:[#allocation2 + $0xa0] sm:$0xff] %vm737_vm1, %v942_v47  ;;  %v877_v60 = vld [vmem:[#allocation3 + $0x78] sm:$0xff] }
 0x117   : > { %v916_v58 = vld [vmem:[#allocation3 + $0xc1] sm:$0xff]  ;;  %v906_v39 = vld [vmem:[#allocation3 + $0x71] sm:$0xff]  ;;  %v907_v38 = vld [vmem:[#allocation3 + $0x79] sm:$0xff]  ;;  %973 = vst.msk [vmem:[#allocation2 + $0xa8] sm:$0xff] %vm737_vm1, %v943_v50 }
 0x118   : > { %v946_v61 = vadd.f32 %v916_v58, %v886_v36  ;;  %974 = vst.msk [vmem:[#allocation2 + $0xb0] sm:$0xff] %vm737_vm1, %v944_v51  ;;  %975 = vst.msk [vmem:[#allocation2 + $0xb8] sm:$0xff] %vm737_vm1, %v945_v53  ;;  %v936_v59 = vadd.f32 %v906_v39, %v876_v48  ;;  %v937_v63 = vadd.f32 %v907_v38, %v877_v60  ;;  %v917_v0 = vld [vmem:[#allocation3 + $0xc9] sm:$0xff]  ;;  %v873_v52 = vld [vmem:[#allocation3 + $0x58] sm:$0xff] }
 0x119   : > { %961 = vst.msk [vmem:[#allocation2 + $0x48] sm:$0xff] %vm737_vm1, %v931_v57  ;;  %v1011_v2 = vld [vmem:[#allocation2 + $0x20] ss:$2 sm:$0xff]  ;;  %v902_v6 = vld [vmem:[#allocation3 + $0x51] sm:$0xff]  ;;  %v947_v7 = vadd.f32 %v917_v0, %v887_v44 }
 0x11a   : > { %v2580_v3 = vld [vmem:[#allocation4 + $0x13] sm:$0xff]  ;;  %976 = vst.msk [vmem:[#allocation2 + $0xc0] sm:$0xff] %vm737_vm1, %v946_v61  ;;  %v1012_v54 = vmul.f32 0.25, %v1011_v2  ;;  %966 = vst.msk [vmem:[#allocation2 + $0x70] sm:$0xff] %vm737_vm1, %v936_v59  ;;  %v903_v15 = vld [vmem:[#allocation3 + $0x59] sm:$0xff]  ;;  %v932_v18 = vadd.f32 %v902_v6, %v872_v55 }
 0x11b   : > { %v875_v5 = vld [vmem:[#allocation3 + $0x68] sm:$0xff]  ;;  %v8815_v9 = vpack.c.bf16 %v2580_v3, %v2580_v3  ;;  %967 = vst.msk [vmem:[#allocation2 + $0x78] sm:$0xff] %vm737_vm1, %v937_v63  ;;  %v933_v20 = vadd.f32 %v903_v15, %v873_v52  ;;  %v1764_v10 = vld [vmem:[#allocation4 + $0x21] sm:$0xff]  ;;  %977 = vst.msk [vmem:[#allocation2 + $0xc8] sm:$0xff] %vm737_vm1, %v947_v7 }
 0x11c   : > { %v904_v62 = vld [vmem:[#allocation3 + $0x61] sm:$0xff]  ;;  %v905_v16 = vld [vmem:[#allocation3 + $0x69] sm:$0xff]  ;;  %v2805_v14 = vld [vmem:[#allocation4 + $0x28] sm:$0xff]  ;;  %1013 = vst.msk [vmem:[#allocation4 + $0x32] sm:$0xff] %vm737_vm1, %v1012_v54  ;;  %v10630_v23 = vpack.c.bf16 %v1764_v10, %v1764_v10 }
 0x11d   : > { %v934_v1 = vadd.f32 %v904_v62, %v874_v56  ;;  %v935_v21 = vadd.f32 %v905_v16, %v875_v5  ;;  %v2804_v22 = vld [vmem:[#allocation4 + $0x20] sm:$0xff]  ;;  %2660 = vst.msk [vmem:[#allocation9] sm:$0xf] %vm1118_vm2, %v8815_v9  ;;  %v10632_v24 = vpack.c.bf16 %v2805_v14, %v2805_v14  ;;  %v1141_v32 = vld [vmem:[#allocation4 + $0x29] sm:$0xff]  ;;  %v891_v40 = vld [vmem:[#allocation3 + $0xe8] sm:$0x7f] }
 0x11e   : > { %962 = vst.msk [vmem:[#allocation2 + $0x50] sm:$0xff] %vm737_vm1, %v932_v18  ;;  %v8847_v27 = vpack.c.bf16 %v2804_v22, %v2804_v22  ;;  %v1365_v28 = vld [vmem:[#allocation4 + $0x1b] sm:$0xff]  ;;  %963 = vst.msk [vmem:[#allocation2 + $0x58] sm:$0xff] %vm737_vm1, %v933_v20  ;;  %v1366_v11 = vld [vmem:[#allocation4 + $0x23] sm:$0xff]  ;;  %1208 = vrot.lane.b32.xlu0 %v10630_v23, %s10102_s20  ;;  %v10657_v47 = vpack.c.bf16 %v1141_v32, %v1141_v32 }
 0x11f   : > { %2788 = vst.msk [vmem:[#allocation9] sm:$0xf] %vm1248_vm3, %v2741_v13  ;;  %v8738_v29 = vpack.c.bf16 %v1365_v28, %v1365_v28  ;;  %v1860_v30 = vld [vmem:[#allocation4 + $0x22] sm:$0xff]  ;;  %v890_v25 = vld [vmem:[#allocation3 + $0xe0] sm:$0xff]  ;;  %v10653_v36 = vpack.c.bf16 %v1366_v11, %v1366_v11  ;;  %v921_v45 = vld [vmem:[#allocation3 + $0xe9] sm:$0x7f] }
 0x120   : > { %964 = vst.msk [vmem:[#allocation2 + $0x60] sm:$0xff] %vm737_vm1, %v934_v1  ;;  %965 = vst.msk [vmem:[#allocation2 + $0x68] sm:$0xff] %vm737_vm1, %v935_v21  ;;  %v888_v31 = vld [vmem:[#allocation3 + $0xd0] sm:$0xff]  ;;  %v10645_v17 = vpack.c.bf16 %v1860_v30, %v1860_v30  ;;  %v1645_v34 = vld [vmem:[#allocation4 + $0x68] sm:$0xff]  ;;  %v951_v44 = vadd.f32 %v921_v45, %v891_v40 }
 0x121   : > { %1844 = vst.msk [vmem:[#allocation9 + $0x14] sm:$0xf] %vm1118_vm2, %v10630_v23  ;;  %2885 = vst.msk [vmem:[#allocation9 + $0xc] sm:$0xf] %vm1118_vm2, %v10632_v24  ;;  %1432 = vrot.lane.b32.xlu1 %v8738_v29, %s10102_s20  ;;  %v10651_v33 = vpack.c.bf16 %v1645_v34, %v1645_v34  ;;  %v889_v37 = vld [vmem:[#allocation3 + $0xd8] sm:$0xff]  ;;  %v920_v43 = vld [vmem:[#allocation3 + $0xe1] sm:$0xff] }
 0x122   : > { %2884 = vst.msk [vmem:[#allocation9 + $0x4] sm:$0xf] %vm1118_vm2, %v8847_v27  ;;  %1123 = vst.msk [vmem:[#allocation9 + $0x20] sm:$0xf] %vm1118_vm2, %v8847_v27  ;;  %v918_v41 = vld [vmem:[#allocation3 + $0xd1] sm:$0xff]  ;;  %v919_v42 = vld [vmem:[#allocation3 + $0xd9] sm:$0xff]  ;;  %v950_v49 = vadd.f32 %v920_v43, %v890_v25  ;;  %1434 = vrot.lane.b32.xlu0 %v10653_v36, %s10102_s20 }
 0x123   : > { %1124 = vst.msk [vmem:[#allocation9 + $0x28] sm:$0xf] %vm1118_vm2, %v10632_v24  ;;  %v948_v46 = vadd.f32 %v918_v41, %v888_v31  ;;  %1350 = vst.msk [vmem:[#allocation9 + $0x24] sm:$0xf] %vm1118_vm2, %v10645_v17  ;;  %v949_v48 = vadd.f32 %v919_v42, %v889_v37  ;;  %v1644_v50 = vld [vmem:[#allocation4 + $0x60] sm:$0xff]  ;;  %v1639_v56 = vld [vmem:[#allocation4 + $0x38] sm:$0xff] }
 0x124   : > { %v1868_v51 = vld [vmem:[#allocation4 + $0x62] sm:$0xff]  ;;  %1132 = vst.msk [vmem:[#allocation9 + $0x68] sm:$0xf] %vm1118_vm2, %v10651_v33  ;;  %v10664_v53 = vpack.c.bf16 %v1644_v50, %v1644_v50  ;;  %v10673_v58 = vpack.c.bf16 %v1639_v56, %v1639_v56  ;;  %v1027_v60 = vld [vmem:[#allocation2 + $0xa0] ss:$2 sm:$0xff] }
 0x125   : > { %978 = vst.msk [vmem:[#allocation2 + $0xd0] sm:$0xff] %vm737_vm1, %v948_v46  ;;  %v10666_v55 = vpack.c.bf16 %v1868_v51, %v1868_v51  ;;  %1210 = vrot.lane.b32.xlu1 %v10657_v47, %s10102_s20  ;;  %979 = vst.msk [vmem:[#allocation2 + $0xd8] sm:$0xff] %vm737_vm1, %v949_v48  ;;  %v1028_v38 = vmul.f32 0.25, %v1027_v60  ;;  %v1638_v61 = vld [vmem:[#allocation4 + $0x30] sm:$0xff]  ;;  %v1373_v59 = vld [vmem:[#allocation4 + $0x5b] sm:$0xff] }
 0x126   : > { %980 = vst.msk [vmem:[#allocation2 + $0xe0] sm:$0xff] %vm737_vm1, %v950_v49  ;;  %1702 = vrot.lane.b32.xlu0 %v8847_v27, %s10102_s20  ;;  %v10680_v63 = vpack.c.bf16 %v1638_v61, %v1638_v61  ;;  %v1862_v0 = vld [vmem:[#allocation4 + $0x32] sm:$0xff]  ;;  %v1269_v6 = vld [vmem:[#allocation4 + $0x1a] sm:$0xff]  ;;  %v8746_v62 = vpack.c.bf16 %v1373_v59, %v1373_v59  ;;  %v1149_v20 = vld [vmem:[#allocation4 + $0x69] sm:$0xff] }
 0x127   : > { %982 = vst.msk [vmem:[#allocation2 + $0xe8] sm:$0x7f] %vm981_vm6, %v951_v44  ;;  %v1019_v57 = vld [vmem:[#allocation2 + $0x60] ss:$2 sm:$0xff]  ;;  %v10688_v3 = vpack.c.bf16 %v1862_v0, %v1862_v0  ;;  %v8722_v9 = vpack.c.bf16 %v1269_v6, %v1269_v6  ;;  %v1148_v16 = vld [vmem:[#allocation4 + $0x61] sm:$0xff]  ;;  %v8716_v14 = vpack.c.bf16 %v1149_v20, %v1149_v20 }
 0x128   : > { %1131 = vst.msk [vmem:[#allocation9 + $0x60] sm:$0xf] %vm1118_vm2, %v10664_v53  ;;  %1358 = vst.msk [vmem:[#allocation9 + $0x64] sm:$0xf] %vm1118_vm2, %v10666_v55  ;;  %v1020_v39 = vmul.f32 0.25, %v1019_v57  ;;  %v1277_v7 = vld [vmem:[#allocation4 + $0x5a] sm:$0xff]  ;;  %v8715_v10 = vpack.c.bf16 %v1148_v16, %v1148_v16 }
 0x129   : > { %v1015_v2 = vld [vmem:[#allocation2 + $0x40] ss:$2 sm:$0xff]  ;;  %1126 = vst.msk [vmem:[#allocation9 + $0x38] sm:$0xf] %vm1118_vm2, %v10673_v58  ;;  %1704 = vrot.lane.b32.xlu1 %v10632_v24, %s10102_s20  ;;  %v10690_v13 = vpack.c.bf16 %v1277_v7, %v1277_v7  ;;  %1125 = vst.msk [vmem:[#allocation9 + $0x30] sm:$0xf] %vm1118_vm2, %v10680_v63 }
 0x12a   : > { %1021 = vst.msk [vmem:[#allocation4 + $0x52] sm:$0xff] %vm737_vm1, %v1020_v39  ;;  %1029 = vst.msk [vmem:[#allocation4 + $0x72] sm:$0xff] %vm737_vm1, %v1028_v38  ;;  %v1016_v52 = vmul.f32 0.25, %v1015_v2  ;;  %v1031_v5 = vld [vmem:[#allocation2 + $0xc0] ss:$2 sm:$0xff]  ;;  %1926 = vrot.lane.b32.xlu0 %v10645_v17, %s10102_s20  ;;  %v1374_v22 = vld [vmem:[#allocation4 + $0x63] sm:$0xff] }
 0x12b   : > { %v1032_v54 = vmul.f32 0.25, %v1031_v5  ;;  %v2581_v15 = vld [vmem:[#allocation4 + $0x1b] sm:$0xff]  ;;  %1352 = vst.msk [vmem:[#allocation9 + $0x34] sm:$0xf] %vm1118_vm2, %v10688_v3  ;;  %1349 = vst.msk [vmem:[#allocation9 + $0x1c] sm:$0xf] %vm1118_vm2, %v8722_v9  ;;  %v8747_v24 = vpack.c.bf16 %v1374_v22, %v1374_v22 }
 0x12c   : > { %1017 = vst.msk [vmem:[#allocation4 + $0x42] sm:$0xff] %vm737_vm1, %v1016_v52  ;;  %v8816_v18 = vpack.c.bf16 %v2581_v15, %v2581_v15  ;;  %v2677_v31 = vld [vmem:[#allocation4 + $0x1c] sm:$0xff]  ;;  %v1271_v48 = vld [vmem:[#allocation4 + $0x2a] sm:$0xff] }
 0x12d   : > { %1033 = vst.msk [vmem:[#allocation4 + $0x82] sm:$0xff] %vm737_vm1, %v1032_v54  ;;  %1448 = vrot.lane.b32.xlu1 %v8746_v62, %s10102_s20  ;;  %v10723_v34 = vpack.c.bf16 %v2677_v31, %v2677_v31  ;;  %v4247_v42 = vld [vmem:[#allocation4 + $0x3a] sm:$0xff]  ;;  %v10747_v50 = vpack.c.bf16 %v1271_v48, %v1271_v48  ;;  %v1367_v57 = vld [vmem:[#allocation4 + $0x2b] sm:$0xff] }
 0x12e   : > { %v1035_v1 = vld [vmem:[#allocation2 + $0xe0] ss:$2 sm:$0xff]  ;;  %1357 = vst.msk [vmem:[#allocation9 + $0x5c] sm:$0xf] %vm1118_vm2, %v10690_v13  ;;  %2661 = vst.msk [vmem:[#allocation9 + $0x8] sm:$0xf] %vm1118_vm2, %v8816_v18  ;;  %1224 = vrot.lane.b32.xlu0 %v8715_v10, %s10102_s20  ;;  %v10737_v43 = vpack.c.bf16 %v4247_v42, %v4247_v42  ;;  %v10770_v59 = vpack.c.bf16 %v1367_v57, %v1367_v57  ;;  %v10861_v57 = vpop.permute.xlu1 %1948 }
 0x12f   : > { %v1036_v21 = vmul.f32 0.25, %v1035_v1  ;;  %v2685_v44 = vld [vmem:[#allocation4 + $0x5c] sm:$0xff]  ;;  %1351 = vst.msk [vmem:[#allocation9 + $0x2c] sm:$0xf] %vm1118_vm2, %v10747_v50  ;;  %v4249_v39 = vld [vmem:[#allocation4 + $0x4a] sm:$0xff]  ;;  %v1368_v62 = vld [vmem:[#allocation4 + $0x33] sm:$0xff] }
 0x130   : > { %1353 = vst.msk [vmem:[#allocation9 + $0x3c] sm:$0xf] %vm1118_vm2, %v10737_v43  ;;  %v10768_v61 = vpack.c.bf16 %v4249_v39, %v4249_v39  ;;  %v2686_v0 = vld [vmem:[#allocation4 + $0x64] sm:$0xff]  ;;  %v1142_v7 = vld [vmem:[#allocation4 + $0x31] sm:$0xff] }
 0x131   : > { %1037 = vst.msk [vmem:[#allocation4 + $0x92] sm:$0xff] %vm737_vm1, %v1036_v21  ;;  %1226 = vrot.lane.b32.xlu1 %v8716_v14, %s10102_s20  ;;  %v1646_v27 = vld [vmem:[#allocation4 + $0x70] sm:$0xff]  ;;  %v1053_v49 = vld [vmem:[#allocation4 + $0x78] sm:$0xf]  ;;  %v8841_v2 = vpack.c.bf16 %v2686_v0, %v2686_v0  ;;  %v10792_v9 = vpack.c.bf16 %v1142_v7, %v1142_v7 }
 0x132   : > { %v1870_v28 = vld [vmem:[#allocation4 + $0x72] sm:$0xff]  ;;  %v10708_v29 = vpack.c.bf16 %v1646_v27, %v1646_v27  ;;  %1450 = vrot.lane.b32.xlu0 %v8747_v24, %s10102_s20  ;;  %v8702_v51 = vpack.c.bf16 %v1053_v49, %v1053_v49  ;;  %1355 = vst.msk [vmem:[#allocation9 + $0x4c] sm:$0xf] %vm1118_vm2, %v10768_v61  ;;  %v1279_v5 = vld [vmem:[#allocation4 + $0x6a] sm:$0xff] }
 0x133   : > { %v10710_v11 = vpack.c.bf16 %v1870_v28, %v1870_v28  ;;  %v1641_v30 = vld [vmem:[#allocation4 + $0x48] sm:$0xff]  ;;  %v1640_v17 = vld [vmem:[#allocation4 + $0x40] sm:$0xff]  ;;  %v1642_v45 = vld [vmem:[#allocation4 + $0x50] sm:$0xff]  ;;  %v10784_v6 = vpack.c.bf16 %v1279_v5, %v1279_v5 }
 0x134   : > { %v10713_v32 = vpack.c.bf16 %v1641_v30, %v1641_v30  ;;  %1133 = vst.msk [vmem:[#allocation9 + $0x70] sm:$0xf] %vm1118_vm2, %v10708_v29  ;;  %v10725_v25 = vpack.c.bf16 %v1640_v17, %v1640_v17  ;;  %v1864_v37 = vld [vmem:[#allocation4 + $0x42] sm:$0xff]  ;;  %v10741_v46 = vpack.c.bf16 %v1642_v45, %v1642_v45  ;;  %v1276_v60 = vld [vmem:[#allocation4 + $0x52] sm:$0xff] }
 0x135   : > { %1720 = vrot.lane.b32.xlu1 %v10651_v33, %s10102_s20  ;;  %1360 = vst.msk [vmem:[#allocation9 + $0x74] sm:$0xf] %vm1118_vm2, %v10710_v11  ;;  %v10729_v40 = vpack.c.bf16 %v1864_v37, %v1864_v37  ;;  %v1643_v33 = vld [vmem:[#allocation4 + $0x58] sm:$0xff]  ;;  %v10766_v38 = vpack.c.bf16 %v1276_v60, %v1276_v60  ;;  %v1375_v54 = vld [vmem:[#allocation4 + $0x6b] sm:$0xff]  ;;  %1359 = vst.msk [vmem:[#allocation9 + $0x6c] sm:$0xf] %vm1118_vm2, %v10784_v6 }
 0x136   : > { %1128 = vst.msk [vmem:[#allocation9 + $0x48] sm:$0xf] %vm1118_vm2, %v10713_v32  ;;  %1718 = vrot.lane.b32.xlu0 %v10664_v53, %s10102_s20  ;;  %v10733_v41 = vpack.c.bf16 %v1643_v33, %v1643_v33  ;;  %1127 = vst.msk [vmem:[#allocation9 + $0x40] sm:$0xf] %vm1118_vm2, %v10725_v25  ;;  %v8840_v53 = vpack.c.bf16 %v2685_v44, %v2685_v44  ;;  %v10794_v15 = vpack.c.bf16 %v1375_v54, %v1375_v54  ;;  %v1151_v16 = vld [vmem:[#allocation4 + $0x79] sm:$0xf] }
 0x137   : > { %1354 = vst.msk [vmem:[#allocation9 + $0x44] sm:$0xf] %vm1118_vm2, %v10729_v40  ;;  %1129 = vst.msk [vmem:[#allocation9 + $0x50] sm:$0xf] %vm1118_vm2, %v10741_v46  ;;  %v8718_v18 = vpack.c.bf16 %v1151_v16, %v1151_v16  ;;  %v1647_v20 = vld [vmem:[#allocation4 + $0x78] sm:$0xff]  ;;  %v2679_v21 = vld [vmem:[#allocation4 + $0x2c] sm:$0xff] }
 0x138   : > { %1130 = vst.msk [vmem:[#allocation9 + $0x58] sm:$0xf] %vm1118_vm2, %v10733_v41  ;;  %1356 = vst.msk [vmem:[#allocation9 + $0x54] sm:$0xf] %vm1118_vm2, %v10766_v38  ;;  %v10802_v1 = vpack.c.bf16 %v1647_v20, %v1647_v20  ;;  %v1376_v24 = vld [vmem:[#allocation4 + $0x73] sm:$0xff]  ;;  %v1369_v33 = vld [vmem:[#allocation4 + $0x3b] sm:$0xff] }
 0x139   : > { %2742 = vrot.lane.b32.xlu1 %v10723_v34, %s10102_s20  ;;  %1135 = vst.msk [vmem:[#allocation9 + $0x78] sm:$0x3] %vm1134_vm5, %v8702_v51  ;;  %v2687_v27 = vld [vmem:[#allocation4 + $0x6c] sm:$0xff]  ;;  %v8749_v28 = vpack.c.bf16 %v1376_v24, %v1376_v24  ;;  %v2911_v31 = vld [vmem:[#allocation4 + $0x79] sm:$0xff]  ;;  %v10841_v45 = vpack.c.bf16 %v1369_v33, %v1369_v33  ;;  %v1649_v49 = vld [vmem:[#allocation4 + $0x88] sm:$0xf] }
 0x13a   : > { %1942 = vrot.lane.b32.xlu0 %v10666_v55, %s10102_s20  ;;  %v2678_v55 = vld [vmem:[#allocation4 + $0x24] sm:$0xff]  ;;  %v10820_v30 = vpack.c.bf16 %v2687_v27, %v2687_v27  ;;  %v10825_v17 = vpack.c.bf16 %v2911_v31, %v2911_v31  ;;  %v2680_v37 = vld [vmem:[#allocation4 + $0x34] sm:$0xff]  ;;  %v8782_v51 = vpack.c.bf16 %v1649_v49, %v1649_v49 }
 0x13b   : > { %v10761_v56 = vpack.c.bf16 %v2678_v55, %v2678_v55  ;;  %v10839_v42 = vpack.c.bf16 %v2680_v37, %v2680_v37  ;;  %v1145_v48 = vld [vmem:[#allocation4 + $0x49] sm:$0xff]  ;;  %v1144_v60 = vld [vmem:[#allocation4 + $0x41] sm:$0xff] }
 0x13c   : > { %v10866_v39 = vpack.c.bf16 %v1144_v60, %v1144_v60  ;;  %v1370_v0 = vld [vmem:[#allocation4 + $0x43] sm:$0xff] }
 0x13d   : > { %2966 = vrot.lane.b32.xlu1 %v10657_v47, %s10102_s20  ;;  %v10874_v5 = vpack.c.bf16 %v1370_v0, %v1370_v0  ;;  %v2913_v54 = vld [vmem:[#allocation4 + $0x89] sm:$0xff]  ;;  %v1648_v24 = vld [vmem:[#allocation4 + $0x80] sm:$0xff] }
 0x13e   : > { %2964 = vrot.lane.b32.xlu0 %v10630_v23, %s10102_s20  ;;  %v1143_v23 = vld [vmem:[#allocation4 + $0x39] sm:$0xff]  ;;  %v1542_v31 = vld [vmem:[#allocation4 + $0x24] sm:$0xff] }
 0x13f   : > { %v10779_v52 = vpack.c.bf16 %v1143_v23, %v1143_v23  ;;  %v2689_v23 = vld [vmem:[#allocation4 + $0x7c] sm:$0xff] }
 0x140   : > { %v8844_v7 = vpack.c.bf16 %v2689_v23, %v2689_v23  ;;  %v2582_v23 = vld [vmem:[#allocation4 + $0x23] sm:$0xff] }
 0x141   : > { %2758 = vrot.lane.b32.xlu1 %v8840_v53, %s10102_s20  ;;  %v2681_v53 = vld [vmem:[#allocation4 + $0x3c] sm:$0xff] }
 0x142   : > { %2744 = vrot.lane.b32.xlu0 %v10761_v56, %s10102_s20  ;;  %v10859_v55 = vpack.c.bf16 %v2681_v53, %v2681_v53 }
 0x145   : > { %2982 = vrot.lane.b32.xlu1 %v8716_v14, %s10102_s20  ;;  %v1150_v14 = vld [vmem:[#allocation4 + $0x71] sm:$0xff] }
 0x146   : > { %2980 = vrot.lane.b32.xlu0 %v8715_v10, %s10102_s20  ;;  %v10808_v10 = vpack.c.bf16 %v2679_v21, %v2679_v21  ;;  %v10814_v22 = vpack.c.bf16 %v1150_v14, %v1150_v14 }
 0x149   : > { %1436 = vrot.lane.b32.xlu1 %v10770_v59, %s10102_s20 }
 0x14a   : > { %2760 = vrot.lane.b32.xlu0 %v8841_v2, %s10102_s20  ;;  %v10872_v2 = vpop.permute.xlu1 %1952 }
 0x14d   : > { %1214 = vrot.lane.b32.xlu1 %v10779_v52, %s10102_s20 }
 0x14e   : > { %3525 = vrot.lane.b32.xlu0 %v10653_v36, %s10102_s20  ;;  %v8741_v36 = vpack.c.bf16 %v1368_v62, %v1368_v62 }
 0x151   : > { %1708 = vrot.lane.b32.xlu1 %v10673_v58, %s10102_s20 }
 0x152   : > { %1212 = vrot.lane.b32.xlu0 %v10792_v9, %s10102_s20 }
 0x155   : > { %1452 = vrot.lane.b32.xlu1 %v10794_v15, %s10102_s20 }
 0x156   : > { %1438 = vrot.lane.b32.xlu0 %v8741_v36, %s10102_s20 }
 0x159   : > { %1230 = vrot.lane.b32.xlu1 %v8718_v18, %s10102_s20  ;;  %v1371_v18 = vld [vmem:[#allocation4 + $0x4b] sm:$0xff] }
 0x15a   : > { %1706 = vrot.lane.b32.xlu0 %v10680_v63, %s10102_s20  ;;  %v10885_v14 = vpack.c.bf16 %v1371_v18, %v1371_v18 }
 0x15d   : > { %1724 = vrot.lane.b32.xlu1 %v10802_v1, %s10102_s20 }
 0x15e   : > { %1930 = vrot.lane.b32.xlu0 %v10688_v3, %s10102_s20 }
 0x161   : > { %2746 = vrot.lane.b32.xlu1 %v10808_v10, %s10102_s20 }
 0x162   : > { %1228 = vrot.lane.b32.xlu0 %v10814_v22, %s10102_s20 }
 0x165   : > { %2970 = vrot.lane.b32.xlu1 %v10779_v52, %s10102_s20 }
 0x166   : > { %1454 = vrot.lane.b32.xlu0 %v8749_v28, %s10102_s20  ;;  %v10892_v28 = vpack.c.bf16 %v1648_v24, %v1648_v24 }
 0x169   : > { %2762 = vrot.lane.b32.xlu1 %v10820_v30, %s10102_s20 }
 0x16a   : > { %1722 = vrot.lane.b32.xlu0 %v10708_v29, %s10102_s20 }
 0x16d   : > { %2986 = vrot.lane.b32.xlu1 %v10825_v17, %s10102_s20 }
 0x16e   : > { %1946 = vrot.lane.b32.xlu0 %v10710_v11, %s10102_s20  ;;  %v10847_v11 = vpack.c.bf16 %v1145_v48, %v1145_v48  ;;  %v1872_v48 = vld [vmem:[#allocation4 + $0x82] sm:$0xff] }
 0x16f   : > { %v8813_v53 = vpack.c.bf16 %v1872_v48, %v1872_v48 }
 0x171   : > { %3527 = vrot.lane.b32.xlu1 %v10770_v59, %s10102_s20 }
 0x172   : > { %2968 = vrot.lane.b32.xlu0 %v10792_v9, %s10102_s20 }
 0x175   : > { %3751 = vrot.lane.b32.xlu1 %v10673_v58, %s10102_s20  ;;  %v2688_v58 = vld [vmem:[#allocation4 + $0x74] sm:$0xff] }
 0x176   : > { %2748 = vrot.lane.b32.xlu0 %v10839_v42, %s10102_s20  ;;  %v8843_v44 = vpack.c.bf16 %v2688_v58, %v2688_v58 }
 0x179   : > { %1440 = vrot.lane.b32.xlu1 %v10841_v45, %s10102_s20 }
 0x17a   : > { %2984 = vrot.lane.b32.xlu0 %v10814_v22, %s10102_s20 }
 0x17d   : > { %1218 = vrot.lane.b32.xlu1 %v10847_v11, %s10102_s20 }
 0x17e   : > { %3749 = vrot.lane.b32.xlu0 %v10680_v63, %s10102_s20 }
 0x181   : > { %1712 = vrot.lane.b32.xlu1 %v10713_v32, %s10102_s20 }
 0x182   : > { %2764 = vrot.lane.b32.xlu0 %v8843_v44, %s10102_s20  ;;  %v1147_v44 = vld [vmem:[#allocation4 + $0x59] sm:$0xff] }
 0x183   : > { %v10913_v60 = vpack.c.bf16 %v1147_v44, %v1147_v44 }
 0x185   : > { %1728 = vrot.lane.b32.xlu1 %v8782_v51, %s10102_s20 }
 0x186   : > { %3529 = vrot.lane.b32.xlu0 %v8741_v36, %s10102_s20  ;;  %v8876_v36 = vpack.c.bf16 %v2913_v54, %v2913_v54 }
 0x189   : > { %2750 = vrot.lane.b32.xlu1 %v10859_v55, %s10102_s20 }
 0x18a   : > { %1216 = vrot.lane.b32.xlu0 %v10866_v39, %s10102_s20 }
 0x18d   : > { %2974 = vrot.lane.b32.xlu1 %v10847_v11, %s10102_s20 }
 0x18e   : > { %1442 = vrot.lane.b32.xlu0 %v10874_v5, %s10102_s20 }
 0x190   : > { %v1209_v62 = vpop.permute.xlu0 %1208 }
 0x191   : > { %2766 = vrot.lane.b32.xlu1 %v8844_v7, %s10102_s20  ;;  %1253 = vst.msk [vmem:[#allocation9 + $0x20] sm:$0xf] %vm1248_vm3, %v1209_v62 }
 0x192   : > { %1710 = vrot.lane.b32.xlu0 %v10725_v25, %s10102_s20 }
 0x193   : > { %v1433_v16 = vpop.permute.xlu1 %1432 }
 0x194   : > { %1477 = vst.msk [vmem:[#allocation9 + $0x1c] sm:$0xf] %vm1248_vm3, %v1433_v16  ;;  %v1435_v20 = vpop.permute.xlu0 %1434  ;;  %v8817_v16 = vpack.c.bf16 %v2582_v23, %v2582_v23 }
 0x195   : > { %2990 = vrot.lane.b32.xlu1 %v8876_v36, %s10102_s20  ;;  %1478 = vst.msk [vmem:[#allocation9 + $0x24] sm:$0xf] %vm1248_vm3, %v1435_v20 }
 0x196   : > { %1934 = vrot.lane.b32.xlu0 %v10729_v40, %s10102_s20 }
 0x197   : > { %v1211_v21 = vpop.permute.xlu1 %1210 }
 0x198   : > { %1254 = vst.msk [vmem:[#allocation9 + $0x28] sm:$0xf] %vm1248_vm3, %v1211_v21  ;;  %v1703_v27 = vpop.permute.xlu0 %1702  ;;  %v2691_v21 = vld [vmem:[#allocation4 + $0x8c] sm:$0xf] }
 0x199   : > { %1444 = vrot.lane.b32.xlu1 %v10885_v14, %s10102_s20  ;;  %1748 = vst.msk [vmem:[#allocation9 + $0x10] sm:$0xf] %vm1248_vm3, %v1703_v27 }
 0x19a   : > { %1726 = vrot.lane.b32.xlu0 %v10892_v28, %s10102_s20 }
 0x19b   : > { %v1493_v37 = vld [vmem:[#allocation9 + $0x18] sm:$0xff]  ;;  %v1705_v33 = vpop.permute.xlu1 %1704 }
 0x19c   : > { %1845 = vst.msk [vmem:[#allocation9 + $0x1c] sm:$0xf] %vm1118_vm2, %v10657_v47  ;;  %1621 = vst.msk [vmem:[#allocation9 + $0x18] sm:$0xf] %vm1118_vm2, %v10723_v34  ;;  %v8056_v58 = vcombine.high %v10332_v19, %v1493_v37  ;;  %v8055_v49 = vcombine.low %v10332_v19, %v1493_v37  ;;  %v8755_v47 = vpack.c.bf16 %v1542_v31, %v1542_v31  ;;  %v10908_v51 = vld [vmem:[#allocation9 + $0x20] sm:$0xff]  ;;  %v1927_v34 = vpop.permute.xlu0 %1926  ;;  %v9712_v37 = vld [vmem:[%s12979_s3 + $0x178] sm:$0xff]  }
 0x19d   : > { %1973 = vst.msk [vmem:[#allocation9 + $0x1c] sm:$0xf] %vm1248_vm3, %v10429_v12  ;;  %1749 = vst.msk [vmem:[#allocation9 + $0x18] sm:$0xf] %vm1248_vm3, %v1705_v33  ;;  %3531 = vrot.lane.b32.xlu1 %v10841_v45, %s10102_s20  ;;  %v2807_v12 = vld [vmem:[#allocation4 + $0x38] sm:$0xff]  ;;  %v2912_v31 = vld [vmem:[#allocation4 + $0x81] sm:$0xff]  ;;  %9253 = vmatprep.subr.bf16.mxu1 %v9712_v37 }
 0x19e   : > { %2523 = vmatprep.mubr.bf16.mxu0 %v8056_v58  ;;  %1846 = vst.msk [vmem:[#allocation9 + $0x24] sm:$0xf] %vm1118_vm2, %v10792_v9  ;;  %1622 = vst.msk [vmem:[#allocation9 + $0x20] sm:$0xf] %vm1118_vm2, %v8755_v47  ;;  %1950 = vrot.lane.b32.xlu0 %v8813_v53, %s10102_s20  ;;  %v2682_v9 = vld [vmem:[#allocation4 + $0x44] sm:$0xff]  ;;  %v8850_v54 = vpack.c.bf16 %v2807_v12, %v2807_v12  ;;  %v10949_v58 = vpack.c.bf16 %v2912_v31, %v2912_v31  ;;  %v1146_v47 = vld [vmem:[#allocation4 + $0x51] sm:$0xff] }
 0x19f   : > { %2524 = vmatmul.mubr.bf16.gmra.mxu0 %v8055_v49  ;;  %v1449_v19 = vpop.permute.xlu1 %1448  ;;  %1972 = vst.msk [vmem:[#allocation9 + $0x14] sm:$0xf] %vm1248_vm3, %v1927_v34  ;;  %v10929_v20 = vpack.c.bf16 %v2682_v9, %v2682_v9  ;;  %v9713_v33 = vld [vmem:[%s12979_s3 + $0x138] sm:$0xff]   ;;  %v9714_v31 = vld [vmem:[%s12979_s3 + $0x170] sm:$0xff]  }
 0x1a0   : > { %1485 = vst.msk [vmem:[#allocation9 + $0x5c] sm:$0xf] %vm1248_vm3, %v1449_v19  ;;  %v1225_v0 = vpop.permute.xlu0 %1224  ;;  %v1550_v49 = vld [vmem:[#allocation4 + $0x64] sm:$0xff]  ;;  %9254 = vmatpush3.bf16.msra.mxu1 %v9713_v33  ;;  %v10961_v19 = vpack.c.bf16 %v1146_v47, %v1146_v47 }
 0x1a1   : > { %1222 = vrot.lane.b32.xlu1 %v10913_v60, %s10102_s20  ;;  %1261 = vst.msk [vmem:[#allocation9 + $0x60] sm:$0xf] %vm1248_vm3, %v1225_v0  ;;  %v1372_v0 = vld [vmem:[#allocation4 + $0x53] sm:$0xff]  ;;  %9255 = vmatprep.subr.bf16.mxu1 %v9714_v31 }
 0x1a2   : > { %2972 = vrot.lane.b32.xlu0 %v10866_v39, %s10102_s20 }
 0x1a3   : > { %v1227_v7 = vpop.permute.xlu1 %1226 }
 0x1a4   : > { %v1989_v62 = vld [vmem:[#allocation9 + $0x18] sm:$0xff]  ;;  %1262 = vst.msk [vmem:[#allocation9 + $0x68] sm:$0xf] %vm1248_vm3, %v1227_v7  ;;  %v1451_v18 = vpop.permute.xlu0 %1450  ;;  %v10972_v7 = vpack.c.bf16 %v1372_v0, %v1372_v0  ;;  %v9718_v0 = vld [vmem:[%s12979_s3 + $0x1f0] sm:$0xff]  }
 0x1a5   : > { %2663 = vst.msk [vmem:[#allocation9 + $0x18] sm:$0xf] %vm1118_vm2, %v10770_v59  ;;  %1716 = vrot.lane.b32.xlu1 %v10733_v41, %s10102_s20  ;;  %2887 = vst.msk [vmem:[#allocation9 + $0x1c] sm:$0xf] %vm1118_vm2, %v8850_v54 }
 0x1a6   : > { %v1988_v36 = vld [vmem:[#allocation9 + $0x10] sm:$0xff]  ;;  %1486 = vst.msk [vmem:[#allocation9 + $0x64] sm:$0xf] %vm1248_vm3, %v1451_v18  ;;  %2752 = vrot.lane.b32.xlu0 %v10929_v20, %s10102_s20 }
 0x1a7   : > { %2886 = vst.msk [vmem:[#allocation9 + $0x14] sm:$0xf] %vm1118_vm2, %v10680_v63  ;;  %v10933_v24 = vpop.permute.xlu1 %1720  ;;  %v8024_v27 = vcombine.high %v1988_v36, %v1989_v62  ;;  %v8023_v59 = vcombine.low %v1988_v36, %v1989_v62  ;;  %2662 = vst.msk [vmem:[#allocation9 + $0x10] sm:$0xf] %vm1118_vm2, %v8817_v16  ;;  %v8846_v63 = vpack.c.bf16 %v2691_v21, %v2691_v21  ;;  %v3365_v62 = vld [vmem:[#allocation4 + $0x22] sm:$0xff]  ;;  %v1866_v21 = vld [vmem:[#allocation4 + $0x52] sm:$0xff] }
 0x1a8   : > { %v10947_v48 = vpop.permute.xlu0 %1718 }
 0x1a9   : > { %3755 = vrot.lane.b32.xlu1 %v10713_v32, %s10102_s20  ;;  %2250 = vmatprep.mubr.bf16.mxu1 %v8024_v27  ;;  %v10955_v32 = vpack.c.bf16 %v1550_v49, %v1550_v49  ;;  %v3692_v27 = vld [vmem:[#allocation4 + $0x68] sm:$0xff] }
 0x1aa   : > { %2251 = vmatmul.mubr.bf16.gmra.mxu1 %v8023_v59  ;;  %2988 = vrot.lane.b32.xlu0 %v10949_v58, %s10102_s20  ;;  %v8879_v59 = vpack.c.bf16 %v3365_v62, %v3365_v62  ;;  %v9715_v49 = vld [vmem:[%s12979_s3 + $0x1f8] sm:$0xff]   ;;  %v8934_v47 = vpack.c.bf16 %v3692_v27, %v3692_v27  ;;  %v9721_v27 = vld [vmem:[%s12979_s3 + $0x1e8] sm:$0xff]  }
 0x1ab   : > { %v2743_v44 = vpop.permute.xlu1 %2742  ;;  %9317 = vmatprep.subr.bf16.mxu0 %v9715_v49 }
 0x1ac   : > { %2789 = vst.msk [vmem:[#allocation9 + $0x8] sm:$0xf] %vm1248_vm3, %v2743_v44  ;;  %v10959_v53 = vpop.permute.xlu0 %1942 }
 0x1ad   : > { %2770 = vrot.lane.b32.xlu1 %v8846_v63, %s10102_s20  ;;  %v10957_v34 = vld [vmem:[#allocation9 + $0x60] sm:$0xff]  ;;  %v11003_v63 = vpack.c.bf16 %v1866_v21, %v1866_v21 }
 0x1ae   : > { %1854 = vst.msk [vmem:[#allocation9 + $0x64] sm:$0xf] %vm1118_vm2, %v10814_v22  ;;  %1630 = vst.msk [vmem:[#allocation9 + $0x60] sm:$0xf] %vm1118_vm2, %v10955_v32  ;;  %1220 = vrot.lane.b32.xlu0 %v10961_v19, %s10102_s20  ;;  %v3468_v22 = vld [vmem:[#allocation4 + $0x5b] sm:$0xff]  ;;  %v2690_v21 = vld [vmem:[#allocation4 + $0x84] sm:$0xff] }
 0x1af   : > { %v2967_v12 = vpop.permute.xlu1 %2966  ;;  %v10986_v18 = vpack.c.bf16 %v3468_v22, %v3468_v22  ;;  %v11046_v49 = vpack.c.bf16 %v2690_v21, %v2690_v21 }
 0x1b0   : > { %3013 = vst.msk [vmem:[#allocation9 + $0xc] sm:$0xf] %vm1248_vm3, %v2967_v12  ;;  %v2965_v23 = vpop.permute.xlu0 %2964  ;;  %v9717_v12 = vld [vmem:[%s12979_s3 + $0x1b8] sm:$0xff]  }
 0x1b1   : > { %4312 = vrot.lane.b32.xlu1 %v10737_v43, %s10102_s20  ;;  %3012 = vst.msk [vmem:[#allocation9 + $0x4] sm:$0xf] %vm1248_vm3, %v2965_v23  ;;  %v9722_v23 = vld [vmem:[%s12979_s3 + $0x128] sm:$0xff]   ;;  %9318 = vmatpush3.bf16.msra.mxu0 %v9717_v12  ;;  %v9724_v12 = vld [vmem:[%s12979_s3 + $0x1e0] sm:$0xff]  }
 0x1b2   : > { %1446 = vrot.lane.b32.xlu0 %v10972_v7, %s10102_s20  ;;  %9319 = vmatprep.subr.bf16.mxu0 %v9718_v0 }
 0x1b3   : > { %v10974_v9 = vpop.permute.xlu1 %2758 }
 0x1b4   : > { %v2745_v54 = vpop.permute.xlu0 %2744 }
 0x1b5   : > { %4536 = vrot.lane.b32.xlu1 %v10859_v55, %s10102_s20  ;;  %2790 = vst.msk [vmem:[#allocation9 + $0x10] sm:$0xf] %vm1248_vm3, %v2745_v54  ;;  %v9719_v54 = vld [vmem:[%s12979_s3 + $0x1b0] sm:$0xff]  }
 0x1b6   : > { %1714 = vrot.lane.b32.xlu0 %v10741_v46, %s10102_s20  ;;  %9320 = vmatpush3.bf16.msra.mxu0 %v9719_v54  ;;  %v9205_v54 = vpop.f32.mrf.mxu0 }
 0x1b7   : > { %v10981_v16 = vld [vmem:[#allocation9 + $0x8] sm:$0xff]  ;;  %v10983_v36 = vpop.permute.xlu1 %2982  ;;  %9321 = vmatprep.subr.bf16.mxu0 %v9721_v27 }
 0x1b8   : > { %3670 = vst.msk [vmem:[#allocation9 + $0xc] sm:$0xf] %vm1118_vm2, %v10808_v10  ;;  %3446 = vst.msk [vmem:[#allocation9 + $0x8] sm:$0xf] %vm1118_vm2, %v10747_v50  ;;  %v10999_v37 = vld [vmem:[#allocation9] sm:$0xff]  ;;  %v11001_v33 = vpop.permute.xlu0 %2980 }
 0x1b9   : > { %3539 = vrot.lane.b32.xlu1 %v10986_v18, %s10102_s20  ;;  %v9716_v50 = vld [vmem:[%s12979_s3 + $0x130] sm:$0xff]   ;;  %3669 = vst.msk [vmem:[#allocation9 + $0x4] sm:$0xf] %vm1118_vm2, %v10761_v56  ;;  %3445 = vst.msk [vmem:[#allocation9] sm:$0xf] %vm1118_vm2, %v8879_v59  ;;  %v9720_v56 = vld [vmem:[%s12979_s3 + $0x168] sm:$0xff]  }
 0x1ba   : > { %1938 = vrot.lane.b32.xlu0 %v11003_v63, %s10102_s20  ;;  %9256 = vmatpush3.bf16.msra.mxu1 %v9716_v50  ;;  %v9726_v59 = vld [vmem:[%s12979_s3 + $0x160] sm:$0xff]   ;;  %v9723_v50 = vld [vmem:[%s12979_s3 + $0x1a8] sm:$0xff]  }
 0x1bb   : > { %v1437_v44 = vpop.permute.xlu1 %1436  ;;  %9257 = vmatprep.subr.bf16.mxu1 %v9720_v56  ;;  %9322 = vmatpush3.bf16.msra.mxu0 %v9723_v50 }
 0x1bc   : > { %1479 = vst.msk [vmem:[#allocation9 + $0x2c] sm:$0xf] %vm1248_vm3, %v1437_v44  ;;  %v11030_v22 = vpop.permute.xlu0 %2760  ;;  %9323 = vmatprep.subr.bf16.mxu0 %v9724_v12 }
 0x1bd   : > { %3763 = vrot.lane.b32.xlu1 %v8934_v47, %s10102_s20 }
 0x1be   : > { %3753 = vrot.lane.b32.xlu0 %v10725_v25, %s10102_s20  ;;  %9258 = vmatpush3.bf16.msra.mxu1 %v9722_v23  ;;  %v9141_v23 = vpop.f32.mrf.mxu1 }
 0x1bf   : > { %v1215_v62 = vpop.permute.xlu1 %1214  ;;  %9259 = vmatprep.subr.bf16.mxu1 %v9726_v59  ;;  %v9206_v59 = vpop.f32.mrf.mxu0 }
 0x1c0   : > { %1256 = vst.msk [vmem:[#allocation9 + $0x38] sm:$0xf] %vm1248_vm3, %v1215_v62  ;;  %v3526_v31 = vpop.permute.xlu0 %3525  ;;  %v9728_v62 = vld [vmem:[%s12979_s3 + $0x120] sm:$0xff]   ;;  %v9142_v21 = vpop.f32.mrf.mxu1  ;;  %v9207_v50 = vadd.f32 %v9206_v59, %v9205_v54 }
 0x1c1   : > { %4316 = vrot.lane.b32.xlu1 %v10768_v61, %s10102_s20  ;;  %3573 = vst.msk [vmem:[#allocation9] sm:$0xf] %vm1248_vm3, %v3526_v31  ;;  %v2809_v31 = vld [vmem:[#allocation4 + $0x48] sm:$0xff] }
 0x1c2   : > { %2768 = vrot.lane.b32.xlu0 %v11046_v49, %s10102_s20  ;;  %9260 = vmatpush3.bf16.msra.mxu1 %v9728_v62 }
 0x1c3   : > { %v1495_v44 = vld [vmem:[#allocation9 + $0x28] sm:$0xff]  ;;  %v1709_v47 = vpop.permute.xlu1 %1708 }
 0x1c4   : > { %1847 = vst.msk [vmem:[#allocation9 + $0x2c] sm:$0xf] %vm1118_vm2, %v10779_v52  ;;  %1623 = vst.msk [vmem:[#allocation9 + $0x28] sm:$0xf] %vm1118_vm2, %v10808_v10  ;;  %v8058_v0 = vcombine.high %v10908_v51, %v1495_v44  ;;  %v8057_v56 = vcombine.low %v10908_v51, %v1495_v44  ;;  %v9732_v52 = vld [vmem:[%s12979_s3 + $0x158] sm:$0xff]   ;;  %v1213_v10 = vpop.permute.xlu0 %1212  ;;  %v9725_v51 = vld [vmem:[%s12979_s3 + $0x1a0] sm:$0xff]   ;;  %v9144_v44 = vpop.f32.mrf.mxu1 }
 0x1c5   : > { %1975 = vst.msk [vmem:[#allocation9 + $0x2c] sm:$0xf] %vm1248_vm3, %v10455_v35  ;;  %1751 = vst.msk [vmem:[#allocation9 + $0x28] sm:$0xf] %vm1248_vm3, %v1709_v47  ;;  %3543 = vrot.lane.b32.xlu1 %v10794_v15, %s10102_s20  ;;  %v9727_v35 = vld [vmem:[%s12979_s3 + $0x1d8] sm:$0xff]   ;;  %v9143_v15 = vadd.f32 %v9142_v21, %v9141_v23  ;;  %v9208_v47 = vpop.f32.mrf.mxu0  ;;  %9261 = vmatprep.subr.bf16.mxu1 %v9732_v52  ;;  %v4475_v21 = vld [vmem:[#allocation4 + $0x5c] sm:$0xff] }
 0x1c6   : > { %2531 = vmatprep.mubr.bf16.mxu0 %v8058_v0  ;;  %1255 = vst.msk [vmem:[#allocation9 + $0x30] sm:$0xf] %vm1248_vm3, %v1213_v10  ;;  %3533 = vrot.lane.b32.xlu0 %v10874_v5, %s10102_s20  ;;  %v9729_v0 = vld [vmem:[%s12979_s3 + $0x198] sm:$0xff]   ;;  %v9145_v23 = vpop.f32.mrf.mxu1  ;;  %v8852_v5 = vpack.c.bf16 %v2809_v31, %v2809_v31  ;;  %v3691_v31 = vld [vmem:[#allocation4 + $0x60] sm:$0xff] }
 0x1c7   : > { %v1453_v27 = vpop.permute.xlu1 %1452  ;;  %2532 = vmatmul.mubr.bf16.gmra.mxu0 %v8057_v56  ;;  %v11089_v56 = vadd.f32 %v9207_v50, %v9143_v15  ;;  %v9146_v54 = vadd.f32 %v9145_v23, %v9144_v44  ;;  %v9209_v62 = vpop.f32.mrf.mxu0  ;;  %v9734_v52 = vld [vmem:[%s12979_s3 + $0x118] sm:$0xff]   ;;  %v1553_v15 = vld [vmem:[#allocation4 + $0x7c] sm:$0xf]  ;;  %v1544_v50 = vld [vmem:[#allocation4 + $0x34] sm:$0xff]  ;;  %v11122_v23 = vpack.c.bf16 %v4475_v21, %v4475_v21 }
 0x1c8   : > { %1487 = vst.msk [vmem:[#allocation9 + $0x6c] sm:$0xf] %vm1248_vm3, %v1453_v27  ;;  %v1439_v12 = vpop.permute.xlu0 %1438  ;;  %9324 = vmatpush3.bf16.msra.mxu0 %v9725_v51  ;;  %v9210_v27 = vadd.f32 %v9209_v62, %v9208_v47  ;;  %9262 = vmatpush3.bf16.msra.mxu1 %v9734_v52  ;;  %v9731_v44 = vld [vmem:[%s12979_s3 + $0x190] sm:$0xff]   ;;  %v11140_v52 = vpack.c.bf16 %v3691_v31, %v3691_v31  ;;  %v9735_v21 = vld [vmem:[%s12979_s3 + $0x188] sm:$0xff]  }
 0x1c9   : > { %3767 = vrot.lane.b32.xlu1 %v10802_v1, %s10102_s20  ;;  %1480 = vst.msk [vmem:[#allocation9 + $0x34] sm:$0xf] %vm1248_vm3, %v1439_v12  ;;  %9325 = vmatprep.subr.bf16.mxu0 %v9727_v35  ;;  %v9730_v1 = vld [vmem:[%s12979_s3 + $0x1d0] sm:$0xff]   ;;  %v2584_v31 = vld [vmem:[#allocation4 + $0x33] sm:$0xff] }
 0x1ca   : > { %4310 = vrot.lane.b32.xlu0 %v10688_v3, %s10102_s20  ;;  %v9738_v35 = vld [vmem:[%s12979_s3 + $0x150] sm:$0xff]   ;;  %v11117_v47 = vadd.f32 %v9210_v27, %v9146_v54 }
 0x1cb   : > { %v1231_v10 = vpop.permute.xlu1 %1230  ;;  %v9739_v3 = vld [vmem:[%s12979_s3 + $0x110] sm:$0xff]   ;;  %9263 = vmatprep.subr.bf16.mxu1 %v9738_v35 }
 0x1cc   : > { %v11098_v51 = vld [vmem:[#allocation9 + $0x28] sm:$0xff]  ;;  %1265 = vst.msk [vmem:[#allocation9 + $0x78] sm:$0x3] %vm1264_vm4, %v1231_v10  ;;  %v1707_v59 = vpop.permute.xlu0 %1706  ;;  %9326 = vmatpush3.bf16.msra.mxu0 %v9729_v0  ;;  %v9733_v0 = vld [vmem:[%s12979_s3 + $0x1c8] sm:$0xff]   ;;  %9264 = vmatpush3.bf16.msra.mxu1 %v9739_v3 }
 0x1cd   : > { %2665 = vst.msk [vmem:[#allocation9 + $0x28] sm:$0xf] %vm1118_vm2, %v10841_v45  ;;  %4320 = vrot.lane.b32.xlu1 %v10690_v13, %s10102_s20  ;;  %2889 = vst.msk [vmem:[#allocation9 + $0x2c] sm:$0xf] %vm1118_vm2, %v8852_v5  ;;  %v1777_v10 = vld [vmem:[#allocation4 + $0x89] sm:$0xf]  ;;  %9327 = vmatprep.subr.bf16.mxu0 %v9730_v1  ;;  %v8766_v5 = vpack.c.bf16 %v1553_v15, %v1553_v15  ;;  %v8757_v1 = vpack.c.bf16 %v1544_v50, %v1544_v50 }
 0x1ce   : > { %1750 = vst.msk [vmem:[#allocation9 + $0x20] sm:$0xf] %vm1248_vm3, %v1707_v59  ;;  %v2593_v54 = vld [vmem:[#allocation4 + $0x7b] sm:$0xff]  ;;  %4534 = vrot.lane.b32.xlu0 %v10839_v42, %s10102_s20  ;;  %v9736_v15 = vld [vmem:[%s12979_s3 + $0x1c0] sm:$0xff]  }
 0x1cf   : > { %v11119_v12 = vld [vmem:[#allocation9 + $0x68] sm:$0xff]  ;;  %v1725_v13 = vpop.permute.xlu1 %1724  ;;  %v9737_v50 = vld [vmem:[%s12979_s3 + $0x180] sm:$0xff]  }
 0x1d0   : > { %1855 = vst.msk [vmem:[#allocation9 + $0x6c] sm:$0xf] %vm1118_vm2, %v10825_v17  ;;  %1631 = vst.msk [vmem:[#allocation9 + $0x68] sm:$0xf] %vm1118_vm2, %v10820_v30  ;;  %v11138_v62 = vld [vmem:[#allocation9 + $0x30] sm:$0xff]  ;;  %v1931_v17 = vpop.permute.xlu0 %1930  ;;  %v8798_v30 = vpack.c.bf16 %v1777_v10, %v1777_v10  ;;  %9328 = vmatpush3.bf16.msra.mxu0 %v9731_v44 }
 0x1d1   : > { %1983 = vst.msk [vmem:[#allocation9 + $0x6c] sm:$0xf] %vm1248_vm3, %v10861_v57  ;;  %1759 = vst.msk [vmem:[#allocation9 + $0x68] sm:$0xf] %vm1248_vm3, %v1725_v13  ;;  %4544 = vrot.lane.b32.xlu1 %v11122_v23, %s10102_s20  ;;  %v8828_v57 = vpack.c.bf16 %v2593_v54, %v2593_v54  ;;  %9329 = vmatprep.subr.bf16.mxu0 %v9733_v0  ;;  %v2683_v3 = vld [vmem:[#allocation4 + $0x4c] sm:$0xff] }
 0x1d2   : > { %1848 = vst.msk [vmem:[#allocation9 + $0x34] sm:$0xf] %vm1118_vm2, %v10866_v39  ;;  %1624 = vst.msk [vmem:[#allocation9 + $0x30] sm:$0xf] %vm1118_vm2, %v8757_v1  ;;  %3761 = vrot.lane.b32.xlu0 %v11140_v52, %s10102_s20  ;;  %v3696_v39 = vld [vmem:[#allocation4 + $0x88] sm:$0xff]  ;;  %v11166_v13 = vpack.c.bf16 %v2683_v3, %v2683_v3 }
 0x1d3   : > { %v11145_v27 = vld [vmem:[#allocation9 + $0x78] sm:$0x33]  ;;  %v2747_v35 = vpop.permute.xlu1 %2746  ;;  %1974 = vst.msk [vmem:[#allocation9 + $0x24] sm:$0xf] %vm1248_vm3, %v1931_v17  ;;  %v8938_v10 = vpack.c.bf16 %v3696_v39, %v3696_v39 }
 0x1d4   : > { %1633 = vst.msk [vmem:[#allocation9 + $0x78] sm:$0x3] %vm1134_vm5, %v8766_v5  ;;  %1857 = vst.msk [vmem:[#allocation9 + $0x7c] sm:$0x3] %vm1134_vm5, %v8798_v30  ;;  %v1229_v59 = vpop.permute.xlu0 %1228  ;;  %9330 = vmatpush3.bf16.msra.mxu0 %v9735_v21  ;;  %v9740_v5 = vld [vmem:[%s12979_s3 + $0x148] sm:$0xff]   ;;  %v3469_v21 = vld [vmem:[#allocation4 + $0x63] sm:$0xff] }
 0x1d5   : > { %2791 = vst.msk [vmem:[#allocation9 + $0x18] sm:$0xf] %vm1248_vm3, %v2747_v35  ;;  %3547 = vrot.lane.b32.xlu1 %v8828_v57, %s10102_s20  ;;  %1263 = vst.msk [vmem:[#allocation9 + $0x70] sm:$0xf] %vm1248_vm3, %v1229_v59  ;;  %9331 = vmatprep.subr.bf16.mxu0 %v9736_v15  ;;  %v8903_v35 = vpack.c.bf16 %v3469_v21, %v3469_v21  ;;  %v1552_v15 = vld [vmem:[#allocation4 + $0x74] sm:$0xff] }
 0x1d6   : > { %1985 = vst.msk [vmem:[#allocation9 + $0x7c] sm:$0x3] %vm1264_vm4, %v10872_v2  ;;  %4314 = vrot.lane.b32.xlu0 %v10729_v40, %s10102_s20  ;;  %v11176_v2 = vpack.c.bf16 %v2584_v31, %v2584_v31  ;;  %9265 = vmatprep.subr.bf16.mxu1 %v9740_v5  ;;  %v11212_v59 = vpack.c.bf16 %v1552_v15, %v1552_v15 }
 0x1d7   : > { %v2971_v44 = vpop.permute.xlu1 %2970 }
 0x1d8   : > { %v11168_v0 = vld [vmem:[#allocation9 + $0x68] sm:$0xff]  ;;  %3015 = vst.msk [vmem:[#allocation9 + $0x1c] sm:$0xf] %vm1248_vm3, %v2971_v44  ;;  %v1455_v1 = vpop.permute.xlu0 %1454  ;;  %9332 = vmatpush3.bf16.msra.mxu0 %v9737_v50  ;;  %v9743_v44 = vld [vmem:[%s12979_s3 + $0x100] sm:$0xff]  }
 0x1d9   : > { %2673 = vst.msk [vmem:[#allocation9 + $0x68] sm:$0xf] %vm1118_vm2, %v8828_v57  ;;  %2754 = vrot.lane.b32.xlu1 %v11166_v13, %s10102_s20  ;;  %2897 = vst.msk [vmem:[#allocation9 + $0x6c] sm:$0xf] %vm1118_vm2, %v8938_v10  ;;  %v9742_v57 = vld [vmem:[%s12979_s3 + $0x140] sm:$0xff]  }
 0x1da   : > { %v1990_v54 = vld [vmem:[#allocation9 + $0x20] sm:$0xff]  ;;  %1488 = vst.msk [vmem:[#allocation9 + $0x74] sm:$0xf] %vm1248_vm3, %v1455_v1  ;;  %4538 = vrot.lane.b32.xlu0 %v10929_v20, %s10102_s20 }
 0x1db   : > { %2888 = vst.msk [vmem:[#allocation9 + $0x24] sm:$0xf] %vm1118_vm2, %v10725_v25  ;;  %v11184_v40 = vpop.permute.xlu1 %2762  ;;  %v8026_v17 = vcombine.high %v1990_v54, %v11098_v51  ;;  %v8025_v30 = vcombine.low %v1990_v54, %v11098_v51  ;;  %2664 = vst.msk [vmem:[#allocation9 + $0x20] sm:$0xf] %vm1118_vm2, %v11176_v2  ;;  %v9741_v25 = vld [vmem:[%s12979_s3 + $0x108] sm:$0xff]  }
 0x1dc   : > { %v1723_v51 = vpop.permute.xlu0 %1722  ;;  %9266 = vmatpush3.bf16.msra.mxu1 %v9741_v25  ;;  %v3471_v54 = vld [vmem:[#allocation4 + $0x73] sm:$0xff] }
 0x1dd   : > { %2978 = vrot.lane.b32.xlu1 %v10913_v60, %s10102_s20  ;;  %2258 = vmatprep.mubr.bf16.mxu1 %v8026_v17  ;;  %1758 = vst.msk [vmem:[#allocation9 + $0x60] sm:$0xf] %vm1248_vm3, %v1723_v51  ;;  %v8905_v1 = vpack.c.bf16 %v3471_v54, %v3471_v54  ;;  %v3367_v25 = vld [vmem:[#allocation4 + $0x32] sm:$0xff] }
 0x1de   : > { %2259 = vmatmul.mubr.bf16.gmra.mxu1 %v8025_v30  ;;  %3541 = vrot.lane.b32.xlu0 %v8903_v35, %s10102_s20  ;;  %v2915_v30 = vld [vmem:[#allocation4 + $0x99] sm:$0xf]  ;;  %v8881_v15 = vpack.c.bf16 %v3367_v25, %v3367_v25  ;;  %v2595_v25 = vld [vmem:[#allocation4 + $0x8b] sm:$0xf] }
 0x1df   : > { %v11201_v3 = vld [vmem:[#allocation9 + $0x18] sm:$0xff]  ;;  %v11203_v39 = vpop.permute.xlu1 %2986  ;;  %9267 = vmatprep.subr.bf16.mxu1 %v9742_v57  ;;  %v8878_v51 = vpack.c.bf16 %v2915_v30, %v2915_v30 }
 0x1e0   : > { %3672 = vst.msk [vmem:[#allocation9 + $0x1c] sm:$0xf] %vm1118_vm2, %v10859_v55  ;;  %3448 = vst.msk [vmem:[#allocation9 + $0x18] sm:$0xf] %vm1118_vm2, %v10737_v43  ;;  %v1947_v50 = vpop.permute.xlu0 %1946  ;;  %v4477_v43 = vld [vmem:[#allocation4 + $0x6c] sm:$0xff]  ;;  %9268 = vmatpush3.bf16.msra.mxu1 %v9743_v44  ;;  %v4151_v35 = vld [vmem:[#allocation4 + $0x39] sm:$0xff] }
 0x1e1   : > { %3771 = vrot.lane.b32.xlu1 %v8938_v10, %s10102_s20  ;;  %v11214_v31 = vld [vmem:[#allocation9 + $0x70] sm:$0xff]  ;;  %1982 = vst.msk [vmem:[#allocation9 + $0x64] sm:$0xf] %vm1248_vm3, %v1947_v50  ;;  %v11230_v17 = vpack.c.bf16 %v4477_v43, %v4477_v43 }
 0x1e2   : > { %1856 = vst.msk [vmem:[#allocation9 + $0x74] sm:$0xf] %vm1118_vm2, %v10949_v58  ;;  %1632 = vst.msk [vmem:[#allocation9 + $0x70] sm:$0xf] %vm1118_vm2, %v11212_v59  ;;  %3765 = vrot.lane.b32.xlu0 %v10708_v29, %s10102_s20  ;;  %v9744_v29 = vld [vmem:[%s12979_s3 + $0x278] sm:$0xff]  }
 0x1e3   : > { %v3528_v5 = vpop.permute.xlu1 %3527  ;;  %9381 = vmatprep.subr.bf16.mxu1 %v9744_v29 }
 0x1e4   : > { %3574 = vst.msk [vmem:[#allocation9 + $0x8] sm:$0xf] %vm1248_vm3, %v3528_v5  ;;  %v2969_v10 = vpop.permute.xlu0 %2968  ;;  %v8944_v5 = vpack.c.bf16 %v4151_v35, %v4151_v35 }
 0x1e5   : > { %4324 = vrot.lane.b32.xlu1 %v10784_v6, %s10102_s20  ;;  %3014 = vst.msk [vmem:[#allocation9 + $0x14] sm:$0xf] %vm1248_vm3, %v2969_v10  ;;  %v4252_v10 = vld [vmem:[#allocation4 + $0x62] sm:$0xff] }
 0x1e6   : > { %3545 = vrot.lane.b32.xlu0 %v8905_v1, %s10102_s20 }
 0x1e7   : > { %v3752_v58 = vpop.permute.xlu1 %3751 }
 0x1e8   : > { %3798 = vst.msk [vmem:[#allocation9 + $0xc] sm:$0xf] %vm1248_vm3, %v3752_v58  ;;  %v11239_v6 = vld [vmem:[#allocation9 + $0x60] sm:$0xff]  ;;  %v2749_v21 = vpop.permute.xlu0 %2748 }
 0x1e9   : > { %4548 = vrot.lane.b32.xlu1 %v11230_v17, %s10102_s20  ;;  %2896 = vst.msk [vmem:[#allocation9 + $0x64] sm:$0xf] %vm1118_vm2, %v10892_v28  ;;  %2672 = vst.msk [vmem:[#allocation9 + $0x60] sm:$0xf] %vm1118_vm2, %v8905_v1  ;;  %v8965_v1 = vpack.c.bf16 %v4252_v10, %v4252_v10  ;;  %v2819_v10 = vld [vmem:[#allocation4 + $0x98] sm:$0xf] }
 0x1ea   : > { %2792 = vst.msk [vmem:[#allocation9 + $0x20] sm:$0xf] %vm1248_vm3, %v2749_v21  ;;  %3769 = vrot.lane.b32.xlu0 %v10892_v28, %s10102_s20 }
 0x1eb   : > { %v1441_v57 = vpop.permute.xlu1 %1440 }
 0x1ec   : > { %1481 = vst.msk [vmem:[#allocation9 + $0x3c] sm:$0xf] %vm1248_vm3, %v1441_v57  ;;  %v11249_v50 = vld [vmem:[#allocation9 + $0x10] sm:$0xff]  ;;  %v11251_v44 = vpop.permute.xlu0 %2984 }
 0x1ed   : > { %2994 = vrot.lane.b32.xlu1 %v8878_v51, %s10102_s20  ;;  %3671 = vst.msk [vmem:[#allocation9 + $0x14] sm:$0xf] %vm1118_vm2, %v10839_v42  ;;  %3447 = vst.msk [vmem:[#allocation9 + $0x10] sm:$0xf] %vm1118_vm2, %v8881_v15 }
 0x1ee   : > { %2976 = vrot.lane.b32.xlu0 %v10961_v19, %s10102_s20 }
 0x1ef   : > { %v11253_v54 = vld [vmem:[#allocation9 + $0x8] sm:$0xff]  ;;  %v1219_v43 = vpop.permute.xlu1 %1218 }
 0x1f0   : > { %4455 = vst.msk [vmem:[#allocation9 + $0xc] sm:$0xf] %vm1118_vm2, %v10841_v45  ;;  %4231 = vst.msk [vmem:[#allocation9 + $0x8] sm:$0xf] %vm1118_vm2, %v8944_v5  ;;  %v3750_v28 = vpop.permute.xlu0 %3749 }
 0x1f1   : > { %1258 = vst.msk [vmem:[#allocation9 + $0x48] sm:$0xf] %vm1248_vm3, %v1219_v43  ;;  %3535 = vrot.lane.b32.xlu1 %v10885_v14, %s10102_s20  ;;  %3797 = vst.msk [vmem:[#allocation9 + $0x4] sm:$0xf] %vm1248_vm3, %v3750_v28 }
 0x1f2   : > { %4322 = vrot.lane.b32.xlu0 %v8965_v1, %s10102_s20  ;;  %v8830_v1 = vpack.c.bf16 %v2595_v25, %v2595_v25 }
 0x1f3   : > { %v1497_v42 = vld [vmem:[#allocation9 + $0x38] sm:$0xff]  ;;  %v1713_v58 = vpop.permute.xlu1 %1712 }
 0x1f4   : > { %1849 = vst.msk [vmem:[#allocation9 + $0x3c] sm:$0xf] %vm1118_vm2, %v10847_v11  ;;  %1625 = vst.msk [vmem:[#allocation9 + $0x38] sm:$0xf] %vm1118_vm2, %v10859_v55  ;;  %v8060_v45 = vcombine.high %v11138_v62, %v1497_v42  ;;  %v8059_v30 = vcombine.low %v11138_v62, %v1497_v42  ;;  %v2765_v29 = vpop.permute.xlu0 %2764  ;;  %v4150_v11 = vld [vmem:[#allocation4 + $0x31] sm:$0xff] }
 0x1f5   : > { %1977 = vst.msk [vmem:[#allocation9 + $0x3c] sm:$0xf] %vm1248_vm3, %v10499_v8  ;;  %1753 = vst.msk [vmem:[#allocation9 + $0x38] sm:$0xf] %vm1248_vm3, %v1713_v58  ;;  %3759 = vrot.lane.b32.xlu1 %v10733_v41, %s10102_s20  ;;  %v2684_v55 = vld [vmem:[#allocation4 + $0x54] sm:$0xff]  ;;  %v3474_v62 = vld [vmem:[#allocation4 + $0x8b] sm:$0xff]  ;;  %v8943_v41 = vpack.c.bf16 %v4150_v11, %v4150_v11 }
 0x1f6   : > { %2539 = vmatprep.mubr.bf16.mxu0 %v8060_v45  ;;  %2800 = vst.msk [vmem:[#allocation9 + $0x60] sm:$0xf] %vm1248_vm3, %v2765_v29  ;;  %4546 = vrot.lane.b32.xlu0 %v10955_v32, %s10102_s20  ;;  %v2811_v8 = vld [vmem:[#allocation4 + $0x58] sm:$0xff]  ;;  %v11287_v35 = vpack.c.bf16 %v2684_v55, %v2684_v55  ;;  %v8908_v5 = vpack.c.bf16 %v3474_v62, %v3474_v62  ;;  %v3473_v32 = vld [vmem:[#allocation4 + $0x83] sm:$0xff] }
 0x1f7   : > { %v1729_v21 = vpop.permute.xlu1 %1728  ;;  %2540 = vmatmul.mubr.bf16.gmra.mxu0 %v8059_v30  ;;  %v11293_v43 = vpack.c.bf16 %v2811_v8, %v2811_v8  ;;  %v3698_v42 = vld [vmem:[#allocation4 + $0x98] sm:$0xff]  ;;  %v11305_v58 = vpack.c.bf16 %v3473_v32, %v3473_v32  ;;  %v8862_v30 = vpack.c.bf16 %v2819_v10, %v2819_v10  ;;  %v3370_v62 = vld [vmem:[#allocation4 + $0x4a] sm:$0xff] }
 0x1f8   : > { %1761 = vst.msk [vmem:[#allocation9 + $0x78] sm:$0x3] %vm1264_vm4, %v1729_v21  ;;  %v11285_v57 = vld [vmem:[#allocation9] sm:$0xff]  ;;  %v3530_v51 = vpop.permute.xlu0 %3529  ;;  %v8940_v21 = vpack.c.bf16 %v3698_v42, %v3698_v42  ;;  %v2914_v55 = vld [vmem:[#allocation4 + $0x91] sm:$0xff]  ;;  %v3476_v32 = vld [vmem:[#allocation4 + $0x9b] sm:$0xf] }
 0x1f9   : > { %4540 = vrot.lane.b32.xlu1 %v11166_v13, %s10102_s20  ;;  %4454 = vst.msk [vmem:[#allocation9 + $0x4] sm:$0xf] %vm1118_vm2, %v11176_v2  ;;  %4230 = vst.msk [vmem:[#allocation9] sm:$0xf] %vm1118_vm2, %v8943_v41  ;;  %v4255_v45 = vld [vmem:[#allocation4 + $0x7a] sm:$0xff]  ;;  %v8877_v25 = vpack.c.bf16 %v2914_v55, %v2914_v55  ;;  %v1546_v10 = vld [vmem:[#allocation4 + $0x44] sm:$0xff] }
 0x1fa   : > { %3575 = vst.msk [vmem:[#allocation9 + $0x10] sm:$0xf] %vm1248_vm3, %v3530_v51  ;;  %2756 = vrot.lane.b32.xlu0 %v11287_v35, %s10102_s20  ;;  %v4479_v51 = vld [vmem:[#allocation4 + $0x7c] sm:$0xff] }
 0x1fb   : > { %v2751_v15 = vpop.permute.xlu1 %2750 }
 0x1fc   : > { %v11295_v28 = vld [vmem:[#allocation9 + $0x38] sm:$0xff]  ;;  %2793 = vst.msk [vmem:[#allocation9 + $0x28] sm:$0xf] %vm1248_vm3, %v2751_v15  ;;  %v1217_v2 = vpop.permute.xlu0 %1216  ;;  %v8884_v15 = vpack.c.bf16 %v3370_v62, %v3370_v62  ;;  %v3700_v62 = vld [vmem:[#allocation4 + $0xa8] sm:$0xf] }
 0x1fd   : > { %2667 = vst.msk [vmem:[#allocation9 + $0x38] sm:$0xf] %vm1118_vm2, %v10885_v14  ;;  %3551 = vrot.lane.b32.xlu1 %v8908_v5, %s10102_s20  ;;  %2891 = vst.msk [vmem:[#allocation9 + $0x3c] sm:$0xf] %vm1118_vm2, %v11293_v43  ;;  %v11316_v14 = vpack.c.bf16 %v4255_v45, %v4255_v45  ;;  %v8910_v45 = vpack.c.bf16 %v3476_v32, %v3476_v32  ;;  %v4257_v32 = vld [vmem:[#allocation4 + $0x8a] sm:$0xff] }
 0x1fe   : > { %1257 = vst.msk [vmem:[#allocation9 + $0x40] sm:$0xf] %vm1248_vm3, %v1217_v2  ;;  %3549 = vrot.lane.b32.xlu0 %v11305_v58, %s10102_s20  ;;  %v11326_v2 = vpack.c.bf16 %v4479_v51, %v4479_v51  ;;  %v8942_v51 = vpack.c.bf16 %v3700_v62, %v3700_v62 }
 0x1ff   : > { %v11307_v29 = vld [vmem:[#allocation9 + $0x78] sm:$0x33]  ;;  %v2975_v11 = vpop.permute.xlu1 %2974 }
 0x200   : > { %2675 = vst.msk [vmem:[#allocation9 + $0x78] sm:$0x3] %vm1134_vm5, %v8830_v1  ;;  %2899 = vst.msk [vmem:[#allocation9 + $0x7c] sm:$0x3] %vm1134_vm5, %v8862_v30  ;;  %v1443_v8 = vpop.permute.xlu0 %1442  ;;  %v8759_v30 = vpack.c.bf16 %v1546_v10, %v1546_v10 }
 0x201   : > { %3017 = vst.msk [vmem:[#allocation9 + $0x2c] sm:$0xf] %vm1248_vm3, %v2975_v11  ;;  %3775 = vrot.lane.b32.xlu1 %v8940_v21, %s10102_s20  ;;  %1482 = vst.msk [vmem:[#allocation9 + $0x44] sm:$0xf] %vm1248_vm3, %v1443_v8  ;;  %v3378_v11 = vld [vmem:[#allocation4 + $0x8a] sm:$0xff] }
 0x202   : > { %2992 = vrot.lane.b32.xlu0 %v8877_v25, %s10102_s20  ;;  %v3602_v8 = vld [vmem:[#allocation4 + $0x8c] sm:$0xff] }
 0x203   : > { %v2767_v41 = vpop.permute.xlu1 %2766 }
 0x204   : > { %2801 = vst.msk [vmem:[#allocation9 + $0x68] sm:$0xf] %vm1248_vm3, %v2767_v41  ;;  %v1711_v5 = vpop.permute.xlu0 %1710  ;;  %v11343_v41 = vpack.c.bf16 %v3378_v11, %v3378_v11 }
 0x205   : > { %4328 = vrot.lane.b32.xlu1 %v11316_v14, %s10102_s20  ;;  %1752 = vst.msk [vmem:[#allocation9 + $0x30] sm:$0xf] %vm1248_vm3, %v1711_v5 }
 0x206   : > { %3757 = vrot.lane.b32.xlu0 %v10741_v46, %s10102_s20 }
 0x207   : > { %v2991_v42 = vpop.permute.xlu1 %2990 }
 0x208   : > { %v11323_v1 = vld [vmem:[#allocation9 + $0x28] sm:$0xff]  ;;  %3025 = vst.msk [vmem:[#allocation9 + $0x6c] sm:$0xf] %vm1248_vm3, %v2991_v42  ;;  %v1498_v21 = vld [vmem:[#allocation9 + $0x40] sm:$0xff]  ;;  %v1935_v55 = vpop.permute.xlu0 %1934 }
 0x209   : > { %3674 = vst.msk [vmem:[#allocation9 + $0x2c] sm:$0xf] %vm1118_vm2, %v11166_v13  ;;  %3450 = vst.msk [vmem:[#allocation9 + $0x28] sm:$0xf] %vm1118_vm2, %v8884_v15  ;;  %4552 = vrot.lane.b32.xlu1 %v11326_v2, %s10102_s20  ;;  %v8924_v15 = vpack.c.bf16 %v3602_v8, %v3602_v8  ;;  %v2818_v8 = vld [vmem:[#allocation4 + $0x90] sm:$0xff] }
 0x20a   : > { %1850 = vst.msk [vmem:[#allocation9 + $0x44] sm:$0xf] %vm1118_vm2, %v10961_v19  ;;  %1626 = vst.msk [vmem:[#allocation9 + $0x40] sm:$0xf] %vm1118_vm2, %v8759_v30  ;;  %3537 = vrot.lane.b32.xlu0 %v10972_v7, %s10102_s20  ;;  %v2586_v19 = vld [vmem:[#allocation4 + $0x43] sm:$0xff]  ;;  %v8970_v7 = vpack.c.bf16 %v4257_v32, %v4257_v32 }
 0x20b   : > { %v1445_v25 = vpop.permute.xlu1 %1444  ;;  %1976 = vst.msk [vmem:[#allocation9 + $0x34] sm:$0xf] %vm1248_vm3, %v1935_v55  ;;  %v1773_v32 = vld [vmem:[#allocation4 + $0x69] sm:$0xff] }
 0x20c   : > { %1483 = vst.msk [vmem:[#allocation9 + $0x4c] sm:$0xf] %vm1248_vm3, %v1445_v25  ;;  %v1727_v5 = vpop.permute.xlu0 %1726 }
 0x20d   : > { %3555 = vrot.lane.b32.xlu1 %v8910_v45, %s10102_s20  ;;  %1760 = vst.msk [vmem:[#allocation9 + $0x70] sm:$0xf] %vm1248_vm3, %v1727_v5  ;;  %v11356_v45 = vpack.c.bf16 %v2586_v19, %v2586_v19 }
 0x20e   : > { %4318 = vrot.lane.b32.xlu0 %v11003_v63, %s10102_s20 }
 0x20f   : > { %v11346_v10 = vld [vmem:[#allocation9 + $0x68] sm:$0xff]  ;;  %v3532_v42 = vpop.permute.xlu1 %3531 }
 0x210   : > { %3682 = vst.msk [vmem:[#allocation9 + $0x6c] sm:$0xf] %vm1118_vm2, %v8924_v15  ;;  %3458 = vst.msk [vmem:[#allocation9 + $0x68] sm:$0xf] %vm1118_vm2, %v11343_v41  ;;  %v1951_v11 = vpop.permute.xlu0 %1950 }
 0x211   : > { %3576 = vst.msk [vmem:[#allocation9 + $0x18] sm:$0xf] %vm1248_vm3, %v3532_v42  ;;  %3779 = vrot.lane.b32.xlu1 %v8942_v51, %s10102_s20  ;;  %1984 = vst.msk [vmem:[#allocation9 + $0x74] sm:$0xf] %vm1248_vm3, %v1951_v11  ;;  %v3369_v11 = vld [vmem:[#allocation4 + $0x42] sm:$0xff] }
 0x212   : > { %v1992_v30 = vld [vmem:[#allocation9 + $0x30] sm:$0xff]  ;;  %4542 = vrot.lane.b32.xlu0 %v11287_v35, %s10102_s20 }
 0x213   : > { %v1499_v55 = vld [vmem:[#allocation9 + $0x48] sm:$0xff]  ;;  %2890 = vst.msk [vmem:[#allocation9 + $0x34] sm:$0xf] %vm1118_vm2, %v10741_v46  ;;  %v1223_v62 = vpop.permute.xlu1 %1222  ;;  %v8028_v63 = vcombine.high %v1992_v30, %v11295_v28  ;;  %v8027_v25 = vcombine.low %v1992_v30, %v11295_v28  ;;  %2666 = vst.msk [vmem:[#allocation9 + $0x30] sm:$0xf] %vm1118_vm2, %v11356_v45 }
 0x214   : > { %1851 = vst.msk [vmem:[#allocation9 + $0x4c] sm:$0xf] %vm1118_vm2, %v10913_v60  ;;  %v8062_v46 = vcombine.high %v1498_v21, %v1499_v55  ;;  %1627 = vst.msk [vmem:[#allocation9 + $0x48] sm:$0xf] %vm1118_vm2, %v11166_v13  ;;  %v8061_v51 = vcombine.low %v1498_v21, %v1499_v55  ;;  %v9756_v28 = vld [vmem:[%s12979_s3 + $0x2f8] sm:$0xff]   ;;  %v8861_v60 = vpack.c.bf16 %v2818_v8, %v2818_v8  ;;  %v2973_v5 = vpop.permute.xlu0 %2972  ;;  %v4254_v13 = vld [vmem:[#allocation4 + $0x72] sm:$0xff] }
 0x215   : > { %1260 = vst.msk [vmem:[#allocation9 + $0x58] sm:$0xf] %vm1248_vm3, %v1223_v62  ;;  %1979 = vst.msk [vmem:[#allocation9 + $0x4c] sm:$0xf] %vm1248_vm3, %v10527_v26  ;;  %4332 = vrot.lane.b32.xlu1 %v8970_v7, %s10102_s20  ;;  %2266 = vmatprep.mubr.bf16.mxu1 %v8028_v63  ;;  %v5032_v21 = vld [vmem:[#allocation4 + $0x49] sm:$0xff]  ;;  %v11382_v26 = vpack.c.bf16 %v1773_v32, %v1773_v32  ;;  %v11386_v30 = vpack.c.bf16 %v4254_v13, %v4254_v13 }
 0x216   : > { %2547 = vmatprep.mubr.bf16.mxu0 %v8062_v46  ;;  %2267 = vmatmul.mubr.bf16.gmra.mxu1 %v8027_v25  ;;  %3016 = vst.msk [vmem:[#allocation9 + $0x24] sm:$0xf] %vm1248_vm3, %v2973_v5  ;;  %v9024_v8 = vpack.c.bf16 %v5032_v21, %v5032_v21  ;;  %v2813_v63 = vld [vmem:[#allocation4 + $0x68] sm:$0xff]  ;;  %v4259_v46 = vld [vmem:[#allocation4 + $0x9a] sm:$0xff] }
 0x217   : > { %v1717_v19 = vpop.permute.xlu1 %1716  ;;  %2548 = vmatmul.mubr.bf16.gmra.mxu0 %v8061_v51  ;;  %9445 = vmatprep.subr.bf16.mxu0 %v9756_v28  ;;  %v8856_v51 = vpack.c.bf16 %v2813_v63, %v2813_v63  ;;  %v8972_v32 = vpack.c.bf16 %v4259_v46, %v4259_v46  ;;  %v4483_v21 = vld [vmem:[#allocation4 + $0x9c] sm:$0xff] }
 0x218   : > { %1755 = vst.msk [vmem:[#allocation9 + $0x48] sm:$0xf] %vm1248_vm3, %v1717_v19  ;;  %3773 = vrot.lane.b32.xlu0 %v8861_v60, %s10102_s20  ;;  %v11384_v42 = vld [vmem:[#allocation9 + $0x70] sm:$0xff]  ;;  %v2753_v7 = vpop.permute.xlu0 %2752  ;;  %v3699_v19 = vld [vmem:[#allocation4 + $0xa0] sm:$0xff] }
 0x219   : > { %4556 = vrot.lane.b32.xlu1 %v8924_v15, %s10102_s20  ;;  %2898 = vst.msk [vmem:[#allocation9 + $0x74] sm:$0xf] %vm1118_vm2, %v8861_v60  ;;  %2674 = vst.msk [vmem:[#allocation9 + $0x70] sm:$0xf] %vm1118_vm2, %v11305_v58  ;;  %v4377_v15 = vld [vmem:[#allocation4 + $0x4b] sm:$0xff]  ;;  %v11406_v58 = vpack.c.bf16 %v3369_v11, %v3369_v11 }
 0x21a   : > { %2794 = vst.msk [vmem:[#allocation9 + $0x30] sm:$0xf] %vm1248_vm3, %v2753_v7  ;;  %v8978_v60 = vpack.c.bf16 %v4377_v15, %v4377_v15  ;;  %v4256_v7 = vld [vmem:[#allocation4 + $0x82] sm:$0xff]  ;;  %v3374_v11 = vld [vmem:[#allocation4 + $0x6a] sm:$0xff] }
 0x21b   : > { %v3756_v62 = vpop.permute.xlu1 %3755  ;;  %v8969_v46 = vpack.c.bf16 %v4256_v7, %v4256_v7 }
 0x21c   : > { %v11388_v55 = vld [vmem:[#allocation9 + $0x58] sm:$0xff]  ;;  %3800 = vst.msk [vmem:[#allocation9 + $0x1c] sm:$0xf] %vm1248_vm3, %v3756_v62  ;;  %4326 = vrot.lane.b32.xlu0 %v11386_v30, %s10102_s20  ;;  %v2989_v25 = vpop.permute.xlu0 %2988 }
 0x21d   : > { %1629 = vst.msk [vmem:[#allocation9 + $0x58] sm:$0xf] %vm1118_vm2, %v11122_v23  ;;  %1853 = vst.msk [vmem:[#allocation9 + $0x5c] sm:$0xf] %vm1118_vm2, %v11382_v26  ;;  %5097 = vrot.lane.b32.xlu1 %v9024_v8, %s10102_s20  ;;  %v11408_v23 = vld [vmem:[#allocation9 + $0x20] sm:$0xff] }
 0x21e   : > { %1757 = vst.msk [vmem:[#allocation9 + $0x58] sm:$0xf] %vm1248_vm3, %v10933_v24  ;;  %1981 = vst.msk [vmem:[#allocation9 + $0x5c] sm:$0xf] %vm1248_vm3, %v10551_v4  ;;  %v3475_v24 = vld [vmem:[#allocation4 + $0x93] sm:$0xff]  ;;  %v2591_v4 = vld [vmem:[#allocation4 + $0x6b] sm:$0xff] }
 0x21f   : > { %v11410_v28 = vld [vmem:[#allocation9 + $0x48] sm:$0xff]  ;;  %3673 = vst.msk [vmem:[#allocation9 + $0x24] sm:$0xf] %vm1118_vm2, %v10929_v20  ;;  %v2771_v5 = vpop.permute.xlu1 %2770  ;;  %3449 = vst.msk [vmem:[#allocation9 + $0x20] sm:$0xf] %vm1118_vm2, %v11406_v58  ;;  %v2815_v20 = vld [vmem:[#allocation4 + $0x78] sm:$0xff]  ;;  %v11428_v62 = vpack.c.bf16 %v2591_v4, %v2591_v4 }
 0x220   : > { %3024 = vst.msk [vmem:[#allocation9 + $0x64] sm:$0xf] %vm1248_vm3, %v2989_v25  ;;  %4550 = vrot.lane.b32.xlu0 %v11212_v59, %s10102_s20  ;;  %v1221_v13 = vpop.permute.xlu0 %1220  ;;  %v9004_v25 = vpack.c.bf16 %v4483_v21, %v4483_v21 }
 0x221   : > { %2669 = vst.msk [vmem:[#allocation9 + $0x48] sm:$0xf] %vm1118_vm2, %v10986_v18  ;;  %2893 = vst.msk [vmem:[#allocation9 + $0x4c] sm:$0xf] %vm1118_vm2, %v8856_v51  ;;  %5321 = vrot.lane.b32.xlu1 %v8978_v60, %s10102_s20  ;;  %v8909_v18 = vpack.c.bf16 %v3475_v24, %v3475_v24  ;;  %v8888_v51 = vpack.c.bf16 %v3374_v11, %v3374_v11  ;;  %v5034_v24 = vld [vmem:[#allocation4 + $0x59] sm:$0xff] }
 0x222   : > { %2803 = vst.msk [vmem:[#allocation9 + $0x78] sm:$0x3] %vm1264_vm4, %v2771_v5 }
 0x223   : > { %2797 = vst.msk [vmem:[#allocation9 + $0x48] sm:$0xf] %vm1248_vm3, %v10974_v9  ;;  %3021 = vst.msk [vmem:[#allocation9 + $0x4c] sm:$0xf] %vm1248_vm3, %v10983_v36  ;;  %v11430_v59 = vld [vmem:[#allocation9 + $0x18] sm:$0xff]  ;;  %v4313_v63 = vpop.permute.xlu1 %4312  ;;  %v8858_v9 = vpack.c.bf16 %v2815_v20, %v2815_v20  ;;  %v8941_v36 = vpack.c.bf16 %v3699_v19, %v3699_v19  ;;  %v9026_v20 = vpack.c.bf16 %v5034_v24, %v5034_v24  ;;  %v4936_v19 = vld [vmem:[#allocation4 + $0x48] sm:$0xff] }
 0x224   : > { %1259 = vst.msk [vmem:[#allocation9 + $0x50] sm:$0xf] %vm1248_vm3, %v1221_v13  ;;  %4359 = vst.msk [vmem:[#allocation9 + $0x8] sm:$0xf] %vm1248_vm3, %v4313_v63  ;;  %3553 = vrot.lane.b32.xlu0 %v8909_v18, %s10102_s20  ;;  %v1447_v5 = vpop.permute.xlu0 %1446  ;;  %v5258_v13 = vld [vmem:[#allocation4 + $0x5b] sm:$0xff]  ;;  %v2814_v24 = vld [vmem:[#allocation4 + $0x70] sm:$0xff] }
 0x225   : > { %v11433_v15 = vld [vmem:[#allocation9 + $0x58] sm:$0xff]  ;;  %4457 = vst.msk [vmem:[#allocation9 + $0x1c] sm:$0xf] %vm1118_vm2, %v8978_v60  ;;  %4233 = vst.msk [vmem:[#allocation9 + $0x18] sm:$0xf] %vm1118_vm2, %v9024_v8  ;;  %4336 = vrot.lane.b32.xlu1 %v8972_v32, %s10102_s20  ;;  %v4480_v32 = vld [vmem:[#allocation4 + $0x84] sm:$0xff] }
 0x226   : > { %2671 = vst.msk [vmem:[#allocation9 + $0x58] sm:$0xf] %vm1118_vm2, %v11428_v62  ;;  %2895 = vst.msk [vmem:[#allocation9 + $0x5c] sm:$0xf] %vm1118_vm2, %v8858_v9  ;;  %v9001_v11 = vpack.c.bf16 %v4480_v32, %v4480_v32  ;;  %v4261_v63 = vld [vmem:[#allocation4 + $0xaa] sm:$0xf]  ;;  %v9008_v9 = vpack.c.bf16 %v4936_v19, %v4936_v19  ;;  %v8857_v32 = vpack.c.bf16 %v2814_v24, %v2814_v24 }
 0x227   : > { %2799 = vst.msk [vmem:[#allocation9 + $0x58] sm:$0xf] %vm1248_vm3, %v11184_v40  ;;  %v11445_v60 = vld [vmem:[#allocation9 + $0x60] sm:$0xff]  ;;  %3023 = vst.msk [vmem:[#allocation9 + $0x5c] sm:$0xf] %vm1248_vm3, %v11203_v39  ;;  %v4537_v8 = vpop.permute.xlu1 %4536 }
 0x228   : > { %3681 = vst.msk [vmem:[#allocation9 + $0x64] sm:$0xf] %vm1118_vm2, %v11046_v49  ;;  %3457 = vst.msk [vmem:[#allocation9 + $0x60] sm:$0xf] %vm1118_vm2, %v8969_v46  ;;  %3777 = vrot.lane.b32.xlu0 %v8941_v36, %s10102_s20  ;;  %v1772_v49 = vld [vmem:[#allocation4 + $0x61] sm:$0xff]  ;;  %v1715_v39 = vpop.permute.xlu0 %1714 }
 0x229   : > { %1484 = vst.msk [vmem:[#allocation9 + $0x54] sm:$0xf] %vm1248_vm3, %v1447_v5  ;;  %4583 = vst.msk [vmem:[#allocation9 + $0xc] sm:$0xf] %vm1248_vm3, %v4537_v8  ;;  %4560 = vrot.lane.b32.xlu1 %v9004_v25, %s10102_s20  ;;  %v11465_v18 = vpack.c.bf16 %v1772_v49, %v1772_v49  ;;  %v4485_v8 = vld [vmem:[#allocation4 + $0xac] sm:$0xf] }
 0x22a   : > { %v11455_v40 = vld [vmem:[#allocation9 + $0x48] sm:$0xff]  ;;  %1754 = vst.msk [vmem:[#allocation9 + $0x40] sm:$0xf] %vm1248_vm3, %v1715_v39  ;;  %v9006_v39 = vpack.c.bf16 %v4485_v8, %v4485_v8  ;;  %v5038_v8 = vld [vmem:[#allocation4 + $0x79] sm:$0xff] }
 0x22b   : > { %3454 = vst.msk [vmem:[#allocation9 + $0x48] sm:$0xf] %vm1118_vm2, %v8888_v51  ;;  %3678 = vst.msk [vmem:[#allocation9 + $0x4c] sm:$0xf] %vm1118_vm2, %v11230_v17  ;;  %v11461_v4 = vpop.permute.xlu1 %3539 }
 0x22c   : > { %4330 = vrot.lane.b32.xlu0 %v8969_v46, %s10102_s20  ;;  %v1939_v17 = vpop.permute.xlu0 %1938  ;;  %v11483_v46 = vpack.c.bf16 %v5258_v13, %v5258_v13 }
 0x22d   : > { %5101 = vrot.lane.b32.xlu1 %v9026_v20, %s10102_s20  ;;  %1978 = vst.msk [vmem:[#allocation9 + $0x44] sm:$0xf] %vm1248_vm3, %v1939_v17 }
 0x22e   : > { %v11468_v21 = vld [vmem:[#allocation9 + $0x58] sm:$0xff] }
 0x22f   : > { %3456 = vst.msk [vmem:[#allocation9 + $0x58] sm:$0xf] %vm1118_vm2, %v11316_v14  ;;  %3680 = vst.msk [vmem:[#allocation9 + $0x5c] sm:$0xf] %vm1118_vm2, %v11326_v2  ;;  %v11480_v25 = vpop.permute.xlu1 %3763  ;;  %v5031_v2 = vld [vmem:[#allocation4 + $0x41] sm:$0xff] }
 0x230   : > { %v1500_v7 = vld [vmem:[#allocation9 + $0x50] sm:$0xff]  ;;  %v11474_v36 = vld [vmem:[#allocation9 + $0x8] sm:$0xff]  ;;  %4554 = vrot.lane.b32.xlu0 %v9001_v11, %s10102_s20  ;;  %v3754_v5 = vpop.permute.xlu0 %3753 }
 0x231   : > { %1628 = vst.msk [vmem:[#allocation9 + $0x50] sm:$0xf] %vm1118_vm2, %v11287_v35  ;;  %1852 = vst.msk [vmem:[#allocation9 + $0x54] sm:$0xf] %vm1118_vm2, %v11465_v18  ;;  %v8064_v14 = vcombine.high %v1500_v7, %v11388_v55  ;;  %v8063_v51 = vcombine.low %v1500_v7, %v11388_v55  ;;  %5325 = vrot.lane.b32.xlu1 %v11483_v46, %s10102_s20  ;;  %v8066_v35 = vcombine.high %v10957_v34, %v11119_v12 }
 0x232   : > { %5240 = vst.msk [vmem:[#allocation9 + $0xc] sm:$0xf] %vm1118_vm2, %v10768_v61  ;;  %5016 = vst.msk [vmem:[#allocation9 + $0x8] sm:$0xf] %vm1118_vm2, %v9008_v9  ;;  %v8974_v55 = vpack.c.bf16 %v4261_v63, %v4261_v63  ;;  %v9023_v61 = vpack.c.bf16 %v5031_v2, %v5031_v2 }
 0x233   : > { %1756 = vst.msk [vmem:[#allocation9 + $0x50] sm:$0xf] %vm1248_vm3, %v10947_v48  ;;  %1980 = vst.msk [vmem:[#allocation9 + $0x54] sm:$0xf] %vm1248_vm3, %v10959_v53  ;;  %2555 = vmatprep.mubr.bf16.mxu0 %v8064_v14  ;;  %v5257_v48 = vld [vmem:[#allocation4 + $0x53] sm:$0xff]  ;;  %v4317_v49 = vpop.permute.xlu1 %4316  ;;  %v5259_v53 = vld [vmem:[#allocation4 + $0x63] sm:$0xff] }
 0x234   : > { %2556 = vmatmul.mubr.bf16.gmra.mxu0 %v8063_v51  ;;  %3799 = vst.msk [vmem:[#allocation9 + $0x14] sm:$0xf] %vm1248_vm3, %v3754_v5  ;;  %4361 = vst.msk [vmem:[#allocation9 + $0x18] sm:$0xf] %vm1248_vm3, %v4317_v49  ;;  %5095 = vrot.lane.b32.xlu0 %v9023_v61, %s10102_s20  ;;  %v11503_v20 = vpack.c.bf16 %v5257_v48, %v5257_v48  ;;  %v1994_v19 = vld [vmem:[#allocation9 + $0x40] sm:$0xff]  ;;  %v2769_v13 = vpop.permute.xlu0 %2768  ;;  %v11505_v7 = vpack.c.bf16 %v5259_v53, %v5259_v53  ;;  %v4258_v14 = vld [vmem:[#allocation4 + $0x92] sm:$0xff] }
 0x235   : > { %2563 = vmatprep.mubr.bf16.mxu0 %v8066_v35  ;;  %4340 = vrot.lane.b32.xlu1 %v8974_v55, %s10102_s20  ;;  %2892 = vst.msk [vmem:[#allocation9 + $0x44] sm:$0xf] %vm1118_vm2, %v11140_v52  ;;  %v8030_v63 = vcombine.high %v1994_v19, %v11410_v28  ;;  %v8029_v9 = vcombine.low %v1994_v19, %v11410_v28  ;;  %v5033_v48 = vld [vmem:[#allocation4 + $0x51] sm:$0xff] }
 0x236   : > { %2802 = vst.msk [vmem:[#allocation9 + $0x70] sm:$0xf] %vm1248_vm3, %v2769_v13  ;;  %3020 = vst.msk [vmem:[#allocation9 + $0x44] sm:$0xf] %vm1248_vm3, %v11001_v33  ;;  %v8065_v52 = vcombine.low %v10957_v34, %v11119_v12  ;;  %v8068_v33 = vcombine.high %v11214_v31, %v11145_v27  ;;  %v8971_v12 = vpack.c.bf16 %v4258_v14, %v4258_v14 }
 0x237   : > { %v3544_v11 = vpop.permute.xlu1 %3543  ;;  %2668 = vst.msk [vmem:[#allocation9 + $0x40] sm:$0xf] %vm1118_vm2, %v11503_v20  ;;  %2274 = vmatprep.mubr.bf16.mxu1 %v8030_v63  ;;  %v8067_v49 = vcombine.low %v11214_v31, %v11145_v27  ;;  %v9030_v27 = vpack.c.bf16 %v5038_v8, %v5038_v8  ;;  %v11563_v31 = vpack.c.bf16 %v5033_v48, %v5033_v48  ;;  %v4935_v63 = vld [vmem:[#allocation4 + $0x40] sm:$0xff]  ;;  %v9764_v48 = vld [vmem:[%s12979_s3 + $0x2e8] sm:$0xff]  }
 0x238   : > { %3582 = vst.msk [vmem:[#allocation9 + $0x48] sm:$0xf] %vm1248_vm3, %v3544_v11  ;;  %5319 = vrot.lane.b32.xlu0 %v11356_v45, %s10102_s20  ;;  %v3534_v34 = vpop.permute.xlu0 %3533  ;;  %2275 = vmatmul.mubr.bf16.gmra.mxu1 %v8029_v9  ;;  %v8033_v14 = vcombine.low %v11239_v6, %v11168_v0 }
 0x239   : > { %4564 = vrot.lane.b32.xlu1 %v9006_v39, %s10102_s20  ;;  %3577 = vst.msk [vmem:[#allocation9 + $0x20] sm:$0xf] %vm1248_vm3, %v3534_v34  ;;  %v8034_v39 = vcombine.high %v11239_v6, %v11168_v0  ;;  %v9757_v34 = vld [vmem:[%s12979_s3 + $0x2b8] sm:$0xff]   ;;  %v9761_v0 = vld [vmem:[%s12979_s3 + $0x2f0] sm:$0xff]   ;;  %v9007_v6 = vpack.c.bf16 %v4935_v63, %v4935_v63 }
 0x23a   : > { %v1996_v17 = vld [vmem:[#allocation9 + $0x50] sm:$0xff]  ;;  %v3596_v63 = vld [vmem:[#allocation4 + $0x5c] sm:$0xff] }
 0x23b   : > { %2894 = vst.msk [vmem:[#allocation9 + $0x54] sm:$0xf] %vm1118_vm2, %v8857_v32  ;;  %v8032_v51 = vcombine.high %v1996_v17, %v11433_v15  ;;  %2670 = vst.msk [vmem:[#allocation9 + $0x50] sm:$0xf] %vm1118_vm2, %v11505_v7  ;;  %v11532_v28 = vld [vmem:[#allocation9 + $0x10] sm:$0xff]  ;;  %v3768_v2 = vpop.permute.xlu1 %3767  ;;  %v8246_v32 = vcombine.high %v11285_v57, %v11253_v54 }
 0x23c   : > { %3022 = vst.msk [vmem:[#allocation9 + $0x54] sm:$0xf] %vm1248_vm3, %v11251_v44  ;;  %2798 = vst.msk [vmem:[#allocation9 + $0x50] sm:$0xf] %vm1248_vm3, %v11030_v22  ;;  %2564 = vmatmul.mubr.bf16.gmra.mxu0 %v8065_v52  ;;  %v4482_v44 = vld [vmem:[#allocation4 + $0x94] sm:$0xff]  ;;  %4334 = vrot.lane.b32.xlu0 %v8971_v12, %s10102_s20  ;;  %v4311_v35 = vpop.permute.xlu0 %4310  ;;  %v8245_v52 = vcombine.low %v11285_v57, %v11253_v54  ;;  %v8036_v12 = vcombine.high %v11384_v42, %v11307_v29 }
 0x23d   : > { %4456 = vst.msk [vmem:[#allocation9 + $0x14] sm:$0xf] %vm1118_vm2, %v11356_v45  ;;  %2282 = vmatprep.mubr.bf16.mxu1 %v8032_v51  ;;  %2571 = vmatprep.mubr.bf16.mxu0 %v8068_v33  ;;  %4232 = vst.msk [vmem:[#allocation9 + $0x10] sm:$0xf] %vm1118_vm2, %v9023_v61  ;;  %v3599_v22 = vld [vmem:[#allocation4 + $0x74] sm:$0xff]  ;;  %v11542_v55 = vpack.c.bf16 %v4482_v44, %v4482_v44  ;;  %v8031_v61 = vcombine.low %v1996_v17, %v11433_v15  ;;  %v5040_v51 = vld [vmem:[#allocation4 + $0x89] sm:$0xff] }
 0x23e   : > { %3806 = vst.msk [vmem:[#allocation9 + $0x4c] sm:$0xf] %vm1248_vm3, %v3768_v2  ;;  %5105 = vrot.lane.b32.xlu1 %v11382_v26, %s10102_s20  ;;  %v4383_v45 = vld [vmem:[#allocation4 + $0x7b] sm:$0xff]  ;;  %4358 = vst.msk [vmem:[#allocation9] sm:$0xf] %vm1248_vm3, %v4311_v35  ;;  %v8921_v24 = vpack.c.bf16 %v3599_v22, %v3599_v22  ;;  %v8248_v2 = vcombine.high %v11532_v28, %v11430_v59  ;;  %v4484_v44 = vld [vmem:[#allocation4 + $0xa4] sm:$0xff]  ;;  %v11600_v35 = vpack.c.bf16 %v5040_v51, %v5040_v51 }
 0x23f   : > { %v11544_v5 = vpop.permute.xlu1 %4320  ;;  %v8984_v15 = vpack.c.bf16 %v4383_v45, %v4383_v45  ;;  %v5264_v45 = vld [vmem:[#allocation4 + $0x8b] sm:$0xff]  ;;  %v9005_v8 = vpack.c.bf16 %v4484_v44, %v4484_v44 }
 0x240   : > { %4558 = vrot.lane.b32.xlu0 %v11542_v55, %s10102_s20  ;;  %v4535_v19 = vpop.permute.xlu0 %4534  ;;  %2283 = vmatmul.mubr.bf16.gmra.mxu1 %v8031_v61  ;;  %v9770_v51 = vld [vmem:[%s12979_s3 + $0x2a0] sm:$0xff]  }
 0x241   : > { %4582 = vst.msk [vmem:[#allocation9 + $0x4] sm:$0xf] %vm1248_vm3, %v4535_v19  ;;  %2290 = vmatprep.mubr.bf16.mxu1 %v8034_v39  ;;  %v8035_v39 = vcombine.low %v11384_v42, %v11307_v29  ;;  %v9765_v19 = vld [vmem:[%s12979_s3 + $0x2a8] sm:$0xff]   ;;  %v9766_v29 = vld [vmem:[%s12979_s3 + $0x2e0] sm:$0xff]  }
 0x242   : > { %5329 = vrot.lane.b32.xlu1 %v11428_v62, %s10102_s20 }
 0x243   : > { %v11552_v53 = vld [vmem:[#allocation9 + $0x50] sm:$0xff]  ;;  %v11567_v17 = vpop.permute.xlu1 %4544 }
 0x244   : > { %3455 = vst.msk [vmem:[#allocation9 + $0x50] sm:$0xf] %vm1118_vm2, %v11386_v30  ;;  %3679 = vst.msk [vmem:[#allocation9 + $0x54] sm:$0xf] %vm1118_vm2, %v8921_v24  ;;  %2572 = vmatmul.mubr.bf16.gmra.mxu0 %v8067_v49  ;;  %5099 = vrot.lane.b32.xlu0 %v11563_v31, %s10102_s20  ;;  %v4260_v30 = vld [vmem:[#allocation4 + $0xa2] sm:$0xff]  ;;  %v11575_v11 = vpop.permute.xlu0 %3761  ;;  %v11614_v49 = vpack.c.bf16 %v5264_v45, %v5264_v45 }
 0x245   : > { %v11565_v13 = vld [vmem:[#allocation9 + $0x48] sm:$0xff]  ;;  %4069 = vmatprep.mubr.bf16.mxu0 %v8246_v32  ;;  %v8973_v33 = vpack.c.bf16 %v4260_v30, %v4260_v30  ;;  %v8247_v32 = vcombine.low %v11532_v28, %v11430_v59  ;;  %v3372_v30 = vld [vmem:[#allocation4 + $0x5a] sm:$0xff]  ;;  %v4937_v28 = vld [vmem:[#allocation4 + $0x50] sm:$0xff] }
 0x246   : > { %4463 = vst.msk [vmem:[#allocation9 + $0x4c] sm:$0xf] %vm1118_vm2, %v8984_v15  ;;  %4239 = vst.msk [vmem:[#allocation9 + $0x48] sm:$0xf] %vm1118_vm2, %v9030_v27  ;;  %5109 = vrot.lane.b32.xlu1 %v9030_v27, %s10102_s20  ;;  %v8150_v27 = vcombine.high %v10999_v37, %v10981_v16  ;;  %v5266_v59 = vld [vmem:[#allocation4 + $0x9b] sm:$0xff]  ;;  %v9745_v45 = vld [vmem:[%s12979_s3 + $0x238] sm:$0xff]  }
 0x247   : > { %v3548_v9 = vpop.permute.xlu1 %3547 }
 0x248   : > { %3584 = vst.msk [vmem:[#allocation9 + $0x58] sm:$0xf] %vm1248_vm3, %v3548_v9  ;;  %5323 = vrot.lane.b32.xlu0 %v11503_v20, %s10102_s20  ;;  %v11595_v54 = vld [vmem:[#allocation9] sm:$0xff]  ;;  %v4315_v57 = vpop.permute.xlu0 %4314  ;;  %2291 = vmatmul.mubr.bf16.gmra.mxu1 %v8033_v14 }
 0x249   : > { %5239 = vst.msk [vmem:[#allocation9 + $0x4] sm:$0xf] %vm1118_vm2, %v11406_v58  ;;  %2298 = vmatprep.mubr.bf16.mxu1 %v8036_v12  ;;  %5015 = vst.msk [vmem:[#allocation9] sm:$0xf] %vm1118_vm2, %v9007_v6  ;;  %v9763_v58 = vld [vmem:[%s12979_s3 + $0x2b0] sm:$0xff]   ;;  %v9009_v12 = vpack.c.bf16 %v4937_v28, %v4937_v28  ;;  %v9777_v28 = vld [vmem:[%s12979_s3 + $0x2c8] sm:$0xff]  }
 0x24a   : > { %5333 = vrot.lane.b32.xlu1 %v8984_v15, %s10102_s20  ;;  %4360 = vst.msk [vmem:[#allocation9 + $0x10] sm:$0xf] %vm1248_vm3, %v4315_v57  ;;  %v5042_v15 = vld [vmem:[#allocation4 + $0x99] sm:$0xff] }
 0x24b   : > { %v2755_v22 = vpop.permute.xlu1 %2754  ;;  %v11634_v14 = vpack.c.bf16 %v5042_v15, %v5042_v15  ;;  %v9747_v15 = vld [vmem:[%s12979_s3 + $0x230] sm:$0xff]  }
 0x24c   : > { %4070 = vmatmul.mubr.bf16.vlgmr.msra.gmra.mxu0 %v8245_v52  ;;  %2795 = vst.msk [vmem:[#allocation9 + $0x38] sm:$0xf] %vm1248_vm3, %v2755_v22  ;;  %4338 = vrot.lane.b32.xlu0 %v8973_v33, %s10102_s20  ;;  %v4539_v24 = vpop.permute.xlu0 %4538  ;;  %v11639_v52 = vpack.c.bf16 %v3372_v30, %v3372_v30  ;;  %v11646_v33 = vpack.c.bf16 %v5266_v59, %v5266_v59  ;;  %v5037_v22 = vld [vmem:[#allocation4 + $0x71] sm:$0xff]  ;;  %v9776_v30 = vld [vmem:[%s12979_s3 + $0x290] sm:$0xff]   ;;  %v5046_v59 = vld [vmem:[#allocation4 + $0xb9] sm:$0xf] }
 0x24d   : > { %4077 = vmatprep.mubr.bf16.mxu0 %v8248_v2  ;;  %9446 = vmatpush3.bf16.msra.mxu0 %v9757_v34  ;;  %4584 = vst.msk [vmem:[#allocation9 + $0x14] sm:$0xf] %vm1248_vm3, %v4539_v24  ;;  %v9771_v34 = vld [vmem:[%s12979_s3 + $0x2d8] sm:$0xff]   ;;  %v8918_v2 = vpack.c.bf16 %v3596_v63, %v3596_v63  ;;  %v11686_v24 = vpack.c.bf16 %v5037_v22, %v5037_v22 }
 0x24e   : > { %5113 = vrot.lane.b32.xlu1 %v11600_v35, %s10102_s20  ;;  %9447 = vmatprep.subr.bf16.mxu0 %v9761_v0  ;;  %v5044_v0 = vld [vmem:[#allocation4 + $0xa9] sm:$0xff] }
 0x24f   : > { %v2979_v61 = vpop.permute.xlu1 %2978 }
 0x250   : > { %3019 = vst.msk [vmem:[#allocation9 + $0x3c] sm:$0xf] %vm1248_vm3, %v2979_v61  ;;  %4562 = vrot.lane.b32.xlu0 %v9005_v8, %s10102_s20  ;;  %v11632_v42 = vpop.permute.xlu0 %3541  ;;  %2299 = vmatmul.mubr.bf16.gmra.mxu1 %v8035_v39  ;;  %v9746_v8 = vld [vmem:[%s12979_s3 + $0x270] sm:$0xff]  }
 0x251   : > { %9448 = vmatpush3.bf16.msra.mxu0 %v9763_v58  ;;  %3284 = vmatprep.mubr.bf16.mxu1 %v8150_v27  ;;  %v8152_v58 = vcombine.high %v11249_v50, %v11201_v3 }
 0x252   : > { %5337 = vrot.lane.b32.xlu1 %v11614_v49, %s10102_s20  ;;  %9449 = vmatprep.subr.bf16.mxu0 %v9764_v48  ;;  %v9036_v48 = vpack.c.bf16 %v5044_v0, %v5044_v0  ;;  %v3604_v0 = vld [vmem:[#allocation4 + $0x9c] sm:$0xf] }
 0x253   : > { %v3772_v9 = vpop.permute.xlu1 %3771 }
 0x254   : > { %4078 = vmatmul.mubr.bf16.gmra.mxu0 %v8247_v32  ;;  %3808 = vst.msk [vmem:[#allocation9 + $0x5c] sm:$0xf] %vm1248_vm3, %v3772_v9  ;;  %5103 = vrot.lane.b32.xlu0 %v11465_v18, %s10102_s20  ;;  %v11651_v18 = vld [vmem:[#allocation9 + $0x10] sm:$0xff]  ;;  %v11653_v44 = vpop.permute.xlu0 %3765 }
 0x255   : > { %9450 = vmatpush3.bf16.msra.mxu0 %v9765_v19  ;;  %5241 = vst.msk [vmem:[#allocation9 + $0x14] sm:$0xf] %vm1118_vm2, %v10766_v38  ;;  %5017 = vst.msk [vmem:[#allocation9 + $0x10] sm:$0xf] %vm1118_vm2, %v9009_v12  ;;  %v8149_v38 = vcombine.low %v10999_v37, %v10981_v16  ;;  %v9772_v16 = vld [vmem:[%s12979_s3 + $0x298] sm:$0xff]   ;;  %v5261_v32 = vld [vmem:[#allocation4 + $0x73] sm:$0xff]  ;;  %v8151_v12 = vcombine.low %v11249_v50, %v11201_v3 }
 0x256   : > { %5117 = vrot.lane.b32.xlu1 %v11634_v14, %s10102_s20  ;;  %9451 = vmatprep.subr.bf16.mxu0 %v9766_v29  ;;  %v9748_v19 = vld [vmem:[%s12979_s3 + $0x268] sm:$0xff]   ;;  %v11710_v29 = vpack.c.bf16 %v5261_v32, %v5261_v32 }
 0x257   : > { %v11655_v6 = vld [vmem:[#allocation9 + $0x38] sm:$0xff]  ;;  %v11659_v57 = vpop.permute.xlu1 %4324 }
 0x258   : > { %3676 = vst.msk [vmem:[#allocation9 + $0x3c] sm:$0xf] %vm1118_vm2, %v8918_v2  ;;  %3452 = vst.msk [vmem:[#allocation9 + $0x38] sm:$0xf] %vm1118_vm2, %v11639_v52  ;;  %5327 = vrot.lane.b32.xlu0 %v11505_v7, %s10102_s20  ;;  %v3546_v37 = vpop.permute.xlu0 %3545  ;;  %3285 = vmatmul.mubr.bf16.vlgmr.msra.gmra.mxu1 %v8149_v38  ;;  %v9750_v2 = vld [vmem:[%s12979_s3 + $0x260] sm:$0xff]   ;;  %v9038_v38 = vpack.c.bf16 %v5046_v59, %v5046_v59  ;;  %v9778_v50 = vld [vmem:[%s12979_s3 + $0x288] sm:$0xff]  }
 0x259   : > { %9452 = vmatpush3.bf16.msra.mxu0 %v9770_v51  ;;  %3804 = vst.msk [vmem:[#allocation9 + $0x3c] sm:$0xf] %vm1248_vm3, %v11480_v25  ;;  %3580 = vst.msk [vmem:[#allocation9 + $0x38] sm:$0xf] %vm1248_vm3, %v11461_v4  ;;  %v5268_v25 = vld [vmem:[#allocation4 + $0xab] sm:$0xff]  ;;  %v9773_v4 = vld [vmem:[%s12979_s3 + $0x2d0] sm:$0xff]   ;;  %3292 = vmatprep.mubr.bf16.mxu1 %v8152_v58 }
 0x25a   : > { %5341 = vrot.lane.b32.xlu1 %v11646_v33, %s10102_s20  ;;  %9453 = vmatprep.subr.bf16.mxu0 %v9771_v34  ;;  %3583 = vst.msk [vmem:[#allocation9 + $0x50] sm:$0xf] %vm1248_vm3, %v3546_v37  ;;  %v9068_v27 = vpack.c.bf16 %v5268_v25, %v5268_v25  ;;  %v9749_v51 = vld [vmem:[%s12979_s3 + $0x228] sm:$0xff]   ;;  %v8926_v25 = vpack.c.bf16 %v3604_v0, %v3604_v0 }
 0x25b   : > { %v11691_v61 = vld [vmem:[#allocation9 + $0x58] sm:$0xff]  ;;  %v4549_v39 = vpop.permute.xlu1 %4548  ;;  %9382 = vmatpush3.bf16.msra.mxu1 %v9745_v45  ;;  %v8154_v45 = vcombine.high %v11408_v23, %v11323_v1 }
 0x25c   : > { %4465 = vst.msk [vmem:[#allocation9 + $0x5c] sm:$0xf] %vm1118_vm2, %v11614_v49  ;;  %5107 = vrot.lane.b32.xlu0 %v11686_v24, %s10102_s20  ;;  %9383 = vmatprep.subr.bf16.mxu1 %v9746_v8  ;;  %4241 = vst.msk [vmem:[#allocation9 + $0x58] sm:$0xf] %vm1118_vm2, %v11600_v35  ;;  %v3770_v49 = vpop.permute.xlu0 %3769  ;;  %v5039_v35 = vld [vmem:[#allocation4 + $0x81] sm:$0xff]  ;;  %v3371_v59 = vld [vmem:[#allocation4 + $0x52] sm:$0xff] }
 0x25d   : > { %9454 = vmatpush3.bf16.msra.mxu0 %v9772_v16  ;;  %3807 = vst.msk [vmem:[#allocation9 + $0x54] sm:$0xf] %vm1248_vm3, %v3770_v49  ;;  %v3380_v3 = vld [vmem:[#allocation4 + $0x9a] sm:$0xf]  ;;  %v9031_v58 = vpack.c.bf16 %v5039_v35, %v5039_v35  ;;  %v9779_v16 = vld [vmem:[%s12979_s3 + $0x2c0] sm:$0xff]   ;;  %v9753_v35 = vld [vmem:[%s12979_s3 + $0x218] sm:$0xff]  }
 0x25e   : > { %5121 = vrot.lane.b32.xlu1 %v9036_v48, %s10102_s20  ;;  %9455 = vmatprep.subr.bf16.mxu0 %v9773_v4  ;;  %v5270_v48 = vld [vmem:[#allocation4 + $0xbb] sm:$0xf]  ;;  %v8894_v4 = vpack.c.bf16 %v3380_v3, %v3380_v3 }
 0x25f   : > { %v9211_v63 = vpop.f32.mrf.mxu0  ;;  %v2995_v9 = vpop.permute.xlu1 %2994  ;;  %9384 = vmatpush3.bf16.msra.mxu1 %v9747_v15  ;;  %v9070_v15 = vpack.c.bf16 %v5270_v48, %v5270_v48 }
 0x260   : > { %v11719_v34 = vld [vmem:[#allocation9 + $0x38] sm:$0xff]  ;;  %3027 = vst.msk [vmem:[#allocation9 + $0x7c] sm:$0x3] %vm1264_vm4, %v2995_v9  ;;  %5331 = vrot.lane.b32.xlu0 %v11710_v29, %s10102_s20  ;;  %9385 = vmatprep.subr.bf16.mxu1 %v9748_v19  ;;  %v2977_v8 = vpop.permute.xlu0 %2976  ;;  %v9783_v19 = vld [vmem:[%s12979_s3 + $0x280] sm:$0xff]  }
 0x261   : > { %4237 = vst.msk [vmem:[#allocation9 + $0x38] sm:$0xf] %vm1118_vm2, %v11382_v26  ;;  %4461 = vst.msk [vmem:[#allocation9 + $0x3c] sm:$0xf] %vm1118_vm2, %v11428_v62  ;;  %v9212_v22 = vpop.f32.mrf.mxu0  ;;  %9456 = vmatpush3.bf16.msra.mxu0 %v9776_v30  ;;  %v4384_v26 = vld [vmem:[#allocation4 + $0x83] sm:$0xff]  ;;  %3293 = vmatmul.mubr.bf16.gmra.mxu1 %v8151_v12  ;;  %v3595_v30 = vld [vmem:[#allocation4 + $0x54] sm:$0xff] }
 0x262   : > { %5345 = vrot.lane.b32.xlu1 %v9068_v27, %s10102_s20  ;;  %4365 = vst.msk [vmem:[#allocation9 + $0x38] sm:$0xf] %vm1248_vm3, %v11659_v57  ;;  %4589 = vst.msk [vmem:[#allocation9 + $0x3c] sm:$0xf] %vm1248_vm3, %v4549_v39  ;;  %v11742_v62 = vadd.f32 %v9212_v22, %v9211_v63  ;;  %9457 = vmatprep.subr.bf16.mxu0 %v9777_v28  ;;  %v9751_v57 = vld [vmem:[%s12979_s3 + $0x220] sm:$0xff]   ;;  %v9752_v39 = vld [vmem:[%s12979_s3 + $0x258] sm:$0xff]   ;;  %v8985_v32 = vpack.c.bf16 %v4384_v26, %v4384_v26 }
 0x263   : > { %v3536_v37 = vpop.permute.xlu1 %3535  ;;  %3018 = vst.msk [vmem:[#allocation9 + $0x34] sm:$0xf] %vm1248_vm3, %v2977_v8  ;;  %3300 = vmatprep.mubr.bf16.mxu1 %v8154_v45  ;;  %9386 = vmatpush3.bf16.msra.mxu1 %v9749_v51  ;;  %v5041_v9 = vld [vmem:[#allocation4 + $0x91] sm:$0xff]  ;;  %v8153_v51 = vcombine.low %v11408_v23, %v11323_v1  ;;  %v9754_v12 = vld [vmem:[%s12979_s3 + $0x250] sm:$0xff]   ;;  %v8917_v0 = vpack.c.bf16 %v3595_v30, %v3595_v30 }
 0x264   : > { %3578 = vst.msk [vmem:[#allocation9 + $0x28] sm:$0xf] %vm1248_vm3, %v3536_v37  ;;  %5111 = vrot.lane.b32.xlu0 %v9031_v58, %s10102_s20  ;;  %9387 = vmatprep.subr.bf16.mxu1 %v9750_v2  ;;  %v11760_v27 = vld [vmem:[#allocation9 + $0x50] sm:$0xff]  ;;  %v11762_v49 = vpop.permute.xlu0 %4322  ;;  %v9214_v2 = vpop.f32.mrf.mxu0  ;;  %v8885_v22 = vpack.c.bf16 %v3371_v59, %v3371_v59  ;;  %v9755_v8 = vld [vmem:[%s12979_s3 + $0x210] sm:$0xff]   ;;  %v9759_v59 = vld [vmem:[%s12979_s3 + $0x208] sm:$0xff]  }
 0x265   : > { %9458 = vmatpush3.bf16.msra.mxu0 %v9778_v50  ;;  %4464 = vst.msk [vmem:[#allocation9 + $0x54] sm:$0xf] %vm1118_vm2, %v8985_v32  ;;  %4240 = vst.msk [vmem:[#allocation9 + $0x50] sm:$0xf] %vm1118_vm2, %v9031_v58  ;;  %v11783_v50 = vpack.c.bf16 %v5041_v9, %v5041_v9  ;;  %v5265_v26 = vld [vmem:[#allocation4 + $0x93] sm:$0xff] }
 0x266   : > { %5125 = vrot.lane.b32.xlu1 %v9038_v38, %s10102_s20  ;;  %9459 = vmatprep.subr.bf16.mxu0 %v9779_v16  ;;  %v4155_v58 = vld [vmem:[#allocation4 + $0x59] sm:$0xff]  ;;  %v9215_v37 = vpop.f32.mrf.mxu0 }
 0x267   : > { %v11764_v28 = vld [vmem:[#allocation9 + $0x78] sm:$0x33]  ;;  %v3760_v63 = vpop.permute.xlu1 %3759  ;;  %9388 = vmatpush3.bf16.msra.mxu1 %v9751_v57 }
 0x268   : > { %3684 = vst.msk [vmem:[#allocation9 + $0x7c] sm:$0x3] %vm1134_vm5, %v8926_v25  ;;  %5335 = vrot.lane.b32.xlu0 %v8985_v32, %s10102_s20  ;;  %3460 = vst.msk [vmem:[#allocation9 + $0x78] sm:$0x3] %vm1134_vm5, %v8894_v4  ;;  %9389 = vmatprep.subr.bf16.mxu1 %v9752_v39  ;;  %v11781_v3 = vpop.permute.xlu0 %4546  ;;  %v9758_v16 = vld [vmem:[%s12979_s3 + $0x248] sm:$0xff]   ;;  %v5043_v25 = vld [vmem:[#allocation4 + $0xa1] sm:$0xff]  ;;  %v11799_v32 = vpack.c.bf16 %v5265_v26, %v5265_v26 }
 0x269   : > { %3802 = vst.msk [vmem:[#allocation9 + $0x2c] sm:$0xf] %vm1248_vm3, %v3760_v63  ;;  %9460 = vmatpush3.bf16.msra.mxu0 %v9783_v19  ;;  %3301 = vmatmul.mubr.bf16.gmra.mxu1 %v8153_v51  ;;  %v11816_v9 = vpack.c.bf16 %v5043_v25, %v5043_v25  ;;  %v9216_v51 = vadd.f32 %v9215_v37, %v9214_v2  ;;  %v11848_v2 = vld [vmem:[%s12979_s3 + $0x318] sm:$0xff]   ;;  %v5045_v26 = vld [vmem:[#allocation4 + $0xb1] sm:$0xff] }
 0x26a   : > { %5349 = vrot.lane.b32.xlu1 %v9070_v15, %s10102_s20  ;;  %v3034_v45 = vld [vmem:[#allocation9 + $0x30] sm:$0xff]  ;;  %v9147_v38 = vpop.f32.mrf.mxu1  ;;  %v9037_v37 = vpack.c.bf16 %v5045_v26, %v5045_v26 }
 0x26b   : > { %3675 = vst.msk [vmem:[#allocation9 + $0x34] sm:$0xf] %vm1118_vm2, %v8917_v0  ;;  %v4541_v1 = vpop.permute.xlu1 %4540  ;;  %v8156_v23 = vcombine.high %v3034_v45, %v11655_v6  ;;  %3451 = vst.msk [vmem:[#allocation9 + $0x30] sm:$0xf] %vm1118_vm2, %v8885_v22  ;;  %9390 = vmatpush3.bf16.msra.mxu1 %v9753_v35  ;;  %v9760_v35 = vld [vmem:[%s12979_s3 + $0x240] sm:$0xff]   ;;  %v3373_v0 = vld [vmem:[#allocation4 + $0x62] sm:$0xff] }
 0x26c   : > { %3803 = vst.msk [vmem:[#allocation9 + $0x34] sm:$0xf] %vm1248_vm3, %v11575_v11  ;;  %4585 = vst.msk [vmem:[#allocation9 + $0x1c] sm:$0xf] %vm1248_vm3, %v4541_v1  ;;  %v9148_v48 = vpop.f32.mrf.mxu1  ;;  %5115 = vrot.lane.b32.xlu0 %v11783_v50, %s10102_s20  ;;  %9391 = vmatprep.subr.bf16.mxu1 %v9754_v12  ;;  %v2757_v39 = vpop.permute.xlu0 %2756  ;;  %v8948_v11 = vpack.c.bf16 %v4155_v58, %v4155_v58  ;;  %v5267_v12 = vld [vmem:[#allocation4 + $0xa3] sm:$0xff] }
 0x26d   : > { %v9149_v57 = vadd.f32 %v9148_v48, %v9147_v38  ;;  %3308 = vmatprep.mubr.bf16.mxu1 %v8156_v23  ;;  %2796 = vst.msk [vmem:[#allocation9 + $0x40] sm:$0xf] %vm1248_vm3, %v2757_v39  ;;  %v11826_v22 = vld [vmem:[#allocation4 + $0x64] sm:$0xff]  ;;  %v11850_v23 = vpack.c.bf16 %v3373_v0, %v3373_v0 }
 0x26e   : > { %v9150_v4 = vpop.f32.mrf.mxu1  ;;  %v5164_v26 = vld [vmem:[#allocation4 + $0x6a] sm:$0xff] }
 0x26f   : > { %v11804_v19 = vadd.f32 %v11742_v62, %v9149_v57  ;;  %v3552_v30 = vpop.permute.xlu1 %3551  ;;  %9392 = vmatpush3.bf16.msra.mxu1 %v9755_v8  ;;  %v8155_v62 = vcombine.low %v3034_v45, %v11655_v6  ;;  %v5269_v57 = vld [vmem:[#allocation4 + $0xb3] sm:$0xff] }
 0x270   : > { %v11801_v15 = vld [vmem:[#allocation9 + $0x28] sm:$0xff]  ;;  %3586 = vst.msk [vmem:[#allocation9 + $0x68] sm:$0xf] %vm1248_vm3, %v3552_v30  ;;  %v9151_v63 = vpop.f32.mrf.mxu1  ;;  %5339 = vrot.lane.b32.xlu0 %v11799_v32, %s10102_s20  ;;  %9393 = vmatprep.subr.bf16.mxu1 %v9758_v16  ;;  %v3550_v6 = vpop.permute.xlu0 %3549 }
 0x271   : > { %4459 = vst.msk [vmem:[#allocation9 + $0x2c] sm:$0xf] %vm1118_vm2, %v11483_v46  ;;  %4235 = vst.msk [vmem:[#allocation9 + $0x28] sm:$0xf] %vm1118_vm2, %v8948_v11  ;;  %v9152_v46 = vadd.f32 %v9151_v63, %v9150_v4  ;;  %3309 = vmatmul.mubr.bf16.gmra.mxu1 %v8155_v62  ;;  %v3379_v4 = vld [vmem:[#allocation4 + $0x92] sm:$0xff] }
 0x272   : > { %4587 = vst.msk [vmem:[#allocation9 + $0x2c] sm:$0xf] %vm1248_vm3, %v11567_v17  ;;  %4363 = vst.msk [vmem:[#allocation9 + $0x28] sm:$0xf] %vm1248_vm3, %v11544_v5  ;;  %v9762_v17 = vld [vmem:[%s12979_s3 + $0x200] sm:$0xff]   ;;  %v11841_v5 = vpack.c.bf16 %v5267_v12, %v5267_v12  ;;  %v11879_v11 = vpack.c.bf16 %v3379_v4, %v3379_v4 }
 0x273   : > { %v11828_v45 = vld [vmem:[#allocation9 + $0x18] sm:$0xff]  ;;  %v11830_v38 = vadd.f32 %v9216_v51, %v9152_v46  ;;  %v3776_v1 = vpop.permute.xlu1 %3775  ;;  %3585 = vst.msk [vmem:[#allocation9 + $0x60] sm:$0xf] %vm1248_vm3, %v3550_v6  ;;  %9394 = vmatpush3.bf16.msra.mxu1 %v9759_v59  ;;  %v4165_v12 = vld [vmem:[#allocation4 + $0xa9] sm:$0xf] }
 0x274   : > { %5242 = vst.msk [vmem:[#allocation9 + $0x1c] sm:$0xf] %vm1118_vm2, %v11639_v52  ;;  %5119 = vrot.lane.b32.xlu0 %v11816_v9, %s10102_s20  ;;  %9395 = vmatprep.subr.bf16.mxu1 %v9760_v35  ;;  %5018 = vst.msk [vmem:[#allocation9 + $0x18] sm:$0xf] %vm1118_vm2, %v11293_v43  ;;  %v8919_v52 = vpack.c.bf16 %v11826_v22, %v11826_v22  ;;  %v3036_v8 = vld [vmem:[#allocation9 + $0x40] sm:$0xff]  ;;  %v2993_v58 = vpop.permute.xlu0 %2992 }
 0x275   : > { %3810 = vst.msk [vmem:[#allocation9 + $0x6c] sm:$0xf] %vm1248_vm3, %v3776_v1  ;;  %3026 = vst.msk [vmem:[#allocation9 + $0x74] sm:$0xf] %vm1248_vm3, %v2993_v58  ;;  %v8158_v43 = vcombine.high %v3036_v8, %v11455_v40  ;;  %v8157_v16 = vcombine.low %v3036_v8, %v11455_v40  ;;  %v8160_v40 = vcombine.high %v11552_v53, %v11468_v21  ;;  %v4156_v35 = vld [vmem:[#allocation4 + $0x61] sm:$0xff] }
 0x276   : > { %3453 = vst.msk [vmem:[#allocation9 + $0x40] sm:$0xf] %vm1118_vm2, %v11850_v23  ;;  %3677 = vst.msk [vmem:[#allocation9 + $0x44] sm:$0xf] %vm1118_vm2, %v8919_v52  ;;  %v8958_v52 = vpack.c.bf16 %v4165_v12, %v4165_v12  ;;  %v4943_v12 = vld [vmem:[#allocation4 + $0x80] sm:$0xff] }
 0x277   : > { %v4329_v48 = vpop.permute.xlu1 %4328  ;;  %9396 = vmatpush3.bf16.msra.mxu1 %v9762_v17  ;;  %3581 = vst.msk [vmem:[#allocation9 + $0x40] sm:$0xf] %vm1248_vm3, %v11632_v42  ;;  %3805 = vst.msk [vmem:[#allocation9 + $0x44] sm:$0xf] %vm1248_vm3, %v11653_v44  ;;  %3316 = vmatprep.mubr.bf16.mxu1 %v8158_v43  ;;  %v9069_v44 = vpack.c.bf16 %v5269_v57, %v5269_v57  ;;  %v8161_v17 = vcombine.low %v11445_v60, %v11346_v10  ;;  %v4939_v43 = vld [vmem:[#allocation4 + $0x60] sm:$0xff]  ;;  %v5165_v57 = vld [vmem:[#allocation4 + $0x72] sm:$0xff] }
 0x278   : > { %4367 = vst.msk [vmem:[#allocation9 + $0x48] sm:$0xf] %vm1248_vm3, %v4329_v48  ;;  %5343 = vrot.lane.b32.xlu0 %v11841_v5, %s10102_s20  ;;  %9592 = vmatprep.subr.bf16.mxu1 %v11848_v2  ;;  %v3758_v25 = vpop.permute.xlu0 %3757 }
 0x279   : > { %3317 = vmatmul.mubr.bf16.gmra.mxu1 %v8157_v16  ;;  %3801 = vst.msk [vmem:[#allocation9 + $0x24] sm:$0xf] %vm1248_vm3, %v3758_v25  ;;  %v4940_v16 = vld [vmem:[#allocation4 + $0x68] sm:$0xff] }
 0x27a   : > { %3324 = vmatprep.mubr.bf16.mxu1 %v8160_v40 }
 0x27b   : > { %v4553_v39 = vpop.permute.xlu1 %4552 }
 0x27c   : > { %v11870_v42 = vld [vmem:[#allocation9 + $0x68] sm:$0xff]  ;;  %4591 = vst.msk [vmem:[#allocation9 + $0x4c] sm:$0xf] %vm1248_vm3, %v4553_v39  ;;  %5123 = vrot.lane.b32.xlu0 %v9037_v37, %s10102_s20  ;;  %v11881_v30 = vld [vmem:[#allocation9 + $0x70] sm:$0xff]  ;;  %v3538_v59 = vpop.permute.xlu0 %3537 }
 0x27d   : > { %4467 = vst.msk [vmem:[#allocation9 + $0x6c] sm:$0xf] %vm1118_vm2, %v11646_v33  ;;  %4243 = vst.msk [vmem:[#allocation9 + $0x68] sm:$0xf] %vm1118_vm2, %v11634_v14  ;;  %v8159_v14 = vcombine.low %v11552_v53, %v11468_v21  ;;  %v8164_v58 = vcombine.high %v11881_v30, %v11764_v28  ;;  %v4941_v37 = vld [vmem:[#allocation4 + $0x70] sm:$0xff] }
 0x27e   : > { %3683 = vst.msk [vmem:[#allocation9 + $0x74] sm:$0xf] %vm1118_vm2, %v11542_v55  ;;  %v11886_v33 = vld [vmem:[#allocation9 + $0x40] sm:$0xff]  ;;  %3459 = vst.msk [vmem:[#allocation9 + $0x70] sm:$0xf] %vm1118_vm2, %v11879_v11  ;;  %v8162_v55 = vcombine.high %v11445_v60, %v11346_v10  ;;  %v9044_v60 = vpack.c.bf16 %v5164_v26, %v5164_v26 }
 0x27f   : > { %v3556_v63 = vpop.permute.xlu1 %3555  ;;  %3579 = vst.msk [vmem:[#allocation9 + $0x30] sm:$0xf] %vm1248_vm3, %v3538_v59  ;;  %v8254_v39 = vcombine.high %v11886_v33, %v11565_v13  ;;  %v9012_v59 = vpack.c.bf16 %v4940_v16, %v4940_v16 }
 0x280   : > { %3588 = vst.msk [vmem:[#allocation9 + $0x78] sm:$0x3] %vm1264_vm4, %v3556_v63  ;;  %5347 = vrot.lane.b32.xlu0 %v9069_v44, %s10102_s20  ;;  %v3817_v62 = vld [vmem:[#allocation9 + $0x20] sm:$0xff]  ;;  %v4319_v51 = vpop.permute.xlu0 %4318  ;;  %v9011_v44 = vpack.c.bf16 %v4939_v43, %v4939_v43  ;;  %s10039_s20 = scalar_lea.vmem %s7798_s25, 16 }
 0x281   : > { %4238 = vst.msk [vmem:[#allocation9 + $0x40] sm:$0xf] %vm1118_vm2, %v11686_v24  ;;  %4462 = vst.msk [vmem:[#allocation9 + $0x44] sm:$0xf] %vm1118_vm2, %v11710_v29  ;;  %3325 = vmatmul.mubr.bf16.gmra.mxu1 %v8159_v14  ;;  %v8250_v21 = vcombine.high %v3817_v62, %v11801_v15  ;;  %v8249_v53 = vcombine.low %v3817_v62, %v11801_v15  ;;  %v8949_v24 = vpack.c.bf16 %v4156_v35, %v4156_v35  ;;  %v4389_v29 = vld [vmem:[#allocation4 + $0xab] sm:$0xf]  ;;  %p10040_p11 = scmp.ne.s32.totalorder %s7798_s25, %s10039_s20  ;;  %p10047_p1 = scmp.lt.s32.totalorder %s10045_s17, %s10039_s20 }
 0x282   : > { %4458 = vst.msk [vmem:[#allocation9 + $0x24] sm:$0xf] %vm1118_vm2, %v11503_v20  ;;  %4234 = vst.msk [vmem:[#allocation9 + $0x20] sm:$0xf] %vm1118_vm2, %v11563_v31  ;;  %3332 = vmatprep.mubr.bf16.mxu1 %v8162_v55  ;;  %v8990_v15 = vpack.c.bf16 %v4389_v29, %v4389_v29  ;;  %v9013_v55 = vpack.c.bf16 %v4941_v37, %v4941_v37  ;;  %v9045_v35 = vpack.c.bf16 %v5165_v57, %v5165_v57  ;;  %v5170_v57 = vld [vmem:[#allocation4 + $0x9a] sm:$0xff] }
 0x283   : > { %v3780_v46 = vpop.permute.xlu1 %3779  ;;  %4362 = vst.msk [vmem:[#allocation9 + $0x20] sm:$0xf] %vm1248_vm3, %v4319_v51  ;;  %4085 = vmatprep.mubr.bf16.mxu0 %v8250_v21  ;;  %p10041_p12 = pnand %p10040_p11, %p10198_p5  ;;  %p10048_p2 = por %p10047_p1, %p10046_p0 }
 0x284   : > { %3812 = vst.msk [vmem:[#allocation9 + $0x7c] sm:$0x3] %vm1264_vm4, %v3780_v46  ;;  %v4543_v6 = vpop.permute.xlu0 %4542  ;;  %4086 = vmatmul.mubr.bf16.gmra.mxu0 %v8249_v53  ;;  %v8163_v46 = vcombine.low %v11881_v30, %v11764_v28  ;;  %v8253_v28 = vcombine.low %v11886_v33, %v11565_v13  ;;  %v8256_v30 = vcombine.high %v11760_v27, %v11691_v61  ;;  %v9780_v13 = vld [vmem:[%s12979_s3 + $0x310] sm:$0xff]  }
 0x285   : > { %4586 = vst.msk [vmem:[#allocation9 + $0x24] sm:$0xf] %vm1248_vm3, %v4543_v6  ;;  %v8344_v33 = vcombine.high %v11651_v18, %v11828_v45  ;;  %p10042_p13 = pneg %p10041_p12 }
 0x286   : > { %v3819_v0 = vld [vmem:[#allocation9 + $0x30] sm:$0xff]  ;;  %5019 = vst.msk [vmem:[#allocation9 + $0x20] sm:$0xf] %vm1118_vm2, %v9011_v44  ;;  %5020 = vst.msk [vmem:[#allocation9 + $0x28] sm:$0xf] %vm1118_vm2, %v9012_v59  ;;  %v4946_v59 = vld [vmem:[#allocation4 + $0x98] sm:$0xff] }
 0x287   : > { %4236 = vst.msk [vmem:[#allocation9 + $0x30] sm:$0xf] %vm1118_vm2, %v8949_v24  ;;  %v4333_v20 = vpop.permute.xlu1 %4332  ;;  %v9217_v31 = vpop.f32.mrf.mxu0  ;;  %v8252_v1 = vcombine.high %v3819_v0, %v11719_v34  ;;  %4460 = vst.msk [vmem:[#allocation9 + $0x34] sm:$0xf] %vm1118_vm2, %v11505_v7  ;;  %v5166_v7 = vld [vmem:[#allocation4 + $0x7a] sm:$0xff]  ;;  %v8251_v25 = vcombine.low %v3819_v0, %v11719_v34  ;;  %v4944_v0 = vld [vmem:[#allocation4 + $0x88] sm:$0xff]  ;;  %p10049_p3 = pnand %p10048_p2, %p10042_p13 }
 0x288   : > { %4364 = vst.msk [vmem:[#allocation9 + $0x30] sm:$0xf] %vm1248_vm3, %v11762_v49  ;;  %4369 = vst.msk [vmem:[#allocation9 + $0x58] sm:$0xf] %vm1248_vm3, %v4333_v20  ;;  %v9046_v4 = vpack.c.bf16 %v5166_v7, %v5166_v7  ;;  %v9015_v20 = vpack.c.bf16 %v4943_v12, %v4943_v12  ;;  %v4945_v44 = vld [vmem:[#allocation4 + $0x90] sm:$0xff] }
 0x289   : > { %4588 = vst.msk [vmem:[#allocation9 + $0x34] sm:$0xf] %vm1248_vm3, %v11781_v3  ;;  %v9218_v8 = vpop.f32.mrf.mxu0  ;;  %4093 = vmatprep.mubr.bf16.mxu0 %v8252_v1  ;;  %3333 = vmatmul.mubr.bf16.gmra.mxu1 %v8161_v17  ;;  %v4942_v3 = vld [vmem:[#allocation4 + $0x78] sm:$0xff] }
 0x28a   : > { %v11922_v48 = vadd.f32 %v9218_v8, %v9217_v31  ;;  %v3774_v49 = vpop.permute.xlu0 %3773  ;;  %3340 = vmatprep.mubr.bf16.mxu1 %v8164_v58  ;;  %v9014_v62 = vpack.c.bf16 %v4942_v3, %v4942_v3  ;;  %5021 = vst.msk [vmem:[#allocation9 + $0x30] sm:$0xf] %vm1118_vm2, %v9013_v55  ;;  %v9016_v31 = vpack.c.bf16 %v4944_v0, %v4944_v0 }
 0x28b   : > { %v11924_v40 = vld [vmem:[#allocation9 + $0x78] sm:$0x33]  ;;  %v4557_v10 = vpop.permute.xlu1 %4556  ;;  %3809 = vst.msk [vmem:[#allocation9 + $0x64] sm:$0xf] %vm1248_vm3, %v3774_v49  ;;  %v9050_v55 = vpack.c.bf16 %v5170_v57, %v5170_v57 }
 0x28c   : > { %4469 = vst.msk [vmem:[#allocation9 + $0x7c] sm:$0x3] %vm1134_vm5, %v8990_v15  ;;  %4245 = vst.msk [vmem:[#allocation9 + $0x78] sm:$0x3] %vm1134_vm5, %v8958_v52  ;;  %4094 = vmatmul.mubr.bf16.gmra.mxu0 %v8251_v25  ;;  %v11933_v14 = vld [vmem:[#allocation9 + $0x24] ss:$8 sps:$4 sm:$0xff]  }
 0x28d   : > { %4593 = vst.msk [vmem:[#allocation9 + $0x5c] sm:$0xf] %vm1248_vm3, %v4557_v10  ;;  %4101 = vmatprep.mubr.bf16.mxu0 %v8254_v39 }
 0x28e   : > { %v4327_v63 = vpop.permute.xlu0 %4326  ;;  %5243 = vst.msk [vmem:[#allocation9 + $0x24] sm:$0xf] %vm1118_vm2, %v11850_v23  ;;  %5244 = vst.msk [vmem:[#allocation9 + $0x2c] sm:$0xf] %vm1118_vm2, %v9044_v60  ;;  %v8342_v23 = vcombine.high %v11595_v54, %v11474_v36 }
 0x28f   : > { %v5098_v51 = vpop.permute.xlu1 %5097  ;;  %4366 = vst.msk [vmem:[#allocation9 + $0x40] sm:$0xf] %vm1248_vm3, %v4327_v63 }
 0x290   : > { %v11941_v34 = vld [vmem:[#allocation9 + $0x34] ss:$8 sps:$4 sm:$0xff]   ;;  %5144 = vst.msk [vmem:[#allocation9 + $0x8] sm:$0xf] %vm1248_vm3, %v5098_v51 }
 0x291   : > { %5022 = vst.msk [vmem:[#allocation9 + $0x38] sm:$0xf] %vm1118_vm2, %v9014_v62  ;;  %5245 = vst.msk [vmem:[#allocation9 + $0x34] sm:$0xf] %vm1118_vm2, %v9045_v35  ;;  %3341 = vmatmul.mubr.bf16.gmra.mxu1 %v8163_v46  ;;  %v9017_v62 = vpack.c.bf16 %v4945_v44, %v4945_v44  ;;  %v9018_v35 = vpack.c.bf16 %v4946_v59, %v4946_v59  ;;  %v5173_v44 = vld [vmem:[#allocation4 + $0xb2] sm:$0xff] }
 0x292   : > { %5246 = vst.msk [vmem:[#allocation9 + $0x3c] sm:$0xf] %vm1118_vm2, %v9046_v4  ;;  %v11952_v21 = vld [vmem:[#allocation9 + $0x60] sm:$0xff]  ;;  %v4551_v53 = vpop.permute.xlu0 %4550  ;;  %4854 = vmatprep.mubr.bf16.mxu1 %v8342_v23  ;;  %5023 = vst.msk [vmem:[#allocation9 + $0x40] sm:$0xf] %vm1118_vm2, %v9015_v20 }
 0x293   : > { %4466 = vst.msk [vmem:[#allocation9 + $0x64] sm:$0xf] %vm1118_vm2, %v11799_v32  ;;  %v5322_v24 = vpop.permute.xlu1 %5321  ;;  %4242 = vst.msk [vmem:[#allocation9 + $0x60] sm:$0xf] %vm1118_vm2, %v11783_v50  ;;  %v5167_v32 = vld [vmem:[#allocation4 + $0x82] sm:$0xff]  ;;  %v8341_v50 = vcombine.low %v11595_v54, %v11474_v36  ;;  %v8255_v36 = vcombine.low %v11760_v27, %v11691_v61  ;;  %v9788_v54 = vld [vmem:[%s12979_s3 + $0x308] sm:$0xff]   ;;  %v8258_v52 = vcombine.high %v11952_v21, %v11870_v42 }
 0x294   : > { %4590 = vst.msk [vmem:[#allocation9 + $0x44] sm:$0xf] %vm1248_vm3, %v4551_v53  ;;  %5368 = vst.msk [vmem:[#allocation9 + $0xc] sm:$0xf] %vm1248_vm3, %v5322_v24  ;;  %4102 = vmatmul.mubr.bf16.gmra.mxu0 %v8253_v28  ;;  %v9047_v1 = vpack.c.bf16 %v5167_v32, %v5167_v32  ;;  %v8343_v61 = vcombine.low %v11651_v18, %v11828_v45  ;;  %v9795_v27 = vld [vmem:[%s12979_s3 + $0x300] sm:$0xff]   ;;  %v8257_v45 = vcombine.low %v11952_v21, %v11870_v42 }
 0x295   : > { %4109 = vmatprep.mubr.bf16.mxu0 %v8256_v30  ;;  %5024 = vst.msk [vmem:[#allocation9 + $0x48] sm:$0xf] %vm1118_vm2, %v9016_v31  ;;  %v4603_v63 = vld [vmem:[#allocation9 + $0x28] sm:$0xff]  ;;  %5026 = vst.msk [vmem:[#allocation9 + $0x58] sm:$0xf] %vm1118_vm2, %v9018_v35 }
 0x296   : > { %v3554_v29 = vpop.permute.xlu0 %3553  ;;  %v5174_v59 = vld [vmem:[#allocation4 + $0xba] sm:$0xf] }
 0x297   : > { %v4337_v6 = vpop.permute.xlu1 %4336  ;;  %3587 = vst.msk [vmem:[#allocation9 + $0x70] sm:$0xf] %vm1248_vm3, %v3554_v29 }
 0x298   : > { %4371 = vst.msk [vmem:[#allocation9 + $0x68] sm:$0xf] %vm1248_vm3, %v4337_v6  ;;  %v4604_v53 = vld [vmem:[#allocation9 + $0x30] sm:$0xff]  ;;  %v4947_v6 = vld [vmem:[#allocation4 + $0xa0] sm:$0xff] }
 0x299   : > { %4855 = vmatmul.mubr.bf16.vlgmr.msra.gmra.mxu1 %v8341_v50  ;;  %v4605_v28 = vld [vmem:[#allocation9 + $0x38] sm:$0xff]  ;;  %v4948_v50 = vld [vmem:[#allocation4 + $0xa8] sm:$0xff] }
 0x29a   : > { %v3778_v15 = vpop.permute.xlu0 %3777  ;;  %4862 = vmatprep.mubr.bf16.mxu1 %v8344_v33  ;;  %9593 = vmatpush3.bf16.msra.mxu1 %v11848_v2  ;;  %v9220_v2 = vpop.f32.mrf.mxu0  ;;  %v5172_v33 = vld [vmem:[#allocation4 + $0xaa] sm:$0xff] }
 0x29b   : > { %v11973_v17 = vld [vmem:[#allocation9 + $0x44] ss:$8 sps:$4 sm:$0xff]   ;;  %v4561_v26 = vpop.permute.xlu1 %4560  ;;  %3811 = vst.msk [vmem:[#allocation9 + $0x74] sm:$0xf] %vm1248_vm3, %v3778_v15  ;;  %9594 = vmatprep.subr.bf16.mxu1 %v9780_v13 }
 0x29c   : > { %5247 = vst.msk [vmem:[#allocation9 + $0x44] sm:$0xf] %vm1118_vm2, %v9047_v1  ;;  %5248 = vst.msk [vmem:[#allocation9 + $0x4c] sm:$0xf] %vm1118_vm2, %v11343_v41  ;;  %4110 = vmatmul.mubr.bf16.gmra.mxu0 %v8255_v36  ;;  %v9221_v49 = vpop.f32.mrf.mxu0  ;;  %v9019_v36 = vpack.c.bf16 %v4947_v6, %v4947_v6 }
 0x29d   : > { %4595 = vst.msk [vmem:[#allocation9 + $0x6c] sm:$0xf] %vm1248_vm3, %v4561_v26  ;;  %4117 = vmatprep.mubr.bf16.mxu0 %v8258_v52 }
 0x29e   : > { %v4331_v8 = vpop.permute.xlu0 %4330  ;;  %v9153_v58 = vpop.f32.mrf.mxu1  ;;  %9595 = vmatpush3.bf16.msra.mxu1 %v9780_v13  ;;  %v5171_v13 = vld [vmem:[#allocation4 + $0xa2] sm:$0xff] }
 0x29f   : > { %v5102_v7 = vpop.permute.xlu1 %5101  ;;  %4368 = vst.msk [vmem:[#allocation9 + $0x50] sm:$0xf] %vm1248_vm3, %v4331_v8  ;;  %9596 = vmatprep.subr.bf16.mxu1 %v9788_v54 }
 0x2a0   : > { %5146 = vst.msk [vmem:[#allocation9 + $0x18] sm:$0xf] %vm1248_vm3, %v5102_v7  ;;  %v9154_v41 = vpop.f32.mrf.mxu1 }
 0x2a1   : > { %v9155_v43 = vadd.f32 %v9154_v41, %v9153_v58  ;;  %4863 = vmatmul.mubr.bf16.gmra.mxu1 %v8343_v61  ;;  %5025 = vst.msk [vmem:[#allocation9 + $0x50] sm:$0xf] %vm1118_vm2, %v9017_v62 }
 0x2a2   : > { %v3827_v16 = vld [vmem:[#allocation9 + $0x70] sm:$0xff]  ;;  %v4555_v37 = vpop.permute.xlu0 %4554  ;;  %v9156_v10 = vpop.f32.mrf.mxu1  ;;  %4870 = vmatprep.mubr.bf16.mxu1 %v11933_v14  ;;  %9597 = vmatpush3.bf16.msra.mxu1 %v9788_v54  ;;  %v9020_v54 = vpack.c.bf16 %v4948_v50, %v4948_v50 }
 0x2a3   : > { %4468 = vst.msk [vmem:[#allocation9 + $0x74] sm:$0xf] %vm1118_vm2, %v11841_v5  ;;  %v12000_v60 = vadd.f32 %v11922_v48, %v9155_v43  ;;  %v5326_v3 = vpop.permute.xlu1 %5325  ;;  %4244 = vst.msk [vmem:[#allocation9 + $0x70] sm:$0xf] %vm1118_vm2, %v11816_v9  ;;  %9598 = vmatprep.subr.bf16.mxu1 %v9795_v27  ;;  %v9222_v5 = vadd.f32 %v9221_v49, %v9220_v2  ;;  %v4602_v48 = vld [vmem:[#allocation9 + $0x20] sm:$0xff]  ;;  %v8260_v4 = vcombine.high %v3827_v16, %v11924_v40  ;;  %v4607_v1 = vld [vmem:[#allocation9 + $0x48] sm:$0xff] }
 0x2a4   : > { %4592 = vst.msk [vmem:[#allocation9 + $0x54] sm:$0xf] %vm1248_vm3, %v4555_v37  ;;  %5370 = vst.msk [vmem:[#allocation9 + $0x1c] sm:$0xf] %vm1248_vm3, %v5326_v3  ;;  %v9157_v18 = vpop.f32.mrf.mxu1  ;;  %4118 = vmatmul.mubr.bf16.gmra.mxu0 %v8257_v45  ;;  %v8345_v42 = vcombine.low %v4602_v48, %v4603_v63  ;;  %v8259_v21 = vcombine.low %v3827_v16, %v11924_v40  ;;  %v4606_v20 = vld [vmem:[#allocation9 + $0x40] sm:$0xff]  ;;  %v9052_v2 = vpack.c.bf16 %v5172_v33, %v5172_v33 }
 0x2a5   : > { %v9158_v25 = vadd.f32 %v9157_v18, %v9156_v10  ;;  %4125 = vmatprep.mubr.bf16.mxu0 %v8260_v4  ;;  %v8349_v52 = vcombine.low %v4606_v20, %v4607_v1  ;;  %5028 = vst.msk [vmem:[#allocation9 + $0x68] sm:$0xf] %vm1118_vm2, %v9020_v54  ;;  %v4949_v4 = vld [vmem:[#allocation4 + $0xb0] sm:$0xff] }
 0x2a6   : > { %v5096_v39 = vpop.permute.xlu0 %5095  ;;  %9599 = vmatpush3.bf16.msra.mxu1 %v9795_v27  ;;  %v9021_v62 = vpack.c.bf16 %v4949_v4, %v4949_v4 }
 0x2a7   : > { %v12010_v9 = vadd.f32 %v9222_v5, %v9158_v25  ;;  %v4341_v14 = vpop.permute.xlu1 %4340  ;;  %5143 = vst.msk [vmem:[#allocation9] sm:$0xf] %vm1248_vm3, %v5096_v39  ;;  %v4950_v39 = vld [vmem:[#allocation4 + $0xb8] sm:$0xf] }
 0x2a8   : > { %4373 = vst.msk [vmem:[#allocation9 + $0x78] sm:$0x3] %vm1264_vm4, %v4341_v14  ;;  %v9022_v35 = vpack.c.bf16 %v4950_v39, %v4950_v39 }
 0x2a9   : > { %4871 = vmatmul.mubr.bf16.gmra.mxu1 %v8345_v42 }
 0x2aa   : > { %v5320_v51 = vpop.permute.xlu0 %5319  ;;  %4878 = vmatprep.mubr.bf16.mxu1 %v11941_v34  ;;  %v8347_v34 = vcombine.low %v4604_v53, %v4605_v28  ;;  %5030 = vst.msk [vmem:[#allocation9 + $0x78] sm:$0x3] %vm1134_vm5, %v9022_v35 }
 0x2ab   : > { %v9786_v46 = vld [vmem:[#allocation9 + $0x54] ss:$8 sps:$4 sm:$0xff]   ;;  %v4565_v23 = vpop.permute.xlu1 %4564  ;;  %5367 = vst.msk [vmem:[#allocation9 + $0x4] sm:$0xf] %vm1248_vm3, %v5320_v51  ;;  %v9053_v51 = vpack.c.bf16 %v5173_v44, %v5173_v44  ;;  %v5728_v44 = vld [vmem:[#allocation4 + $0x84] sm:$0xff] }
 0x2ac   : > { %5249 = vst.msk [vmem:[#allocation9 + $0x54] sm:$0xf] %vm1118_vm2, %v11879_v11  ;;  %5250 = vst.msk [vmem:[#allocation9 + $0x5c] sm:$0xf] %vm1118_vm2, %v9050_v55  ;;  %4126 = vmatmul.mubr.bf16.gmra.mxu0 %v8259_v21  ;;  %v5384_v11 = vld [vmem:[#allocation9 + $0x8] sm:$0xff]  ;;  %v5386_v57 = vld [vmem:[#allocation9 + $0x18] sm:$0xff] }
 0x2ad   : > { %4597 = vst.msk [vmem:[#allocation9 + $0x7c] sm:$0x3] %vm1264_vm4, %v4565_v23 }
 0x2ae   : > { %v4335_v24 = vpop.permute.xlu0 %4334 }
 0x2af   : > { %4370 = vst.msk [vmem:[#allocation9 + $0x60] sm:$0xf] %vm1248_vm3, %v4335_v24 }
 0x2b0   : > { %v5106_v30 = vpop.permute.xlu1 %5105  ;;  %5027 = vst.msk [vmem:[#allocation9 + $0x60] sm:$0xf] %vm1118_vm2, %v9019_v36  ;;  %v5725_v36 = vld [vmem:[#allocation4 + $0x6c] sm:$0xff] }
 0x2b1   : > { %5148 = vst.msk [vmem:[#allocation9 + $0x28] sm:$0xf] %vm1248_vm3, %v5106_v30  ;;  %4879 = vmatmul.mubr.bf16.gmra.mxu1 %v8347_v34  ;;  %v5720_v34 = vld [vmem:[#allocation4 + $0x44] sm:$0xff] }
 0x2b2   : > { %v4559_v29 = vpop.permute.xlu0 %4558  ;;  %v5383_v12 = vld [vmem:[#allocation9] sm:$0xff]  ;;  %4886 = vmatprep.mubr.bf16.mxu1 %v11973_v17  ;;  %v9051_v17 = vpack.c.bf16 %v5171_v13, %v5171_v13 }
 0x2b3   : > { %v9784_v0 = vld [vmem:[#allocation9 + $0x4] ss:$8 sps:$4 sm:$0xff]   ;;  %4594 = vst.msk [vmem:[#allocation9 + $0x64] sm:$0xf] %vm1248_vm3, %v4559_v29  ;;  %v8437_v40 = vcombine.low %v5383_v12, %v5384_v11  ;;  %v4608_v27 = vld [vmem:[#allocation9 + $0x50] sm:$0xff]  ;;  %v4609_v37 = vld [vmem:[#allocation9 + $0x58] sm:$0xff] }
 0x2b4   : > { %v5330_v32 = vpop.permute.xlu1 %5329  ;;  %5639 = vmatprep.mubr.bf16.mxu0 %v9784_v0  ;;  %v8351_v3 = vcombine.low %v4608_v27, %v4609_v37  ;;  %v5721_v29 = vld [vmem:[#allocation4 + $0x4c] sm:$0xff]  ;;  %v5738_v27 = vpack.c.bf16 %v5725_v36, %v11826_v22 }
 0x2b5   : > { %5372 = vst.msk [vmem:[#allocation9 + $0x2c] sm:$0xf] %vm1248_vm3, %v5330_v32  ;;  %5640 = vmatmul.mubr.bf16.vlgmr.msra.gmra.mxu0 %v8437_v40  ;;  %v5736_v32 = vpack.c.bf16 %v5721_v29, %v5720_v34 }
 0x2b6   : > { %v5100_v31 = vpop.permute.xlu0 %5099 }
 0x2b7   : > { %5145 = vst.msk [vmem:[#allocation9 + $0x10] sm:$0xf] %vm1248_vm3, %v5100_v31  ;;  %v12029_v26 = vpop.f32.mrf.mxu0  ;;  %v5722_v31 = vld [vmem:[#allocation4 + $0x54] sm:$0xff] }
 0x2b8   : > { %v5110_v15 = vpop.permute.xlu1 %5109 }
 0x2b9   : > { %5150 = vst.msk [vmem:[#allocation9 + $0x38] sm:$0xf] %vm1248_vm3, %v5110_v15  ;;  %v12032_v8 = vpop.f32.mrf.mxu0  ;;  %4887 = vmatmul.mubr.bf16.gmra.mxu1 %v8349_v52 }
 0x2ba   : > { %v5324_v58 = vpop.permute.xlu0 %5323  ;;  %v9789_v7 = vld [vmem:[#allocation9 + $0x64] ss:$8 sps:$4 sm:$0xff]   ;;  %4894 = vmatprep.mubr.bf16.mxu1 %v9786_v46  ;;  %v9054_v46 = vpack.c.bf16 %v5174_v59, %v5174_v59 }
 0x2bb   : > { %5369 = vst.msk [vmem:[#allocation9 + $0x14] sm:$0xf] %vm1248_vm3, %v5324_v58  ;;  %v9226_v61 = vpop.f32.mrf.mxu0  ;;  %v5729_v59 = vld [vmem:[#allocation4 + $0x8c] sm:$0xff] }
 0x2bc   : > { %v5334_v41 = vpop.permute.xlu1 %5333  ;;  %5251 = vst.msk [vmem:[#allocation9 + $0x64] sm:$0xf] %vm1118_vm2, %v9051_v17  ;;  %5252 = vst.msk [vmem:[#allocation9 + $0x6c] sm:$0xf] %vm1118_vm2, %v9052_v2  ;;  %v5388_v50 = vld [vmem:[#allocation9 + $0x28] sm:$0xff]  ;;  %v5723_v17 = vld [vmem:[#allocation4 + $0x5c] sm:$0xff] }
 0x2bd   : > { %5374 = vst.msk [vmem:[#allocation9 + $0x3c] sm:$0xf] %vm1248_vm3, %v5334_v41  ;;  %v9227_v49 = vpop.f32.mrf.mxu0  ;;  %v5737_v58 = vpack.c.bf16 %v5723_v17, %v5722_v31 }
 0x2be   : > { %v12040_v43 = vadd.f32 %v9227_v49, %v9226_v61  ;;  %v4339_v16 = vpop.permute.xlu0 %4338 }
 0x2bf   : > { %4372 = vst.msk [vmem:[#allocation9 + $0x70] sm:$0xf] %vm1248_vm3, %v4339_v16 }
 0x2c0   : > { %v5114_v10 = vpop.permute.xlu1 %5113  ;;  %5029 = vst.msk [vmem:[#allocation9 + $0x70] sm:$0xf] %vm1118_vm2, %v9021_v62 }
 0x2c1   : > { %5152 = vst.msk [vmem:[#allocation9 + $0x48] sm:$0xf] %vm1248_vm3, %v5114_v10  ;;  %4895 = vmatmul.mubr.bf16.gmra.mxu1 %v8351_v3 }
 0x2c2   : > { %v4563_v18 = vpop.permute.xlu0 %4562  ;;  %v5385_v45 = vld [vmem:[#allocation9 + $0x10] sm:$0xff]  ;;  %4902 = vmatprep.mubr.bf16.mxu1 %v9789_v7  ;;  %v9225_v7 = vadd.f32 %v12032_v8, %v12029_v26 }
 0x2c3   : > { %v9791_v5 = vld [vmem:[#allocation9 + $0x14] ss:$8 sps:$4 sm:$0xff]   ;;  %4596 = vst.msk [vmem:[#allocation9 + $0x74] sm:$0xf] %vm1248_vm3, %v4563_v18  ;;  %v8439_v25 = vcombine.low %v5385_v45, %v5386_v57  ;;  %v4610_v63 = vld [vmem:[#allocation9 + $0x60] sm:$0xff]  ;;  %v4611_v55 = vld [vmem:[#allocation9 + $0x68] sm:$0xff] }
 0x2c4   : > { %v5338_v48 = vpop.permute.xlu1 %5337  ;;  %5647 = vmatprep.mubr.bf16.mxu0 %v9791_v5  ;;  %v8353_v23 = vcombine.low %v4610_v63, %v4611_v55  ;;  %v5390_v3 = vld [vmem:[#allocation9 + $0x38] sm:$0xff] }
 0x2c5   : > { %5376 = vst.msk [vmem:[#allocation9 + $0x4c] sm:$0xf] %vm1248_vm3, %v5338_v48  ;;  %5648 = vmatmul.mubr.bf16.gmra.mxu0 %v8439_v25  ;;  %v5727_v25 = vld [vmem:[#allocation4 + $0x7c] sm:$0xff] }
 0x2c6   : > { %v5104_v14 = vpop.permute.xlu0 %5103 }
 0x2c7   : > { %5147 = vst.msk [vmem:[#allocation9 + $0x20] sm:$0xf] %vm1248_vm3, %v5104_v14  ;;  %v5726_v14 = vld [vmem:[#allocation4 + $0x74] sm:$0xff] }
 0x2c8   : > { %v5118_v42 = vpop.permute.xlu1 %5117  ;;  %v5739_v55 = vpack.c.bf16 %v5727_v25, %v5726_v14 }
 0x2c9   : > { %5154 = vst.msk [vmem:[#allocation9 + $0x58] sm:$0xf] %vm1248_vm3, %v5118_v42  ;;  %4903 = vmatmul.mubr.bf16.gmra.mxu1 %v8353_v23  ;;  %v5740_v42 = vpack.c.bf16 %v5729_v59, %v5728_v44 }
 0x2ca   : > { %v5328_v21 = vpop.permute.xlu0 %5327  ;;  %v9793_v53 = vld [vmem:[#allocation9 + $0x74] ss:$8 sps:$4 sm:$0x3f]  }
 0x2cb   : > { %5371 = vst.msk [vmem:[#allocation9 + $0x24] sm:$0xf] %vm1248_vm3, %v5328_v21  ;;  %4910 = vmatprep.mubr.bf16.mxu1 %v9793_v53  ;;  %v5732_v21 = vld [vmem:[#allocation4 + $0xa4] sm:$0xff]  ;;  %v5730_v53 = vld [vmem:[#allocation4 + $0x94] sm:$0xff] }
 0x2cc   : > { %v5342_v24 = vpop.permute.xlu1 %5341  ;;  %5253 = vst.msk [vmem:[#allocation9 + $0x74] sm:$0xf] %vm1118_vm2, %v9053_v51  ;;  %v5392_v51 = vld [vmem:[#allocation9 + $0x48] sm:$0xff] }
 0x2cd   : > { %5254 = vst.msk [vmem:[#allocation9 + $0x7c] sm:$0x3] %vm1134_vm5, %v9054_v46 }
 0x2ce   : > { %5378 = vst.msk [vmem:[#allocation9 + $0x5c] sm:$0xf] %vm1248_vm3, %v5342_v24  ;;  %v5108_v30 = vpop.permute.xlu0 %5107  ;;  %v5731_v24 = vld [vmem:[#allocation4 + $0x9c] sm:$0xff] }
 0x2cf   : > { %5149 = vst.msk [vmem:[#allocation9 + $0x30] sm:$0xf] %vm1248_vm3, %v5108_v30  ;;  %v5741_v34 = vpack.c.bf16 %v5731_v24, %v5730_v53 }
 0x2d0   : > { %v5122_v11 = vpop.permute.xlu1 %5121 }
 0x2d1   : > { %5156 = vst.msk [vmem:[#allocation9 + $0x68] sm:$0xf] %vm1248_vm3, %v5122_v11 }
 0x2d2   : > { %v5332_v40 = vpop.permute.xlu0 %5331  ;;  %v5387_v6 = vld [vmem:[#allocation9 + $0x20] sm:$0xff] }
 0x2d3   : > { %v4612_v28 = vld [vmem:[#allocation9 + $0x70] sm:$0xff]  ;;  %v9796_v13 = vld [vmem:[#allocation9 + $0x24] ss:$8 sps:$4 sm:$0xff]   ;;  %5373 = vst.msk [vmem:[#allocation9 + $0x34] sm:$0xf] %vm1248_vm3, %v5332_v40  ;;  %v8441_v33 = vcombine.low %v5387_v6, %v5388_v50 }
 0x2d4   : > { %v4613_v12 = vld [vmem:[#allocation9 + $0x78] sm:$0x33]  ;;  %v5346_v20 = vpop.permute.xlu1 %5345  ;;  %5655 = vmatprep.mubr.bf16.mxu0 %v9796_v13 }
 0x2d5   : > { %v8355_v0 = vcombine.low %v4612_v28, %v4613_v12  ;;  %5380 = vst.msk [vmem:[#allocation9 + $0x6c] sm:$0xf] %vm1248_vm3, %v5346_v20  ;;  %5656 = vmatmul.mubr.bf16.gmra.mxu0 %v8441_v33  ;;  %v5394_v11 = vld [vmem:[#allocation9 + $0x58] sm:$0xff] }
 0x2d6   : > { %v5112_v1 = vpop.permute.xlu0 %5111  ;;  %v9159_v15 = vpop.f32.mrf.mxu1  ;;  %v5734_v40 = vld [vmem:[#allocation4 + $0xb4] sm:$0xff]  ;;  %v5735_v6 = vld [vmem:[#allocation4 + $0xbc] sm:$0xf] }
 0x2d7   : > { %4911 = vmatmul.mubr.bf16.gmra.mxu1 %v8355_v0  ;;  %5151 = vst.msk [vmem:[#allocation9 + $0x40] sm:$0xf] %vm1248_vm3, %v5112_v1  ;;  %v9229_v54 = vpop.f32.mrf.mxu0  ;;  %v5743_v13 = vpack.c.bf16 %v5735_v6, %v5734_v40 }
 0x2d8   : > { %9600 = vmatprep.mubr.msk.bf16.mxu1 %vm737_vm1, %v5736_v32  ;;  %v5126_v2 = vpop.permute.xlu1 %5125  ;;  %v9160_v52 = vpop.f32.mrf.mxu1 }
 0x2d9   : > { %5158 = vst.msk [vmem:[#allocation9 + $0x78] sm:$0x3] %vm1264_vm4, %v5126_v2  ;;  %v9161_v41 = vadd.f32 %v9160_v52, %v9159_v15  ;;  %v9230_v61 = vpop.f32.mrf.mxu0 }
 0x2da   : > { %v12064_v49 = vadd.f32 %v9230_v61, %v9229_v54  ;;  %v5336_v16 = vpop.permute.xlu0 %5335  ;;  %v9162_v37 = vpop.f32.mrf.mxu1  ;;  %v5389_v10 = vld [vmem:[#allocation9 + $0x30] sm:$0xff] }
 0x2db   : > { %v9798_v18 = vld [vmem:[#allocation9 + $0x34] ss:$8 sps:$4 sm:$0xff]   ;;  %v12067_v45 = vadd.f32 %v9225_v7, %v9161_v41  ;;  %5375 = vst.msk [vmem:[#allocation9 + $0x44] sm:$0xf] %vm1248_vm3, %v5336_v16  ;;  %v9232_v57 = vpop.f32.mrf.mxu0  ;;  %v8443_v26 = vcombine.low %v5389_v10, %v5390_v3 }
 0x2dc   : > { %v5350_v8 = vpop.permute.xlu1 %5349  ;;  %v9163_v5 = vpop.f32.mrf.mxu1  ;;  %5663 = vmatprep.mubr.bf16.mxu0 %v9798_v18 }
 0x2dd   : > { %5382 = vst.msk [vmem:[#allocation9 + $0x7c] sm:$0x3] %vm1264_vm4, %v5350_v8  ;;  %v9164_v22 = vadd.f32 %v9163_v5, %v9162_v37  ;;  %v9233_v48 = vpop.f32.mrf.mxu0  ;;  %5664 = vmatmul.mubr.bf16.gmra.mxu0 %v8443_v26 }
 0x2de   : > { %v12072_v4 = vadd.f32 %v9233_v48, %v9232_v57  ;;  %v5116_v39 = vpop.permute.xlu0 %5115 }
 0x2df   : > { %9601 = vmatmul.mubr.msk.bf16.vlgmr.msra.gmra.mxu1 %vm737_vm1, %v5737_v58  ;;  %v12075_v63 = vadd.f32 %v12040_v43, %v9164_v22  ;;  %5153 = vst.msk [vmem:[#allocation9 + $0x50] sm:$0xf] %vm1248_vm3, %v5116_v39  ;;  %v5733_v43 = vld [vmem:[#allocation4 + $0xac] sm:$0xff] }
 0x2e0   : > { %9604 = vmatprep.mubr.msk.bf16.mxu1 %vm737_vm1, %v5738_v27  ;;  %v5742_v30 = vpack.c.bf16 %v5733_v43, %v5732_v21 }
 0x2e2   : > { %v5340_v62 = vpop.permute.xlu0 %5339  ;;  %v5391_v35 = vld [vmem:[#allocation9 + $0x40] sm:$0xff] }
 0x2e3   : > { %v9800_v46 = vld [vmem:[#allocation9 + $0x44] ss:$8 sps:$4 sm:$0xff]   ;;  %5377 = vst.msk [vmem:[#allocation9 + $0x54] sm:$0xf] %vm1248_vm3, %v5340_v62  ;;  %v8445_v23 = vcombine.low %v5391_v35, %v5392_v51 }
 0x2e4   : > { %5671 = vmatprep.mubr.bf16.mxu0 %v9800_v46 }
 0x2e5   : > { %5672 = vmatmul.mubr.bf16.gmra.mxu0 %v8445_v23 }
 0x2e6   : > { %v5120_v28 = vpop.permute.xlu0 %5119 }
 0x2e7   : > { %9605 = vmatmul.mubr.msk.bf16.gmra.mxu1 %vm737_vm1, %v5739_v55  ;;  %5155 = vst.msk [vmem:[#allocation9 + $0x60] sm:$0xf] %vm1248_vm3, %v5120_v28 }
 0x2e8   : > { %9608 = vmatprep.mubr.msk.bf16.mxu1 %vm737_vm1, %v5740_v42 }
 0x2ea   : > { %v5344_v29 = vpop.permute.xlu0 %5343  ;;  %v5393_v12 = vld [vmem:[#allocation9 + $0x50] sm:$0xff] }
 0x2eb   : > { %v9802_v0 = vld [vmem:[#allocation9 + $0x54] ss:$8 sps:$4 sm:$0xff]   ;;  %5379 = vst.msk [vmem:[#allocation9 + $0x64] sm:$0xf] %vm1248_vm3, %v5344_v29  ;;  %v8447_v32 = vcombine.low %v5393_v12, %v5394_v11 }
 0x2ec   : > { %5679 = vmatprep.mubr.bf16.mxu0 %v9802_v0 }
 0x2ed   : > { %5680 = vmatmul.mubr.bf16.gmra.mxu0 %v8447_v32 }
 0x2ee   : > { %v5124_v50 = vpop.permute.xlu0 %5123  ;;  %v9806_v1 = vld [vmem:[#allocation9 + $0x60] ss:$8 sps:$4 sm:$0xff]  }
 0x2ef   : > { %9609 = vmatmul.mubr.msk.bf16.gmra.mxu1 %vm737_vm1, %v5741_v34  ;;  %5157 = vst.msk [vmem:[#allocation9 + $0x70] sm:$0xf] %vm1248_vm3, %v5124_v50 }
 0x2f0   : > { %9612 = vmatprep.mubr.msk.bf16.mxu1 %vm737_vm1, %v5742_v30 }
 0x2f2   : > { %v5348_v33 = vpop.permute.xlu0 %5347  ;;  %v9804_v31 = vld [vmem:[#allocation9 + $0x64] ss:$8 sps:$4 sm:$0xff]  }
 0x2f3   : > { %5381 = vst.msk [vmem:[#allocation9 + $0x74] sm:$0xf] %vm1248_vm3, %v5348_v33  ;;  %5687 = vmatprep.mubr.bf16.mxu0 %v9804_v31 }
 0x2f4   : > { %v9235_v20 = vpop.f32.mrf.mxu0 }
 0x2f5   : > { %5688 = vmatmul.mubr.bf16.gmra.mxu0 %v9806_v1 }
 0x2f6   : > { %v9236_v15 = vpop.f32.mrf.mxu0  ;;  %v9809_v41 = vld [vmem:[#allocation9 + $0x70] ss:$8 sps:$4 sm:$0x3f]  }
 0x2f7   : > { %9613 = vmatmul.mubr.msk.bf16.gmra.mxu1 %vm737_vm1, %v5743_v13  ;;  %v9237_v36 = vadd.f32 %v9236_v15, %v9235_v20 }
 0x2f8   : > { %v9238_v54 = vpop.f32.mrf.mxu0  ;;  %v9165_v52 = vpop.f32.mrf.mxu1 }
 0x2fa   : > { %v9239_v17 = vpop.f32.mrf.mxu0  ;;  %v9807_v7 = vld [vmem:[#allocation9 + $0x74] ss:$8 sps:$4 sm:$0x3f]   ;;  %v9166_v61 = vpop.f32.mrf.mxu1 }
 0x2fb   : > { %v9240_v2 = vadd.f32 %v9239_v17, %v9238_v54  ;;  %5695 = vmatprep.mubr.bf16.mxu0 %v9807_v7  ;;  %v9167_v16 = vadd.f32 %v9166_v61, %v9165_v52  ;;  %v9812_v61 = vld [vmem:[%s12981_s5 + $0x74] ss:$8 sps:$4 sm:$0xff]  }
 0x2fc   : > { %v9241_v58 = vpop.f32.mrf.mxu0  ;;  %v9168_v10 = vpop.f32.mrf.mxu1  ;;  %6682 = vmatprep.subr.bf16.mxu1 %v9812_v61  ;;  %v9828_v61 = vld [vmem:[%s12981_s5 + $0x150] ss:$8 sps:$4 sm:$0xff]  }
 0x2fd   : > { %5696 = vmatmul.mubr.bf16.gmra.mxu0 %v9809_v41  ;;  %v12089_v18 = vadd.f32 %v12064_v49, %v9167_v16  ;;  %v9810_v41 = vld [vmem:[%s12981_s5 + $0x70] ss:$8 sps:$4 sm:$0xff]  }
 0x2fe   : > { %v9242_v27 = vpop.f32.mrf.mxu0  ;;  %v9169_v57 = vpop.f32.mrf.mxu1  ;;  %6683 = vmatpush1.bf16.msra.mxu1 %v9810_v41 }
 0x2ff   : > { %v9243_v37 = vadd.f32 %v9242_v27, %v9241_v58  ;;  %v9170_v8 = vadd.f32 %v9169_v57, %v9168_v10 }
 0x300   : > { %v9244_v3 = vpop.f32.mrf.mxu0  ;;  %v9171_v22 = vpop.f32.mrf.mxu1 }
 0x301   : > { %v12092_v25 = vadd.f32 %v12072_v4, %v9170_v8 }
 0x302   : > { %v9245_v26 = vpop.f32.mrf.mxu0  ;;  %v9172_v39 = vpop.f32.mrf.mxu1 }
 0x303   : > { %v9246_v5 = vadd.f32 %v9245_v26, %v9244_v3  ;;  %v9173_v59 = vadd.f32 %v9172_v39, %v9171_v22 }
 0x304   : > { %v9247_v48 = vpop.f32.mrf.mxu0  ;;  %v9174_v55 = vpop.f32.mrf.mxu1 }
 0x305   : > { %v12094_v62 = vadd.f32 %v9237_v36, %v9173_v59  ;;  %v9815_v59 = vld [vmem:[%s12981_s5 + $0x64] ss:$8 sps:$4 sm:$0xff]  }
 0x306   : > { %v9248_v44 = vpop.f32.mrf.mxu0  ;;  %v9175_v35 = vpop.f32.mrf.mxu1  ;;  %6684 = vmatprep.subr.bf16.mxu1 %v9815_v59 }
 0x307   : > { %v9249_v14 = vadd.f32 %v9248_v44, %v9247_v48  ;;  %v9176_v51 = vadd.f32 %v9175_v35, %v9174_v55  ;;  %v9813_v44 = vld [vmem:[%s12981_s5 + $0x60] ss:$8 sps:$4 sm:$0xff]  }
 0x308   : > { %v9250_v42 = vpop.f32.mrf.mxu0  ;;  %v9177_v23 = vpop.f32.mrf.mxu1  ;;  %6685 = vmatpush1.bf16.msra.mxu1 %v9813_v44 }
 0x309   : > { %v12096_v43 = vadd.f32 %v9240_v2, %v9176_v51 }
 0x30a   : > { %v9251_v49 = vpop.f32.mrf.mxu0  ;;  %v9178_v53 = vpop.f32.mrf.mxu1 }
 0x30b   : > { %v9252_v46 = vadd.f32 %v9251_v49, %v9250_v42  ;;  %v9179_v4 = vadd.f32 %v9178_v53, %v9177_v23 }
 0x30c   : > { %v9333_v21 = vpop.f32.mrf.mxu0  ;;  %v9180_v30 = vpop.f32.mrf.mxu1 }
 0x30d   : > { %v12098_v29 = vadd.f32 %v9243_v37, %v9179_v4 }
 0x30e   : > { %v9334_v24 = vpop.f32.mrf.mxu0  ;;  %v9181_v12 = vpop.f32.mrf.mxu1 }
 0x30f   : > { %v9335_v28 = vadd.f32 %v9334_v24, %v9333_v21  ;;  %v9182_v0 = vadd.f32 %v9181_v12, %v9180_v30 }
 0x310   : > { %v9336_v34 = vpop.f32.mrf.mxu0  ;;  %v9183_v40 = vpop.f32.mrf.mxu1 }
 0x311   : > { %v12100_v50 = vadd.f32 %v9246_v5, %v9182_v0 }
 0x312   : > { %v9337_v11 = vpop.f32.mrf.mxu0  ;;  %v9184_v13 = vpop.f32.mrf.mxu1 }
 0x313   : > { %v9338_v32 = vadd.f32 %v9337_v11, %v9336_v34  ;;  %v9185_v20 = vadd.f32 %v9184_v13, %v9183_v40  ;;  %v9816_v13 = vld [vmem:[%s12981_s5 + $0x170] ss:$8 sps:$4 sm:$0xff]  }
 0x314   : > { %v9339_v6 = vpop.f32.mrf.mxu0  ;;  %v9186_v1 = vpop.f32.mrf.mxu1 }
 0x315   : > { %v12102_v36 = vadd.f32 %v9249_v14, %v9185_v20  ;;  %v9824_v20 = vld [vmem:[%s12981_s5 + $0x164] ss:$8 sps:$4 sm:$0xff]  }
 0x316   : > { %v9340_v33 = vpop.f32.mrf.mxu0  ;;  %v9187_v54 = vpop.f32.mrf.mxu1 }
 0x317   : > { %v9341_v31 = vadd.f32 %v9340_v33, %v9339_v6  ;;  %v9188_v2 = vadd.f32 %v9187_v54, %v9186_v1  ;;  %v9827_v1 = vld [vmem:[%s12981_s5 + $0x44] ss:$8 sps:$4 sm:$0xff]   ;;  %v9822_v54 = vld [vmem:[%s12981_s5 + $0x160] ss:$8 sps:$4 sm:$0xff]  }
 0x318   : > { %v9342_v15 = vpop.f32.mrf.mxu0  ;;  %v9269_v58 = vpop.f32.mrf.mxu1 }
 0x319   : > { %v12104_v7 = vadd.f32 %v9252_v46, %v9188_v2 }
 0x31a   : > { %v9343_v17 = vpop.f32.mrf.mxu0  ;;  %v9270_v27 = vpop.f32.mrf.mxu1 }
 0x31b   : > { %v9344_v52 = vadd.f32 %v9343_v17, %v9342_v15  ;;  %v9271_v16 = vadd.f32 %v9270_v27, %v9269_v58  ;;  %v9830_v27 = vld [vmem:[%s12981_s5 + $0x154] ss:$8 sps:$4 sm:$0xff]  }
 0x31c   : > { %v9272_v37 = vpop.f32.mrf.mxu1 }
 0x31d   : > { %v3349_v10 = vadd.f32 %v9271_v16, %v11089_v56  ;;  %v9831_v16 = vld [vmem:[%s12981_s5 + $0x30] ss:$8 sps:$4 sm:$0xff]  }
 0x31e   : > { %v9273_v3 = vpop.f32.mrf.mxu1 }
 0x31f   : > { %v9274_v57 = vadd.f32 %v9273_v3, %v9272_v37  ;;  %v12113_v26 = vadd.f32 %v9335_v28, %v3349_v10  ;;  %v9836_v3 = vld [vmem:[%s12981_s5 + $0x144] ss:$8 sps:$4 sm:$0xff]  }
 0x321   : > { %v9275_v8 = vpop.f32.mrf.mxu1  ;;  %v3350_v5 = vadd.f32 %v9274_v57, %v11117_v47 }
 0x323   : > { %v9276_v22 = vpop.f32.mrf.mxu1  ;;  %v12116_v39 = vadd.f32 %v9338_v32, %v3350_v5 }
 0x324   : > { %v9277_v48 = vadd.f32 %v9276_v22, %v9275_v8  ;;  %v9839_v8 = vld [vmem:[%s12981_s5 + $0x24] ss:$8 sps:$4 sm:$0xff]  }
 0x325   : > { %v9278_v56 = vpop.f32.mrf.mxu1 }
 0x326   : > { %v3351_v14 = vadd.f32 %v9277_v48, %v11804_v19  ;;  %v9834_v48 = vld [vmem:[%s12981_s5 + $0x140] ss:$8 sps:$4 sm:$0xff]  }
 0x327   : > { %v9279_v55 = vpop.f32.mrf.mxu1 }
 0x328   : > { %v9280_v42 = vadd.f32 %v9279_v55, %v9278_v56  ;;  %v12125_v47 = vadd.f32 %v9341_v31, %v3351_v14  ;;  %v9842_v56 = vld [vmem:[%s12981_s5 + $0x134] ss:$8 sps:$4 sm:$0xff]  }
 0x329   : > { %v9281_v35 = vpop.f32.mrf.mxu1 }
 0x32a   : > { %v3352_v49 = vadd.f32 %v9280_v42, %v11830_v38  ;;  %v9845_v42 = vld [vmem:[%s12981_s5 + $0x14] ss:$8 sps:$4 sm:$0xff]  }
 0x32b   : > { %v9282_v51 = vpop.f32.mrf.mxu1 }
 0x32c   : > { %v9283_v46 = vadd.f32 %v9282_v51, %v9281_v35  ;;  %v12128_v23 = vadd.f32 %v9344_v52, %v3352_v49 }
 0x32d   : > { %v9284_v21 = vpop.f32.mrf.mxu1 }
 0x32e   : > { %v12131_v53 = vadd.f32 %v9283_v46, %v12000_v60 }
 0x32f   : > { %v9285_v24 = vpop.f32.mrf.mxu1 }
 0x330   : > { %v9286_v4 = vadd.f32 %v9285_v24, %v9284_v21  ;;  %v9840_v21 = vld [vmem:[%s12981_s5 + $0x130] ss:$8 sps:$4 sm:$0xff]  }
 0x331   : > { %v9287_v19 = vpop.f32.mrf.mxu1 }
 0x332   : > { %v12134_v28 = vadd.f32 %v9286_v4, %v12010_v9  ;;  %v9818_v9 = vld [vmem:[%s12981_s5 + $0x174] ss:$8 sps:$4 sm:$0xff]  }
 0x333   : > { %v9288_v30 = vpop.f32.mrf.mxu1  ;;  %6449 = vmatprep.subr.bf16.mxu0 %v9818_v9 }
 0x334   : > { %v9289_v34 = vadd.f32 %v9288_v30, %v9287_v19  ;;  %6450 = vmatpush1.bf16.msra.mxu0 %v9816_v13  ;;  %v9843_v19 = vld [vmem:[%s12981_s5 + $0x10] ss:$8 sps:$4 sm:$0xff]  }
 0x335   : > { %v9290_v12 = vpop.f32.mrf.mxu1  ;;  %6451 = vmatprep.subr.bf16.mxu0 %v9824_v20 }
 0x336   : > { %v12137_v11 = vadd.f32 %v9289_v34, %v12067_v45  ;;  %v9819_v45 = vld [vmem:[%s12981_s5 + $0x50] ss:$8 sps:$4 sm:$0xff]  }
 0x337   : > { %v9291_v38 = vpop.f32.mrf.mxu1 }
 0x338   : > { %v9292_v0 = vadd.f32 %v9291_v38, %v9290_v12  ;;  %6452 = vmatpush1.bf16.msra.mxu0 %v9822_v54 }
 0x339   : > { %v9293_v32 = vpop.f32.mrf.mxu1  ;;  %6453 = vmatprep.subr.bf16.mxu0 %v9830_v27 }
 0x33a   : > { %v12140_v40 = vadd.f32 %v9292_v0, %v12075_v63  ;;  %v9821_v63 = vld [vmem:[%s12981_s5 + $0x54] ss:$8 sps:$4 sm:$0xff]  }
 0x33b   : > { %v9294_v60 = vpop.f32.mrf.mxu1  ;;  %6686 = vmatprep.subr.bf16.mxu1 %v9821_v63  ;;  %v9854_v63 = vld [vmem:[%s12981_s5 + $0x114] ss:$8 sps:$4 sm:$0xff]  }
 0x33c   : > { %v9295_v6 = vadd.f32 %v9294_v60, %v9293_v32  ;;  %6687 = vmatpush1.bf16.msra.mxu1 %v9819_v45  ;;  %6454 = vmatpush1.bf16.msra.mxu0 %v9828_v61  ;;  %v9849_v45 = vld [vmem:[%s12981_s5] ss:$8 sps:$4 sm:$0xff]   ;;  %v9863_v61 = vld [vmem:[%s12981_s5 + $0xe4] ss:$8 sps:$4 sm:$0xff]  }
 0x33d   : > { %v9296_v33 = vpop.f32.mrf.mxu1  ;;  %6688 = vmatprep.subr.bf16.mxu1 %v9827_v1  ;;  %6455 = vmatprep.subr.bf16.mxu0 %v9836_v3 }
 0x33e   : > { %v12158_v31 = vadd.f32 %v9295_v6, %v12089_v18  ;;  %v9825_v18 = vld [vmem:[%s12981_s5 + $0x40] ss:$8 sps:$4 sm:$0xff]  }
 0x33f   : > { %v9297_v15 = vpop.f32.mrf.mxu1 }
 0x340   : > { %v9298_v17 = vadd.f32 %v9297_v15, %v9296_v33  ;;  %6689 = vmatpush1.bf16.msra.mxu1 %v9825_v18  ;;  %6456 = vmatpush1.bf16.msra.mxu0 %v9834_v48  ;;  %v9857_v15 = vld [vmem:[%s12981_s5 + $0xf4] ss:$8 sps:$4 sm:$0xff]  }
 0x341   : > { %v9299_v2 = vpop.f32.mrf.mxu1  ;;  %6457 = vmatprep.subr.bf16.mxu0 %v9842_v56  ;;  %v9867_v56 = vld [vmem:[%s12981_s5 + $0xd0] ss:$8 sps:$4 sm:$0xff]  }
 0x342   : > { %v12170_v52 = vadd.f32 %v9298_v17, %v12092_v25  ;;  %v9833_v25 = vld [vmem:[%s12981_s5 + $0x34] ss:$8 sps:$4 sm:$0xff]   ;;  %v9852_v17 = vld [vmem:[%s12981_s5 + $0x110] ss:$8 sps:$4 sm:$0xff]  }
 0x343   : > { %v9300_v58 = vpop.f32.mrf.mxu1  ;;  %6690 = vmatprep.subr.bf16.mxu1 %v9833_v25 }
 0x344   : > { %v9301_v41 = vadd.f32 %v9300_v58, %v9299_v2  ;;  %v9345_v10 = vpop.f32.mrf.mxu0  ;;  %6691 = vmatpush1.bf16.msra.mxu1 %v9831_v16  ;;  %6458 = vmatpush1.bf16.msra.mxu0 %v9840_v21  ;;  %v9855_v58 = vld [vmem:[%s12981_s5 + $0xf0] ss:$8 sps:$4 sm:$0xff]  }
 0x345   : > { %v9302_v37 = vpop.f32.mrf.mxu1  ;;  %6692 = vmatprep.subr.bf16.mxu1 %v9839_v8  ;;  %v9861_v8 = vld [vmem:[%s12981_s5 + $0xe0] ss:$8 sps:$4 sm:$0xff]  }
 0x346   : > { %v12188_v57 = vadd.f32 %v9301_v41, %v12094_v62  ;;  %v9346_v22 = vpop.f32.mrf.mxu0  ;;  %v9837_v62 = vld [vmem:[%s12981_s5 + $0x20] ss:$8 sps:$4 sm:$0xff]  }
 0x347   : > { %v9303_v5 = vpop.f32.mrf.mxu1  ;;  %v9347_v59 = vadd.f32 %v9346_v22, %v9345_v10  ;;  %v9858_v10 = vld [vmem:[%s12981_s5 + $0x100] ss:$8 sps:$4 sm:$0xff]  }
 0x348   : > { %v9304_v44 = vadd.f32 %v9303_v5, %v9302_v37  ;;  %v9348_v55 = vpop.f32.mrf.mxu0  ;;  %6693 = vmatpush1.bf16.msra.mxu1 %v9837_v62  ;;  %v9869_v5 = vld [vmem:[%s12981_s5 + $0xd4] ss:$8 sps:$4 sm:$0xff]  }
 0x349   : > { %v9305_v14 = vpop.f32.mrf.mxu1  ;;  %v12209_v49 = vadd.f32 %v9347_v59, %v12131_v53  ;;  %6694 = vmatprep.subr.bf16.mxu1 %v9845_v42 }
 0x34a   : > { %v12206_v35 = vadd.f32 %v9304_v44, %v12096_v43  ;;  %v9349_v46 = vpop.f32.mrf.mxu0  ;;  %v9864_v44 = vld [vmem:[%s12981_s5 + $0x1f0] ss:$8 sps:$4 sm:$0xff]  }
 0x34b   : > { %v9306_v51 = vpop.f32.mrf.mxu1  ;;  %v9350_v4 = vadd.f32 %v9349_v46, %v9348_v55 }
 0x34c   : > { %12991 = vst [vmem:[#allocation13_spill] sm:$0xff] %v12206_v35  ;;  %v9307_v24 = vadd.f32 %v9306_v51, %v9305_v14  ;;  %v12217_v30 = vpop.f32.mrf.mxu0  ;;  %6695 = vmatpush1.bf16.msra.mxu1 %v9843_v19 }
 0x34d   : > { %v9308_v43 = vpop.f32.mrf.mxu1  ;;  %v12223_v34 = vadd.f32 %v9350_v4, %v12134_v28  ;;  %v9848_v28 = vld [vmem:[%s12981_s5 + $0x124] ss:$8 sps:$4 sm:$0xff]  }
 0x34e   : > { %v12220_v53 = vadd.f32 %v9307_v24, %v12098_v29  ;;  %v12225_v38 = vpop.f32.mrf.mxu0  ;;  %v9846_v29 = vld [vmem:[%s12981_s5 + $0x120] ss:$8 sps:$4 sm:$0xff]   ;;  %6459 = vmatprep.subr.bf16.mxu0 %v9848_v28 }
 0x34f   : > { %v9309_v12 = vpop.f32.mrf.mxu1  ;;  %6460 = vmatpush1.bf16.msra.mxu0 %v9846_v29  ;;  %v9873_v29 = vld [vmem:[%s12981_s5 + $0xc0] ss:$8 sps:$4 sm:$0xff]  }
 0x350   : > { %12992 = vst [vmem:[#allocation14_spill] sm:$0xff] %v12220_v53  ;;  %v9310_v0 = vadd.f32 %v9309_v12, %v9308_v43  ;;  %v12227_v60 = vpop.f32.mrf.mxu0  ;;  %6461 = vmatprep.subr.bf16.mxu0 %v9854_v63  ;;  %v10036_v28 = vld [vmem:[#allocation7] sm:$0xff] }
 0x351   : > { %v9311_v32 = vpop.f32.mrf.mxu1 }
 0x352   : > { %v12230_v6 = vadd.f32 %v9310_v0, %v12100_v50  ;;  %v12232_v9 = vpop.f32.mrf.mxu0  ;;  %v9851_v50 = vld [vmem:[%s12981_s5 + $0x4] ss:$8 sps:$4 sm:$0xff]  }
 0x353   : > { %v9312_v13 = vpop.f32.mrf.mxu1  ;;  %6696 = vmatprep.subr.bf16.mxu1 %v9851_v50  ;;  %6462 = vmatpush1.bf16.msra.mxu0 %v9852_v17  ;;  %v9878_v50 = vld [vmem:[%s12981_s5 + $0x1d4] ss:$8 sps:$4 sm:$0xff]   ;;  %v9876_v17 = vld [vmem:[%s12981_s5 + $0x1d0] ss:$8 sps:$4 sm:$0xff]  }
 0x354   : > { %12993 = vst [vmem:[#allocation15_spill] sm:$0xff] %v12230_v6  ;;  %v9313_v33 = vadd.f32 %v9312_v13, %v9311_v32  ;;  %v12249_v1 = vpop.f32.mrf.mxu0  ;;  %6697 = vmatpush1.bf16.msra.mxu1 %v9849_v45  ;;  %v9870_v32 = vld [vmem:[%s12981_s5 + $0x1e0] ss:$8 sps:$4 sm:$0xff]   ;;  %v9872_v13 = vld [vmem:[%s12981_s5 + $0x1e4] ss:$8 sps:$4 sm:$0xff]   ;;  %v9071_v45 = vpack.c.bf16 %v10036_v28, %v10036_v28 }
 0x355   : > { %v9314_v20 = vpop.f32.mrf.mxu1  ;;  %6698 = vmatprep.subr.bf16.mxu1 %v9857_v15  ;;  %v9881_v15 = vld [vmem:[%s12981_s5 + $0xb4] ss:$8 sps:$4 sm:$0xff]  }
 0x356   : > { %v12255_v54 = vadd.f32 %v9313_v33, %v12102_v36  ;;  %v12260_v2 = vpop.f32.mrf.mxu0  ;;  %v9860_v36 = vld [vmem:[%s12981_s5 + $0x104] ss:$8 sps:$4 sm:$0xff]   ;;  %6121 = vst [vmem:[#allocation9] sm:$0xf] %v9071_v45  ;;  %v9893_v28 = vld [vmem:[%s12981_s5 + $0x94] ss:$8 sps:$4 sm:$0xff]  }
 0x357   : > { %v9315_v18 = vpop.f32.mrf.mxu1  ;;  %6463 = vmatprep.subr.bf16.mxu0 %v9860_v36  ;;  %v9875_v33 = vld [vmem:[%s12981_s5 + $0xc4] ss:$8 sps:$4 sm:$0xff]   ;;  %v9879_v36 = vld [vmem:[%s12981_s5 + $0xb0] ss:$8 sps:$4 sm:$0xff]  }
 0x358   : > { %12994 = vst [vmem:[#allocation16_spill] sm:$0xff] %v12255_v54  ;;  %v9316_v41 = vadd.f32 %v9315_v18, %v9314_v20  ;;  %v12271_v27 = vpop.f32.mrf.mxu0  ;;  %6699 = vmatpush2.bf16.msra.mxu1 %v9855_v58  ;;  %6464 = vmatpush1.bf16.msra.mxu0 %v9858_v10 }
 0x359   : > { %v12273_v16 = vpop.f32.mrf.mxu1  ;;  %6700 = vmatprep.subr.bf16.mxu1 %v9863_v61  ;;  %v9887_v61 = vld [vmem:[%s12981_s5 + $0xa4] ss:$8 sps:$4 sm:$0xff]  }
 0x35a   : > { %v12276_v37 = vadd.f32 %v9316_v41, %v12104_v7  ;;  %v12281_v25 = vpop.f32.mrf.mxu0  ;;  %v9866_v7 = vld [vmem:[%s12981_s5 + $0x1f4] ss:$8 sps:$4 sm:$0xff]   ;;  %v9884_v41 = vld [vmem:[%s12981_s5 + $0x1c4] ss:$8 sps:$4 sm:$0xff]  }
 0x35b   : > { %v12283_v3 = vpop.f32.mrf.mxu1  ;;  %6465 = vmatprep.subr.bf16.mxu0 %v9866_v7  ;;  %v9882_v7 = vld [vmem:[%s12981_s5 + $0x1c0] ss:$8 sps:$4 sm:$0xff]  }
 0x35c   : > { %12995 = vst [vmem:[#allocation17_spill] sm:$0xff] %v12276_v37  ;;  %v12294_v22 = vpop.f32.mrf.mxu0  ;;  %6701 = vmatpush2.bf16.msra.mxu1 %v9861_v8  ;;  %6466 = vmatpush2.bf16.msra.mxu0 %v9864_v44  ;;  %v9908_v37 = vld [vmem:[%s12981_s5 + $0x184] ss:$8 sps:$4 sm:$0xff]  }
 0x35d   : > { %v12296_v48 = vpop.f32.mrf.mxu1  ;;  %6702 = vmatprep.subr.bf16.mxu1 %v9869_v5  ;;  %6467 = vmatprep.subr.bf16.mxu0 %v9872_v13  ;;  %v6125_v5 = vld [vmem:[#allocation7 + $0x1] sm:$0xff] }
 0x35e   : > { %v12301_v59 = vpop.f32.mrf.mxu0  ;;  %v9075_v13 = vpack.c.bf16 %v6125_v5, %v6125_v5 }
 0x35f   : > { %v12303_v62 = vpop.f32.mrf.mxu1 }
 0x360   : > { %v12308_v14 = vpop.f32.mrf.mxu0  ;;  %6703 = vmatpush2.bf16.msra.mxu1 %v9867_v56  ;;  %6468 = vmatpush2.bf16.msra.mxu0 %v9870_v32  ;;  %v9885_v56 = vld [vmem:[%s12981_s5 + $0xa0] ss:$8 sps:$4 sm:$0xff]   ;;  %v9890_v32 = vld [vmem:[%s12981_s5 + $0x1b4] ss:$8 sps:$4 sm:$0xff]   ;;  %6145 = vst [vmem:[#allocation9 + $0x4] sm:$0xf] %v9075_v13 }
 0x361   : > { %v12310_v55 = vpop.f32.mrf.mxu1  ;;  %6704 = vmatprep.subr.bf16.mxu1 %v9875_v33  ;;  %6469 = vmatprep.subr.bf16.mxu0 %v9878_v50  ;;  %v9888_v33 = vld [vmem:[%s12981_s5 + $0x1b0] ss:$8 sps:$4 sm:$0xff]  }
 0x362   : > { %v12312_v42 = vpop.f32.mrf.mxu0 }
 0x363   : > { %v12314_v51 = vpop.f32.mrf.mxu1 }
 0x364   : > { %v12316_v46 = vpop.f32.mrf.mxu0  ;;  %6705 = vmatpush2.bf16.msra.mxu1 %v9873_v29  ;;  %6470 = vmatpush2.bf16.msra.mxu0 %v9876_v17  ;;  %v9896_v17 = vld [vmem:[%s12981_s5 + $0x1a4] ss:$8 sps:$4 sm:$0xff]  }
 0x365   : > { %12996 = vst [vmem:[#allocation18_spill] sm:$0xff] %v12316_v46  ;;  %v12318_v21 = vpop.f32.mrf.mxu1  ;;  %6706 = vmatprep.subr.bf16.mxu1 %v9881_v15  ;;  %6471 = vmatprep.subr.bf16.mxu0 %v9884_v41  ;;  %v9891_v15 = vld [vmem:[%s12981_s5 + $0x90] ss:$8 sps:$4 sm:$0xff]   ;;  %v9899_v41 = vld [vmem:[%s12981_s5 + $0x84] ss:$8 sps:$4 sm:$0xff]  }
 0x366   : > { %v12320_v24 = vpop.f32.mrf.mxu0 }
 0x367   : > { %12997 = vst [vmem:[#allocation19_spill] sm:$0xff] %v12320_v24  ;;  %v12322_v4 = vpop.f32.mrf.mxu1  ;;  %v9405_v24 = vadd.f32 %v12314_v51, %v12310_v55  ;;  %v9402_v51 = vadd.f32 %v12303_v62, %v12296_v48 }
 0x368   : > { %v12324_v19 = vpop.f32.mrf.mxu0  ;;  %6707 = vmatpush2.bf16.msra.mxu1 %v9879_v36  ;;  %6472 = vmatpush2.bf16.msra.mxu0 %v9882_v7  ;;  %v9894_v7 = vld [vmem:[%s12981_s5 + $0x1a0] ss:$8 sps:$4 sm:$0xff]  }
 0x369   : > { %12998 = vst [vmem:[#allocation20_spill] sm:$0xff] %v12324_v19  ;;  %v12326_v43 = vpop.f32.mrf.mxu1  ;;  %6708 = vmatprep.subr.bf16.mxu1 %v9887_v61  ;;  %6473 = vmatprep.subr.bf16.mxu0 %v9890_v32  ;;  %v9902_v32 = vld [vmem:[%s12981_s5 + $0x194] ss:$8 sps:$4 sm:$0xff]  }
 0x36a   : > { %v12328_v12 = vpop.f32.mrf.mxu0 }
 0x36b   : > { %12999 = vst [vmem:[#allocation21_spill] sm:$0xff] %v12328_v12  ;;  %v12330_v0 = vpop.f32.mrf.mxu1 }
 0x36c   : > { %v12347_v63 = vpop.f32.mrf.mxu0  ;;  %6709 = vmatpush2.bf16.msra.mxu1 %v9885_v56  ;;  %6474 = vmatpush2.bf16.msra.mxu0 %v9888_v33  ;;  %v9897_v56 = vld [vmem:[%s12981_s5 + $0x80] ss:$8 sps:$4 sm:$0xff]  }
 0x36d   : > { %13000 = vst [vmem:[#allocation22_spill] sm:$0xff] %v12347_v63  ;;  %v12349_v20 = vpop.f32.mrf.mxu1  ;;  %6710 = vmatprep.subr.bf16.mxu1 %v9893_v28  ;;  %6475 = vmatprep.subr.bf16.mxu0 %v9896_v17  ;;  %v9905_v28 = vld [vmem:[%s12981_s5 + $0x374] ss:$8 sps:$4 sm:$0xff]  }
 0x36e   : > { %v12357_v18 = vpop.f32.mrf.mxu0 }
 0x36f   : > { %13001 = vst [vmem:[#allocation23_spill] sm:$0xff] %v12357_v18  ;;  %v12359_v58 = vpop.f32.mrf.mxu1 }
 0x370   : > { %v12370_v10 = vpop.f32.mrf.mxu0  ;;  %6711 = vmatpush2.bf16.msra.mxu1 %v9891_v15  ;;  %6476 = vmatpush2.bf16.msra.mxu0 %v9894_v7  ;;  %v9900_v15 = vld [vmem:[%s12981_s5 + $0x190] ss:$8 sps:$4 sm:$0xff]   ;;  %v9906_v7 = vld [vmem:[%s12981_s5 + $0x180] ss:$8 sps:$4 sm:$0xff]  }
 0x371   : > { %13002 = vst [vmem:[#allocation24_spill] sm:$0xff] %v12370_v10  ;;  %v12372_v8 = vpop.f32.mrf.mxu1  ;;  %6712 = vmatprep.subr.bf16.mxu1 %v9899_v41  ;;  %6477 = vmatprep.subr.bf16.mxu0 %v9902_v32 }
 0x372   : > { %v12385_v29 = vpop.f32.mrf.mxu0 }
 0x373   : > { %v12377_v44 = vpop.f32.mrf.mxu1  ;;  %13003 = vst [vmem:[#allocation25_spill] sm:$0xff] %v12385_v29 }
 0x374   : > { %6713 = vmatpush2.bf16.msra.mxu1 %v9897_v56  ;;  %6478 = vmatpush2.bf16.msra.mxu0 %v9900_v15  ;;  %v9916_v56 = vld [vmem:[%s12981_s5 + $0x274] ss:$8 sps:$4 sm:$0xff]  }
 0x375   : > { %v12390_v45 = vpop.f32.mrf.mxu1  ;;  %v9461_v36 = vpop.f32.mrf.mxu0  ;;  %7324 = vmatprep.subr.bf16.mxu1 %v9905_v28  ;;  %6479 = vmatprep.subr.bf16.mxu0 %v9908_v37 }
 0x377   : > { %v12395_v50 = vpop.f32.mrf.mxu1  ;;  %v9462_v13 = vpop.f32.mrf.mxu0 }
 0x378   : > { %6480 = vmatpush2.bf16.msra.mxu0 %v9906_v7 }
 0x379   : > { %v12406_v61 = vpop.f32.mrf.mxu1  ;;  %v9464_v41 = vpop.f32.mrf.mxu0  ;;  %6999 = vmatprep.subr.bf16.mxu0 %v9916_v56  ;;  %v9399_v56 = vadd.f32 %v12283_v3, %v12273_v16 }
 0x37b   : > { %v12411_v5 = vpop.f32.mrf.mxu1  ;;  %v9465_v32 = vpop.f32.mrf.mxu0  ;;  %v4919_v55 = vadd.f32 %v9399_v56, %v12113_v26 }
 0x37d   : > { %v12422_v33 = vpop.f32.mrf.mxu1 }
 0x37f   : > { %v12427_v17 = vpop.f32.mrf.mxu1 }
 0x381   : > { %v12432_v54 = vpop.f32.mrf.mxu1 }
 0x383   : > { %v12437_v29 = vpop.f32.mrf.mxu1 }
 0x385   : > { %v12442_v10 = vpop.f32.mrf.mxu1  ;;  %v9467_v18 = vpop.f32.mrf.mxu0 }
 0x386   : > { %13004 = vst [vmem:[#allocation26_spill] sm:$0xff] %v12442_v10 }
 0x387   : > { %v12444_v28 = vpop.f32.mrf.mxu1  ;;  %v9468_v63 = vpop.f32.mrf.mxu0 }
 0x388   : > { %13005 = vst [vmem:[#allocation27_spill] sm:$0xff] %v12444_v28 }
 0x389   : > { %v12446_v15 = vpop.f32.mrf.mxu1  ;;  %v9470_v37 = vpop.f32.mrf.mxu0 }
 0x38a   : > { %13006 = vst [vmem:[#allocation28_spill] sm:$0xff] %v12446_v15  ;;  %v9469_v15 = vadd.f32 %v9468_v63, %v9467_v18  ;;  %v9353_v63 = vadd.f32 %v12225_v38, %v12217_v30  ;;  %v4920_v30 = vadd.f32 %v9402_v51, %v12116_v39 }
 0x38b   : > { %v12448_v6 = vpop.f32.mrf.mxu1  ;;  %v9471_v46 = vpop.f32.mrf.mxu0 }
 0x38c   : > { %13007 = vst [vmem:[#allocation29_spill] sm:$0xff] %v12448_v6  ;;  %v9463_v6 = vadd.f32 %v9462_v13, %v9461_v36  ;;  %v4140_v13 = vadd.f32 %v9353_v63, %v12137_v11  ;;  %v9420_v11 = vadd.f32 %v12395_v50, %v12390_v45 }
 0x38d   : > { %v12450_v53 = vpop.f32.mrf.mxu1 }
 0x38e   : > { %13008 = vst [vmem:[#allocation30_spill] sm:$0xff] %v12450_v53  ;;  %v4921_v53 = vadd.f32 %v9405_v24, %v12125_v47  ;;  %v9411_v47 = vadd.f32 %v12330_v0, %v12326_v43  ;;  %v5704_v62 = vadd.f32 %v9463_v6, %v4919_v55  ;;  %v9359_v6 = vadd.f32 %v12260_v2, %v12249_v1 }
 0x38f   : > { %v12452_v12 = vpop.f32.mrf.mxu1  ;;  %v9423_v55 = vadd.f32 %v12411_v5, %v12406_v61 }
 0x390   : > { %13009 = vst [vmem:[#allocation31_spill] sm:$0xff] %v12452_v12  ;;  %v9408_v12 = vadd.f32 %v12322_v4, %v12318_v21  ;;  %v5706_v3 = vadd.f32 %v9469_v15, %v4921_v53  ;;  %v12479_v21 = vld [vmem:[%s12980_s4] ss:$0 sm:$0xff]  ;;  %v9466_v4 = vadd.f32 %v9465_v32, %v9464_v41  ;;  %v9417_v53 = vadd.f32 %v12377_v44, %v12372_v8 }
 0x392   : > { %v4922_v26 = vadd.f32 %v9408_v12, %v12128_v23  ;;  %v9356_v23 = vadd.f32 %v12232_v9, %v12227_v60  ;;  %v4923_v12 = vadd.f32 %v9411_v47, %v12209_v49  ;;  %v5705_v15 = vadd.f32 %v9466_v4, %v4920_v30 }
 0x393   : > { %v4142_v47 = vadd.f32 %v9359_v6, %v12158_v31 }
 0x394   : > { %v4141_v56 = vadd.f32 %v9356_v23, %v12140_v40 }
 0x395   : > { %v9473_v35 = vpop.f32.mrf.mxu0  ;;  %v4927_v30 = vadd.f32 %v9423_v55, %v4142_v47 }
 0x397   : > { %v12454_v19 = vpop.f32.mrf.mxu1 }
 0x398   : > { %13010 = vst [vmem:[#allocation32_spill] sm:$0xff] %v12454_v19  ;;  %v9474_v19 = vpop.f32.mrf.mxu0 }
 0x399   : > { %v12458_v7 = vpop.f32.mrf.mxu1  ;;  %v9475_v44 = vadd.f32 %v9474_v19, %v9473_v35 }
 0x39a   : > { %13011 = vst [vmem:[#allocation33_spill] sm:$0xff] %v12458_v7  ;;  %v9472_v7 = vadd.f32 %v9471_v46, %v9470_v37  ;;  %v9476_v16 = vpop.f32.mrf.mxu0  ;;  %v9414_v37 = vadd.f32 %v12359_v58, %v12349_v20 }
 0x39b   : > { %v12462_v28 = vpop.f32.mrf.mxu1  ;;  %v5708_v63 = vadd.f32 %v9475_v44, %v4923_v12 }
 0x39c   : > { %v9477_v48 = vpop.f32.mrf.mxu0  ;;  %v5707_v36 = vadd.f32 %v9472_v7, %v4922_v26  ;;  %v4925_v7 = vadd.f32 %v9417_v53, %v4140_v13  ;;  %v4924_v40 = vadd.f32 %v9414_v37, %v12223_v34 }
 0x39d   : > { %v12467_v10 = vpop.f32.mrf.mxu1  ;;  %v9478_v51 = vadd.f32 %v9477_v48, %v9476_v16 }
 0x39e   : > { %v9479_v0 = vpop.f32.mrf.mxu0 }
 0x39f   : > { %v9602_v24 = vpop.f32.mrf.mxu1  ;;  %v5709_v34 = vadd.f32 %v9478_v51, %v4924_v40  ;;  %v13012_v51 = vld [vmem:[#allocation26_spill] sm:$0xff] }
 0x3a0   : > { %v5899_v18 = vadd.f32 %v9602_v24, %v5706_v3  ;;  %v9480_v32 = vpop.f32.mrf.mxu0  ;;  %v4926_v24 = vadd.f32 %v9420_v11, %v4141_v56  ;;  %v13015_v40 = vld [vmem:[#allocation18_spill] sm:$0xff] }
 0x3a1   : > { %v5834_v46 = vpop.f32.mrf.mxu1  ;;  %v9481_v60 = vadd.f32 %v9480_v32, %v9479_v0 }
 0x3a2   : > { %v12486_v38 = vadd.f32 %v12479_v21, %v5899_v18  ;;  %v5897_v43 = vadd.f32 %v5834_v46, %v5704_v62  ;;  %v9482_v19 = vpop.f32.mrf.mxu0  ;;  %v9362_v62 = vadd.f32 %v12281_v25, %v12271_v27 }
 0x3a3   : > { %v9603_v8 = vpop.f32.mrf.mxu1  ;;  %v5710_v20 = vadd.f32 %v9481_v60, %v4925_v7  ;;  %v9429_v60 = vadd.f32 %v12437_v29, %v12432_v54 }
 0x3a4   : > { %v5920_v39 = vadd.f32 %v12479_v21, %v5897_v43  ;;  %v5900_v41 = vadd.f32 %v9603_v8, %v5707_v36  ;;  %v5938_v1 = vmax.f32 %v12486_v38, 0.0  ;;  %v9483_v50 = vpop.f32.mrf.mxu0  ;;  %v9426_v36 = vadd.f32 %v12427_v17, %v12422_v33 }
 0x3a5   : > { %v5837_v9 = vpop.f32.mrf.mxu1  ;;  %v9484_v4 = vadd.f32 %v9483_v50, %v9482_v19  ;;  %v4143_v44 = vadd.f32 %v9362_v62, %v12170_v52 }
 0x3a6   : > { %v5936_v2 = vmax.f32 %v5920_v39, 0.0  ;;  %v12501_v49 = vadd.f32 %v12479_v21, %v5900_v41  ;;  %v5898_v35 = vadd.f32 %v5837_v9, %v5705_v15  ;;  %v9485_v48 = vpop.f32.mrf.mxu0  ;;  %v9365_v39 = vadd.f32 %v12301_v59, %v12294_v22 }
 0x3a7   : > { %v9606_v58 = vpop.f32.mrf.mxu1  ;;  %v5711_v46 = vadd.f32 %v9484_v4, %v4926_v24  ;;  %v4928_v11 = vadd.f32 %v9426_v36, %v4143_v44  ;;  %v13014_v4 = vld [vmem:[#allocation13_spill] sm:$0xff] }
 0x3a8   : > { %v12506_v3 = vadd.f32 %v5938_v1, %v5936_v2  ;;  %v5921_v45 = vadd.f32 %v12479_v21, %v5898_v35  ;;  %v5903_v26 = vadd.f32 %v9606_v58, %v5710_v20  ;;  %v5939_v61 = vmax.f32 %v12501_v49, 0.0  ;;  %v9486_v0 = vpop.f32.mrf.mxu0  ;;  %v13020_v36 = vld [vmem:[#allocation21_spill] sm:$0xff] }
 0x3a9   : > { %v5850_v18 = vpop.f32.mrf.mxu1  ;;  %v9487_v6 = vadd.f32 %v9486_v0, %v9485_v48  ;;  %v4144_v35 = vadd.f32 %v9365_v39, %v12188_v57  ;;  %v13022_v39 = vld [vmem:[#allocation30_spill] sm:$0xff] }
 0x3aa   : > { %6010 = vst [vmem:[#allocation6] sm:$0xff] %v12506_v3  ;;  %v5937_v5 = vmax.f32 %v5921_v45, 0.0  ;;  %v5901_v16 = vadd.f32 %v5850_v18, %v5708_v63  ;;  %v5926_v53 = vadd.f32 %v12479_v21, %v5903_v26  ;;  %v9488_v25 = vpop.f32.mrf.mxu0  ;;  %v13013_v45 = vld [vmem:[#allocation27_spill] sm:$0xff] }
 0x3ab   : > { %v9607_v31 = vpop.f32.mrf.mxu1  ;;  %v5712_v15 = vadd.f32 %v9487_v6, %v4927_v30  ;;  %v4929_v29 = vadd.f32 %v9429_v60, %v4144_v35  ;;  %v9432_v50 = vadd.f32 %v13013_v45, %v13012_v51  ;;  %v13018_v30 = vld [vmem:[#allocation29_spill] sm:$0xff]  ;;  %v13027_v45 = vld [vmem:[#allocation32_spill] sm:$0xff] }
 0x3ac   : > { %v5997_v38 = vadd.f32 %v5939_v61, %v5937_v5  ;;  %v5924_v43 = vadd.f32 %v12479_v21, %v5901_v16  ;;  %v5942_v13 = vmax.f32 %v5926_v53, 0.0  ;;  %v5904_v23 = vadd.f32 %v9607_v31, %v5711_v46  ;;  %v9489_v17 = vpop.f32.mrf.mxu0 }
 0x3ad   : > { %v5853_v12 = vpop.f32.mrf.mxu1  ;;  %v9490_v2 = vadd.f32 %v9489_v17, %v9488_v25 }
 0x3ae   : > { %6011 = vst [vmem:[#allocation6 + $0x8] sm:$0xff] %v5997_v38  ;;  %v5940_v8 = vmax.f32 %v5924_v43, 0.0  ;;  %v5902_v27 = vadd.f32 %v5853_v12, %v5709_v34  ;;  %v5927_v41 = vadd.f32 %v12479_v21, %v5904_v23  ;;  %v9491_v59 = vpop.f32.mrf.mxu0  ;;  %v13019_v34 = vld [vmem:[#allocation20_spill] sm:$0xff] }
 0x3af   : > { %v9610_v32 = vpop.f32.mrf.mxu1  ;;  %v5713_v56 = vadd.f32 %v9490_v2, %v4928_v11  ;;  %v9374_v23 = vadd.f32 %v13020_v36, %v13019_v34 }
 0x3b0   : > { %v5998_v37 = vadd.f32 %v5940_v8, %v5938_v1  ;;  %v6000_v7 = vadd.f32 %v5942_v13, %v5940_v8  ;;  %v5925_v33 = vadd.f32 %v12479_v21, %v5902_v27  ;;  %v5943_v9 = vmax.f32 %v5927_v41, 0.0  ;;  %v9492_v54 = vpop.f32.mrf.mxu0  ;;  %v13021_v27 = vld [vmem:[#allocation14_spill] sm:$0xff]  ;;  %v13023_v41 = vld [vmem:[#allocation31_spill] sm:$0xff] }
 0x3b1   : > { %v5866_v49 = vpop.f32.mrf.mxu1  ;;  %v9368_v1 = vadd.f32 %v12312_v42, %v12308_v14  ;;  %v9493_v47 = vadd.f32 %v9492_v54, %v9491_v59 }
 0x3b2   : > { %6012 = vst [vmem:[#allocation6 + $0x10] sm:$0xff] %v5998_v37  ;;  %6014 = vst [vmem:[#allocation6 + $0x20] sm:$0xff] %v6000_v7  ;;  %v5941_v52 = vmax.f32 %v5925_v33, 0.0  ;;  %v5905_v22 = vadd.f32 %v5866_v49, %v5712_v15  ;;  %v9494_v42 = vpop.f32.mrf.mxu0  ;;  %v9438_v15 = vadd.f32 %v13023_v41, %v13022_v39  ;;  %v13024_v49 = vld [vmem:[#allocation15_spill] sm:$0xff] }
 0x3b3   : > { %v9611_v19 = vpop.f32.mrf.mxu1  ;;  %v4145_v18 = vadd.f32 %v9368_v1, %v13014_v4  ;;  %v5714_v16 = vadd.f32 %v9493_v47, %v4929_v29  ;;  %v13025_v1 = vld [vmem:[#allocation22_spill] sm:$0xff] }
 0x3b4   : > { %v5999_v55 = vadd.f32 %v5941_v52, %v5939_v61  ;;  %v6001_v20 = vadd.f32 %v5943_v9, %v5941_v52  ;;  %v5928_v58 = vadd.f32 %v12479_v21, %v5905_v22  ;;  %v13016_v61 = vld [vmem:[#allocation19_spill] sm:$0xff]  ;;  %v9495_v46 = vpop.f32.mrf.mxu0  ;;  %v4147_v52 = vadd.f32 %v9374_v23, %v13024_v49 }
 0x3b5   : > { %v6038_v63 = vld [vmem:[#allocation6 + $0x1] sm:$0xff]  ;;  %v5869_v24 = vpop.f32.mrf.mxu1  ;;  %v9371_v5 = vadd.f32 %v13016_v61, %v13015_v40  ;;  %v4930_v31 = vadd.f32 %v9432_v50, %v4145_v18  ;;  %v5907_v43 = vadd.f32 %v9610_v32, %v5714_v16  ;;  %v9496_v0 = vadd.f32 %v9495_v46, %v9494_v42 }
 0x3b6   : > { %v6052_v26 = vadd.f32 %v6038_v63, %v12506_v3  ;;  %6013 = vst [vmem:[#allocation6 + $0x18] sm:$0xff] %v5999_v55  ;;  %6015 = vst [vmem:[#allocation6 + $0x28] sm:$0xff] %v6001_v20  ;;  %v5944_v57 = vmax.f32 %v5928_v58, 0.0  ;;  %v5906_v14 = vadd.f32 %v5869_v24, %v5713_v56  ;;  %v13017_v3 = vld [vmem:[#allocation28_spill] sm:$0xff]  ;;  %v9497_v12 = vpop.f32.mrf.mxu0  ;;  %v13026_v56 = vld [vmem:[#allocation23_spill] sm:$0xff]  ;;  %v4932_v29 = vadd.f32 %v9438_v15, %v4147_v52 }
 0x3b7   : > { %v12536_v48 = vpop.f32.mrf.mxu1  ;;  %v9435_v38 = vadd.f32 %v13018_v30, %v13017_v3  ;;  %v4146_v25 = vadd.f32 %v9371_v5, %v13021_v27  ;;  %v5715_v44 = vadd.f32 %v9496_v0, %v4930_v31  ;;  %v9377_v55 = vadd.f32 %v13026_v56, %v13025_v1  ;;  %v13028_v50 = vld [vmem:[#allocation33_spill] sm:$0xff]  ;;  %v13031_v18 = vld [vmem:[#allocation16_spill] sm:$0xff] }
 0x3b8   : > { %6066 = vst [vmem:[#allocation5] sm:$0xff] %v6052_v26  ;;  %v6002_v62 = vadd.f32 %v5944_v57, %v5942_v13  ;;  %v5929_v53 = vadd.f32 %v12479_v21, %v5906_v14  ;;  %v5930_v13 = vadd.f32 %v12479_v21, %v5907_v43  ;;  %v9498_v33 = vpop.f32.mrf.mxu0  ;;  %v9441_v63 = vadd.f32 %v13028_v50, %v13027_v45  ;;  %v13029_v26 = vld [vmem:[#allocation24_spill] sm:$0xff]  ;;  %v13030_v14 = vld [vmem:[#allocation25_spill] sm:$0xff] }
 0x3b9   : > { %v5882_v8 = vpop.f32.mrf.mxu1  ;;  %v4931_v17 = vadd.f32 %v9435_v38, %v4146_v25  ;;  %v5908_v60 = vadd.f32 %v9611_v19, %v5715_v44  ;;  %v9499_v2 = vadd.f32 %v9498_v33, %v9497_v12  ;;  %v9380_v42 = vadd.f32 %v13030_v14, %v13029_v26  ;;  %v13032_v38 = vld [vmem:[#allocation17_spill] sm:$0xff]  ;;  %v9909_v50 = vld [vmem:[%s12981_s5 + $0x360] ss:$8 sps:$4 sm:$0xff]  }
 0x3ba   : > { %6016 = vst [vmem:[#allocation6 + $0x30] sm:$0xff] %v6002_v62  ;;  %v5945_v6 = vmax.f32 %v5929_v53, 0.0  ;;  %v5946_v11 = vmax.f32 %v5930_v13, 0.0  ;;  %v9500_v59 = vpop.f32.mrf.mxu0  ;;  %v4148_v40 = vadd.f32 %v9377_v55, %v13031_v18  ;;  %v9444_v62 = vadd.f32 %v12467_v10, %v12462_v28  ;;  %v6149_v25 = vld [vmem:[#allocation9] sm:$0xff] }
 0x3bb   : > { %v12548_v35 = vpop.f32.mrf.mxu1  ;;  %v5716_v54 = vadd.f32 %v9499_v2, %v4931_v17  ;;  %v4149_v43 = vadd.f32 %v9380_v42, %v13032_v38 }
 0x3bc   : > { %v6003_v37 = vadd.f32 %v5945_v6, %v5943_v9  ;;  %v6004_v58 = vadd.f32 %v5946_v11, %v5944_v57  ;;  %v5931_v9 = vadd.f32 %v12479_v21, %v5908_v60  ;;  %v9501_v19 = vpop.f32.mrf.mxu0  ;;  %v4933_v46 = vadd.f32 %v9441_v63, %v4148_v40  ;;  %v9919_v63 = vld [vmem:[%s12981_s5 + $0x354] ss:$8 sps:$4 sm:$0xff]   ;;  %v9922_v40 = vld [vmem:[%s12981_s5 + $0x264] ss:$8 sps:$4 sm:$0xff]  }
 0x3bd   : > { %v6042_v32 = vld [vmem:[#allocation6 + $0x21] sm:$0xff]  ;;  %v9502_v47 = vadd.f32 %v9501_v19, %v9500_v59  ;;  %v5909_v24 = vadd.f32 %v5882_v8, %v5716_v54  ;;  %v5885_v57 = vpop.f32.mrf.mxu1  ;;  %v4934_v12 = vadd.f32 %v9444_v62, %v4149_v43 }
 0x3be   : > { %v6056_v22 = vadd.f32 %v6042_v32, %v6000_v7  ;;  %6017 = vst [vmem:[#allocation6 + $0x38] sm:$0xff] %v6003_v37  ;;  %6018 = vst [vmem:[#allocation6 + $0x40] sm:$0xff] %v6004_v58  ;;  %v5947_v7 = vmax.f32 %v5931_v9, 0.0  ;;  %v9503_v4 = vpop.f32.mrf.mxu0  ;;  %v9928_v62 = vld [vmem:[%s12981_s5 + $0x254] ss:$8 sps:$4 sm:$0xff]  }
 0x3bf   : > { %v6086_v20 = vld [vmem:[#allocation5] ss:$2 sm:$0xf]  ;;  %v5932_v5 = vadd.f32 %v12479_v21, %v5909_v24  ;;  %v5717_v16 = vadd.f32 %v9502_v47, %v4932_v29 }
 0x3c0   : > { %v6087_v51 = vmul.f32 0.25, %v6086_v20  ;;  %6070 = vst [vmem:[#allocation5 + $0x20] sm:$0xff] %v6056_v22  ;;  %v6005_v61 = vadd.f32 %v5947_v7, %v5945_v6  ;;  %v9504_v53 = vpop.f32.mrf.mxu0  ;;  %v9914_v24 = vld [vmem:[%s12981_s5 + $0x270] ss:$8 sps:$4 sm:$0xff]  }
 0x3c1   : > { %v5948_v31 = vmax.f32 %v5932_v5, 0.0  ;;  %v9505_v3 = vadd.f32 %v9504_v53, %v9503_v4  ;;  %v5910_v30 = vadd.f32 %v5885_v57, %v5717_v16  ;;  %v9917_v57 = vld [vmem:[%s12981_s5 + $0x350] ss:$8 sps:$4 sm:$0xff]   ;;  %v9920_v5 = vld [vmem:[%s12981_s5 + $0x260] ss:$8 sps:$4 sm:$0xff]  }
 0x3c2   : > { %6088 = vst [vmem:[#allocation7 + $0x9] sm:$0xf] %v6087_v51  ;;  %6019 = vst [vmem:[#allocation6 + $0x48] sm:$0xff] %v6005_v61  ;;  %v9506_v0 = vpop.f32.mrf.mxu0  ;;  %v9911_v51 = vld [vmem:[%s12981_s5 + $0x364] ss:$8 sps:$4 sm:$0xff]  }
 0x3c3   : > { %v6006_v36 = vadd.f32 %v5948_v31, %v5946_v11  ;;  %v5718_v23 = vadd.f32 %v9505_v3, %v4933_v46  ;;  %v5933_v6 = vadd.f32 %v12479_v21, %v5910_v30  ;;  %v9925_v61 = vld [vmem:[%s12981_s5 + $0x344] ss:$8 sps:$4 sm:$0xff]   ;;  %v9923_v16 = vld [vmem:[%s12981_s5 + $0x340] ss:$8 sps:$4 sm:$0xff]   ;;  %v9931_v30 = vld [vmem:[%s12981_s5 + $0x334] ss:$8 sps:$4 sm:$0xff]  }
 0x3c4   : > { %v9507_v27 = vpop.f32.mrf.mxu0 }
 0x3c5   : > { %6020 = vst [vmem:[#allocation6 + $0x50] sm:$0xff] %v6006_v36  ;;  %v5911_v10 = vadd.f32 %v12536_v48, %v5718_v23  ;;  %v5949_v28 = vmax.f32 %v5933_v6, 0.0  ;;  %v9508_v13 = vadd.f32 %v9507_v27, %v9506_v0  ;;  %v9929_v6 = vld [vmem:[%s12981_s5 + $0x330] ss:$8 sps:$4 sm:$0xff]  }
 0x3c7   : > { %v6090_v34 = vld [vmem:[#allocation5 + $0x20] ss:$2 sm:$0xf]  ;;  %v5934_v17 = vadd.f32 %v12479_v21, %v5911_v10  ;;  %5965 = vst [vmem:[#allocation5 + $0x68] sm:$0xff] %v5949_v28  ;;  %v6007_v32 = vadd.f32 %v5949_v28, %v5947_v7  ;;  %v5719_v11 = vadd.f32 %v9508_v13, %v4934_v12  ;;  %v9934_v12 = vld [vmem:[%s12981_s5 + $0x244] ss:$8 sps:$4 sm:$0xff]  }
 0x3c8   : > { %v6091_v8 = vmul.f32 0.25, %v6090_v34  ;;  %v9926_v34 = vld [vmem:[%s12981_s5 + $0x250] ss:$8 sps:$4 sm:$0xff]  }
 0x3c9   : > { %v6102_v44 = vld [vmem:[#allocation7 + $0x8] sm:$0xff]  ;;  %v6046_v60 = vld [vmem:[#allocation6 + $0x41] sm:$0xff]  ;;  %v5950_v2 = vmax.f32 %v5934_v17, 0.0  ;;  %6021 = vst [vmem:[#allocation6 + $0x58] sm:$0xff] %v6007_v32  ;;  %v5912_v49 = vadd.f32 %v12548_v35, %v5719_v11 }
 0x3ca   : > { %v6126_v39 = vld [vmem:[#allocation7 + $0x9] sm:$0xff]  ;;  %6092 = vst [vmem:[#allocation7 + $0x11] sm:$0xf] %v6091_v8  ;;  %v9072_v15 = vpack.c.bf16 %v6102_v44, %v6102_v44  ;;  %v6060_v48 = vadd.f32 %v6046_v60, %v6004_v58  ;;  %v9943_v32 = vld [vmem:[%s12981_s5 + $0x314] ss:$8 sps:$4 sm:$0xff]  }
 0x3cb   : > { %v6185_v41 = vld [vmem:[#allocation7 + $0x2] sm:$0xff]  ;;  %v9076_v37 = vpack.c.bf16 %v6126_v39, %v6126_v39  ;;  %v12566_v52 = vadd.f32 %v5950_v2, %v5948_v31  ;;  %v5935_v22 = vadd.f32 %v12479_v21, %v5912_v49  ;;  %v9903_v21 = vld [vmem:[%s12981_s5 + $0x370] ss:$8 sps:$4 sm:$0xff]  }
 0x3cc   : > { %v9079_v33 = vpack.c.bf16 %v6185_v41, %v6185_v41  ;;  %6122 = vst [vmem:[#allocation9 + $0x8] sm:$0xf] %v9072_v15  ;;  %6229 = vst [vmem:[#allocation9 + $0x4] sm:$0xf] %v9072_v15  ;;  %v9937_v44 = vld [vmem:[%s12981_s5 + $0x324] ss:$8 sps:$4 sm:$0xff]  }
 0x3cd   : > { %6146 = vst [vmem:[#allocation9 + $0xc] sm:$0xf] %v9076_v37  ;;  %6074 = vst [vmem:[#allocation5 + $0x40] sm:$0xff] %v6060_v48  ;;  %v5951_v59 = vmax.f32 %v5935_v22, 0.0  ;;  %v9932_v15 = vld [vmem:[%s12981_s5 + $0x240] ss:$8 sps:$4 sm:$0xff]  }
 0x3ce   : > { %6205 = vst [vmem:[#allocation9] sm:$0xf] %v9079_v33  ;;  %6022 = vst [vmem:[#allocation6 + $0x60] sm:$0xff] %v12566_v52  ;;  %v5981_v7 = vld [vmem:[#allocation5 + $0x68] sm:$0xf] }
 0x3cf   : > { %5967 = vst [vmem:[#allocation5 + $0x78] sm:$0xf] %v5951_v59  ;;  %v9940_v33 = vld [vmem:[%s12981_s5 + $0x234] ss:$8 sps:$4 sm:$0xff]   ;;  %v9938_v49 = vld [vmem:[%s12981_s5 + $0x230] ss:$8 sps:$4 sm:$0xff]  }
 0x3d0   : > { %v9941_v22 = vld [vmem:[%s12981_s5 + $0x310] ss:$8 sps:$4 sm:$0xff]   ;;  %v9946_v59 = vld [vmem:[%s12981_s5 + $0x224] ss:$8 sps:$4 sm:$0xff]  }
 0x3d1   : > { %v6186_v1 = vld [vmem:[#allocation7 + $0xa] sm:$0xff] }
 0x3d2   : > { %v6210_v56 = vld [vmem:[#allocation7 + $0x10] sm:$0xff]  ;;  %v9080_v20 = vpack.c.bf16 %v6186_v1, %v6186_v1  ;;  %v9949_v1 = vld [vmem:[%s12981_s5 + $0x304] ss:$8 sps:$4 sm:$0xff]  }
 0x3d3   : > { %v6736_v55 = vld [vmem:[#allocation7 + $0x11] sm:$0xff]  ;;  %v12570_v9 = vpack.c.bf16 %v6210_v56, %v6210_v56 }
 0x3d4   : > { %v12572_v54 = vpack.c.bf16 %v6736_v55, %v6736_v55  ;;  %v6150_v58 = vld [vmem:[#allocation9 + $0x8] sm:$0xff]  ;;  %v6094_v19 = vld [vmem:[#allocation5 + $0x40] ss:$2 sm:$0xf] }
 0x3d5   : > { %6206 = vst [vmem:[#allocation9 + $0x8] sm:$0xf] %v9080_v20  ;;  %6230 = vst [vmem:[#allocation9 + $0xc] sm:$0xf] %v12570_v9  ;;  %v8535_v35 = vcombine.high %v6149_v25, %v6150_v58  ;;  %v8534_v29 = vcombine.low %v6149_v25, %v6150_v58  ;;  %v6095_v45 = vmul.f32 0.25, %v6094_v19  ;;  %v6233_v14 = vld [vmem:[#allocation9] sm:$0xff] }
 0x3d6   : > { %6123 = vst [vmem:[#allocation9 + $0x10] sm:$0xf] %v12570_v9  ;;  %6147 = vst [vmem:[#allocation9 + $0x14] sm:$0xf] %v12572_v54  ;;  %v5995_v47 = vld [vmem:[#allocation5 + $0x78] sm:$0xf] }
 0x3d7   : > { %6714 = vmatprep.mubr.bf16.mxu1 %v8535_v35  ;;  %6096 = vst [vmem:[#allocation7 + $0x19] sm:$0xf] %v6095_v45  ;;  %v6009_v26 = vadd.f32 %v5995_v47, %v5981_v7  ;;  %6755 = vst [vmem:[#allocation9] sm:$0xf] %v9076_v37  ;;  %v9935_v37 = vld [vmem:[%s12981_s5 + $0x320] ss:$8 sps:$4 sm:$0xff]  }
 0x3d8   : > { %6715 = vmatmul.mubr.bf16.vlgmr.msra.gmra.mxu1 %v8534_v29  ;;  %v9955_v58 = vld [vmem:[%s12981_s5 + $0x3f4] ss:$8 sps:$4 sm:$0xff]   ;;  %v9953_v29 = vld [vmem:[%s12981_s5 + $0x3f0] ss:$8 sps:$4 sm:$0xff]   ;;  %v9964_v19 = vld [vmem:[%s12981_s5 + $0x3e4] ss:$8 sps:$4 sm:$0xff]  }
 0x3d9   : > { %7325 = vmatpush1.bf16.msra.mxu1 %v9903_v21  ;;  %6023 = vst [vmem:[#allocation6 + $0x68] sm:$0xf] %v6009_v26  ;;  %v9950_v21 = vld [vmem:[%s12981_s5 + $0x210] ss:$8 sps:$4 sm:$0xff]   ;;  %v9959_v45 = vld [vmem:[%s12981_s5 + $0x200] ss:$8 sps:$4 sm:$0xff]  }
 0x3da   : > { %7326 = vmatprep.subr.bf16.mxu1 %v9911_v51  ;;  %v9961_v51 = vld [vmem:[%s12981_s5 + $0x204] ss:$8 sps:$4 sm:$0xff]   ;;  %v9969_v7 = vld [vmem:[%s12981_s5 + $0x2f4] ss:$8 sps:$4 sm:$0xff]   ;;  %v9967_v26 = vld [vmem:[%s12981_s5 + $0x2f0] ss:$8 sps:$4 sm:$0xff]  }
 0x3dc   : > { %v6234_v42 = vld [vmem:[#allocation9 + $0x8] sm:$0xff] }
 0x3dd   : > { %v9912_v4 = vld [vmem:[#allocation9 + $0x4] ss:$8 sps:$4 sm:$0xff]   ;;  %7327 = vmatpush1.bf16.msra.mxu1 %v9909_v50  ;;  %6756 = vst [vmem:[#allocation9 + $0x8] sm:$0xf] %v12572_v54  ;;  %v8498_v18 = vcombine.low %v6233_v14, %v6234_v42  ;;  %v6151_v36 = vld [vmem:[#allocation9 + $0x10] sm:$0xff] }
 0x3de   : > { %6779 = vst [vmem:[#allocation9 + $0x4] sm:$0xf] %v9080_v20  ;;  %6481 = vmatprep.mubr.bf16.mxu0 %v9912_v4  ;;  %7328 = vmatprep.subr.bf16.mxu1 %v9919_v63  ;;  %v12611_v53 = vld [vmem:[#allocation7 + $0x12] sm:$0xff]  ;;  %v6188_v39 = vld [vmem:[#allocation7 + $0x1a] sm:$0x3f] }
 0x3df   : > { %6482 = vmatmul.mubr.bf16.vlgmr.msra.gmra.mxu0 %v8498_v18  ;;  %v6104_v46 = vld [vmem:[#allocation7 + $0x18] sm:$0x3f]  ;;  %v9092_v3 = vpack.c.bf16 %v12611_v53, %v12611_v53  ;;  %v9082_v17 = vpack.c.bf16 %v6188_v39, %v6188_v39  ;;  %v9944_v20 = vld [vmem:[%s12981_s5 + $0x220] ss:$8 sps:$4 sm:$0xff]   ;;  %v9975_v42 = vld [vmem:[%s12981_s5 + $0x2e4] ss:$8 sps:$4 sm:$0xff]  }
 0x3e0   : > { %7000 = vmatpush1.bf16.msra.mxu0 %v9914_v24  ;;  %v6128_v31 = vld [vmem:[#allocation7 + $0x19] sm:$0x3f]  ;;  %v9074_v38 = vpack.c.bf16 %v6104_v46, %v6104_v46  ;;  %v6050_v25 = vld [vmem:[#allocation6 + $0x61] sm:$0xff]  ;;  %v9962_v63 = vld [vmem:[%s12981_s5 + $0x3e0] ss:$8 sps:$4 sm:$0xff]  }
 0x3e1   : > { %7329 = vmatpush1.bf16.msra.mxu1 %v9917_v57  ;;  %7001 = vmatprep.subr.bf16.mxu0 %v9922_v40  ;;  %v9078_v43 = vpack.c.bf16 %v6128_v31, %v6128_v31  ;;  %v6211_v0 = vld [vmem:[#allocation7 + $0x18] sm:$0xff]  ;;  %6780 = vst [vmem:[#allocation9 + $0xc] sm:$0xf] %v9092_v3  ;;  %6207 = vst [vmem:[#allocation9 + $0x10] sm:$0xf] %v9092_v3  ;;  %v6064_v28 = vadd.f32 %v6050_v25, %v12566_v52 }
 0x3e2   : > { %7330 = vmatprep.subr.bf16.mxu1 %v9925_v61  ;;  %v9085_v23 = vpack.c.bf16 %v6211_v0, %v6211_v0  ;;  %6124 = vst [vmem:[#allocation9 + $0x18] sm:$0x7] %v9074_v38  ;;  %v6037_v27 = vld [vmem:[#allocation6 + $0x68] sm:$0x7]  ;;  %v9972_v24 = vld [vmem:[%s12981_s5 + $0x3d4] ss:$8 sps:$4 sm:$0xff]  }
 0x3e3   : > { %6148 = vst [vmem:[#allocation9 + $0x1c] sm:$0x7] %v9078_v43  ;;  %v6051_v10 = vld [vmem:[#allocation6 + $0x69] sm:$0x7]  ;;  %6078 = vst [vmem:[#allocation5 + $0x60] sm:$0xff] %v6064_v28 }
 0x3e4   : > { %7002 = vmatpush1.bf16.msra.mxu0 %v9920_v5  ;;  %6231 = vst [vmem:[#allocation9 + $0x14] sm:$0xf] %v9085_v23  ;;  %v6065_v13 = vadd.f32 %v6051_v10, %v6037_v27  ;;  %v7085_v41 = vld [vmem:[#allocation7 + $0x19] sm:$0xff]  ;;  %v9978_v4 = vld [vmem:[%s12981_s5 + $0x3c4] ss:$8 sps:$4 sm:$0xff]  }
 0x3e5   : > { %v12627_v8 = vld [vmem:[#allocation9] sm:$0xff]  ;;  %7331 = vmatpush1.bf16.msra.mxu1 %v9923_v16  ;;  %7003 = vmatprep.subr.bf16.mxu0 %v9928_v62  ;;  %v12647_v11 = vpack.c.bf16 %v7085_v41, %v7085_v41  ;;  %v9973_v61 = vld [vmem:[%s12981_s5 + $0x2e0] ss:$8 sps:$4 sm:$0xff]   ;;  %v9990_v25 = vld [vmem:[%s12981_s5 + $0x3a4] ss:$8 sps:$4 sm:$0xff]  }
 0x3e6   : > { %7080 = vst [vmem:[#allocation9] sm:$0xf] %v12570_v9  ;;  %7104 = vst [vmem:[#allocation9 + $0x4] sm:$0xf] %v12572_v54  ;;  %7332 = vmatprep.subr.bf16.mxu1 %v9931_v30  ;;  %v9947_v9 = vld [vmem:[%s12981_s5 + $0x300] ss:$8 sps:$4 sm:$0xff]  }
 0x3e7   : > { %6079 = vst [vmem:[#allocation5 + $0x68] sm:$0x7] %v6065_v13  ;;  %v9952_v54 = vld [vmem:[%s12981_s5 + $0x214] ss:$8 sps:$4 sm:$0xff]   ;;  %v9970_v14 = vld [vmem:[%s12981_s5 + $0x3d0] ss:$8 sps:$4 sm:$0xff]  }
 0x3e8   : > { %7004 = vmatpush1.bf16.msra.mxu0 %v9926_v34  ;;  %v12649_v48 = vld [vmem:[#allocation9 + $0x8] sm:$0xff]  ;;  %v9976_v5 = vld [vmem:[%s12981_s5 + $0x3c0] ss:$8 sps:$4 sm:$0xff]  }
 0x3e9   : > { %7333 = vmatpush1.bf16.msra.mxu1 %v9929_v6  ;;  %7005 = vmatprep.subr.bf16.mxu0 %v9934_v12  ;;  %7081 = vst [vmem:[#allocation9 + $0x8] sm:$0xf] %v9085_v23  ;;  %7105 = vst [vmem:[#allocation9 + $0xc] sm:$0xf] %v12647_v11  ;;  %v9981_v31 = vld [vmem:[%s12981_s5 + $0x2d4] ss:$8 sps:$4 sm:$0xff]   ;;  %v8579_v23 = vcombine.high %v12627_v8, %v12649_v48 }
 0x3ea   : > { %7334 = vmatprep.subr.bf16.mxu1 %v9937_v44  ;;  %v6152_v60 = vld [vmem:[#allocation9 + $0x18] sm:$0x77]  ;;  %v6098_v56 = vld [vmem:[#allocation5 + $0x60] ss:$2 sm:$0xf] }
 0x3eb   : > { %6208 = vst [vmem:[#allocation9 + $0x18] sm:$0x7] %v9082_v17  ;;  %v8537_v2 = vcombine.high %v6151_v36, %v6152_v60  ;;  %v8536_v52 = vcombine.low %v6151_v36, %v6152_v60  ;;  %v6099_v55 = vmul.f32 0.25, %v6098_v56  ;;  %v9984_v3 = vld [vmem:[%s12981_s5 + $0x3b4] ss:$8 sps:$4 sm:$0xff]   ;;  %v6235_v30 = vld [vmem:[#allocation9 + $0x10] sm:$0xff] }
 0x3ec   : > { %7006 = vmatpush1.bf16.msra.mxu0 %v9932_v15  ;;  %6757 = vst [vmem:[#allocation9 + $0x10] sm:$0xf] %v12647_v11  ;;  %v9979_v34 = vld [vmem:[%s12981_s5 + $0x2d0] ss:$8 sps:$4 sm:$0xff]   ;;  %v9987_v6 = vld [vmem:[%s12981_s5 + $0x2c4] ss:$8 sps:$4 sm:$0xff]  }
 0x3ed   : > { %7335 = vmatpush1.bf16.msra.mxu1 %v9935_v37  ;;  %7007 = vmatprep.subr.bf16.mxu0 %v9940_v33  ;;  %6100 = vst [vmem:[#allocation7 + $0x21] sm:$0xf] %v6099_v55  ;;  %v9982_v36 = vld [vmem:[%s12981_s5 + $0x3b0] ss:$8 sps:$4 sm:$0xff]   ;;  %v7063_v12 = vld [vmem:[#allocation7 + $0x28] sm:$0x3f] }
 0x3ee   : > { %6724 = vmatprep.mubr.bf16.mxu1 %v8537_v2  ;;  %7336 = vmatprep.subr.bf16.mxu1 %v9943_v32  ;;  %v7087_v27 = vld [vmem:[#allocation7 + $0x29] sm:$0x3f]  ;;  %v9098_v44 = vpack.c.bf16 %v7063_v12, %v7063_v12  ;;  %v9993_v15 = vld [vmem:[%s12981_s5 + $0x2b4] ss:$8 sps:$4 sm:$0xff]   ;;  %v9991_v60 = vld [vmem:[%s12981_s5 + $0x2b0] ss:$8 sps:$4 sm:$0xff]  }
 0x3ef   : > { %6725 = vmatmul.mubr.bf16.gmra.mxu1 %v8536_v52  ;;  %v9985_v13 = vld [vmem:[%s12981_s5 + $0x2c0] ss:$8 sps:$4 sm:$0xff]   ;;  %v9102_v39 = vpack.c.bf16 %v7087_v27, %v7087_v27  ;;  %v9996_v37 = vld [vmem:[%s12981_s5 + $0x394] ss:$8 sps:$4 sm:$0xff]   ;;  %v9994_v2 = vld [vmem:[%s12981_s5 + $0x390] ss:$8 sps:$4 sm:$0xff]  }
 0x3f0   : > { %7008 = vmatpush1.bf16.msra.mxu0 %v9938_v49  ;;  %v9958_v35 = vld [vmem:[#allocation9 + $0x4] ss:$8 sps:$4 sm:$0xff]   ;;  %v9988_v41 = vld [vmem:[%s12981_s5 + $0x3a0] ss:$8 sps:$4 sm:$0xff]   ;;  %v9999_v49 = vld [vmem:[%s12981_s5 + $0x2a4] ss:$8 sps:$4 sm:$0xff]  }
 0x3f1   : > { %7337 = vmatpush1.bf16.msra.mxu1 %v9941_v22  ;;  %7009 = vmatprep.subr.bf16.mxu0 %v9946_v59  ;;  %v10002_v52 = vld [vmem:[%s12981_s5 + $0x384] ss:$8 sps:$4 sm:$0xff]   ;;  %v9997_v22 = vld [vmem:[%s12981_s5 + $0x2a0] ss:$8 sps:$4 sm:$0xff]   ;;  %v10003_v56 = vld [vmem:[%s12981_s5 + $0x290] ss:$8 sps:$4 sm:$0xff]  }
 0x3f2   : > { %7338 = vmatprep.subr.bf16.mxu1 %v9949_v1  ;;  %7356 = vmatprep.mubr.bf16.mxu1 %v9958_v35  ;;  %v10000_v59 = vld [vmem:[%s12981_s5 + $0x380] ss:$8 sps:$4 sm:$0xff]   ;;  %v10005_v1 = vld [vmem:[%s12981_s5 + $0x294] ss:$8 sps:$4 sm:$0xff]   ;;  %v10011_v55 = vld [vmem:[%s12981_s5 + $0x284] ss:$8 sps:$4 sm:$0xff]   ;;  %v8578_v35 = vcombine.low %v12627_v8, %v12649_v48 }
 0x3f3   : > { %v10020_v8 = vld [vmem:[%s12981_s5 + $0x454] ss:$8 sps:$4 sm:$0xff]  }
 0x3f4   : > { %7010 = vmatpush1.bf16.msra.mxu0 %v9944_v20  ;;  %v6212_v50 = vld [vmem:[#allocation7 + $0x20] sm:$0x3f]  ;;  %v9956_v20 = vld [vmem:[#allocation9] ss:$8 sps:$4 sm:$0xff]  }
 0x3f5   : > { %7339 = vmatpush1.bf16.msra.mxu1 %v9947_v9  ;;  %7011 = vmatprep.subr.bf16.mxu0 %v9952_v54  ;;  %v9086_v47 = vpack.c.bf16 %v6212_v50, %v6212_v50  ;;  %v6738_v57 = vld [vmem:[#allocation7 + $0x21] sm:$0x3f]  ;;  %v10018_v50 = vld [vmem:[%s12981_s5 + $0x450] ss:$8 sps:$4 sm:$0xff]  }
 0x3f6   : > { %7340 = vmatprep.subr.bf16.mxu1 %v9955_v58  ;;  %v12712_v18 = vld [vmem:[#allocation7 + $0x1a] sm:$0xff]  ;;  %v6762_v40 = vld [vmem:[#allocation7 + $0x22] sm:$0x3f]  ;;  %v9090_v16 = vpack.c.bf16 %v6738_v57, %v6738_v57 }
 0x3f7   : > { %6232 = vst [vmem:[#allocation9 + $0x1c] sm:$0x7] %v9086_v47  ;;  %v9093_v62 = vpack.c.bf16 %v12712_v18, %v12712_v18  ;;  %v9094_v46 = vpack.c.bf16 %v6762_v40, %v6762_v40  ;;  %v7062_v10 = vld [vmem:[#allocation7 + $0x20] sm:$0xff]  ;;  %v10014_v58 = vld [vmem:[%s12981_s5 + $0x474] ss:$8 sps:$4 sm:$0xff]  }
 0x3f8   : > { %7012 = vmatpush1.bf16.msra.mxu0 %v9950_v21  ;;  %v7086_v28 = vld [vmem:[#allocation7 + $0x21] sm:$0xff]  ;;  %v9097_v33 = vpack.c.bf16 %v7062_v10, %v7062_v10  ;;  %v10012_v21 = vld [vmem:[%s12981_s5 + $0x470] ss:$8 sps:$4 sm:$0xff]  }
 0x3f9   : > { %7341 = vmatpush2.bf16.msra.mxu1 %v9953_v29  ;;  %7013 = vmatprep.subr.bf16.mxu0 %v9961_v51  ;;  %v9101_v17 = vpack.c.bf16 %v7086_v28, %v7086_v28  ;;  %v10009_v54 = vld [vmem:[%s12981_s5 + $0x280] ss:$8 sps:$4 sm:$0xff]   ;;  %v10030_v57 = vld [vmem:[%s12981_s5 + $0x410] ss:$8 sps:$4 sm:$0xff]   ;;  %v10035_v40 = vld [vmem:[%s12981_s5 + $0x404] ss:$8 sps:$4 sm:$0xff]  }
 0x3fa   : > { %7342 = vmatprep.subr.bf16.mxu1 %v9964_v19  ;;  %v10017_v19 = vld [vmem:[%s12981_s5 + $0x464] ss:$8 sps:$4 sm:$0xff]   ;;  %v10021_v47 = vld [vmem:[%s12981_s5 + $0x440] ss:$8 sps:$4 sm:$0xff]  }
 0x3fc   : > { %7014 = vmatpush1.bf16.msra.mxu0 %v9959_v45  ;;  %v10015_v45 = vld [vmem:[%s12981_s5 + $0x460] ss:$8 sps:$4 sm:$0xff]  }
 0x3fd   : > { %7343 = vmatpush2.bf16.msra.mxu1 %v9962_v63  ;;  %7015 = vmatprep.subr.bf16.mxu0 %v9969_v7  ;;  %v10023_v63 = vld [vmem:[%s12981_s5 + $0x444] ss:$8 sps:$4 sm:$0xff]   ;;  %v10103_v7 = vmov 0  }
 0x3fe   : > { %7344 = vmatprep.subr.bf16.mxu1 %v9972_v24  ;;  %v6236_v38 = vld [vmem:[#allocation9 + $0x18] sm:$0x77]  ;;  %v10026_v24 = vld [vmem:[%s12981_s5 + $0x434] ss:$8 sps:$4 sm:$0xff]  }
 0x3ff   : > { %v9965_v43 = vld [vmem:[#allocation9 + $0x14] ss:$8 sps:$4 sm:$0x7f]   ;;  %6758 = vst [vmem:[#allocation9 + $0x18] sm:$0x7] %v9090_v16  ;;  %v8500_v0 = vcombine.low %v6235_v30, %v6236_v38 }
 0x400   : > { %7016 = vmatpush2.bf16.msra.mxu0 %v9967_v26  ;;  %6781 = vst [vmem:[#allocation9 + $0x14] sm:$0xf] %v9093_v62  ;;  %6782 = vst [vmem:[#allocation9 + $0x1c] sm:$0x7] %v9094_v46  ;;  %6491 = vmatprep.mubr.bf16.mxu0 %v9965_v43  ;;  %v10024_v26 = vld [vmem:[%s12981_s5 + $0x430] ss:$8 sps:$4 sm:$0xff]  }
 0x401   : > { %7345 = vmatpush2.bf16.msra.mxu1 %v9970_v14  ;;  %7017 = vmatprep.subr.bf16.mxu0 %v9975_v42  ;;  %v10029_v14 = vld [vmem:[%s12981_s5 + $0x424] ss:$8 sps:$4 sm:$0xff]   ;;  %v10027_v42 = vld [vmem:[%s12981_s5 + $0x420] ss:$8 sps:$4 sm:$0xff]  }
 0x402   : > { %7346 = vmatprep.subr.bf16.mxu1 %v9978_v4  ;;  %6492 = vmatmul.mubr.bf16.gmra.mxu0 %v8500_v0  ;;  %v10032_v4 = vld [vmem:[%s12981_s5 + $0x414] ss:$8 sps:$4 sm:$0xff]   ;;  %v7387_v16 = vld [vmem:[#allocation7 + $0x22] sm:$0xff]  ;;  %v7388_v62 = vld [vmem:[#allocation7 + $0x2a] sm:$0x3f] }
 0x403   : > { %7031 = vmatprep.mubr.bf16.mxu0 %v8579_v23  ;;  %v7390_v46 = vpack.c.bf16 %v7388_v62, %v7387_v16 }
 0x404   : > { %7018 = vmatpush2.bf16.msra.mxu0 %v9973_v61  ;;  %v10033_v61 = vld [vmem:[%s12981_s5 + $0x400] ss:$8 sps:$4 sm:$0xff]  }
 0x405   : > { %7347 = vmatpush2.bf16.msra.mxu1 %v9976_v5  ;;  %7019 = vmatprep.subr.bf16.mxu0 %v9981_v31  ;;  %v7389_v5 = vpack.c.bf16 %v12712_v18, %v12611_v53 }
 0x406   : > { %7348 = vmatprep.subr.bf16.mxu1 %v9984_v3 }
 0x407   : > { %v6785_v32 = vld [vmem:[#allocation9 + $0x10] sm:$0xff]  ;;  %v6786_v11 = vld [vmem:[#allocation9 + $0x18] sm:$0x77] }
 0x408   : > { %7020 = vmatpush2.bf16.msra.mxu0 %v9979_v34  ;;  %7082 = vst [vmem:[#allocation9 + $0x10] sm:$0xf] %v9097_v33  ;;  %7083 = vst [vmem:[#allocation9 + $0x18] sm:$0x7] %v9098_v44  ;;  %v8581_v51 = vcombine.high %v6785_v32, %v6786_v11  ;;  %v8580_v48 = vcombine.low %v6785_v32, %v6786_v11 }
 0x409   : > { %7349 = vmatpush2.bf16.msra.mxu1 %v9982_v36  ;;  %7021 = vmatprep.subr.bf16.mxu0 %v9987_v6  ;;  %7106 = vst [vmem:[#allocation9 + $0x14] sm:$0xf] %v9101_v17  ;;  %7107 = vst [vmem:[#allocation9 + $0x1c] sm:$0x7] %v9102_v39 }
 0x40a   : > { %7350 = vmatprep.subr.bf16.mxu1 %v9990_v25 }
 0x40c   : > { %7022 = vmatpush2.bf16.msra.mxu0 %v9985_v13 }
 0x40d   : > { %7351 = vmatpush2.bf16.msra.mxu1 %v9988_v41  ;;  %7023 = vmatprep.subr.bf16.mxu0 %v9993_v15 }
 0x40e   : > { %7352 = vmatprep.subr.bf16.mxu1 %v9996_v37  ;;  %v7550_v37 = vlaneseq }
 0x40f   : > { %v10006_v29 = vld [vmem:[#allocation9 + $0x10] ss:$8 sps:$4 sm:$0x7f]  }
 0x410   : > { %7024 = vmatpush2.bf16.msra.mxu0 %v9991_v60  ;;  %v10008_v9 = vld [vmem:[#allocation9 + $0x14] ss:$8 sps:$4 sm:$0x7f]   ;;  %v7551_v32 = vshrl.u32 %v7550_v37, 7 }
 0x411   : > { %7353 = vmatpush2.bf16.msra.mxu1 %v9994_v2  ;;  %7025 = vmatprep.subr.bf16.mxu0 %v9999_v49 }
 0x412   : > { %7354 = vmatprep.subr.bf16.mxu1 %v10002_v52 }
 0x414   : > { %7026 = vmatpush2.bf16.msra.mxu0 %v9997_v22  ;;  %v7552_v22 = vsub.s32 0, %v7551_v32 }
 0x415   : > { %7355 = vmatpush2.bf16.msra.mxu1 %v10000_v59  ;;  %7027 = vmatprep.subr.bf16.mxu0 %v10005_v1  ;;  %v7548_v1 = vld [vmem:[%s12982_s6] sm:$0x3] }
 0x418   : > { %7357 = vmatmul.mubr.bf16.vlgmr.msra.gmra.mxu1 %v9956_v20  ;;  %7028 = vmatpush2.bf16.msra.mxu0 %v10003_v56  ;;  %v7556_v20 = vsub.s32 1, %v7551_v32 }
 0x419   : > { %7366 = vmatprep.mubr.bf16.mxu1 %v10008_v9  ;;  %7029 = vmatprep.subr.bf16.mxu0 %v10011_v55 }
 0x41c   : > { %7030 = vmatpush2.bf16.msra.mxu0 %v10009_v54 }
 0x41d   : > { %7487 = vmatprep.subr.bf16.mxu0 %v10014_v58 }
 0x41f   : > { %7032 = vmatmul.mubr.bf16.vlgmr.msra.gmra.mxu0 %v8578_v35 }
 0x420   : > { %7367 = vmatmul.mubr.bf16.gmra.mxu1 %v10006_v29  ;;  %7041 = vmatprep.mubr.bf16.mxu0 %v8581_v51 }
 0x421   : > { %7488 = vmatpush1.bf16.msra.mxu0 %v10012_v21  ;;  %v7553_v21 = vrot.slane %v7548_v1, %v7552_v22 }
 0x422   : > { %7489 = vmatprep.subr.bf16.mxu0 %v10017_v19 }
 0x425   : > { %7490 = vmatpush1.bf16.msra.mxu0 %v10015_v45 }
 0x426   : > { %7491 = vmatprep.subr.bf16.mxu0 %v10020_v8 }
 0x427   : > { %7042 = vmatmul.mubr.bf16.gmra.mxu0 %v8580_v48 }
 0x428   : > { %7519 = vmatprep.mubr.bf16.mxu0 %v10103_v7 }
 0x429   : > { %7492 = vmatpush1.bf16.msra.mxu0 %v10018_v50  ;;  %v7557_v50 = vrot.slane %v7548_v1, %v7556_v20 }
 0x42a   : > { %7493 = vmatprep.subr.bf16.mxu0 %v10023_v63 }
 0x42d   : > { %7494 = vmatpush1.bf16.msra.mxu0 %v10021_v47 }
 0x42e   : > { %7495 = vmatprep.subr.bf16.mxu0 %v10026_v24 }
 0x431   : > { %7496 = vmatpush1.bf16.msra.mxu0 %v10024_v26 }
 0x432   : > { %7497 = vmatprep.subr.bf16.mxu0 %v10029_v14 }
 0x435   : > { %7498 = vmatpush1.bf16.msra.mxu0 %v10027_v42 }
 0x436   : > { %7499 = vmatprep.subr.bf16.mxu0 %v10032_v4 }
 0x439   : > { %7500 = vmatpush1.bf16.msra.mxu0 %v10030_v57 }
 0x43a   : > { %7501 = vmatprep.subr.bf16.mxu0 %v10035_v40 }
 0x43d   : > { %7502 = vmatpush1.bf16.msra.mxu0 %v10033_v61 }
 0x440   : > { %7520 = vmatmul.mubr.bf16.vlgmr.msra.gmra.mxu0 %v7389_v5 }
 0x441   : > { %7529 = vmatprep.mubr.bf16.mxu0 %v10103_v7 }
 0x448   : > { %7530 = vmatmul.mubr.bf16.gmra.mxu0 %v7390_v46 }
 0x449   : > { %7670 = vmatprep.mubr.bf16.mxu0 %v10103_v7 }
 0x498   : > { %v6716_v43 = vpop.f32.mrf.mxu1 }
 0x49a   : > { %v6718_v34 = vpop.f32.mrf.mxu1 }
 0x49c   : > { %v6720_v23 = vpop.f32.mrf.mxu1 }
 0x49e   : > { %v6722_v12 = vpop.f32.mrf.mxu1 }
 0x49f   : > { %v6483_v31 = vpop.f32.mrf.mxu0 }
 0x4a0   : > { %v6717_v60 = vadd.f32 %v6716_v43, %v6483_v31 }
 0x4a1   : > { %v6485_v3 = vpop.f32.mrf.mxu0 }
 0x4a2   : > { %v6719_v49 = vadd.f32 %v6718_v34, %v6485_v3 }
 0x4a3   : > { %v6487_v30 = vpop.f32.mrf.mxu0 }
 0x4a4   : > { %v6721_v56 = vadd.f32 %v6720_v23, %v6487_v30 }
 0x4a5   : > { %v6489_v38 = vpop.f32.mrf.mxu0 }
 0x4a6   : > { %v6723_v54 = vadd.f32 %v6722_v12, %v6489_v38 }
 0x4af   : > { %v6726_v53 = vpop.f32.mrf.mxu1 }
 0x4b1   : > { %v6728_v25 = vpop.f32.mrf.mxu1 }
 0x4b3   : > { %v6730_v28 = vpop.f32.mrf.mxu1 }
 0x4b5   : > { %v6732_v44 = vpop.f32.mrf.mxu1 }
 0x4c2   : > { %v6493_v0 = vpop.f32.mrf.mxu0 }
 0x4c3   : > { %v6727_v29 = vadd.f32 %v6726_v53, %v6493_v0 }
 0x4c4   : > { %v6495_v36 = vpop.f32.mrf.mxu0 }
 0x4c5   : > { %v6729_v63 = vadd.f32 %v6728_v25, %v6495_v36 }
 0x4c6   : > { %v6497_v6 = vpop.f32.mrf.mxu0 }
 0x4c7   : > { %v6731_v42 = vadd.f32 %v6730_v28, %v6497_v6 }
 0x4c8   : > { %v6499_v27 = vpop.f32.mrf.mxu0 }
 0x4c9   : > { %v6733_v62 = vadd.f32 %v6732_v44, %v6499_v27 }
 0x4d8   : > { %v7358_v41 = vpop.f32.mrf.mxu1 }
 0x4da   : > { %v7360_v33 = vpop.f32.mrf.mxu1 }
 0x4dc   : > { %v7362_v11 = vpop.f32.mrf.mxu1 }
 0x4de   : > { %v7364_v59 = vpop.f32.mrf.mxu1 }
 0x4df   : > { %v7033_v18 = vpop.f32.mrf.mxu0 }
 0x4e0   : > { %v7052_v52 = vadd.f32 %v7033_v18, %v6717_v60  ;;  %v7368_v51 = vpop.f32.mrf.mxu1 }
 0x4e1   : > { %v7035_v10 = vpop.f32.mrf.mxu0 }
 0x4e2   : > { %v7053_v55 = vadd.f32 %v7035_v10, %v6719_v49  ;;  %v7377_v35 = vadd.f32 %v7358_v41, %v7052_v52  ;;  %v7370_v4 = vpop.f32.mrf.mxu1 }
 0x4e3   : > { %v7037_v13 = vpop.f32.mrf.mxu0 }
 0x4e4   : > { %v7054_v58 = vadd.f32 %v7037_v13, %v6721_v56  ;;  %v7378_v48 = vadd.f32 %v7360_v33, %v7053_v55  ;;  %v7372_v34 = vpop.f32.mrf.mxu1 }
 0x4e5   : > { %v7039_v39 = vpop.f32.mrf.mxu0 }
 0x4e6   : > { %v7055_v45 = vadd.f32 %v7039_v39, %v6723_v54  ;;  %v7379_v14 = vadd.f32 %v7362_v11, %v7054_v58  ;;  %v7374_v27 = vpop.f32.mrf.mxu1  ;;  %v7710_v58 = vld [vmem:[%s12984_s8 + $0xf8] sm:$0xff] }
 0x4e7   : > { %v7043_v15 = vpop.f32.mrf.mxu0 }
 0x4e8   : > { %v7056_v7 = vadd.f32 %v7043_v15, %v6727_v29  ;;  %v7380_v16 = vadd.f32 %v7364_v59, %v7055_v45  ;;  %v7709_v29 = vld [vmem:[%s12984_s8 + $0xf0] sm:$0xff]  ;;  %v7692_v45 = vld [vmem:[%s12984_s8 + $0x68] sm:$0xff] }
 0x4e9   : > { %v7045_v17 = vpop.f32.mrf.mxu0 }
 0x4ea   : > { %v7057_v57 = vadd.f32 %v7045_v17, %v6729_v63  ;;  %v7381_v3 = vadd.f32 %v7368_v51, %v7056_v7  ;;  %v7693_v51 = vld [vmem:[%s12984_s8 + $0x70] sm:$0xff]  ;;  %v7690_v63 = vld [vmem:[%s12984_s8 + $0x58] sm:$0xff] }
 0x4eb   : > { %v7047_v2 = vpop.f32.mrf.mxu0  ;;  %v7705_v7 = vld [vmem:[%s12984_s8 + $0xd0] sm:$0xff] }
 0x4ec   : > { %v7058_v46 = vadd.f32 %v7047_v2, %v6731_v42  ;;  %v7382_v23 = vadd.f32 %v7370_v4, %v7057_v57  ;;  %v7687_v42 = vld [vmem:[%s12984_s8 + $0x40] sm:$0xff]  ;;  %v7702_v4 = vld [vmem:[%s12984_s8 + $0xb8] sm:$0xff] }
 0x4ed   : > { %v7049_v9 = vpop.f32.mrf.mxu0  ;;  %v7686_v57 = vld [vmem:[%s12984_s8 + $0x38] sm:$0xff] }
 0x4ee   : > { %v7059_v12 = vadd.f32 %v7049_v9, %v6733_v62  ;;  %v7383_v25 = vadd.f32 %v7372_v34, %v7058_v46  ;;  %v7699_v62 = vld [vmem:[%s12984_s8 + $0xa0] sm:$0xff] }
 0x4ef   : > { %v7683_v46 = vld [vmem:[%s12984_s8 + $0x20] sm:$0xff] }
 0x4f0   : > { %v7384_v37 = vadd.f32 %v7374_v27, %v7059_v12  ;;  %v7695_v34 = vld [vmem:[%s12984_s8 + $0x80] sm:$0xff] }
 0x500   : > { %v7521_v19 = vpop.f32.mrf.mxu0 }
 0x501   : > { %v7540_v8 = vadd.f32 %v7521_v19, %v7377_v35  ;;  %v7604_v35 = vld [vmem:[%s12983_s7] sm:$0x1]  ;;  %v7708_v19 = vld [vmem:[%s12984_s8 + $0xe8] sm:$0xff] }
 0x502   : > { %v7523_v47 = vpop.f32.mrf.mxu0 }
 0x503   : > { %v7560_v24 = vadd.f32 %v7553_v21, %v7540_v8  ;;  %v7541_v26 = vadd.f32 %v7523_v47, %v7378_v48  ;;  %v7707_v8 = vld [vmem:[%s12984_s8 + $0xe0] sm:$0xff]  ;;  %v7689_v47 = vld [vmem:[%s12984_s8 + $0x50] sm:$0xff] }
 0x504   : > { %v7525_v40 = vpop.f32.mrf.mxu0  ;;  %v7691_v48 = vld [vmem:[%s12984_s8 + $0x60] sm:$0xff] }
 0x505   : > { %v7561_v61 = vadd.f32 %v7557_v50, %v7541_v26  ;;  %v7542_v5 = vadd.f32 %v7525_v40, %v7379_v14  ;;  %v7568_v30 = vmax.f32 %v7560_v24, 0.0  ;;  %v7704_v24 = vld [vmem:[%s12984_s8 + $0xc8] sm:$0xff]  ;;  %v7703_v14 = vld [vmem:[%s12984_s8 + $0xc0] sm:$0xff]  ;;  %v7701_v40 = vld [vmem:[%s12984_s8 + $0xb0] sm:$0xff] }
 0x506   : > { %v7527_v31 = vpop.f32.mrf.mxu0  ;;  %v7688_v26 = vld [vmem:[%s12984_s8 + $0x48] sm:$0xff] }
 0x507   : > { %v7569_v38 = vmax.f32 %v7561_v61, 0.0  ;;  %v7562_v43 = vadd.f32 %v7553_v21, %v7542_v5  ;;  %v7543_v0 = vadd.f32 %v7527_v31, %v7380_v16  ;;  %v7685_v61 = vld [vmem:[%s12984_s8 + $0x30] sm:$0xff]  ;;  %v7700_v5 = vld [vmem:[%s12984_s8 + $0xa8] sm:$0xff]  ;;  %v7698_v31 = vld [vmem:[%s12984_s8 + $0x98] sm:$0xff] }
 0x508   : > { %v7531_v36 = vpop.f32.mrf.mxu0  ;;  %v7684_v16 = vld [vmem:[%s12984_s8 + $0x28] sm:$0xff] }
 0x509   : > { %v7563_v53 = vadd.f32 %v7557_v50, %v7543_v0  ;;  %v7544_v6 = vadd.f32 %v7531_v36, %v7381_v3  ;;  %v7570_v10 = vmax.f32 %v7562_v43, 0.0  ;;  %v7682_v3 = vld [vmem:[%s12984_s8 + $0x18] sm:$0xff]  ;;  %v7696_v43 = vld [vmem:[%s12984_s8 + $0x88] sm:$0xff]  ;;  %v7679_v36 = vld [vmem:[%s12984_s8] sm:$0xff] }
 0x50a   : > { %v7533_v18 = vpop.f32.mrf.mxu0  ;;  %v7680_v0 = vld [vmem:[%s12984_s8 + $0x8] sm:$0xff] }
 0x50b   : > { %v7571_v28 = vmax.f32 %v7563_v53, 0.0  ;;  %v7564_v13 = vadd.f32 %v7553_v21, %v7544_v6  ;;  %v7545_v39 = vadd.f32 %v7533_v18, %v7382_v23  ;;  %v10038_v54 = vpack.c.bf16 %v7570_v10, %v7568_v30  ;;  %v7697_v30 = vld [vmem:[%s12984_s8 + $0x90] sm:$0xff] }
 0x50c   : > { %v7535_v44 = vpop.f32.mrf.mxu0 }
 0x50d   : > { %v7565_v41 = vadd.f32 %v7557_v50, %v7545_v39  ;;  %v7546_v15 = vadd.f32 %v7535_v44, %v7383_v25  ;;  %v7572_v17 = vmax.f32 %v7564_v13, 0.0  ;;  %v10037_v9 = vpack.c.bf16 %v7571_v28, %v7569_v38  ;;  %v7681_v38 = vld [vmem:[%s12984_s8 + $0x10] sm:$0xff]  ;;  %v7711_v25 = vld [vmem:[%s12985_s9] sm:$0x1] }
 0x50e   : > { %v7537_v33 = vpop.f32.mrf.mxu0 }
 0x50f   : > { %v7573_v32 = vmax.f32 %v7565_v41, 0.0  ;;  %v7566_v11 = vadd.f32 %v7553_v21, %v7546_v15  ;;  %v7547_v60 = vadd.f32 %v7537_v33, %v7384_v37  ;;  %v7694_v21 = vld [vmem:[%s12984_s8 + $0x78] sm:$0xff] }
 0x511   : > { %v9105_v2 = vpack.c.bf16 %v7573_v32, %v7572_v17  ;;  %v7567_v49 = vadd.f32 %v7557_v50, %v7547_v60  ;;  %v7574_v52 = vmax.f32 %v7566_v11, 0.0  ;;  %v7706_v50 = vld [vmem:[%s12984_s8 + $0xd8] sm:$0xff] }
 0x513   : > { %v7575_v22 = vmax.f32 %v7567_v49, 0.0 }
 0x515   : > { %v9106_v59 = vpack.c.bf16 %v7575_v22, %v7574_v52 }
 0x517   : > { %7603 = vst [vmem:[#allocation8 + $0x8] sm:$0x77] %v9106_v59 }
 0x51e   : > { %v7608_v1 = vld [vmem:[#allocation8 + $0x8] sm:$0x77] }
 0x51f   : > { %v8681_v56 = vcombine.high %v9105_v2, %v7608_v1  ;;  %v8680_v55 = vcombine.low %v9105_v2, %v7608_v1 }
 0x521   : > { %8682 = vmatprep.subr.msk.bf16.mxu0 %vm7631_vm7, %v8681_v56  ;;  %v7633_v20 = vsel %vm7631_vm7, %v8680_v55, 0 }
 0x522   : > { %7651 = vmatpush1.bf16.msra.mxu0 %v7633_v20 }
 0x523   : > { %7652 = vmatprep.subr.bf16.mxu0 %v10037_v9 }
 0x526   : > { %7653 = vmatpush1.bf16.msra.mxu0 %v10038_v54 }
 0x527   : > { %9521 = vmatprep.subr.mxu0 %v7710_v58 }
 0x529   : > { %8683 = vmatmul.mubr.msk.bf16.vlgmr.msra.gmra.mxu0 %vm7627_vm8, %v7604_v35 }
 0x52a   : > { %9522 = vmatpush3.msra.mxu0 %v7694_v21 }
 0x52b   : > { %9523 = vmatprep.subr.mxu0 %v7709_v29 }
 0x52c   : > { %9524 = vmatpush3.msra.mxu0 %v7693_v51 }
 0x52d   : > { %9525 = vmatprep.subr.mxu0 %v7708_v19 }
 0x52e   : > { %9526 = vmatpush3.msra.mxu0 %v7692_v45 }
 0x52f   : > { %9527 = vmatprep.subr.mxu0 %v7707_v8 }
 0x530   : > { %9528 = vmatpush3.msra.mxu0 %v7691_v48 }
 0x531   : > { %9529 = vmatprep.subr.mxu0 %v7706_v50 }
 0x532   : > { %9530 = vmatpush3.msra.mxu0 %v7690_v63 }
 0x533   : > { %9531 = vmatprep.subr.mxu0 %v7705_v7 }
 0x534   : > { %9532 = vmatpush3.msra.mxu0 %v7689_v47 }
 0x535   : > { %9533 = vmatprep.subr.mxu0 %v7704_v24 }
 0x536   : > { %9534 = vmatpush3.msra.mxu0 %v7688_v26 }
 0x537   : > { %9535 = vmatprep.subr.mxu0 %v7703_v14 }
 0x538   : > { %9536 = vmatpush3.msra.mxu0 %v7687_v42 }
 0x539   : > { %9537 = vmatprep.subr.mxu0 %v7702_v4 }
 0x53a   : > { %9538 = vmatpush3.msra.mxu0 %v7686_v57 }
 0x53b   : > { %9539 = vmatprep.subr.mxu0 %v7701_v40 }
 0x53c   : > { %9540 = vmatpush3.msra.mxu0 %v7685_v61 }
 0x53d   : > { %9541 = vmatprep.subr.mxu0 %v7700_v5 }
 0x53e   : > { %9542 = vmatpush3.msra.mxu0 %v7684_v16 }
 0x53f   : > { %9543 = vmatprep.subr.mxu0 %v7699_v62 }
 0x540   : > { %9544 = vmatpush3.msra.mxu0 %v7683_v46 }
 0x541   : > { %9545 = vmatprep.subr.mxu0 %v7698_v31 }
 0x542   : > { %9546 = vmatpush3.msra.mxu0 %v7682_v3 }
 0x543   : > { %9547 = vmatprep.subr.mxu0 %v7697_v30 }
 0x544   : > { %9548 = vmatpush3.msra.mxu0 %v7681_v38 }
 0x545   : > { %9549 = vmatprep.subr.mxu0 %v7696_v43 }
 0x546   : > { %9550 = vmatpush3.msra.mxu0 %v7680_v0 }
 0x547   : > { %9551 = vmatprep.subr.mxu0 %v7695_v34 }
 0x548   : > { %9552 = vmatpush3.msra.mxu0 %v7679_v36 }
 0x5e9   : > { %v7672_v23 = vpop.f32.mrf.mxu0 }
 0x5eb   : > { %v7674_v12 = vpop.f32.mrf.mxu0 }
 0x5ec   : > { %7776 = vmatprep.mubr.f32.mxu0 %v7674_v12 }
 0x5ed   : > { %v7676_v53 = vpop.f32.mrf.mxu0  ;;  %7777 = vmatmul.mubr.f32.vlgmr.msra.gmra.mxu0 %v7672_v23 }
 0x5ef   : > { %v7677_v6 = vpop.f32.mrf.mxu0 }
 0x6ad   : > { %v9553_v18 = vpop.f32.mrf.mxu0 }
 0x6af   : > { %v9554_v10 = vpop.f32.mrf.mxu0 }
 0x6b0   : > { %v9555_v28 = vadd.f32 %v9554_v10, %v9553_v18 }
 0x6b2   : > { %v7779_v13 = vadd.f32 %v9555_v28, %v7711_v25 }
 0x6b4   : > { %7783 = vst.msk [vmem:[%s352_s21] sm:$0x1] %vm7782_vm9, %v7779_v13 }
 0x6b5   : > { %10052 = shalt.err (!%p10049_p3)
}
 0x6b6   : > { %s10053_s0 = scalar_lea.hbm %s7795_s28, 16  ;;  %s10057_s21 = scalar_lea.hbm %s12986_s10, 32 }
 0x6b7   : > { %p10054_p4 = scmp.ne.s32.totalorder %s7795_s28, %s10053_s0  ;;  %p10058_p9 = scmp.lt.s32.totalorder %s7795_s28, %s12986_s10 }
 0x6b8   : > { %p10059_p10 = scmp.lt.s32.totalorder %s10057_s21, %s10053_s0 }
 0x6b9   : > { %p10055_p7 = pnand %p10054_p4, %p10198_p5 }
 0x6ba   : > { %p10060_p11 = por %p10059_p10, %p10058_p9 }
 0x6bb   : > { %p10056_p8 = pneg %p10055_p7 }
 0x6bd   : > { %p10061_p12 = pnand %p10060_p11, %p10056_p8 }
 0x6bf   : > { %10064 = shalt.err (!%p10061_p12)
}
 0x6c0   : > { %9620 = dma.vmem_to_hbm [thread:$0]  (%p10198_p5), %s7798_s25, 16, %s7795_s28, %s7785_s29  }
 0x6c1 PF: > { %p9626_p13 = scmp.ge.s32.totalorder %s10099_s16, 2  ;;  %s7809_s20 = sand.u32 1, %s10087_s13  }
 0x6c2   : > { %s7810_s11 = scalar_lea.sflag [#allocation11], %s7809_s20 }
 0x6c3   : > { %p9623_p0 = pnand %p9626_p13, %p10202_p6 }
 0x6c5   : > { %p9624_p1 = pneg %p9623_p0 }
 0x6c7   : > { %10082 = dma.done.wait (%p9624_p1), %s7810_s11, 16  }
 0x6c8   : > { %10084 = vsyncadd (%p9624_p1), %s7810_s11, 4294967280  ;;  %p20_p2 = scmp.ge.s32.totalorder %s10185_s19, 4   ;;  %s13033_s13 = smov %s10091_s14 }
 0x6c9   : > { %s13034_s14 = smov %s10095_s15  ;;  %s13035_s15 = smov %s10196_s22 }
 0x6ca   : > { %s13036_s16 = smov %s10185_s19  ;;  %22 = sbr.rel (!%p20_p2) target bundleno = 5 (0x5), region = 105 }
 0x6cf   :  { %7814 = vsyncpa [#allocation11], 1 }
 0x6d0   :  { %7816 = vsyncpa [#allocation11 + $0x1], 1 }

</bundles_post_ra>
